<compile_context>
chip_gen: v7x
topology: tpu7x:2x2x1
jax: 0.10.0
libtpu: 0.0.40
codegen_flags: <defaults>
</compile_context>

<pallas_src>
import numpy as np

import jax
import jax.numpy as jnp
from jax import lax
from jax.experimental import pallas as pl
from jax.experimental.pallas import tpu as pltpu


def _cnn_median_kernel(x_ref, w_ref, pool_ref, cmp_ref, out_ref):
    """One grid step == `bb` batch elements (all of their breaths at once).

    x_ref    : (C, LX)      raw input, channel-major; breath m occupies lanes
                            [m*Tp, m*Tp+224) (zeros to m*Tp+Tp, 128-lane tail pad).
    w_ref    : (F, C*K+1)   conv weight with (k, c) folded; last column = bias.
    pool_ref : (N, N*Tp)    shared per-batch-element mean-pool matrix
                            (1/T on the T=218 valid conv lanes of each breath).
    cmp_ref  : (M, M)       median comparison codes (0: other group,
                            1: same group & j >= i, 2: same group & j < i).
    out_ref  : (bb, F)      median-pooled features for the bb batch elements.
    """
    C = x_ref.shape[0]
    Fo, CK1 = w_ref.shape
    K = (CK1 - 1) // C
    N, NTp = pool_ref.shape
    M = cmp_ref.shape[0]
    bb = M // N
    MTp = bb * NTp
    kmed = (N - 1) // 2              # torch.median -> lower of the two middle values

    # ---- Conv1d('valid') + bias as ONE MXU matmul over the folded (k, c) axis.
    # The K taps are built in-kernel from static lane slices of the raw input
    # (no im2col blow-up in HBM); the trailing all-ones row carries the bias.
    x = x_ref[...]
    taps = [x[:, k:k + MTp] for k in range(K)]                    # K x (C, MTp)
    taps.append(jnp.ones((1, MTp), x.dtype))                      # bias row
    patches = jnp.concatenate(taps, axis=0)                       # (C*K+1, MTp)
    conv = lax.dot_general(w_ref[...], patches, (((1,), (0,)), ((), ())),
                           preferred_element_type=jnp.float32)    # (F, MTp)
    conv = jnp.maximum(conv, 0.0)                                 # ReLU
    # Lanes t in [218, Tp) of every breath hold garbage; the pool matrix has
    # zero weight there, so they never reach the features.

    # ---- Per-breath global mean pool: shared (N, N*Tp) matrix applied per
    # batch element to 128-aligned lane slices (transposed-rhs contraction;
    # F lands on lanes, breaths on sublanes — exactly what the median needs).
    feats = []
    for e in range(bb):                                           # static, bb <= ~8
        seg = conv[:, e * NTp:(e + 1) * NTp]                      # (F, N*Tp), aligned
        feats.append(
            lax.dot_general(pool_ref[...], seg, (((1,), (1,)), ((), ())),
                            preferred_element_type=jnp.float32))  # (N, F)
    feat = jnp.concatenate(feats, axis=0) if bb > 1 else feats[0]  # (M, F)

    # ---- torch.median(dim=1)[0]: lower-middle order statistic via a single
    # vectorized pairwise rank count (ties broken by index, like torch).
    code = cmp_ref[...][:, :, None]                               # (M, M, 1)
    a = feat[:, None, :]                                          # candidate row i
    b = feat[None, :, :]                                          # competitor row j
    win = ((b < a) & (code >= 1)) | ((b == a) & (code == 2))      # (M, M, F)
    rank = jnp.sum(win.astype(jnp.int32), axis=1)                 # (M, F), in-group rank
    sel = jnp.where(rank == kmed, feat, 0.0)                      # one hit per group/lane
    out_ref[...] = jnp.sum(sel.reshape(bb, N, Fo), axis=1)        # (bb, F)


def _tensorcores_per_chip():
    """TensorCores sharing one Pallas program (v7x / v4 megacore -> 2)."""
    try:
        kind = jax.devices()[0].device_kind.lower()
    except Exception:
        return 1
    return 2 if ("v7" in kind or "v4" in kind) else 1


def _pick_batch_block(B, N, Tp, C, K, Fo, CKp, n_cores, vmem_budget=8 << 20):
    """Largest bb dividing B with grid a multiple of n_cores and VMEM in budget."""
    def est_bytes(bb):
        lanes = bb * N * Tp
        # conv output + in-kernel tap copies / patches (sublane-padded) + 2x input
        linear = 4 * lanes * (Fo + CKp + 8 * (K + 2))
        # pairwise-median temporaries scale with (bb*N)^2
        quad = 12 * (bb * N) ** 2 * Fo
        return linear + quad

    best = None
    for G in range(1, B + 1):
        if B % G:
            continue
        bb = B // G
        if est_bytes(bb) > vmem_budget:
            continue
        if G % n_cores == 0:
            return bb                      # smallest feasible grid -> largest bb
        if best is None:
            best = bb                      # fallback if no n_cores-multiple grid
    return best if best is not None else 1


def cnn_linear_compr_to_rf(x, metadata, params, *, batch_block=None,
                           use_bf16_matmul=False):
    """JAX/Pallas equivalent of CNNLinearComprToRF.forward(x, metadata)."""
    if x.shape[-1] != 224:
        raise Exception('input breaths must have sequence length of 224')
    del metadata                       # unused, exactly as in the PyTorch forward

    B, N, C, S = x.shape
    wconv, bconv, wlin, blin = (params['wconv'], params['bconv'],
                                params['wlin'], params['blin'])
    Fo, _, K = wconv.shape
    T = S - K + 1                      # 218 valid conv positions per breath
    Tp = ((S + 127) // 128) * 128      # 256: lane-aligned per-breath stride
    CKp = C * K + 1                    # folded (c, k) contraction depth + bias row

    n_cores = _tensorcores_per_chip()
    bb = (_pick_batch_block(B, N, Tp, C, K, Fo, CKp, n_cores)
          if batch_block is None else batch_block)
    assert B % bb == 0
    G = B // bb                        # 1 on v5e/v6e, 2 on v7x at B=4
    M = bb * N
    MTp = M * Tp
    LX = MTp + 128                     # tail pad keeps every tap slice in-bounds

    # Channel-major, per-breath lane-padded input: xp[g, c, m*Tp + t] = x[b, n, c, t].
    # One ~x-sized relayout; replaces the 7x im2col materialisation.
    xpad = jnp.pad(x, ((0, 0), (0, 0), (0, 0), (0, Tp - S)))            # (B, N, C, Tp)
    xp = (xpad.reshape(G, bb, N, C, Tp).transpose(0, 3, 1, 2, 4)
              .reshape(G, C, MTp))
    xp = jnp.pad(xp, ((0, 0), (0, 0), (0, LX - MTp)))                   # (G, C, LX)

    # Conv weight with (k, c) folded; bias appended as the last contraction column.
    w_aug = jnp.concatenate(
        [jnp.transpose(wconv, (0, 2, 1)).reshape(Fo, C * K), bconv[:, None]], axis=1)

    if use_bf16_matmul:
        # Optional v6e/v7x MXU path (relaxes numerics ~1e-3 relative).
        xp = xp.astype(jnp.bfloat16)
        w_aug = w_aug.astype(jnp.bfloat16)

    # Compile-time numpy constants (baked into the executable under jit).
    pool_np = np.zeros((N, N * Tp), np.float32)
    for n in range(N):
        pool_np[n, n * Tp:n * Tp + T] = 1.0 / T
    ri, rj = np.indices((M, M))
    cmp_np = np.where(ri // N == rj // N, np.where(rj < ri, 2, 1), 0).astype(np.int32)

    feat = pl.pallas_call(
        _cnn_median_kernel,
        out_shape=jax.ShapeDtypeStruct((G, bb, Fo), jnp.float32),
        grid=(G,),
        in_specs=[
            pl.BlockSpec((None, C, LX), lambda i: (i, 0, 0)),
            pl.BlockSpec((Fo, CKp), lambda i: (0, 0)),
            pl.BlockSpec((N, N * Tp), lambda i: (0, 0)),
            pl.BlockSpec((M, M), lambda i: (0, 0)),
        ],
        out_specs=pl.BlockSpec((None, bb, Fo), lambda i: (i, 0, 0)),
        compiler_params=pltpu.CompilerParams(
            dimension_semantics=("parallel",)),
    )(xp, w_aug, jnp.asarray(pool_np), jnp.asarray(cmp_np))

    feat = feat.reshape(B, Fo)
    # linear_final: tiny (B,F)x(F,2) GEMV — cheaper in plain XLA than a padded
    # 2-wide MXU op / narrow masked store inside the kernel.
    return feat @ wlin.T + blin[None, :]


def init_params(key, n_out_filters=32, in_chans=2, ksize=7):
    """Parameters in PyTorch layouts: Conv1d (F,C,K), Linear (out,in)."""
    k1, k2, k3, k4 = jax.random.split(key, 4)
    return dict(
        wconv=0.1 * jax.random.normal(k1, (n_out_filters, in_chans, ksize), jnp.float32),
        bconv=0.1 * jax.random.normal(k2, (n_out_filters,), jnp.float32),
        wlin=0.1 * jax.random.normal(k3, (2, n_out_filters), jnp.float32),
        blin=0.1 * jax.random.normal(k4, (2,), jnp.float32),
    )


def reference(x, params):
    """Pure-JAX reference matching the PyTorch semantics."""
    B, N, C, S = x.shape
    wconv, bconv, wlin, blin = (params['wconv'], params['bconv'],
                                params['wlin'], params['blin'])
    Fo, _, K = wconv.shape
    conv = lax.conv_general_dilated(
        x.reshape(B * N, C, S), wconv, window_strides=(1,), padding='VALID',
        dimension_numbers=('NCH', 'OIH', 'NCH'))
    conv = jnp.maximum(conv + bconv.reshape(1, Fo, 1), 0.0)
    feat = conv.mean(axis=2).reshape(B, N, Fo)
    # torch.median returns the lower of the two middle values for even N
    med = jnp.sort(feat, axis=1)[:, (N - 1) // 2, :]
    return med @ wlin.T + blin[None, :]


if __name__ == "__main__":
    key = jax.random.PRNGKey(0)
    kx, kp = jax.random.split(key)

    B, N, C, S = 4, 8, 2, 224    # batch, breaths, channels, seq (must be 224)
    x = jax.random.normal(kx, (B, N, C, S), jnp.float32)
    metadata = jnp.zeros((B, N, 4), jnp.float32)          # ignored, like PyTorch
    params = init_params(kp)

    fwd = jax.jit(lambda xx, md: cnn_linear_compr_to_rf(xx, md, params))
    out = jax.block_until_ready(fwd(x, metadata))         # grid=(1,) v5e/v6e, (2,) v7x

    ref = reference(x, params)
    assert out.shape == (B, 2), out.shape
    assert jnp.allclose(out, ref, rtol=1e-3, atol=2e-3), (out, ref)

    print("KERNEL_OK")
</pallas_src>

<mosaic_0001>
module attributes {stable_mosaic.version = 11 : i64} {
  func.func @_cnn_median_kernel(%arg0: i32, %arg1: memref<1x2x8320xf32, #tpu.memory_space<vmem>>, %arg2: memref<32x15xf32, #tpu.memory_space<vmem>>, %arg3: memref<8x2048xf32, #tpu.memory_space<vmem>>, %arg4: memref<32x32xi32, #tpu.memory_space<vmem>>, %arg5: memref<1x4x32xf32, #tpu.memory_space<vmem>>) attributes {dimension_semantics = [#tpu.dimension_semantics<parallel>], iteration_bounds = array<i64: 1>, scalar_prefetch = 0 : i64, scratch_operands = 0 : i64, tpu.core_type = #tpu.core_type<tc>, window_params = [{transform_indices = @transform_0, window_bounds = array<i64: 1, 2, 8320>}, {pipeline_mode = #tpu.pipeline_mode<synchronous>, transform_indices = @transform_1, window_bounds = array<i64: 32, 15>}, {pipeline_mode = #tpu.pipeline_mode<synchronous>, transform_indices = @transform_2, window_bounds = array<i64: 8, 2048>}, {pipeline_mode = #tpu.pipeline_mode<synchronous>, transform_indices = @transform_3, window_bounds = array<i64: 32, 32>}, {transform_indices = @transform_4, window_bounds = array<i64: 1, 4, 32>}]} {
    %c0 = arith.constant 0 : index
    %c0_0 = arith.constant 0 : index
    %c0_1 = arith.constant 0 : index
    %0 = vector.load %arg1[%c0, %c0_0, %c0_1] : memref<1x2x8320xf32, #tpu.memory_space<vmem>>, vector<1x2x8320xf32>
    %1 = vector.shape_cast %0 : vector<1x2x8320xf32> to vector<2x8320xf32>
    %2 = vector.extract_strided_slice %1 {offsets = [0, 0], sizes = [2, 8192], strides = [1, 1]} : vector<2x8320xf32> to vector<2x8192xf32>
    %3 = vector.extract_strided_slice %1 {offsets = [0, 1], sizes = [2, 8192], strides = [1, 1]} : vector<2x8320xf32> to vector<2x8192xf32>
    %4 = vector.extract_strided_slice %1 {offsets = [0, 2], sizes = [2, 8192], strides = [1, 1]} : vector<2x8320xf32> to vector<2x8192xf32>
    %5 = vector.extract_strided_slice %1 {offsets = [0, 3], sizes = [2, 8192], strides = [1, 1]} : vector<2x8320xf32> to vector<2x8192xf32>
    %6 = vector.extract_strided_slice %1 {offsets = [0, 4], sizes = [2, 8192], strides = [1, 1]} : vector<2x8320xf32> to vector<2x8192xf32>
    %7 = vector.extract_strided_slice %1 {offsets = [0, 5], sizes = [2, 8192], strides = [1, 1]} : vector<2x8320xf32> to vector<2x8192xf32>
    %8 = vector.extract_strided_slice %1 {offsets = [0, 6], sizes = [2, 8192], strides = [1, 1]} : vector<2x8320xf32> to vector<2x8192xf32>
    %cst = arith.constant 1.000000e+00 : f32
    %9 = vector.broadcast %cst : f32 to vector<1x8192xf32>
    %10 = tpu.concatenate %2, %3, %4, %5, %6, %7, %8, %9 in 0 : vector<2x8192xf32>, vector<2x8192xf32>, vector<2x8192xf32>, vector<2x8192xf32>, vector<2x8192xf32>, vector<2x8192xf32>, vector<2x8192xf32>, vector<1x8192xf32> -> vector<15x8192xf32>
    %c0_2 = arith.constant 0 : index
    %c0_3 = arith.constant 0 : index
    %11 = vector.load %arg2[%c0_2, %c0_3] : memref<32x15xf32, #tpu.memory_space<vmem>>, vector<32x15xf32>
    %cst_4 = arith.constant dense<0.000000e+00> : vector<32x8192xf32>
    %12 = tpu.matmul %11, %10, %cst_4 {dimension_numbers = #tpu.dot_dimension_numbers<[1], [0], [0], [1], [0, 0, 1, 1], [], []>} : vector<32x15xf32>, vector<15x8192xf32>, vector<32x8192xf32> -> vector<32x8192xf32>
    %cst_5 = arith.constant 0.000000e+00 : f32
    %13 = vector.broadcast %cst_5 : f32 to vector<32x8192xf32>
    %14 = arith.maximumf %12, %13 : vector<32x8192xf32>
    %15 = vector.extract_strided_slice %14 {offsets = [0, 0], sizes = [32, 2048], strides = [1, 1]} : vector<32x8192xf32> to vector<32x2048xf32>
    %c0_6 = arith.constant 0 : index
    %c0_7 = arith.constant 0 : index
    %16 = vector.load %arg3[%c0_6, %c0_7] : memref<8x2048xf32, #tpu.memory_space<vmem>>, vector<8x2048xf32>
    %cst_8 = arith.constant dense<0.000000e+00> : vector<8x32xf32>
    %17 = tpu.matmul %16, %15, %cst_8 {dimension_numbers = #tpu.dot_dimension_numbers<[1], [1], [0], [0], [0, 0, 1, 0], [], []>} : vector<8x2048xf32>, vector<32x2048xf32>, vector<8x32xf32> -> vector<8x32xf32>
    %18 = vector.extract_strided_slice %14 {offsets = [0, 2048], sizes = [32, 2048], strides = [1, 1]} : vector<32x8192xf32> to vector<32x2048xf32>
    %c0_9 = arith.constant 0 : index
    %c0_10 = arith.constant 0 : index
    %19 = vector.load %arg3[%c0_9, %c0_10] : memref<8x2048xf32, #tpu.memory_space<vmem>>, vector<8x2048xf32>
    %cst_11 = arith.constant dense<0.000000e+00> : vector<8x32xf32>
    %20 = tpu.matmul %19, %18, %cst_11 {dimension_numbers = #tpu.dot_dimension_numbers<[1], [1], [0], [0], [0, 0, 1, 0], [], []>} : vector<8x2048xf32>, vector<32x2048xf32>, vector<8x32xf32> -> vector<8x32xf32>
    %21 = vector.extract_strided_slice %14 {offsets = [0, 4096], sizes = [32, 2048], strides = [1, 1]} : vector<32x8192xf32> to vector<32x2048xf32>
    %c0_12 = arith.constant 0 : index
    %c0_13 = arith.constant 0 : index
    %22 = vector.load %arg3[%c0_12, %c0_13] : memref<8x2048xf32, #tpu.memory_space<vmem>>, vector<8x2048xf32>
    %cst_14 = arith.constant dense<0.000000e+00> : vector<8x32xf32>
    %23 = tpu.matmul %22, %21, %cst_14 {dimension_numbers = #tpu.dot_dimension_numbers<[1], [1], [0], [0], [0, 0, 1, 0], [], []>} : vector<8x2048xf32>, vector<32x2048xf32>, vector<8x32xf32> -> vector<8x32xf32>
    %24 = vector.extract_strided_slice %14 {offsets = [0, 6144], sizes = [32, 2048], strides = [1, 1]} : vector<32x8192xf32> to vector<32x2048xf32>
    %c0_15 = arith.constant 0 : index
    %c0_16 = arith.constant 0 : index
    %25 = vector.load %arg3[%c0_15, %c0_16] : memref<8x2048xf32, #tpu.memory_space<vmem>>, vector<8x2048xf32>
    %cst_17 = arith.constant dense<0.000000e+00> : vector<8x32xf32>
    %26 = tpu.matmul %25, %24, %cst_17 {dimension_numbers = #tpu.dot_dimension_numbers<[1], [1], [0], [0], [0, 0, 1, 0], [], []>} : vector<8x2048xf32>, vector<32x2048xf32>, vector<8x32xf32> -> vector<8x32xf32>
    %27 = tpu.concatenate %17, %20, %23, %26 in 0 : vector<8x32xf32>, vector<8x32xf32>, vector<8x32xf32>, vector<8x32xf32> -> vector<32x32xf32>
    %c0_18 = arith.constant 0 : index
    %c0_19 = arith.constant 0 : index
    %28 = vector.load %arg4[%c0_18, %c0_19] : memref<32x32xi32, #tpu.memory_space<vmem>>, vector<32x32xi32>
    %29 = vector.shape_cast %28 : vector<32x32xi32> to vector<32x32x1xi32>
    %30 = vector.shape_cast %27 : vector<32x32xf32> to vector<32x1x32xf32>
    %31 = vector.shape_cast %27 : vector<32x32xf32> to vector<1x32x32xf32>
    %32 = vector.broadcast %31 : vector<1x32x32xf32> to vector<32x32x32xf32>
    %33 = vector.broadcast %30 : vector<32x1x32xf32> to vector<32x32x32xf32>
    %34 = arith.cmpf olt, %32, %33 : vector<32x32x32xf32>
    %c1_i32 = arith.constant 1 : i32
    %35 = vector.broadcast %c1_i32 : i32 to vector<32x32x1xi32>
    %36 = arith.cmpi sge, %29, %35 : vector<32x32x1xi32>
    %37 = vector.broadcast %36 : vector<32x32x1xi1> to vector<32x32x32xi1>
    %38 = arith.andi %34, %37 : vector<32x32x32xi1>
    %39 = vector.broadcast %31 : vector<1x32x32xf32> to vector<32x32x32xf32>
    %40 = vector.broadcast %30 : vector<32x1x32xf32> to vector<32x32x32xf32>
    %41 = arith.cmpf oeq, %39, %40 : vector<32x32x32xf32>
    %c2_i32 = arith.constant 2 : i32
    %42 = vector.broadcast %c2_i32 : i32 to vector<32x32x1xi32>
    %43 = arith.cmpi eq, %29, %42 : vector<32x32x1xi32>
    %44 = vector.broadcast %43 : vector<32x32x1xi1> to vector<32x32x32xi1>
    %45 = arith.andi %41, %44 : vector<32x32x32xi1>
    %46 = arith.ori %38, %45 : vector<32x32x32xi1>
    %47 = arith.extui %46 : vector<32x32x32xi1> to vector<32x32x32xi32>
    %cst_20 = arith.constant dense<0> : vector<32x32xi32>
    %48 = vector.multi_reduction <add>, %47, %cst_20 [1] : vector<32x32x32xi32> to vector<32x32xi32>
    %c3_i32 = arith.constant 3 : i32
    %49 = vector.broadcast %c3_i32 : i32 to vector<32x32xi32>
    %50 = arith.cmpi eq, %48, %49 : vector<32x32xi32>
    %cst_21 = arith.constant 0.000000e+00 : f32
    %51 = vector.broadcast %cst_21 : f32 to vector<32x32xf32>
    %52 = arith.select %50, %27, %51 : vector<32x32xi1>, vector<32x32xf32>
    %53 = vector.shape_cast %52 : vector<32x32xf32> to vector<4x8x32xf32>
    %cst_22 = arith.constant dense<0.000000e+00> : vector<4x32xf32>
    %54 = vector.multi_reduction <add>, %53, %cst_22 [1] : vector<4x8x32xf32> to vector<4x32xf32>
    %c0_23 = arith.constant 0 : index
    %c0_24 = arith.constant 0 : index
    %c0_25 = arith.constant 0 : index
    %55 = vector.load %arg5[%c0_23, %c0_24, %c0_25] : memref<1x4x32xf32, #tpu.memory_space<vmem>>, vector<1x4x32xf32>
    %56 = vector.shape_cast %55 : vector<1x4x32xf32> to vector<4x32xf32>
    %57 = vector.shape_cast %54 : vector<4x32xf32> to vector<1x4x32xf32>
    tpu.vector_store %arg5[%c0_23, %c0_24, %c0_25], %57 {strides = array<i32>} : memref<1x4x32xf32, #tpu.memory_space<vmem>>, vector<1x4x32xf32>,
    return
  }
  func.func @transform_0(%arg0: i32) -> (i32, i32, i32) {
    %c0_i32 = arith.constant 0 : i32
    %c0_i32_0 = arith.constant 0 : i32
    %c0_i32_1 = arith.constant 0 : i32
    return %arg0, %c0_i32, %c0_i32_0 : i32, i32, i32
  }
  func.func @transform_1(%arg0: i32) -> (i32, i32) {
    %c0_i32 = arith.constant 0 : i32
    %c0_i32_0 = arith.constant 0 : i32
    %c0_i32_1 = arith.constant 0 : i32
    return %c0_i32, %c0_i32_0 : i32, i32
  }
  func.func @transform_2(%arg0: i32) -> (i32, i32) {
    %c0_i32 = arith.constant 0 : i32
    %c0_i32_0 = arith.constant 0 : i32
    %c0_i32_1 = arith.constant 0 : i32
    return %c0_i32, %c0_i32_0 : i32, i32
  }
  func.func @transform_3(%arg0: i32) -> (i32, i32) {
    %c0_i32 = arith.constant 0 : i32
    %c0_i32_0 = arith.constant 0 : i32
    %c0_i32_1 = arith.constant 0 : i32
    return %c0_i32, %c0_i32_0 : i32, i32
  }
  func.func @transform_4(%arg0: i32) -> (i32, i32, i32) {
    %c0_i32 = arith.constant 0 : i32
    %c0_i32_0 = arith.constant 0 : i32
    %c0_i32_1 = arith.constant 0 : i32
    return %arg0, %c0_i32, %c0_i32_0 : i32, i32, i32
  }
}

</mosaic_0001>

<bundles_post_ra>
// kernel: _lambda_.1
= control target key start
LH: loop header
LB: loop body
LE: loop exit
PB: predicated region body
PF: predicated region fallthrough
CT: control target
= control target key end

     0   :  { %v54_v0 = vlaneseq  ;;  %v13026_v2 = vmov 1983009808   ;;  %s13027_s25 = smov 127   ;;  %s13028_s24 = smov 126   ;;  %vm676_vm0 = vcmask 1039360   ;;  %vm2150_vm1 = vcmask 1041408   ;;  %s22808_s0 = inlined_call_operand.vmem [shape: f32[1,2,8320], index: 0, kind: input, shape index: {}]   ;;  %s22809_s1 = inlined_call_operand.vmem [shape: f32[32,15], index: 1, kind: input, shape index: {}]   ;;  %s22810_s3 = inlined_call_operand.vmem [shape: s32[32,32], index: 3, kind: input, shape index: {}]   ;;  %s22811_s2 = inlined_call_operand.vmem [shape: f32[8,2048], index: 2, kind: input, shape index: {}]   ;;  %s22812_s4 = inlined_call_operand.vmem [shape: f32[1,4,32], index: 4, kind: output, shape index: {}]  }
   0x1   :  { %v13065_v1 = vld [vmem:[%s22808_s0 + $0x8] sm:$0xff]  ;;  %v52_v3 = vunpack.c.l.s4 %v13026_v2  ;;  %v13070_v4 = vld [vmem:[%s22808_s0] sm:$0xff]  ;;  %v13075_v5 = vld [vmem:[%s22808_s0 + $0x10] sm:$0xff]  ;;  %s13030_s26 = smov 124   ;;  %s13031_s27 = smov 125   ;;  %vm1762_vm2 = vcmask 1006592  }
   0x2   :  { %v13077_v6 = vshrl.u32 %v54_v0, 7  ;;  %v396_v8 = vcombine.low %v13065_v1, %v13065_v1  ;;  %v387_v9 = vcombine.low %v13070_v4, %v13070_v4  ;;  %v405_v10 = vcombine.low %v13075_v5, %v13075_v5  ;;  %v13091_v12 = vld [vmem:[%s22808_s0 + $0x18] sm:$0xff]  ;;  %v13133_v24 = vld [vmem:[%s22808_s0 + $0x20] sm:$0xff]  ;;  %v13167_v34 = vld [vmem:[%s22808_s0 + $0x28] sm:$0xff]  ;;  %s13032_s28 = smov 122  }
   0x3   :  { %v53_v7 = vunpack.c.0.s8 %v52_v3  ;;  %v414_v19 = vcombine.low %v13091_v12, %v13091_v12  ;;  %v423_v30 = vcombine.low %v13133_v24, %v13133_v24  ;;  %v432_v38 = vcombine.low %v13167_v34, %v13167_v34  ;;  %v13197_v42 = vld [vmem:[%s22808_s0 + $0x30] sm:$0xff]  ;;  %v13228_v50 = vld [vmem:[%s22808_s0 + $0x38] sm:$0xff]  ;;  %v13259_v58 = vld [vmem:[%s22808_s0 + $0x40] sm:$0xff] }
   0x4   :  { %23411 = vst [vmem:[#allocation2_spill] sm:$0xff] %v13077_v6  ;;  %v441_v46 = vcombine.low %v13197_v42, %v13197_v42  ;;  %v450_v54 = vcombine.low %v13228_v50, %v13228_v50  ;;  %v459_v62 = vcombine.low %v13259_v58, %v13259_v58  ;;  %v13290_v3 = vld [vmem:[%s22808_s0 + $0x48] sm:$0xff]  ;;  %vm1503_vm3 = vcmask 1014784  }
   0x5   :  { %v13086_v11 = vsub.s32 %v53_v7, %v13077_v6  ;;  %vm968_vm4 = vcmask 1031168   ;;  %vm2021_vm5 = vcmask 998400   ;;  %vm1244_vm6 = vcmask 1022976  }
   0x6   :  { %vm2215_vm7 = vcmask 1043456   ;;  %vm2280_vm8 = vcmask 1045504   ;;  %vm2554_vm9 = vcmask 1046528   ;;  %vm2541_vm10 = vcmask 121856  }
   0x7   :  { %v13094_v13 = vrot.slane %v396_v8, %v13086_v11  ;;  %v13098_v14 = vrot.slane %v13065_v1, %v13086_v11  ;;  %v13101_v15 = vrot.slane %v387_v9, %v13086_v11  ;;  %v13105_v16 = vrot.slane %v13070_v4, %v13086_v11 }
   0x8   :  { %v13109_v17 = vrot.slane %v13075_v5, %v13086_v11  ;;  %v13112_v18 = vrot.slane %v405_v10, %v13086_v11  ;;  %v13146_v28 = vrot.slane %v13091_v12, %v13086_v11  ;;  %v13149_v29 = vrot.slane %v414_v19, %v13086_v11 }
   0x9   :  { %v404_v20 = vcombine.high %v13094_v13, %v13094_v13  ;;  %v13120_v21 = vcombine.high %v13101_v15, %v13101_v15  ;;  %v13124_v22 = vcombine.high %v13098_v14, %v13098_v14  ;;  %v13128_v23 = vcombine.high %v13105_v16, %v13105_v16 }
   0xa   :  { %v13142_v27 = vcombine.high %v13109_v17, %v13109_v17  ;;  %23414 = vst [vmem:[#allocation5_spill] sm:$0xff] %v13146_v28  ;;  %v413_v33 = vcombine.high %v13112_v18, %v13112_v18  ;;  %v13175_v36 = vcombine.high %v13146_v28, %v13146_v28  ;;  %v422_v37 = vcombine.high %v13149_v29, %v13149_v29 }
   0xb   :  { %23412 = vst [vmem:[#allocation3_spill] sm:$0xff] %v13124_v22  ;;  %v13136_v25 = vpack.i.bf16 %v404_v20, %v13094_v13  ;;  %v12007_v26 = vpack.i.bf16 %v13120_v21, %v13101_v15  ;;  %v13158_v31 = vpack.i.bf16 %v13124_v22, %v13098_v14  ;;  %v12012_v32 = vpack.i.bf16 %v13128_v23, %v13105_v16 }
   0xc   :  { %23413 = vst [vmem:[#allocation4_spill] sm:$0xff] %v13142_v27  ;;  %v13171_v35 = vpack.i.bf16 %v13142_v27, %v13109_v17  ;;  %23415 = vst [vmem:[#allocation6_spill] sm:$0xff] %v13175_v36  ;;  %v13185_v39 = vpack.i.bf16 %v413_v33, %v13112_v18  ;;  %v13189_v40 = vrot.slane %v13133_v24, %v13086_v11  ;;  %vm13034_vm11 = vmmov 1  }
   0xd   :  { %12018 = vrot.lane.b32.xlu1 %v13136_v25, %s13027_s25  ;;  %12008 = vrot.lane.b32.xlu0 %v12007_v26, %s13027_s25  ;;  %v13192_v41 = vrot.slane %v423_v30, %v13086_v11  ;;  %v13201_v43 = vpack.i.bf16 %v13175_v36, %v13146_v28  ;;  %v13204_v44 = vpack.i.bf16 %v422_v37, %v13149_v29  ;;  %v13321_v30 = vld [vmem:[%s22808_s0 + $0x50] sm:$0xff]  ;;  %vm14421_vm12 = vmpackc.low %vm2554_vm9, %vm13034_vm11  ;;  %vm23029_vm14 = vcmask 261120  }
   0xe   :  { %23416 = vst [vmem:[#allocation7_spill] sm:$0xff] %v13189_v40  ;;  %v13208_v45 = vrot.slane %v13167_v34, %v13086_v11  ;;  %v13218_v47 = vcombine.high %v13189_v40, %v13189_v40  ;;  %v13223_v49 = vrot.slane %v432_v38, %v13086_v11  ;;  %v13236_v52 = vrot.slane %v13197_v42, %v13086_v11 }
   0xf   :  { %v431_v48 = vcombine.high %v13192_v41, %v13192_v41  ;;  %v13239_v53 = vrot.slane %v441_v46, %v13086_v11  ;;  %v13269_v61 = vrot.slane %v13228_v50, %v13086_v11  ;;  %v13285_v2 = vrot.slane %v450_v54, %v13086_v11  ;;  %v13339_v46 = vld [vmem:[%s22808_s0 + $0x58] sm:$0xff] }
  0x10   :  { %23417 = vst [vmem:[#allocation8_spill] sm:$0xff] %v13208_v45  ;;  %23418 = vst [vmem:[#allocation9_spill] sm:$0xff] %v13218_v47  ;;  %v13232_v51 = vcombine.high %v13208_v45, %v13208_v45  ;;  %v13249_v55 = vpack.i.bf16 %v13218_v47, %v13189_v40  ;;  %v440_v57 = vcombine.high %v13223_v49, %v13223_v49 }
  0x11   :  { %12023 = vrot.lane.b32.xlu1 %v13158_v31, %s13027_s25  ;;  %12013 = vrot.lane.b32.xlu0 %v12012_v32, %s13027_s25  ;;  %23420 = vst [vmem:[#allocation11_spill] sm:$0xff] %v13236_v52  ;;  %v13252_v56 = vpack.i.bf16 %v431_v48, %v13192_v41  ;;  %v13263_v59 = vcombine.high %v13236_v52, %v13236_v52 }
  0x12   :  { %23419 = vst [vmem:[#allocation10_spill] sm:$0xff] %v13232_v51  ;;  %v449_v60 = vcombine.high %v13239_v53, %v13239_v53  ;;  %v13279_v63 = vpack.i.bf16 %v13232_v51, %v13208_v45  ;;  %v13282_v0 = vpack.i.bf16 %v440_v57, %v13223_v49  ;;  %v13301_v9 = vcombine.high %v13269_v61, %v13269_v61 }
  0x13   :  { %23421 = vst [vmem:[#allocation12_spill] sm:$0xff] %v13263_v59  ;;  %v13294_v7 = vpack.i.bf16 %v13263_v59, %v13236_v52  ;;  %v468_v10 = vcombine.low %v13290_v3, %v13290_v3  ;;  %v458_v19 = vcombine.high %v13285_v2, %v13285_v2  ;;  %v13313_v20 = vrot.slane %v13259_v58, %v13086_v11 }
  0x14   :  { %v13297_v8 = vpack.i.bf16 %v449_v60, %v13239_v53  ;;  %23424 = vst [vmem:[#allocation15_spill] sm:$0xff] %v13301_v9  ;;  %v13316_v26 = vrot.slane %v459_v62, %v13086_v11  ;;  %v13325_v32 = vpack.i.bf16 %v13301_v9, %v13269_v61  ;;  %v13329_v33 = vrot.slane %v13290_v3, %v13086_v11 }
  0x15   :  { %12033 = vrot.lane.b32.xlu1 %v13171_v35, %s13027_s25  ;;  %12028 = vrot.lane.b32.xlu0 %v13185_v39, %s13027_s25  ;;  %23422 = vst [vmem:[#allocation13_spill] sm:$0xff] %v13294_v7  ;;  %v13332_v37 = vrot.slane %v468_v10, %v13086_v11  ;;  %v477_v38 = vcombine.low %v13321_v30, %v13321_v30 }
  0x16   :  { %23423 = vst [vmem:[#allocation14_spill] sm:$0xff] %v13297_v8  ;;  %23425 = vst [vmem:[#allocation16_spill] sm:$0xff] %v13325_v32  ;;  %v13346_v48 = vpack.i.bf16 %v458_v19, %v13285_v2  ;;  %v13350_v54 = vcombine.high %v13313_v20, %v13313_v20  ;;  %v467_v57 = vcombine.high %v13316_v26, %v13316_v26 }
  0x17   :  { %23426 = vst [vmem:[#allocation17_spill] sm:$0xff] %v13329_v33  ;;  %23427 = vst [vmem:[#allocation18_spill] sm:$0xff] %v13332_v37  ;;  %v486_v60 = vcombine.low %v13339_v46, %v13339_v46  ;;  %v13358_v62 = vcombine.high %v13329_v33, %v13329_v33  ;;  %v13362_v10 = vrot.slane %v13321_v30, %v13086_v11 }
  0x18   :  { %23428 = vst [vmem:[#allocation19_spill] sm:$0xff] %v13346_v48  ;;  %23429 = vst [vmem:[#allocation20_spill] sm:$0xff] %v13350_v54  ;;  %v13365_v19 = vrot.slane %v477_v38, %v13086_v11  ;;  %v13373_v6 = vpack.i.bf16 %v13350_v54, %v13313_v20  ;;  %v13376_v9 = vpack.i.bf16 %v467_v57, %v13316_v26  ;;  %v13383_v38 = vld [vmem:[%s22808_s0 + $0x60] sm:$0xff] }
  0x19   :  { %12043 = vrot.lane.b32.xlu1 %v13201_v43, %s13027_s25  ;;  %12038 = vrot.lane.b32.xlu0 %v13204_v44, %s13027_s25  ;;  %23430 = vst [vmem:[#allocation21_spill] sm:$0xff] %v13358_v62  ;;  %23431 = vst [vmem:[#allocation22_spill] sm:$0xff] %v13362_v10  ;;  %v476_v59 = vcombine.high %v13332_v37, %v13332_v37  ;;  %v13393_v54 = vrot.slane %v13339_v46, %v13086_v11 }
  0x1a   :  { %23432 = vst [vmem:[#allocation23_spill] sm:$0xff] %v13365_v19  ;;  %23433 = vst [vmem:[#allocation24_spill] sm:$0xff] %v13373_v6  ;;  %v495_v57 = vcombine.low %v13383_v38, %v13383_v38  ;;  %v13403_v51 = vpack.i.bf16 %v13358_v62, %v13329_v33  ;;  %v13409_v47 = vrot.slane %v486_v60, %v13086_v11  ;;  %v13432_v60 = vld [vmem:[%s22808_s0 + $0x70] sm:$0xff] }
  0x1b   :  { %23434 = vst [vmem:[#allocation25_spill] sm:$0xff] %v13376_v9  ;;  %23436 = vst [vmem:[#allocation27_spill] sm:$0xff] %v13393_v54  ;;  %v13425_v62 = vcombine.high %v13393_v54, %v13393_v54 }
  0x1c   :  { %23437 = vst [vmem:[#allocation28_spill] sm:$0xff] %v13403_v51  ;;  %23439 = vst [vmem:[#allocation30_spill] sm:$0xff] %v13409_v47 }
  0x1d   :  { %12053 = vrot.lane.b32.xlu1 %v13249_v55, %s13027_s25  ;;  %12048 = vrot.lane.b32.xlu0 %v13252_v56, %s13027_s25  ;;  %23442 = vst [vmem:[#allocation33_spill] sm:$0xff] %v13425_v62 }
  0x21   :  { %12063 = vrot.lane.b32.xlu1 %v13279_v63, %s13027_s25  ;;  %12058 = vrot.lane.b32.xlu0 %v13282_v0, %s13027_s25 }
  0x25   :  { %12073 = vrot.lane.b32.xlu1 %v13294_v7, %s13027_s25  ;;  %12068 = vrot.lane.b32.xlu0 %v13297_v8, %s13027_s25  ;;  %v13406_v8 = vpack.i.bf16 %v476_v59, %v13332_v37  ;;  %v13414_v7 = vld [vmem:[%s22808_s0 + $0x68] sm:$0xff]  ;;  %v13451_v37 = vpack.i.bf16 %v13425_v62, %v13393_v54 }
  0x26   :  { %v504_v59 = vcombine.low %v13414_v7, %v13414_v7 }
  0x27   :  { %23438 = vst [vmem:[#allocation29_spill] sm:$0xff] %v13406_v8  ;;  %23445 = vst [vmem:[#allocation36_spill] sm:$0xff] %v13451_v37 }
  0x29   :  { %12083 = vrot.lane.b32.xlu1 %v13325_v32, %s13027_s25  ;;  %12078 = vrot.lane.b32.xlu0 %v13346_v48, %s13027_s25  ;;  %v13387_v32 = vcombine.high %v13362_v10, %v13362_v10  ;;  %v485_v48 = vcombine.high %v13365_v19, %v13365_v19 }
  0x2b   :  { %23435 = vst [vmem:[#allocation26_spill] sm:$0xff] %v13387_v32 }
  0x2d   :  { %12093 = vrot.lane.b32.xlu1 %v13373_v6, %s13027_s25  ;;  %12088 = vrot.lane.b32.xlu0 %v13376_v9, %s13027_s25  ;;  %v13418_v6 = vpack.i.bf16 %v13387_v32, %v13362_v10  ;;  %v13421_v9 = vpack.i.bf16 %v485_v48, %v13365_v19  ;;  %v494_v48 = vcombine.high %v13409_v47, %v13409_v47 }
  0x2e   :  { %v13442_v32 = vrot.slane %v13383_v38, %v13086_v11  ;;  %v13445_v19 = vrot.slane %v495_v57, %v13086_v11  ;;  %v513_v10 = vcombine.low %v13432_v60, %v13432_v60 }
  0x2f   :  { %23440 = vst [vmem:[#allocation31_spill] sm:$0xff] %v13418_v6  ;;  %23441 = vst [vmem:[#allocation32_spill] sm:$0xff] %v13421_v9  ;;  %v13465_v57 = vpack.i.bf16 %v494_v48, %v13409_v47  ;;  %v13486_v47 = vrot.slane %v13432_v60, %v13086_v11 }
  0x30   :  { %23443 = vst [vmem:[#allocation34_spill] sm:$0xff] %v13442_v32  ;;  %23444 = vst [vmem:[#allocation35_spill] sm:$0xff] %v13445_v19  ;;  %v13469_v54 = vcombine.high %v13442_v32, %v13442_v32  ;;  %v503_v62 = vcombine.high %v13445_v19, %v13445_v19 }
  0x31   :  { %12103 = vrot.lane.b32.xlu1 %v13403_v51, %s13027_s25  ;;  %12098 = vrot.lane.b32.xlu0 %v13406_v8, %s13027_s25  ;;  %v13455_v8 = vrot.slane %v13414_v7, %v13086_v11  ;;  %v13458_v51 = vrot.slane %v504_v59, %v13086_v11  ;;  %23448 = vst [vmem:[#allocation39_spill] sm:$0xff] %v13465_v57  ;;  %v13476_v59 = vld [vmem:[%s22808_s0 + $0x78] sm:$0xff]  ;;  %23451 = vst [vmem:[#allocation42_spill] sm:$0xff] %v13486_v47 }
  0x32   :  { %23449 = vst [vmem:[#allocation40_spill] sm:$0xff] %v13469_v54  ;;  %v13497_v36 = vpack.i.bf16 %v13469_v54, %v13442_v32  ;;  %v13500_v33 = vpack.i.bf16 %v503_v62, %v13445_v19  ;;  %v522_v27 = vcombine.low %v13476_v59, %v13476_v59  ;;  %v50_v32 = vcombine.high %v13070_v4, %v13070_v4 }
  0x33   :  { %23446 = vst [vmem:[#allocation37_spill] sm:$0xff] %v13455_v8  ;;  %23447 = vst [vmem:[#allocation38_spill] sm:$0xff] %v13458_v51  ;;  %v512_v48 = vcombine.high %v13458_v51, %v13458_v51 }
  0x34   :  { %23453 = vst [vmem:[#allocation44_spill] sm:$0xff] %v13497_v36  ;;  %23454 = vst [vmem:[#allocation45_spill] sm:$0xff] %v13500_v33  ;;  %v13526_v19 = vrot.slane %v522_v27, %v13086_v11 }
  0x35   :  { %12113 = vrot.lane.b32.xlu1 %v13418_v6, %s13027_s25  ;;  %12108 = vrot.lane.b32.xlu0 %v13421_v9, %s13027_s25  ;;  %v13480_v6 = vcombine.high %v13455_v8, %v13455_v8  ;;  %v13489_v9 = vrot.slane %v513_v10, %v13086_v11  ;;  %v13506_v10 = vcombine.high %v13486_v47, %v13486_v47 }
  0x36   :  { %v13523_v54 = vpack.i.bf16 %v512_v48, %v13458_v51  ;;  %23459 = vst [vmem:[#allocation50_spill] sm:$0xff] %v13526_v19  ;;  %v530_v4 = vcombine.high %v13526_v19, %v13526_v19 }
  0x37   :  { %23450 = vst [vmem:[#allocation41_spill] sm:$0xff] %v13480_v6  ;;  %23452 = vst [vmem:[#allocation43_spill] sm:$0xff] %v13489_v9  ;;  %v13520_v62 = vpack.i.bf16 %v13480_v6, %v13455_v8  ;;  %v13540_v48 = vpack.i.bf16 %v13506_v10, %v13486_v47  ;;  %v33_v6 = vld [vmem:[%s22808_s0 + $0x80] sm:$0x3]  ;;  %v13566_v47 = vrot.slane %v50_v32, %v13086_v11 }
  0x38   :  { %23455 = vst [vmem:[#allocation46_spill] sm:$0xff] %v13506_v10  ;;  %23458 = vst [vmem:[#allocation49_spill] sm:$0xff] %v13523_v54  ;;  %v805_v10 = vcombine.low %v13105_v16, %v13105_v16  ;;  %v84_v32 = vcombine.high %v13075_v5, %v13075_v5  ;;  %v203_v8 = vcombine.high %v13290_v3, %v13290_v3 }
  0x39   :  { %12123 = vrot.lane.b32.xlu1 %v13451_v37, %s13027_s25  ;;  %12118 = vrot.lane.b32.xlu0 %v13465_v57, %s13027_s25  ;;  %v521_v37 = vcombine.high %v13489_v9, %v13489_v9  ;;  %v13512_v57 = vrot.slane %v13476_v59, %v13086_v11  ;;  %23457 = vst [vmem:[#allocation48_spill] sm:$0xff] %v13520_v62  ;;  %23461 = vst [vmem:[#allocation52_spill] sm:$0xff] %v13540_v48 }
  0x3a   :  { %v12232_v51 = vpack.i.bf16 %v13566_v47, %v805_v10 }
  0x3b   :  { %23456 = vst [vmem:[#allocation47_spill] sm:$0xff] %v13512_v57  ;;  %v13532_v22 = vcombine.high %v13512_v57, %v13512_v57  ;;  %v13543_v27 = vpack.i.bf16 %v521_v37, %v13489_v9  ;;  %v13563_v37 = vpack.i.bf16 %v530_v4, %v13526_v19  ;;  %v531_v9 = vcombine.low %v33_v6, %v33_v6 }
  0x3c   :  { %v806_v6 = vcombine.low %v13566_v47, %v13566_v47 }
  0x3d   :  { %12133 = vrot.lane.b32.xlu1 %v13497_v36, %s13027_s25  ;;  %12128 = vrot.lane.b32.xlu0 %v13500_v33, %s13027_s25  ;;  %23460 = vst [vmem:[#allocation51_spill] sm:$0xff] %v13532_v22  ;;  %23462 = vst [vmem:[#allocation53_spill] sm:$0xff] %v13543_v27  ;;  %v13579_v4 = vrot.slane %v531_v9, %v13086_v11 }
  0x3e   :  { %23464 = vst [vmem:[#allocation55_spill] sm:$0xff] %v13563_v37  ;;  %v12172_v9 = vpack.i.bf16 %v13566_v47, %v806_v6 }
  0x3f   :  { %23465 = vst [vmem:[#allocation56_spill] sm:$0xff] %v13579_v4 }
  0x41   :  { %12143 = vrot.lane.b32.xlu1 %v13520_v62, %s13027_s25  ;;  %12138 = vrot.lane.b32.xlu0 %v13523_v54, %s13027_s25  ;;  %v67_v62 = vcombine.high %v13065_v1, %v13065_v1  ;;  %v13554_v54 = vpack.i.bf16 %v13532_v22, %v13512_v57  ;;  %v12167_v1 = vpack.i.bf16 %v13105_v16, %v805_v10 }
  0x42   :  { %v807_v22 = vcombine.low %v13098_v14, %v13098_v14 }
  0x43   :  { %23463 = vst [vmem:[#allocation54_spill] sm:$0xff] %v13554_v54  ;;  %v13572_v57 = vrot.slane %v67_v62, %v13086_v11  ;;  %v809_v62 = vcombine.low %v13109_v17, %v13109_v17 }
  0x44   :  { %v12177_v19 = vpack.i.bf16 %v13098_v14, %v807_v22 }
  0x45   :  { %12153 = vrot.lane.b32.xlu1 %v13540_v48, %s13027_s25  ;;  %12148 = vrot.lane.b32.xlu0 %v13543_v27, %s13027_s25  ;;  %v13598_v5 = vpack.i.bf16 %v13109_v17, %v809_v62  ;;  %v13623_v27 = vcombine.high %v13566_v47, %v13566_v47  ;;  %v12222_v48 = vpack.i.bf16 %v806_v6, %v13105_v16 }
  0x46   :  { %v101_v6 = vcombine.high %v13091_v12, %v13091_v12 }
  0x49   :  { %12163 = vrot.lane.b32.xlu1 %v13554_v54, %s13027_s25  ;;  %12158 = vrot.lane.b32.xlu0 %v13563_v37, %s13027_s25  ;;  %v808_v37 = vcombine.low %v13572_v57, %v13572_v57  ;;  %v13595_v54 = vrot.slane %v84_v32, %v13086_v11 }
  0x4b   :  { %v12182_v22 = vpack.i.bf16 %v13572_v57, %v808_v37  ;;  %v12207_v37 = vpack.i.bf16 %v13105_v16, %v13120_v21  ;;  %v12227_v21 = vpack.i.bf16 %v805_v10, %v13101_v15  ;;  %v1098_v10 = vcombine.low %v13094_v13, %v13094_v13 }
  0x4d   :  { %12168 = vrot.lane.b32.xlu1 %v12167_v1, %s13028_s24  ;;  %674 = vrot.lane.b32.xlu0 %v13579_v4, %s13027_s25  ;;  %v811_v1 = vcombine.low %v13146_v28, %v13146_v28  ;;  %v810_v4 = vcombine.low %v13595_v54, %v13595_v54  ;;  %s13029_s25 = smov 123  }
  0x4f   :  { %v13611_v32 = vpack.i.bf16 %v13146_v28, %v811_v1  ;;  %v12192_v62 = vpack.i.bf16 %v13595_v54, %v810_v4  ;;  %v12217_v4 = vpack.i.bf16 %v13128_v23, %v13101_v15  ;;  %v12212_v1 = vpack.i.bf16 %v13623_v27, %v13105_v16 }
  0x51   :  { %12178 = vrot.lane.b32.xlu1 %v12177_v19, %s13028_s24  ;;  %12173 = vrot.lane.b32.xlu0 %v12172_v9, %s13028_s24  ;;  %v12202_v9 = vpack.i.bf16 %v13566_v47, %v13128_v23 }
  0x55   :  { %12188 = vrot.lane.b32.xlu1 %v13598_v5, %s13028_s24  ;;  %12183 = vrot.lane.b32.xlu0 %v12182_v22, %s13028_s24 }
  0x59   :  { %12198 = vrot.lane.b32.xlu1 %v13611_v32, %s13028_s24  ;;  %12193 = vrot.lane.b32.xlu0 %v12192_v62, %s13028_s24 }
  0x5d   :  { %12208 = vrot.lane.b32.xlu1 %v12207_v37, %s13029_s25  ;;  %12203 = vrot.lane.b32.xlu0 %v12202_v9, %s13030_s26  ;;  %v1097_v37 = vcombine.low %v13101_v15, %v13101_v15 }
  0x5f   :  { %v12237_v9 = vpack.i.bf16 %v13105_v16, %v1097_v37 }
  0x61   :  { %12218 = vrot.lane.b32.xlu1 %v12217_v4, %s13029_s25  ;;  %12213 = vrot.lane.b32.xlu0 %v12212_v1, %s13030_s26  ;;  %v13643_v4 = vcombine.high %v13572_v57, %v13572_v57  ;;  %v13687_v1 = vrot.slane %v101_v6, %v13086_v11 }
  0x63   :  { %v12247_v15 = vpack.i.bf16 %v13643_v4, %v13572_v57 }
  0x65   :  { %12228 = vrot.lane.b32.xlu1 %v12227_v21, %s13031_s27  ;;  %12223 = vrot.lane.b32.xlu0 %v12222_v48, %s13032_s28  ;;  %v22885_v48 = vmov 0.0  }
  0x66   :  { %2811 = vmatprep.mubr.f32.mxu0 %v22885_v48  ;;  %2900 = vmatprep.mubr.f32.mxu1 %v22885_v48 }
  0x69   :  { %12238 = vrot.lane.b32.xlu1 %v12237_v9, %s13031_s27  ;;  %12233 = vrot.lane.b32.xlu0 %v12232_v51, %s13032_s28  ;;  %v12272_v51 = vpack.i.bf16 %v13094_v13, %v1098_v10 }
  0x6d   :  { %12248 = vrot.lane.b32.xlu1 %v12247_v15, %s13030_s26  ;;  %12243 = vrot.lane.b32.xlu0 %v13158_v31, %s13030_s26 }
  0x71   :  { %12258 = vrot.lane.b32.xlu1 %v13158_v31, %s13029_s25  ;;  %12253 = vrot.lane.b32.xlu0 %v13136_v25, %s13029_s25  ;;  %v13665_v31 = vcombine.high %v13595_v54, %v13595_v54 }
  0x73   :  { %v12287_v25 = vpack.i.bf16 %v13665_v31, %v13595_v54 }
  0x75   :  { %12268 = vrot.lane.b32.xlu1 %v12182_v22, %s13032_s28  ;;  %12263 = vrot.lane.b32.xlu0 %v12177_v19, %s13032_s28 }
  0x79   :  { %12278 = vrot.lane.b32.xlu1 %v12177_v19, %s13031_s27  ;;  %12273 = vrot.lane.b32.xlu0 %v12272_v51, %s13031_s27  ;;  %v1099_v19 = vcombine.low %v13112_v18, %v13112_v18 }
  0x7b   :  { %v12312_v12 = vpack.i.bf16 %v13112_v18, %v1099_v19  ;;  %v812_v18 = vcombine.low %v13687_v1, %v13687_v1  ;;  %v1100_v19 = vcombine.low %v13149_v29, %v13149_v29 }
  0x7d   :  { %12288 = vrot.lane.b32.xlu1 %v12287_v25, %s13030_s26  ;;  %12283 = vrot.lane.b32.xlu0 %v13171_v35, %s13030_s26  ;;  %v118_v25 = vcombine.high %v13133_v24, %v13133_v24  ;;  %v12342_v6 = vpack.i.bf16 %v13687_v1, %v812_v18  ;;  %v152_v24 = vcombine.high %v13197_v42, %v13197_v42 }
  0x7e   :  { %v186_v18 = vcombine.high %v13259_v58, %v13259_v58  ;;  %v813_v42 = vcombine.low %v13189_v40, %v13189_v40  ;;  %v220_v58 = vcombine.high %v13321_v30, %v13321_v30 }
  0x7f   :  { %v13676_v13 = vpop.permute.xlu1 %12018  ;;  %v13678_v22 = vpop.permute.xlu0 %12008 }
  0x81   :  { %12298 = vrot.lane.b32.xlu1 %v13171_v35, %s13029_s25  ;;  %12293 = vrot.lane.b32.xlu0 %v13185_v39, %s13029_s25  ;;  %v13699_v35 = vcombine.high %v13687_v1, %v13687_v1 }
  0x83   :  { %v13689_v21 = vpop.permute.xlu1 %12023  ;;  %v13691_v37 = vpop.permute.xlu0 %12013  ;;  %23466 = vst [vmem:[#allocation57_spill] sm:$0xff] %v13699_v35 }
  0x85   :  { %12308 = vrot.lane.b32.xlu1 %v12192_v62, %s13032_s28  ;;  %12303 = vrot.lane.b32.xlu0 %v13598_v5, %s13032_s28  ;;  %v12327_v62 = vpack.i.bf16 %v13699_v35, %v13687_v1  ;;  %v13789_v35 = vpack.i.bf16 %v13189_v40, %v813_v42  ;;  %v271_v42 = vcombine.high %v13414_v7, %v13414_v7 }
  0x86   :  { %v1102_v40 = vcombine.low %v13223_v49, %v13223_v49 }
  0x87   :  { %v13701_v39 = vpop.permute.xlu1 %12033  ;;  %v13703_v9 = vpop.permute.xlu0 %12028 }
  0x89   :  { %12318 = vrot.lane.b32.xlu1 %v13598_v5, %s13031_s27  ;;  %12313 = vrot.lane.b32.xlu0 %v12312_v12, %s13031_s27  ;;  %v135_v12 = vcombine.high %v13167_v34, %v13167_v34  ;;  %v12357_v34 = vpack.i.bf16 %v13149_v29, %v1100_v19 }
  0x8b   :  { %v13710_v15 = vpop.permute.xlu1 %12043  ;;  %v13712_v10 = vpop.permute.xlu0 %12038 }
  0x8d   :  { %12328 = vrot.lane.b32.xlu1 %v12327_v62, %s13030_s26  ;;  %12323 = vrot.lane.b32.xlu0 %v13201_v43, %s13030_s26 }
  0x8f   :  { %v13719_v51 = vpop.permute.xlu1 %12053  ;;  %v13721_v5 = vpop.permute.xlu0 %12048 }
  0x91   :  { %12338 = vrot.lane.b32.xlu1 %v13201_v43, %s13029_s25  ;;  %12333 = vrot.lane.b32.xlu0 %v13204_v44, %s13029_s25  ;;  %v169_v43 = vcombine.high %v13228_v50, %v13228_v50  ;;  %v13743_v44 = vrot.slane %v118_v25, %v13086_v11  ;;  %v13756_v50 = vrot.slane %v135_v12, %v13086_v11 }
  0x92   :  { %v13759_v25 = vrot.slane %v152_v24, %v13086_v11  ;;  %v13779_v12 = vrot.slane %v186_v18, %v13086_v11  ;;  %v237_v24 = vcombine.high %v13339_v46, %v13339_v46  ;;  %v13798_v18 = vrot.slane %v220_v58, %v13086_v11 }
  0x93   :  { %v13734_v62 = vpop.permute.xlu1 %12063  ;;  %v13736_v48 = vpop.permute.xlu0 %12058  ;;  %23469 = vst [vmem:[#allocation60_spill] sm:$0xff] %v13743_v44  ;;  %v13766_v29 = vrot.slane %v169_v43, %v13086_v11  ;;  %v13772_v3 = vcombine.high %v13743_v44, %v13743_v44  ;;  %v814_v19 = vcombine.low %v13743_v44, %v13743_v44  ;;  %v13786_v43 = vrot.slane %v203_v8, %v13086_v11 }
  0x94   :  { %23467 = vst [vmem:[#allocation58_spill] sm:$0xff] %v13734_v62  ;;  %23468 = vst [vmem:[#allocation59_spill] sm:$0xff] %v13736_v48  ;;  %v254_v46 = vcombine.high %v13383_v38, %v13383_v38  ;;  %v305_v8 = vcombine.high %v13476_v59, %v13476_v59  ;;  %v13816_v38 = vrot.slane %v237_v24, %v13086_v11 }
  0x95   :  { %12348 = vrot.lane.b32.xlu1 %v13611_v32, %s13032_s28  ;;  %12343 = vrot.lane.b32.xlu0 %v12342_v6, %s13028_s24  ;;  %23470 = vst [vmem:[#allocation61_spill] sm:$0xff] %v13759_v25  ;;  %23473 = vst [vmem:[#allocation64_spill] sm:$0xff] %v13772_v3  ;;  %v12372_v30 = vpack.i.bf16 %v13772_v3, %v13743_v44  ;;  %v13805_v3 = vpack.i.bf16 %v13743_v44, %v814_v19 }
  0x96   :  { %23476 = vst [vmem:[#allocation67_spill] sm:$0xff] %v13798_v18  ;;  %23477 = vst [vmem:[#allocation68_spill] sm:$0xff] %v13816_v38  ;;  %v815_v59 = vcombine.low %v13208_v45, %v13208_v45  ;;  %v816_v58 = vcombine.low %v13756_v50, %v13756_v50  ;;  %v13835_v24 = vrot.slane %v305_v8, %v13086_v11 }
  0x97   :  { %v13761_v33 = vpop.permute.xlu1 %12073  ;;  %v13763_v36 = vpop.permute.xlu0 %12068  ;;  %v13889_v48 = vcombine.high %v13798_v18, %v13798_v18  ;;  %v13893_v44 = vcombine.high %v13816_v38, %v13816_v38 }
  0x98   :  { %23471 = vst [vmem:[#allocation62_spill] sm:$0xff] %v13761_v33  ;;  %23472 = vst [vmem:[#allocation63_spill] sm:$0xff] %v13763_v36  ;;  %v13840_v33 = vrot.slane %v271_v42, %v13086_v11  ;;  %v13858_v8 = vpack.i.bf16 %v13756_v50, %v816_v58  ;;  %v13879_v58 = vcombine.high %v13835_v24, %v13835_v24 }
  0x99   :  { %12358 = vrot.lane.b32.xlu1 %v12357_v34, %s13031_s27  ;;  %12353 = vrot.lane.b32.xlu0 %v12342_v6, %s13032_s28  ;;  %v1101_v34 = vcombine.low %v13192_v41, %v13192_v41  ;;  %23481 = vst [vmem:[#allocation72_spill] sm:$0xff] %v13835_v24  ;;  %v817_v42 = vcombine.low %v13236_v52, %v13236_v52  ;;  %23486 = vst [vmem:[#allocation77_spill] sm:$0xff] %v13889_v48 }
  0x9a   :  { %23482 = vst [vmem:[#allocation73_spill] sm:$0xff] %v13840_v33  ;;  %23485 = vst [vmem:[#allocation76_spill] sm:$0xff] %v13879_v58 }
  0x9b   :  { %v13793_v36 = vpop.permute.xlu1 %12083  ;;  %v13795_v6 = vpop.permute.xlu0 %12078  ;;  %v12407_v7 = vpack.i.bf16 %v13192_v41, %v1101_v34  ;;  %v13882_v41 = vpack.i.bf16 %v13223_v49, %v1102_v40  ;;  %23487 = vst [vmem:[#allocation78_spill] sm:$0xff] %v13893_v44  ;;  %v818_v40 = vcombine.low %v13759_v25, %v13759_v25  ;;  %v13907_v49 = vcombine.high %v13840_v33, %v13840_v33 }
  0x9c   :  { %23474 = vst [vmem:[#allocation65_spill] sm:$0xff] %v13793_v36  ;;  %23475 = vst [vmem:[#allocation66_spill] sm:$0xff] %v13795_v6  ;;  %v288_v36 = vcombine.high %v13432_v60, %v13432_v60  ;;  %v13825_v60 = vcombine.high %v13756_v50, %v13756_v50 }
  0x9d   :  { %12368 = vrot.lane.b32.xlu1 %v13249_v55, %s13030_s26  ;;  %12363 = vrot.lane.b32.xlu0 %v13611_v32, %s13031_s27  ;;  %v13832_v32 = vrot.slane %v254_v46, %v13086_v11  ;;  %v13855_v46 = vpack.i.bf16 %v13208_v45, %v815_v59  ;;  %23489 = vst [vmem:[#allocation80_spill] sm:$0xff] %v13907_v49 }
  0x9e   :  { %v13845_v34 = vrot.slane %v288_v36, %v13086_v11  ;;  %v13863_v11 = vcombine.high %v13766_v29, %v13766_v29  ;;  %v13867_v36 = vcombine.high %v13779_v12, %v13779_v12 }
  0x9f   :  { %v13827_v19 = vpop.permute.xlu1 %12093  ;;  %v13829_v6 = vpop.permute.xlu0 %12088  ;;  %23480 = vst [vmem:[#allocation71_spill] sm:$0xff] %v13832_v32  ;;  %v13897_v24 = vcombine.high %v13832_v32, %v13832_v32 }
  0xa0   :  { %23478 = vst [vmem:[#allocation69_spill] sm:$0xff] %v13827_v19  ;;  %23479 = vst [vmem:[#allocation70_spill] sm:$0xff] %v13829_v6  ;;  %v13849_v6 = vcombine.high %v13759_v25, %v13759_v25  ;;  %v13911_v45 = vcombine.high %v13845_v34, %v13845_v34  ;;  %v23492_v38 = vunpack.i.h.bf16 %v13827_v19 }
  0xa1   :  { %23483 = vst [vmem:[#allocation74_spill] sm:$0xff] %v13845_v34  ;;  %12378 = vrot.lane.b32.xlu1 %v13252_v56, %s13029_s25  ;;  %12373 = vrot.lane.b32.xlu0 %v12372_v30, %s13030_s26  ;;  %v13871_v56 = vcombine.high %v13786_v43, %v13786_v43  ;;  %23488 = vst [vmem:[#allocation79_spill] sm:$0xff] %v13897_v24  ;;  %v13928_v34 = vpack.i.bf16 %v13236_v52, %v817_v42 }
  0xa2   :  { %23490 = vst [vmem:[#allocation81_spill] sm:$0xff] %v13911_v45 }
  0xa3   :  { %v13873_v30 = vpop.permute.xlu1 %12103  ;;  %v13875_v59 = vpop.permute.xlu0 %12098  ;;  %23495 = vst [vmem:[#allocation84_spill] sm:$0xff] %v13928_v34 }
  0xa4   :  { %23484 = vst [vmem:[#allocation75_spill] sm:$0xff] %v13875_v59  ;;  %v23491_v32 = vunpack.i.l.bf16 %v13875_v59  ;;  %v819_v59 = vcombine.low %v13269_v61, %v13269_v61  ;;  %v23498_v19 = vunpack.i.h.bf16 %v13873_v30 }
  0xa5   :  { %12388 = vrot.lane.b32.xlu1 %v13789_v35, %s13028_s24  ;;  %12383 = vrot.lane.b32.xlu0 %v13249_v55, %s13029_s25  ;;  %v1103_v55 = vcombine.low %v13239_v53, %v13239_v53 }
  0xa6   :  { %v712_v18 = vsel %vm676_vm0, %v23492_v38, %v23491_v32  ;;  %v13938_v38 = vpack.i.bf16 %v13759_v25, %v818_v40  ;;  %v820_v32 = vcombine.low %v13766_v29, %v13766_v29  ;;  %v1104_v40 = vcombine.low %v13285_v2, %v13285_v2 }
  0xa7   :  { %v13921_v62 = vpop.permute.xlu1 %12113  ;;  %v13923_v28 = vpop.permute.xlu0 %12108  ;;  %v13944_v42 = vsel %vm2150_vm1, %v13867_v36, %v712_v18  ;;  %v13953_v34 = vpack.i.bf16 %v13239_v53, %v1103_v55 }
  0xa8   :  { %23493 = vst [vmem:[#allocation82_spill] sm:$0xff] %v13921_v62  ;;  %23494 = vst [vmem:[#allocation83_spill] sm:$0xff] %v13923_v28  ;;  %v22927_v58 = vunpack.i.l.bf16 %v13923_v28  ;;  %v13971_v53 = vpack.i.bf16 %v13766_v29, %v820_v32 }
  0xa9   :  { %12398 = vrot.lane.b32.xlu1 %v13789_v35, %s13032_s28  ;;  %12393 = vrot.lane.b32.xlu0 %v13805_v3, %s13028_s24  ;;  %23496 = vst [vmem:[#allocation85_spill] sm:$0xff] %v13938_v38  ;;  %23497 = vst [vmem:[#allocation86_spill] sm:$0xff] %v13944_v42  ;;  %v13965_v42 = vpack.i.bf16 %v13269_v61, %v819_v59 }
  0xaa   :  { %v716_v52 = vsel %vm676_vm0, %v23498_v19, %v22927_v58  ;;  %23501 = vst [vmem:[#allocation89_spill] sm:$0xff] %v13971_v53  ;;  %v23503_v58 = vunpack.i.h.bf16 %v13921_v62  ;;  %v12025_v53 = vunpack.i.l.bf16 %v13689_v21 }
  0xab   :  { %v13957_v38 = vpop.permute.xlu1 %12123  ;;  %v13959_v25 = vpop.permute.xlu0 %12118  ;;  %v13975_v19 = vsel %vm2150_vm1, %v13871_v56, %v716_v52  ;;  %v12021_v52 = vunpack.i.h.bf16 %v13676_v13 }
  0xac   :  { %23499 = vst [vmem:[#allocation87_spill] sm:$0xff] %v13957_v38  ;;  %23500 = vst [vmem:[#allocation88_spill] sm:$0xff] %v13959_v25  ;;  %v22928_v18 = vunpack.i.l.bf16 %v13959_v25 }
  0xad   :  { %12408 = vrot.lane.b32.xlu1 %v12407_v7, %s13031_s27  ;;  %12403 = vrot.lane.b32.xlu0 %v13805_v3, %s13032_s28  ;;  %23502 = vst [vmem:[#allocation90_spill] sm:$0xff] %v13975_v19  ;;  %v13984_v7 = vpack.i.bf16 %v13285_v2, %v1104_v40  ;;  %v821_v3 = vcombine.low %v13313_v20, %v13313_v20  ;;  %v12020_v2 = vunpack.i.l.bf16 %v13676_v13  ;;  %v12011_v40 = vunpack.i.h.bf16 %v13678_v22 }
  0xae   :  { %v720_v59 = vsel %vm676_vm0, %v23503_v58, %v22928_v18  ;;  %v822_v19 = vcombine.low %v13779_v12, %v13779_v12  ;;  %v1105_v58 = vcombine.low %v13316_v26, %v13316_v26  ;;  %v12010_v18 = vunpack.i.l.bf16 %v13678_v22 }
  0xaf   :  { %23504 = vst [vmem:[#allocation91_spill] sm:$0xff] %v13984_v7  ;;  %v13988_v32 = vpop.permute.xlu1 %12133  ;;  %v13990_v33 = vpop.permute.xlu0 %12128  ;;  %v14007_v55 = vsel %vm2150_vm1, %v13889_v48, %v720_v59  ;;  %v23509_v13 = vunpack.i.h.bf16 %v13957_v38  ;;  %v14018_v7 = vpack.i.bf16 %v13313_v20, %v821_v3  ;;  %v682_v38 = vsel %vm676_vm0, %v12021_v52, %v12025_v53 }
  0xb0   :  { %23505 = vst [vmem:[#allocation92_spill] sm:$0xff] %v13988_v32  ;;  %23506 = vst [vmem:[#allocation93_spill] sm:$0xff] %v13990_v33  ;;  %v23508_v28 = vunpack.i.l.bf16 %v13990_v33  ;;  %v14028_v33 = vpack.i.bf16 %v13779_v12, %v822_v19  ;;  %v677_v3 = vsel %vm676_vm0, %v12010_v18, %v12011_v40  ;;  %v12016_v19 = vunpack.i.h.bf16 %v13691_v37 }
  0xb1   :  { %12418 = vrot.lane.b32.xlu1 %v13279_v63, %s13030_s26  ;;  %12413 = vrot.lane.b32.xlu0 %v13789_v35, %s13031_s27  ;;  %23507 = vst [vmem:[#allocation94_spill] sm:$0xff] %v14007_v55  ;;  %v12026_v35 = vunpack.i.h.bf16 %v13689_v21  ;;  %v23513_v21 = vpack.i.bf16 %v13825_v60, %v13756_v50  ;;  %v23515_v18 = vunpack.i.h.bf16 %v13988_v32 }
  0xb2   :  { %v724_v62 = vsel %vm676_vm0, %v23509_v13, %v23508_v28  ;;  %v14031_v28 = vpack.i.bf16 %v13316_v26, %v1105_v58  ;;  %v681_v13 = vsel %vm676_vm0, %v12020_v2, %v12021_v52  ;;  %v12015_v26 = vunpack.i.l.bf16 %v13691_v37 }
  0xb3   :  { %v14022_v59 = vpop.permute.xlu1 %12143  ;;  %v14024_v55 = vpop.permute.xlu0 %12138  ;;  %v14043_v22 = vsel %vm2150_vm1, %v13893_v44, %v724_v62  ;;  %v12035_v37 = vunpack.i.l.bf16 %v13701_v39  ;;  %v12031_v58 = vunpack.i.h.bf16 %v13703_v9  ;;  %v14065_v44 = vsel %vm2150_vm1, %v13098_v14, %v681_v13 }
  0xb4   :  { %23510 = vst [vmem:[#allocation95_spill] sm:$0xff] %v14022_v59  ;;  %23511 = vst [vmem:[#allocation96_spill] sm:$0xff] %v14024_v55  ;;  %v22943_v25 = vunpack.i.l.bf16 %v14024_v55  ;;  %v680_v52 = vsel %vm676_vm0, %v12016_v19, %v12020_v2  ;;  %v23519_v13 = vunpack.i.h.bf16 %v14022_v59  ;;  %v679_v2 = vsel %vm676_vm0, %v12015_v26, %v12016_v19  ;;  %v23547_v59 = vld [vmem:[#allocation14_spill] sm:$0xff] }
  0xb5   :  { %23512 = vst [vmem:[#allocation97_spill] sm:$0xff] %v14031_v28  ;;  %12428 = vrot.lane.b32.xlu1 %v13282_v0, %s13029_s25  ;;  %12423 = vrot.lane.b32.xlu0 %v23513_v21, %s13030_s26  ;;  %23514 = vst [vmem:[#allocation98_spill] sm:$0xff] %v14043_v22  ;;  %v683_v21 = vsel %vm676_vm0, %v12025_v53, %v12026_v35  ;;  %v12036_v22 = vunpack.i.h.bf16 %v13701_v39  ;;  %v14073_v53 = vsel %vm2150_vm1, %v13105_v16, %v677_v3 }
  0xb6   :  { %v728_v0 = vsel %vm676_vm0, %v23515_v18, %v22943_v25  ;;  %v678_v18 = vsel %vm676_vm0, %v12011_v40, %v12015_v26  ;;  %v23520_v25 = vld [vmem:[#allocation3_spill] sm:$0xff]  ;;  %v14093_v3 = vsel %vm2150_vm1, %v13572_v57, %v683_v21  ;;  %v12030_v40 = vunpack.i.l.bf16 %v13703_v9 }
  0xb7   :  { %v14055_v28 = vpop.permute.xlu1 %12153  ;;  %v14057_v62 = vpop.permute.xlu0 %12148  ;;  %v14077_v39 = vsel %vm2150_vm1, %v13897_v24, %v728_v0  ;;  %v14089_v16 = vsel %vm2150_vm1, %v23520_v25, %v682_v38  ;;  %v12045_v38 = vunpack.i.l.bf16 %v13710_v15  ;;  %v12041_v57 = vunpack.i.h.bf16 %v13712_v10 }
  0xb8   :  { %23516 = vst [vmem:[#allocation99_spill] sm:$0xff] %v14055_v28  ;;  %23517 = vst [vmem:[#allocation100_spill] sm:$0xff] %v14057_v62  ;;  %v22944_v55 = vunpack.i.l.bf16 %v14057_v62  ;;  %v12040_v19 = vunpack.i.l.bf16 %v13712_v10  ;;  %v23524_v26 = vunpack.i.h.bf16 %v14055_v28  ;;  %v14123_v21 = vsel %vm2150_vm1, %v13128_v23, %v678_v18  ;;  %v23526_v18 = vld [vmem:[#allocation4_spill] sm:$0xff] }
  0xb9   :  { %12438 = vrot.lane.b32.xlu1 %v13855_v46, %s13028_s24  ;;  %12433 = vrot.lane.b32.xlu0 %v13279_v63, %s13029_s25  ;;  %23518 = vst [vmem:[#allocation101_spill] sm:$0xff] %v14077_v39  ;;  %v687_v39 = vsel %vm676_vm0, %v12035_v37, %v12036_v22  ;;  %v14127_v10 = vsel %vm2150_vm1, %v13623_v27, %v680_v52 }
  0xba   :  { %v732_v63 = vsel %vm676_vm0, %v23519_v13, %v22944_v55  ;;  %v686_v13 = vsel %vm676_vm0, %v12031_v58, %v12035_v37  ;;  %v12046_v55 = vunpack.i.h.bf16 %v13710_v15  ;;  %v14131_v37 = vsel %vm2150_vm1, %v13566_v47, %v679_v2  ;;  %v23527_v2 = vld [vmem:[#allocation17_spill] sm:$0xff] }
  0xbb   :  { %v14097_v0 = vpop.permute.xlu1 %12163  ;;  %v14099_v14 = vpop.permute.xlu0 %12158  ;;  %v14114_v9 = vsel %vm2150_vm1, %v13907_v49, %v732_v63  ;;  %v14135_v63 = vsel %vm2150_vm1, %v13595_v54, %v687_v39  ;;  %v14145_v27 = vsel %vm2150_vm1, %v23526_v18, %v686_v13  ;;  %v12056_v47 = vunpack.i.h.bf16 %v13719_v51 }
  0xbc   :  { %23521 = vst [vmem:[#allocation3_spill] sm:$0xff] %v14097_v0  ;;  %23522 = vst [vmem:[#allocation102_spill] sm:$0xff] %v14099_v14  ;;  %v22945_v25 = vunpack.i.l.bf16 %v14099_v14  ;;  %v691_v52 = vsel %vm676_vm0, %v12045_v38, %v12046_v55  ;;  %v823_v54 = vcombine.low %v23527_v2, %v23527_v2  ;;  %v690_v39 = vsel %vm676_vm0, %v12041_v57, %v12045_v38  ;;  %v23540_v14 = vld [vmem:[#allocation59_spill] sm:$0xff] }
  0xbd   :  { %12448 = vrot.lane.b32.xlu1 %v13855_v46, %s13032_s28  ;;  %12443 = vrot.lane.b32.xlu0 %v13858_v8, %s13028_s24  ;;  %23523 = vst [vmem:[#allocation103_spill] sm:$0xff] %v14114_v9  ;;  %v684_v9 = vsel %vm676_vm0, %v12026_v35, %v12030_v40  ;;  %v688_v35 = vsel %vm676_vm0, %v12036_v22, %v12040_v19  ;;  %v12055_v13 = vunpack.i.l.bf16 %v13719_v51  ;;  %v12051_v18 = vunpack.i.h.bf16 %v13721_v5 }
  0xbe   :  { %v736_v15 = vsel %vm676_vm0, %v23524_v26, %v22945_v25  ;;  %v685_v26 = vsel %vm676_vm0, %v12030_v40, %v12031_v58  ;;  %v689_v40 = vsel %vm676_vm0, %v12040_v19, %v12041_v57  ;;  %v12050_v38 = vunpack.i.l.bf16 %v13721_v5  ;;  %v23530_v5 = vld [vmem:[#allocation6_spill] sm:$0xff] }
  0xbf   :  { %v14139_v25 = vpop.permute.xlu1 %12168  ;;  %v14141_v23 = vpop.permute.xlu0 %674  ;;  %v14159_v58 = vsel %vm2150_vm1, %v13911_v45, %v736_v15  ;;  %v14167_v22 = vsel %vm2150_vm1, %v13643_v4, %v684_v9  ;;  %v14181_v51 = vsel %vm2150_vm1, %v13687_v1, %v691_v52  ;;  %v14185_v19 = vsel %vm2150_vm1, %v23530_v5, %v690_v39  ;;  %v23533_v9 = vld [vmem:[#allocation5_spill] sm:$0xff] }
  0xc0   :  { %23525 = vst [vmem:[#allocation104_spill] sm:$0xff] %v14141_v23  ;;  %23528 = vst [vmem:[#allocation4_spill] sm:$0xff] %v14159_v58  ;;  %v14189_v4 = vsel %vm2150_vm1, %v13665_v31, %v688_v35  ;;  %v23535_v58 = vld [vmem:[#allocation58_spill] sm:$0xff]  ;;  %v23536_v23 = vld [vmem:[#allocation13_spill] sm:$0xff]  ;;  %v14202_v1 = vpack.i.bf16 %v23527_v2, %v823_v54  ;;  %v694_v31 = vsel %vm676_vm0, %v12051_v18, %v12055_v13  ;;  %v12060_v54 = vunpack.i.l.bf16 %v23540_v14 }
  0xc1   :  { %12458 = vrot.lane.b32.xlu1 %v13882_v41, %s13031_s27  ;;  %12453 = vrot.lane.b32.xlu0 %v13858_v8, %s13032_s28  ;;  %v14171_v41 = vsel %vm2150_vm1, %v13109_v17, %v685_v26  ;;  %23529 = vst [vmem:[#allocation17_spill] sm:$0xff] %v14181_v51  ;;  %23531 = vst [vmem:[#allocation6_spill] sm:$0xff] %v14185_v19  ;;  %v695_v17 = vsel %vm676_vm0, %v12055_v13, %v12056_v47  ;;  %v12066_v57 = vunpack.i.h.bf16 %v23535_v58 }
  0xc2   :  { %23532 = vst [vmem:[#allocation105_spill] sm:$0xff] %v14189_v4  ;;  %v14194_v26 = vsel %vm2150_vm1, %v23533_v9, %v689_v40  ;;  %23537 = vst [vmem:[#allocation58_spill] sm:$0xff] %v14202_v1  ;;  %v692_v52 = vsel %vm676_vm0, %v12046_v55, %v12050_v38  ;;  %v693_v39 = vsel %vm676_vm0, %v12050_v38, %v12051_v18  ;;  %v23538_v40 = vld [vmem:[#allocation60_spill] sm:$0xff]  ;;  %v12065_v9 = vunpack.i.l.bf16 %v23535_v58  ;;  %v23541_v55 = vld [vmem:[#allocation62_spill] sm:$0xff] }
  0xc3   :  { %v14173_v8 = vpop.permute.xlu1 %12178  ;;  %v14175_v15 = vpop.permute.xlu0 %12173  ;;  %23534 = vst [vmem:[#allocation5_spill] sm:$0xff] %v14194_v26  ;;  %v824_v35 = vcombine.low %v13786_v43, %v13786_v43  ;;  %v14211_v5 = vsel %vm2150_vm1, %v23538_v40, %v695_v17  ;;  %v12076_v62 = vunpack.i.h.bf16 %v23541_v55  ;;  %v12075_v18 = vunpack.i.l.bf16 %v23541_v55  ;;  %v23542_v38 = vld [vmem:[#allocation63_spill] sm:$0xff]  ;;  %v23543_v17 = vld [vmem:[#allocation9_spill] sm:$0xff] }
  0xc4   :  { %23539 = vst [vmem:[#allocation13_spill] sm:$0xff] %v14211_v5  ;;  %v12071_v28 = vunpack.i.h.bf16 %v23542_v38  ;;  %v12070_v45 = vunpack.i.l.bf16 %v23542_v38  ;;  %v14226_v40 = vsel %vm2150_vm1, %v23543_v17, %v694_v31  ;;  %v23545_v58 = vld [vmem:[#allocation57_spill] sm:$0xff]  ;;  %v23550_v5 = vld [vmem:[#allocation7_spill] sm:$0xff]  ;;  %v23553_v17 = vld [vmem:[#allocation18_spill] sm:$0xff]  ;;  %v12170_v48 = vunpack.i.l.bf16 %v14139_v25 }
  0xc5   :  { %12468 = vrot.lane.b32.xlu1 %v23536_v23, %s13030_s26  ;;  %12463 = vrot.lane.b32.xlu0 %v13855_v46, %s13031_s27  ;;  %v12061_v46 = vunpack.i.h.bf16 %v23540_v14  ;;  %23544 = vst [vmem:[#allocation60_spill] sm:$0xff] %v14226_v40  ;;  %v14230_v49 = vsel %vm2150_vm1, %v23545_v58, %v692_v52  ;;  %v699_v14 = vsel %vm676_vm0, %v12065_v9, %v12066_v57  ;;  %v23548_v55 = vld [vmem:[#allocation61_spill] sm:$0xff]  ;;  %v12180_v1 = vunpack.i.l.bf16 %v14173_v8 }
  0xc6   :  { %23546 = vst [vmem:[#allocation59_spill] sm:$0xff] %v14230_v49  ;;  %v23549_v24 = vpack.i.bf16 %v13849_v6, %v23548_v55  ;;  %v14241_v38 = vsel %vm2150_vm1, %v23550_v5, %v693_v39  ;;  %v14244_v31 = vpack.i.bf16 %v13786_v43, %v824_v35  ;;  %v1106_v52 = vcombine.low %v23553_v17, %v23553_v17  ;;  %v23554_v49 = vld [vmem:[#allocation65_spill] sm:$0xff] }
  0xc7   :  { %v14216_v0 = vpop.permute.xlu1 %12188  ;;  %v14218_v13 = vpop.permute.xlu0 %12183  ;;  %23551 = vst [vmem:[#allocation62_spill] sm:$0xff] %v14241_v38  ;;  %v698_v58 = vsel %vm676_vm0, %v12061_v46, %v12065_v9  ;;  %v696_v40 = vsel %vm676_vm0, %v12056_v47, %v12060_v54  ;;  %v14258_v39 = vsel %vm2150_vm1, %v13756_v50, %v699_v14  ;;  %v703_v35 = vsel %vm676_vm0, %v12075_v18, %v12076_v62  ;;  %v23557_v50 = vld [vmem:[#allocation84_spill] sm:$0xff] }
  0xc8   :  { %23552 = vst [vmem:[#allocation63_spill] sm:$0xff] %v14244_v31  ;;  %23555 = vst [vmem:[#allocation9_spill] sm:$0xff] %v14258_v39  ;;  %v702_v5 = vsel %vm676_vm0, %v12071_v28, %v12075_v18  ;;  %v700_v9 = vsel %vm676_vm0, %v12066_v57, %v12070_v45  ;;  %v701_v47 = vsel %vm676_vm0, %v12070_v45, %v12071_v28  ;;  %v23558_v18 = vld [vmem:[#allocation10_spill] sm:$0xff]  ;;  %v23560_v14 = vld [vmem:[#allocation8_spill] sm:$0xff] }
  0xc9   :  { %12478 = vrot.lane.b32.xlu1 %v23547_v59, %s13029_s25  ;;  %12473 = vrot.lane.b32.xlu0 %v23549_v24, %s13030_s26  ;;  %v697_v59 = vsel %vm676_vm0, %v12060_v54, %v12061_v46  ;;  %v12085_v46 = vunpack.i.l.bf16 %v23554_v49  ;;  %v23556_v54 = vld [vmem:[#allocation66_spill] sm:$0xff]  ;;  %v14273_v57 = vsel %vm2150_vm1, %v23558_v18, %v698_v58  ;;  %v23562_v28 = vld [vmem:[#allocation64_spill] sm:$0xff]  ;;  %v14288_v19 = vsel %vm2150_vm1, %v23548_v55, %v703_v35 }
  0xca   :  { %v12081_v51 = vunpack.i.h.bf16 %v23556_v54  ;;  %v12080_v38 = vunpack.i.l.bf16 %v23556_v54  ;;  %23559 = vst [vmem:[#allocation57_spill] sm:$0xff] %v14273_v57  ;;  %v14277_v45 = vsel %vm2150_vm1, %v23560_v14, %v697_v59  ;;  %v14281_v39 = vsel %vm2150_vm1, %v23562_v28, %v696_v40  ;;  %23565 = vst [vmem:[#allocation18_spill] sm:$0xff] %v14288_v19  ;;  %v23567_v59 = vld [vmem:[#allocation12_spill] sm:$0xff] }
  0xcb   :  { %v14252_v32 = vpop.permute.xlu1 %12198  ;;  %v14254_v24 = vpop.permute.xlu0 %12193  ;;  %23561 = vst [vmem:[#allocation14_spill] sm:$0xff] %v14277_v45  ;;  %23563 = vst [vmem:[#allocation61_spill] sm:$0xff] %v14281_v39  ;;  %v14284_v54 = vpack.i.bf16 %v23553_v17, %v1106_v52  ;;  %v14299_v40 = vsel %vm2150_vm1, %v23567_v59, %v702_v5  ;;  %v23569_v17 = vld [vmem:[#allocation11_spill] sm:$0xff]  ;;  %v14307_v55 = vsel %vm2150_vm1, %v13825_v60, %v700_v9  ;;  %v23572_v5 = vld [vmem:[#allocation85_spill] sm:$0xff] }
  0xcc   :  { %23568 = vst [vmem:[#allocation65_spill] sm:$0xff] %v14299_v40  ;;  %v14303_v52 = vsel %vm2150_vm1, %v23569_v17, %v701_v47  ;;  %23571 = vst [vmem:[#allocation84_spill] sm:$0xff] %v14307_v55  ;;  %v706_v35 = vsel %vm676_vm0, %v12081_v51, %v12085_v46  ;;  %v704_v14 = vsel %vm676_vm0, %v12076_v62, %v12080_v38  ;;  %v23574_v9 = vld [vmem:[#allocation67_spill] sm:$0xff]  ;;  %v23580_v59 = vld [vmem:[#allocation69_spill] sm:$0xff] }
  0xcd   :  { %12488 = vrot.lane.b32.xlu1 %v23557_v50, %s13028_s24  ;;  %12483 = vrot.lane.b32.xlu0 %v23536_v23, %s13029_s25  ;;  %23564 = vst [vmem:[#allocation7_spill] sm:$0xff] %v14284_v54  ;;  %v23566_v23 = vunpack.i.h.bf16 %v23554_v49  ;;  %23570 = vst [vmem:[#allocation66_spill] sm:$0xff] %v14303_v52  ;;  %v705_v28 = vsel %vm676_vm0, %v12080_v38, %v12081_v51  ;;  %v23576_v60 = vld [vmem:[#allocation15_spill] sm:$0xff]  ;;  %v12171_v38 = vunpack.i.h.bf16 %v14139_v25  ;;  %v12095_v52 = vunpack.i.l.bf16 %v23580_v59  ;;  %v23581_v55 = vld [vmem:[#allocation70_spill] sm:$0xff] }
  0xce   :  { %v14339_v62 = vsel %vm2150_vm1, %v13269_v61, %v705_v28  ;;  %v14344_v40 = vsel %vm2150_vm1, %v13849_v6, %v704_v14  ;;  %v12091_v45 = vunpack.i.h.bf16 %v23581_v55  ;;  %v12090_v39 = vunpack.i.l.bf16 %v23581_v55 }
  0xcf   :  { %v707_v58 = vsel %vm676_vm0, %v12085_v46, %v23566_v23  ;;  %v14293_v18 = vpop.permute.xlu1 %12208  ;;  %v14295_v57 = vpop.permute.xlu0 %12203  ;;  %v23575_v46 = vld [vmem:[#allocation22_spill] sm:$0xff]  ;;  %23578 = vst [vmem:[#allocation64_spill] sm:$0xff] %v14339_v62  ;;  %23579 = vst [vmem:[#allocation12_spill] sm:$0xff] %v14344_v40  ;;  %v23582_v61 = vunpack.i.l.bf16 %v14175_v15 }
  0xd0   :  { %v14318_v47 = vsel %vm2150_vm1, %v13766_v29, %v707_v58  ;;  %v825_v51 = vcombine.low %v23575_v46, %v23575_v46  ;;  %v12210_v23 = vunpack.i.l.bf16 %v14293_v18  ;;  %v12205_v17 = vunpack.i.l.bf16 %v14295_v57 }
  0xd1   :  { %12498 = vrot.lane.b32.xlu1 %v23557_v50, %s13032_s28  ;;  %12493 = vrot.lane.b32.xlu0 %v23572_v5, %s13028_s24  ;;  %23573 = vst [vmem:[#allocation10_spill] sm:$0xff] %v14318_v47  ;;  %v14335_v47 = vsel %vm2150_vm1, %v23576_v60, %v706_v35  ;;  %v970_v35 = vsel %vm968_vm4, %v12171_v38, %v23582_v61  ;;  %v23585_v61 = vunpack.i.h.bf16 %v14293_v18 }
  0xd2   :  { %23577 = vst [vmem:[#allocation8_spill] sm:$0xff] %v14335_v47  ;;  %v14358_v6 = vpack.i.bf16 %v23575_v46, %v825_v51  ;;  %v710_v54 = vsel %vm676_vm0, %v12091_v45, %v12095_v52 }
  0xd3   :  { %v14329_v19 = vpop.permute.xlu1 %12218  ;;  %v14331_v58 = vpop.permute.xlu0 %12213  ;;  %v1764_v51 = vsel %vm1762_vm2, %v12210_v23, %v23585_v61  ;;  %v23587_v61 = vld [vmem:[#allocation16_spill] sm:$0xff] }
  0xd4   :  { %23583 = vst [vmem:[#allocation11_spill] sm:$0xff] %v14358_v6  ;;  %v12220_v55 = vunpack.i.l.bf16 %v14329_v19  ;;  %v12215_v25 = vunpack.i.l.bf16 %v14331_v58  ;;  %v23586_v6 = vunpack.i.h.bf16 %v23580_v59 }
  0xd5   :  { %12508 = vrot.lane.b32.xlu1 %v13953_v34, %s13031_s27  ;;  %12503 = vrot.lane.b32.xlu0 %v23572_v5, %s13032_s28  ;;  %v23584_v5 = vunpack.i.h.bf16 %v14295_v57 }
  0xd6   :  { %v711_v46 = vsel %vm676_vm0, %v12095_v52, %v23586_v6  ;;  %v2217_v52 = vsel %vm2215_vm7, %v14123_v21, %v970_v35  ;;  %v1504_v26 = vsel %vm1503_vm3, %v12215_v25, %v12205_v17  ;;  %v23590_v25 = vld [vmem:[#allocation19_spill] sm:$0xff] }
  0xd7   :  { %v14364_v28 = vpop.permute.xlu1 %12228  ;;  %v14366_v34 = vpop.permute.xlu0 %12223  ;;  %v1505_v60 = vsel %vm1503_vm3, %v12205_v17, %v23584_v5  ;;  %v969_v5 = vsel %vm968_vm4, %v12170_v48, %v12171_v38  ;;  %v1763_v38 = vsel %vm1762_vm2, %v12220_v55, %v12210_v23  ;;  %v23589_v23 = vunpack.i.h.bf16 %v23554_v49 }
  0xd8   :  { %v22964_v47 = vunpack.i.h.bf16 %v14364_v28  ;;  %v12230_v14 = vunpack.i.l.bf16 %v14364_v28  ;;  %v12225_v40 = vunpack.i.l.bf16 %v14366_v34  ;;  %v23588_v59 = vunpack.i.h.bf16 %v14366_v34 }
  0xd9   :  { %12518 = vrot.lane.b32.xlu1 %v23587_v61, %s13030_s26  ;;  %12513 = vrot.lane.b32.xlu0 %v23557_v50, %s13031_s27  ;;  %v2346_v48 = vsel %vm2150_vm1, %v1505_v60, %v1764_v51  ;;  %v708_v17 = vsel %vm676_vm0, %v23589_v23, %v12090_v39  ;;  %v709_v55 = vsel %vm676_vm0, %v12090_v39, %v12091_v45 }
  0xda   :  { %v1246_v62 = vsel %vm1244_vm6, %v12230_v14, %v22964_v47  ;;  %v2023_v6 = vsel %vm2021_vm5, %v12225_v40, %v23588_v59  ;;  %v12176_v59 = vunpack.i.h.bf16 %v14175_v15  ;;  %v2216_v49 = vsel %vm2215_vm7, %v14073_v53, %v969_v5 }
  0xdb   :  { %v14399_v31 = vpop.permute.xlu1 %12238  ;;  %v14401_v50 = vpop.permute.xlu0 %12233  ;;  %v2282_v4 = vsel %vm2280_vm8, %v2217_v52, %v1246_v62  ;;  %v2410_v47 = vsel %vm2215_vm7, %v2346_v48, %v2023_v6  ;;  %v23591_v62 = vpack.i.bf16 %v13863_v11, %v13766_v29  ;;  %v2345_v52 = vsel %vm2150_vm1, %v1504_v26, %v1763_v38 }
  0xdc   :  { %v12240_v21 = vunpack.i.l.bf16 %v14399_v31  ;;  %v12235_v35 = vunpack.i.l.bf16 %v14401_v50  ;;  %v2474_v60 = vsel %vm2280_vm8, %v2410_v47, 1.0  ;;  %v14432_v29 = vsel %vm2150_vm1, %v13779_v12, %v711_v46  ;;  %v23595_v47 = vld [vmem:[#allocation20_spill] sm:$0xff] }
  0xdd   :  { %12528 = vrot.lane.b32.xlu1 %v23590_v25, %s13029_s25  ;;  %12523 = vrot.lane.b32.xlu0 %v23591_v62, %s13030_s26  ;;  %v11492_v45 = vpack.c.bf16 %v2474_v60, %v2282_v4  ;;  %23594 = vst [vmem:[#allocation85_spill] sm:$0xff] %v14432_v29  ;;  %v14436_v48 = vsel %vm2150_vm1, %v23595_v47, %v710_v54  ;;  %v23597_v26 = vunpack.i.h.bf16 %v14173_v8  ;;  %v22966_v38 = vunpack.i.h.bf16 %v14216_v0 }
  0xde   :  { %v2022_v39 = vsel %vm2021_vm5, %v12235_v35, %v12225_v40  ;;  %v1245_v6 = vsel %vm1244_vm6, %v12240_v21, %v12230_v14  ;;  %23596 = vst [vmem:[#allocation67_spill] sm:$0xff] %v14436_v48  ;;  %v14446_v40 = vsel %vm2150_vm1, %v13313_v20, %v709_v55  ;;  %v23598_v14 = vunpack.i.l.bf16 %v14175_v15 }
  0xdf   :  { %v14438_v23 = vpop.permute.xlu1 %12248  ;;  %v14440_v25 = vpop.permute.xlu0 %12243  ;;  %v2281_v53 = vsel %vm2280_vm8, %v2216_v49, %v1245_v6  ;;  %v2409_v4 = vsel %vm2215_vm7, %v2345_v52, %v2022_v39  ;;  %v973_v46 = vsel %vm968_vm4, %v12180_v1, %v23597_v26  ;;  %11494 = vmatprep.subr.msk.bf16.mxu0 %vm14421_vm12, %v11492_v45  ;;  %v972_v5 = vsel %vm968_vm4, %v12176_v59, %v12180_v1  ;;  %v23600_v39 = vld [vmem:[#allocation23_spill] sm:$0xff]  ;;  %v23603_v26 = vld [vmem:[#allocation89_spill] sm:$0xff] }
  0xe0   :  { %v971_v54 = vsel %vm968_vm4, %v23598_v14, %v12176_v59  ;;  %v12190_v21 = vunpack.i.l.bf16 %v14216_v0  ;;  %v12221_v20 = vunpack.i.h.bf16 %v14329_v19  ;;  %v2473_v15 = vsel %vm2280_vm8, %v2409_v4, 1.0 }
  0xe1   :  { %12538 = vrot.lane.b32.xlu1 %v13965_v42, %s13028_s24  ;;  %12533 = vrot.lane.b32.xlu0 %v23587_v61, %s13029_s25  ;;  %v22967_v35 = vunpack.i.l.bf16 %v13873_v30  ;;  %v12216_v55 = vunpack.i.h.bf16 %v14331_v58  ;;  %v11495_v62 = vpack.c.bf16 %v2473_v15, %v2281_v53  ;;  %v12236_v1 = vunpack.i.h.bf16 %v14401_v50 }
  0xe2   :  { %v23599_v19 = vcombine.low %v23574_v9, %v23574_v9  ;;  %v14480_v45 = vsel %vm2150_vm1, %v13863_v11, %v708_v17  ;;  %v23601_v58 = vunpack.i.h.bf16 %v13873_v30  ;;  %v14491_v6 = vsel %vm2215_vm7, %v14065_v44, %v973_v46  ;;  %v14502_v11 = vld [vmem:[%s22809_s1] sm:$0xff] }
  0xe3   :  { %v14468_v59 = vpop.permute.xlu1 %12258  ;;  %v12254_v60 = vpop.permute.xlu0 %12253  ;;  %11497 = vmatpush1.bf16.msk.msra.mxu0 %vm14421_vm12, %v11495_v62  ;;  %v14497_v52 = vsel %vm2215_vm7, %v14127_v10, %v972_v5  ;;  %v14506_v17 = vsel %vm2215_vm7, %v14131_v37, %v971_v54  ;;  %v14511_v44 = vsel %vm968_vm4, %v12190_v21, %v22966_v38  ;;  %v22968_v47 = vunpack.i.h.bf16 %v14218_v13  ;;  %v23607_v38 = vld [vmem:[#allocation75_spill] sm:$0xff] }
  0xe4   :  { %v14474_v49 = vpack.i.bf16 %v23574_v9, %v23599_v19  ;;  %v14487_v50 = vsel %vm676_vm0, %v22967_v35, %v23601_v58  ;;  %v22969_v53 = vunpack.i.l.bf16 %v14218_v13  ;;  %v23602_v10 = vunpack.i.h.bf16 %v14293_v18 }
  0xe5   :  { %12548 = vrot.lane.b32.xlu1 %v13965_v42, %s13032_s28  ;;  %12543 = vrot.lane.b32.xlu0 %v23603_v26, %s13028_s24  ;;  %v23604_v37 = vunpack.i.h.bf16 %v14295_v57  ;;  %v12241_v14 = vunpack.i.h.bf16 %v14399_v31  ;;  %v12256_v54 = vunpack.i.h.bf16 %v12254_v60  ;;  %v12255_v5 = vunpack.i.l.bf16 %v12254_v60  ;;  %v23609_v57 = vld [vmem:[#allocation91_spill] sm:$0xff] }
  0xe6   :  { %v1765_v4 = vsel %vm1762_vm2, %v23602_v10, %v12221_v20  ;;  %v23605_v15 = vunpack.i.h.bf16 %v14366_v34  ;;  %v12246_v19 = vunpack.i.h.bf16 %v14440_v25  ;;  %11302 = vmatmul.mubr.msk.f32.vlgmr.msra.gmra.mrb[0].mxu0 %vm2541_vm10, %v14502_v11  ;;  %v12245_v31 = vunpack.i.l.bf16 %v14440_v25 }
  0xe7   :  { %v1506_v46 = vsel %vm1503_vm3, %v23604_v37, %v12216_v55  ;;  %v14532_v10 = vpop.permute.xlu1 %12268  ;;  %v12264_v61 = vpop.permute.xlu0 %12263  ;;  %v23606_v37 = vmov 0.0   ;;  %v14548_v58 = vsel %vm968_vm4, %v22968_v47, %v12190_v21  ;;  %v23608_v25 = vunpack.i.h.bf16 %v14173_v8 }
  0xe8   :  { %v2024_v18 = vsel %vm2021_vm5, %v23605_v15, %v12236_v1  ;;  %v12266_v60 = vunpack.i.h.bf16 %v12264_v61  ;;  %v12265_v34 = vunpack.i.l.bf16 %v12264_v61  ;;  %2817 = vmatprep.mubr.f32.mxu0 %v23606_v37  ;;  %v14542_v15 = vld [vmem:[%s22809_s1 + $0x8] sm:$0xff]  ;;  %v2347_v62 = vsel %vm2150_vm1, %v1506_v46, %v1765_v4 }
  0xe9   :  { %v974_v61 = vsel %vm968_vm4, %v23608_v25, %v22969_v53  ;;  %12558 = vrot.lane.b32.xlu1 %v23609_v57, %s13031_s27  ;;  %12553 = vrot.lane.b32.xlu0 %v23603_v26, %s13032_s28  ;;  %v1767_v35 = vsel %vm1762_vm2, %v12255_v5, %v12256_v54  ;;  %v1766_v29 = vsel %vm1762_vm2, %v12221_v20, %v12255_v5  ;;  %v23610_v21 = vunpack.i.h.bf16 %v14364_v28 }
  0xea   :  { %v2411_v8 = vsel %vm2215_vm7, %v2347_v62, %v2024_v18  ;;  %v23611_v25 = vunpack.i.l.bf16 %v14438_v23  ;;  %v23612_v57 = vunpack.i.l.bf16 %v14468_v59  ;;  %v2026_v4 = vsel %vm2021_vm5, %v12265_v34, %v12266_v60  ;;  %11303 = vmatmul.mubr.msk.f32.gmra.mrb[2].mxu0 %vm2541_vm10, %v14542_v15 }
  0xeb   :  { %v1247_v47 = vsel %vm1244_vm6, %v23610_v21, %v12241_v14  ;;  %v14573_v46 = vpop.permute.xlu1 %12278  ;;  %v12274_v48 = vpop.permute.xlu0 %12273  ;;  %v2025_v20 = vsel %vm2021_vm5, %v12236_v1, %v12265_v34  ;;  %v1508_v28 = vsel %vm1503_vm3, %v12245_v31, %v12246_v19  ;;  %v23613_v5 = vunpack.i.l.bf16 %v14532_v10  ;;  %2823 = vmatprep.mubr.f32.mxu0 %v23606_v37  ;;  %v14588_v21 = vld [vmem:[%s22809_s1 + $0x10] sm:$0xff] }
  0xec   :  { %v1509_v53 = vsel %vm1503_vm3, %v12246_v19, %v23611_v25  ;;  %v1768_v26 = vsel %vm1762_vm2, %v12256_v54, %v23612_v57  ;;  %v12280_v62 = vunpack.i.l.bf16 %v14573_v46  ;;  %v1507_v54 = vsel %vm1503_vm3, %v12216_v55, %v12245_v31  ;;  %v23614_v19 = vld [vmem:[#allocation24_spill] sm:$0xff] }
  0xed   :  { %v2027_v18 = vsel %vm2021_vm5, %v12266_v60, %v23613_v5  ;;  %v2349_v1 = vsel %vm2150_vm1, %v1508_v28, %v1767_v35  ;;  %v12276_v34 = vunpack.i.h.bf16 %v12274_v48  ;;  %v12275_v25 = vunpack.i.l.bf16 %v12274_v48  ;;  %12568 = vrot.lane.b32.xlu1 %v23614_v19, %s13030_s26  ;;  %12563 = vrot.lane.b32.xlu0 %v13965_v42, %s13031_s27 }
  0xee   :  { %v2348_v60 = vsel %vm2150_vm1, %v1507_v54, %v1766_v29  ;;  %v2221_v55 = vsel %vm2215_vm7, %v14089_v16, %v974_v61  ;;  %v2350_v31 = vsel %vm2150_vm1, %v1509_v53, %v1768_v26  ;;  %v2413_v57 = vsel %vm2215_vm7, %v2349_v1, %v2026_v4  ;;  %11304 = vmatmul.mubr.msk.f32.gmra.mrb[4].mxu0 %vm2541_vm10, %v14588_v21  ;;  %v23615_v54 = vld [vmem:[#allocation25_spill] sm:$0xff] }
  0xef   :  { %v2412_v5 = vsel %vm2215_vm7, %v2348_v60, %v2025_v20  ;;  %v1250_v48 = vsel %vm1244_vm6, %v12276_v34, %v12280_v62  ;;  %v1249_v35 = vsel %vm1244_vm6, %v12275_v25, %v12276_v34  ;;  %v14605_v28 = vpop.permute.xlu1 %12288  ;;  %v14607_v42 = vpop.permute.xlu0 %12283  ;;  %v1248_v29 = vsel %vm1244_vm6, %v12241_v14, %v12275_v25  ;;  %2829 = vmatprep.mubr.f32.mxu0 %v23606_v37  ;;  %v14623_v14 = vld [vmem:[%s22809_s1 + $0x18] sm:$0xff] }
  0xf0   :  { %v2414_v16 = vsel %vm2215_vm7, %v2350_v31, %v2027_v18  ;;  %v12251_v53 = vunpack.i.h.bf16 %v14438_v23  ;;  %v2285_v61 = vsel %vm2280_vm8, %v14491_v6, %v1249_v35  ;;  %v2283_v26 = vsel %vm2280_vm8, %v14506_v17, %v1247_v47 }
  0xf1   :  { %v2475_v4 = vsel %vm2280_vm8, %v2411_v8, 1.0  ;;  %v12261_v20 = vunpack.i.h.bf16 %v14468_v59  ;;  %v2477_v18 = vsel %vm2280_vm8, %v2413_v57, 1.0  ;;  %12578 = vrot.lane.b32.xlu1 %v23615_v54, %s13029_s25  ;;  %v23616_v6 = vpack.i.bf16 %v13867_v36, %v13779_v12 }
  0xf2   :  { %v2284_v17 = vsel %vm2280_vm8, %v14497_v52, %v1248_v29  ;;  %v2476_v47 = vsel %vm2280_vm8, %v2412_v5, 1.0  ;;  %v11507_v8 = vpack.c.bf16 %v2477_v18, %v2285_v61  ;;  %v2286_v34 = vsel %vm2280_vm8, %v2221_v55, %v1250_v48  ;;  %11305 = vmatmul.mubr.msk.f32.gmra.mrb[6].mxu0 %vm2541_vm10, %v14623_v14 }
  0xf3   :  { %12573 = vrot.lane.b32.xlu0 %v23616_v6, %s13030_s26  ;;  %v11498_v1 = vpack.c.bf16 %v2476_v47, %v2284_v17  ;;  %v2478_v25 = vsel %vm2280_vm8, %v2414_v16, 1.0  ;;  %v23617_v60 = vunpack.i.l.bf16 %v13873_v30  ;;  %v23618_v31 = vunpack.i.h.bf16 %v23607_v38  ;;  %v14646_v35 = vpop.permute.xlu1 %12298  ;;  %v12294_v52 = vpop.permute.xlu0 %12293  ;;  %v23621_v16 = vld [vmem:[#allocation82_spill] sm:$0xff]  ;;  %2989 = vmatprep.mubr.f32.mxu0 %v23606_v37 }
  0xf4   :  { %v12271_v12 = vunpack.i.h.bf16 %v14532_v10  ;;  %v11504_v36 = vpack.c.bf16 %v2478_v25, %v2286_v34  ;;  %v11501_v5 = vpack.c.bf16 %v2475_v4, %v2283_v26  ;;  %v14653_v55 = vsel %vm2150_vm1, %v13786_v43, %v14487_v50 }
  0xf5   :  { %v14643_v57 = vsel %vm676_vm0, %v23618_v31, %v23617_v60  ;;  %v23619_v30 = vmov %v23618_v31  ;;  %v23620_v48 = vunpack.i.l.bf16 %v23607_v38  ;;  %v12115_v61 = vunpack.i.l.bf16 %v23621_v16  ;;  %11500 = vmatprep.subr.msk.bf16.mxu1 %vm14421_vm12, %v11498_v1  ;;  %12588 = vrot.lane.b32.xlu1 %v14018_v7, %s13028_s24 }
  0xf6   :  { %v23622_v18 = vunpack.i.h.bf16 %v14218_v13  ;;  %v23623_v26 = vunpack.i.l.bf16 %v14218_v13  ;;  %v14674_v38 = vsel %vm2215_vm7, %v14171_v41, %v14511_v44  ;;  %v14679_v50 = vsel %vm2215_vm7, %v14167_v22, %v14548_v58  ;;  %11506 = vmatprep.subr.msk.bf16.mxu0 %vm14421_vm12, %v11504_v36  ;;  %11503 = vmatpush1.bf16.msk.msra.mxu1 %vm14421_vm12, %v11501_v5  ;;  %v23627_v5 = vld [vmem:[#allocation83_spill] sm:$0xff] }
  0xf7   :  { %v14660_v29 = vsel %vm676_vm0, %v23620_v48, %v23619_v30  ;;  %v12195_v54 = vunpack.i.l.bf16 %v14254_v24  ;;  %v23624_v13 = vunpack.i.l.bf16 %v14438_v23  ;;  %v23625_v41 = vunpack.i.l.bf16 %v14468_v59  ;;  %11509 = vmatpush1.bf16.msk.msra.mxu0 %vm14421_vm12, %v11507_v8  ;;  %v14705_v59 = vpop.permute.xlu1 %12308  ;;  %v12304_v31 = vpop.permute.xlu0 %12303  ;;  %12583 = vrot.lane.b32.xlu0 %v23614_v19, %s13029_s25 }
  0xf8   :  { %v975_v4 = vsel %vm968_vm4, %v23623_v26, %v23622_v18  ;;  %v12281_v22 = vunpack.i.h.bf16 %v14573_v46  ;;  %v12296_v58 = vunpack.i.h.bf16 %v12294_v52  ;;  %v12295_v17 = vunpack.i.l.bf16 %v12294_v52 }
  0xf9   :  { %v1510_v6 = vsel %vm1503_vm3, %v23624_v13, %v12251_v53  ;;  %v1769_v44 = vsel %vm1762_vm2, %v23625_v41, %v12261_v20  ;;  %v23626_v47 = vunpack.i.l.bf16 %v14532_v10  ;;  %v12290_v34 = vunpack.i.l.bf16 %v14605_v28  ;;  %11308 = vmatmul.mubr.msk.f32.vlgmr.msra.gmra.mrb[0].mxu1 %vm2541_vm10, %v14502_v11  ;;  %12598 = vrot.lane.b32.xlu1 %v14018_v7, %s13032_s28 }
  0xfa   :  { %v12286_v25 = vunpack.i.h.bf16 %v14607_v42  ;;  %v12300_v60 = vunpack.i.l.bf16 %v14646_v35  ;;  %v12285_v36 = vunpack.i.l.bf16 %v14607_v42  ;;  %v12310_v10 = vunpack.i.l.bf16 %v14705_v59  ;;  %11314 = vmatmul.mubr.msk.f32.vlgmr.msra.gmra.mrb[8].mxu0 %vm2541_vm10, %v14502_v11  ;;  %2906 = vmatprep.mubr.f32.mxu1 %v23606_v37 }
  0xfb   :  { %v2028_v1 = vsel %vm2021_vm5, %v23626_v47, %v12271_v12  ;;  %v12306_v8 = vunpack.i.h.bf16 %v12304_v31  ;;  %v12305_v52 = vunpack.i.l.bf16 %v12304_v31  ;;  %v12111_v30 = vunpack.i.h.bf16 %v23627_v5  ;;  %2995 = vmatprep.mubr.f32.mxu0 %v23606_v37  ;;  %12593 = vrot.lane.b32.xlu0 %v14028_v33, %s13028_s24 }
  0xfc   :  { %v2222_v48 = vsel %vm2215_vm7, %v14093_v3, %v975_v4  ;;  %v23628_v18 = vunpack.i.h.bf16 %v14216_v0  ;;  %v2351_v19 = vsel %vm2150_vm1, %v1510_v6, %v1769_v44  ;;  %v1251_v13 = vsel %vm1244_vm6, %v12280_v62, %v12281_v22  ;;  %v14742_v62 = vpop.permute.xlu1 %12318 }
  0xfd   :  { %v2415_v26 = vsel %vm2215_vm7, %v2351_v19, %v2028_v1  ;;  %v1770_v3 = vsel %vm1762_vm2, %v12261_v20, %v12295_v17  ;;  %v1771_v4 = vsel %vm1762_vm2, %v12295_v17, %v12296_v58  ;;  %v1513_v0 = vsel %vm1503_vm3, %v12286_v25, %v12290_v34  ;;  %v12314_v20 = vpop.permute.xlu0 %12313  ;;  %11309 = vmatmul.mubr.msk.f32.gmra.mrb[2].mxu1 %vm2541_vm10, %v14542_v15 }
  0xfe   :  { %v978_v42 = vsel %vm968_vm4, %v23628_v18, %v12195_v54  ;;  %v1772_v6 = vsel %vm1762_vm2, %v12296_v58, %v12300_v60  ;;  %v2029_v41 = vsel %vm2021_vm5, %v12271_v12, %v12305_v52  ;;  %v2030_v46 = vsel %vm2021_vm5, %v12305_v52, %v12306_v8  ;;  %2912 = vmatprep.mubr.f32.mxu1 %v23606_v37 }
  0xff   :  { %v1511_v44 = vsel %vm1503_vm3, %v12251_v53, %v12285_v36  ;;  %v1512_v17 = vsel %vm1503_vm3, %v12285_v36, %v12286_v25  ;;  %v2031_v58 = vsel %vm2021_vm5, %v12306_v8, %v12310_v10  ;;  %v12320_v12 = vunpack.i.l.bf16 %v14742_v62  ;;  %11315 = vmatmul.mubr.msk.f32.gmra.mrb[10].mxu0 %vm2541_vm10, %v14542_v15  ;;  %12603 = vrot.lane.b32.xlu0 %v14028_v33, %s13032_s28 }
 0x100   :  { %v2352_v47 = vsel %vm2150_vm1, %v1511_v44, %v1770_v3  ;;  %v2353_v23 = vsel %vm2150_vm1, %v1512_v17, %v1771_v4  ;;  %v12316_v1 = vunpack.i.h.bf16 %v12314_v20  ;;  %v12315_v53 = vunpack.i.l.bf16 %v12314_v20  ;;  %3001 = vmatprep.mubr.f32.mxu0 %v23606_v37  ;;  %v23629_v3 = vld [vmem:[#allocation97_spill] sm:$0xff] }
 0x101   :  { %v2225_v25 = vsel %vm2215_vm7, %v14145_v27, %v978_v42  ;;  %v2354_v31 = vsel %vm2150_vm1, %v1513_v0, %v1772_v6  ;;  %v2417_v36 = vsel %vm2215_vm7, %v2353_v23, %v2030_v46  ;;  %v2416_v8 = vsel %vm2215_vm7, %v2352_v47, %v2029_v41  ;;  %12608 = vrot.lane.b32.xlu1 %v23629_v3, %s13031_s27  ;;  %v14774_v27 = vpop.permute.xlu1 %12328  ;;  %v14776_v42 = vpop.permute.xlu0 %12323  ;;  %v23630_v47 = vld [vmem:[#allocation28_spill] sm:$0xff] }
 0x102   :  { %v1254_v52 = vsel %vm1244_vm6, %v12316_v1, %v12320_v12  ;;  %v1252_v18 = vsel %vm1244_vm6, %v12281_v22, %v12315_v53  ;;  %v1253_v19 = vsel %vm1244_vm6, %v12315_v53, %v12316_v1  ;;  %v2418_v4 = vsel %vm2215_vm7, %v2354_v31, %v2031_v58  ;;  %11310 = vmatmul.mubr.msk.f32.gmra.mrb[4].mxu1 %vm2541_vm10, %v14588_v21  ;;  %v23631_v31 = vld [vmem:[#allocation21_spill] sm:$0xff] }
 0x103   :  { %v2479_v0 = vsel %vm2280_vm8, %v2415_v26, 1.0  ;;  %v2287_v6 = vsel %vm2280_vm8, %v2222_v48, %v1251_v13  ;;  %v12291_v41 = vunpack.i.h.bf16 %v14605_v28  ;;  %v2289_v22 = vsel %vm2280_vm8, %v14674_v38, %v1253_v19  ;;  %2918 = vmatprep.mubr.f32.mxu1 %v23606_v37  ;;  %11316 = vmatmul.mubr.msk.f32.gmra.mrb[12].mxu0 %vm2541_vm10, %v14588_v21 }
 0x104   :  { %v12301_v46 = vunpack.i.h.bf16 %v14646_v35  ;;  %v2481_v20 = vsel %vm2280_vm8, %v2417_v36, 1.0  ;;  %v2288_v26 = vsel %vm2280_vm8, %v14679_v50, %v1252_v18  ;;  %v2480_v48 = vsel %vm2280_vm8, %v2416_v8, 1.0  ;;  %3007 = vmatprep.mubr.f32.mxu0 %v23606_v37  ;;  %12613 = vrot.lane.b32.xlu0 %v14018_v7, %s13031_s27 }
 0x105   :  { %v11519_v38 = vpack.c.bf16 %v2481_v20, %v2289_v22  ;;  %v11510_v13 = vpack.c.bf16 %v2480_v48, %v2288_v26  ;;  %v2290_v33 = vsel %vm2280_vm8, %v2225_v25, %v1254_v52  ;;  %v2482_v44 = vsel %vm2280_vm8, %v2418_v4, 1.0  ;;  %12618 = vrot.lane.b32.xlu1 %v23630_v47, %s13030_s26  ;;  %v14803_v1 = vpop.permute.xlu1 %12338  ;;  %v14805_v53 = vpop.permute.xlu0 %12333 }
 0x106   :  { %v12196_v17 = vunpack.i.h.bf16 %v14254_v24  ;;  %v11513_v58 = vpack.c.bf16 %v2479_v0, %v2287_v6  ;;  %v12311_v50 = vunpack.i.h.bf16 %v14705_v59  ;;  %v11516_v23 = vpack.c.bf16 %v2482_v44, %v2290_v33  ;;  %11311 = vmatmul.mubr.msk.f32.gmra.mrb[6].mxu1 %vm2541_vm10, %v14623_v14 }
 0x107   :  { %v14810_v25 = vsel %vm2150_vm1, %v23631_v31, %v14643_v57  ;;  %v14815_v36 = vsel %vm2150_vm1, %v23527_v2, %v14660_v29  ;;  %11512 = vmatprep.subr.msk.bf16.mxu1 %vm14421_vm12, %v11510_v13  ;;  %v23632_v8 = vcombine.low %v23600_v39, %v23600_v39  ;;  %v12201_v57 = vunpack.i.h.bf16 %v14252_v32  ;;  %3078 = vmatprep.mubr.f32.mxu1 %v23606_v37 }
 0x108   :  { %v12200_v18 = vunpack.i.l.bf16 %v14252_v32  ;;  %11518 = vmatprep.subr.msk.bf16.mxu0 %vm14421_vm12, %v11516_v23  ;;  %v12335_v2 = vunpack.i.l.bf16 %v14805_v53  ;;  %11515 = vmatpush1.bf16.msk.msra.mxu1 %vm14421_vm12, %v11513_v58  ;;  %v23633_v7 = vunpack.i.h.bf16 %v23621_v16  ;;  %v1514_v19 = vsel %vm1503_vm3, %v12290_v34, %v12291_v41  ;;  %v23634_v34 = vld [vmem:[#allocation29_spill] sm:$0xff] }
 0x109   :  { %v14825_v52 = vpack.i.bf16 %v23600_v39, %v23632_v8  ;;  %v14846_v39 = vsel %vm676_vm0, %v12111_v30, %v12115_v61  ;;  %v1773_v3 = vsel %vm1762_vm2, %v12300_v60, %v12301_v46  ;;  %11521 = vmatpush1.bf16.msk.msra.mxu0 %vm14421_vm12, %v11519_v38  ;;  %v979_v16 = vsel %vm968_vm4, %v12195_v54, %v12196_v17  ;;  %v12349_v35 = vpop.permute.xlu1 %12348  ;;  %v14868_v60 = vpop.permute.xlu0 %12343 }
 0x10a   :  { %v14839_v29 = vsel %vm676_vm0, %v12115_v61, %v23633_v7  ;;  %v2032_v61 = vsel %vm2021_vm5, %v12310_v10, %v12311_v50  ;;  %v12321_v4 = vunpack.i.h.bf16 %v14742_v62  ;;  %v12325_v0 = vunpack.i.l.bf16 %v14776_v42  ;;  %12628 = vrot.lane.b32.xlu1 %v23634_v34, %s13029_s25  ;;  %11317 = vmatmul.mubr.msk.f32.gmra.mrb[14].mxu0 %vm2541_vm10, %v14623_v14 }
 0x10b   :  { %v23635_v24 = vunpack.i.l.bf16 %v23627_v5  ;;  %v12340_v59 = vunpack.i.l.bf16 %v14803_v1  ;;  %v12336_v10 = vunpack.i.h.bf16 %v14805_v53  ;;  %v23636_v6 = vpack.i.bf16 %v13871_v56, %v13786_v43  ;;  %3167 = vmatprep.mubr.f32.mxu0 %v23606_v37  ;;  %11320 = vmatmul.mubr.msk.f32.vlgmr.msra.gmra.mrb[8].mxu1 %vm2541_vm10, %v14502_v11  ;;  %v23638_v53 = vld [vmem:[#allocation105_spill] sm:$0xff] }
 0x10c   :  { %v12350_v22 = vunpack.i.l.bf16 %v12349_v35  ;;  %v981_v5 = vsel %vm968_vm4, %v12200_v18, %v12201_v57  ;;  %v1774_v20 = vsel %vm1762_vm2, %v12301_v46, %v12335_v2  ;;  %v980_v43 = vsel %vm968_vm4, %v12196_v17, %v12200_v18  ;;  %3084 = vmatprep.mubr.f32.mxu1 %v23606_v37 }
 0x10d   :  { %v14875_v54 = vsel %vm676_vm0, %v23635_v24, %v12111_v30  ;;  %12623 = vrot.lane.b32.xlu0 %v23636_v6, %s13030_s26  ;;  %v2355_v30 = vsel %vm2150_vm1, %v1514_v19, %v1773_v3  ;;  %v2226_v56 = vsel %vm2215_vm7, %v14135_v63, %v979_v16  ;;  %v1255_v46 = vsel %vm1244_vm6, %v12320_v12, %v12321_v4  ;;  %v23637_v63 = vld [vmem:[#allocation58_spill] sm:$0xff]  ;;  %v12359_v44 = vpop.permute.xlu1 %12358  ;;  %v14909_v17 = vpop.permute.xlu0 %12353 }
 0x10e   :  { %v2419_v26 = vsel %vm2215_vm7, %v2355_v30, %v2032_v61  ;;  %v2033_v48 = vsel %vm2021_vm5, %v12311_v50, %v12350_v22  ;;  %v12330_v38 = vunpack.i.l.bf16 %v14774_v27  ;;  %v12326_v13 = vunpack.i.h.bf16 %v14776_v42  ;;  %12638 = vrot.lane.b32.xlu1 %v23637_v63, %s13028_s24  ;;  %11326 = vmatmul.mubr.msk.f32.vlgmr.msra.gmra.mrb[16].mxu0 %vm2541_vm10, %v14502_v11 }
 0x10f   :  { %v1515_v33 = vsel %vm1503_vm3, %v12291_v41, %v12325_v0  ;;  %v1776_v62 = vsel %vm1762_vm2, %v12336_v10, %v12340_v59  ;;  %v12351_v58 = vunpack.i.h.bf16 %v12349_v35  ;;  %v12360_v42 = vunpack.i.l.bf16 %v12359_v44  ;;  %3173 = vmatprep.mubr.f32.mxu0 %v23606_v37  ;;  %11321 = vmatmul.mubr.msk.f32.gmra.mrb[10].mxu1 %vm2541_vm10, %v14542_v15 }
 0x110   :  { %v2356_v12 = vsel %vm2150_vm1, %v1515_v33, %v1774_v20  ;;  %v12345_v28 = vunpack.i.l.bf16 %v14868_v60  ;;  %v12361_v41 = vunpack.i.h.bf16 %v12359_v44  ;;  %v12355_v50 = vunpack.i.l.bf16 %v14909_v17  ;;  %3090 = vmatprep.mubr.f32.mxu1 %v23606_v37  ;;  %v23642_v44 = vld [vmem:[#allocation87_spill] sm:$0xff] }
 0x111   :  { %12633 = vrot.lane.b32.xlu0 %v23630_v47, %s13029_s25  ;;  %v2420_v23 = vsel %vm2215_vm7, %v2356_v12, %v2033_v48  ;;  %v2227_v31 = vsel %vm2215_vm7, %v23638_v53, %v980_v43  ;;  %v2483_v47 = vsel %vm2280_vm8, %v2419_v26, 1.0  ;;  %v2291_v8 = vsel %vm2280_vm8, %v2226_v56, %v1255_v46  ;;  %v14940_v16 = vpop.permute.xlu1 %12368  ;;  %v14942_v61 = vpop.permute.xlu0 %12363  ;;  %v23640_v56 = vld [vmem:[#allocation5_spill] sm:$0xff]  ;;  %v23643_v12 = vld [vmem:[#allocation88_spill] sm:$0xff] }
 0x112   :  { %v1256_v18 = vsel %vm1244_vm6, %v12321_v4, %v12360_v42  ;;  %v1517_v7 = vsel %vm1503_vm3, %v12326_v13, %v12330_v38  ;;  %v1775_v19 = vsel %vm1762_vm2, %v12335_v2, %v12336_v10  ;;  %v2035_v3 = vsel %vm2021_vm5, %v12351_v58, %v12355_v50  ;;  %12648 = vrot.lane.b32.xlu1 %v23637_v63, %s13032_s28  ;;  %v23639_v2 = vld [vmem:[#allocation63_spill] sm:$0xff] }
 0x113   :  { %v2292_v4 = vsel %vm2280_vm8, %v2227_v31, %v1256_v18  ;;  %v1516_v34 = vsel %vm1503_vm3, %v12325_v0, %v12326_v13  ;;  %v2358_v35 = vsel %vm2150_vm1, %v1517_v7, %v1776_v62  ;;  %v2034_v24 = vsel %vm2021_vm5, %v12350_v22, %v12351_v58  ;;  %11327 = vmatmul.mubr.msk.f32.gmra.mrb[18].mxu0 %vm2541_vm10, %v14542_v15  ;;  %v23641_v13 = vld [vmem:[#allocation7_spill] sm:$0xff]  ;;  %v23644_v58 = vld [vmem:[#allocation6_spill] sm:$0xff] }
 0x114   :  { %v2484_v10 = vsel %vm2280_vm8, %v2420_v23, 1.0  ;;  %v982_v6 = vsel %vm968_vm4, %v12201_v57, %v12345_v28  ;;  %v1257_v0 = vsel %vm1244_vm6, %v12360_v42, %v12361_v41  ;;  %v12365_v30 = vunpack.i.l.bf16 %v14942_v61  ;;  %3179 = vmatprep.mubr.f32.mxu0 %v23606_v37  ;;  %11322 = vmatmul.mubr.msk.f32.gmra.mrb[12].mxu1 %vm2541_vm10, %v14588_v21 }
 0x115   :  { %12643 = vrot.lane.b32.xlu0 %v23639_v2, %s13028_s24  ;;  %v11522_v20 = vpack.c.bf16 %v2484_v10, %v2292_v4  ;;  %v14966_v22 = vsel %vm2150_vm1, %v23574_v9, %v14839_v29  ;;  %v11525_v43 = vpack.c.bf16 %v2483_v47, %v2291_v8  ;;  %v2357_v32 = vsel %vm2150_vm1, %v1516_v34, %v1775_v19  ;;  %v14981_v29 = vpop.permute.xlu1 %12378  ;;  %v14983_v33 = vpop.permute.xlu0 %12373  ;;  %v23646_v34 = vld [vmem:[#allocation22_spill] sm:$0xff] }
 0x116   :  { %v2422_v57 = vsel %vm2215_vm7, %v2358_v35, %v2035_v3  ;;  %v2228_v26 = vsel %vm2215_vm7, %v23640_v56, %v981_v5  ;;  %v2421_v48 = vsel %vm2215_vm7, %v2357_v32, %v2034_v24  ;;  %v1258_v46 = vsel %vm1244_vm6, %v12361_v41, %v12365_v30  ;;  %12658 = vrot.lane.b32.xlu1 %v23641_v13, %s13031_s27  ;;  %v23645_v3 = vld [vmem:[#allocation26_spill] sm:$0xff] }
 0x117   :  { %11524 = vmatprep.subr.msk.bf16.mxu1 %vm14421_vm12, %v11522_v20  ;;  %v12125_v62 = vunpack.i.l.bf16 %v23642_v44  ;;  %v12121_v5 = vunpack.i.h.bf16 %v23643_v12  ;;  %v2229_v42 = vsel %vm2215_vm7, %v23644_v58, %v982_v6  ;;  %v2293_v23 = vsel %vm2280_vm8, %v2228_v26, %v1257_v0  ;;  %11328 = vmatmul.mubr.msk.f32.gmra.mrb[20].mxu0 %vm2541_vm10, %v14588_v21 }
 0x118   :  { %11527 = vmatpush1.bf16.msk.msra.mxu1 %vm14421_vm12, %v11525_v43  ;;  %v12331_v41 = vunpack.i.h.bf16 %v14774_v27  ;;  %v12341_v53 = vunpack.i.h.bf16 %v14803_v1  ;;  %v2294_v31 = vsel %vm2280_vm8, %v2229_v42, %v1258_v46  ;;  %v2486_v47 = vsel %vm2280_vm8, %v2422_v57, 1.0  ;;  %3096 = vmatprep.mubr.f32.mxu1 %v23606_v37  ;;  %v23655_v42 = vld [vmem:[#allocation27_spill] sm:$0xff] }
 0x119   :  { %12653 = vrot.lane.b32.xlu0 %v23639_v2, %s13032_s28  ;;  %v2485_v8 = vsel %vm2280_vm8, %v2421_v48, 1.0  ;;  %v12346_v18 = vunpack.i.h.bf16 %v14868_v60  ;;  %v12356_v7 = vunpack.i.h.bf16 %v14909_v17  ;;  %v11528_v19 = vpack.c.bf16 %v2486_v47, %v2294_v31  ;;  %3185 = vmatprep.mubr.f32.mxu0 %v23606_v37  ;;  %v23647_v2 = vld [vmem:[#allocation31_spill] sm:$0xff]  ;;  %v15019_v10 = vpop.permute.xlu1 %12388  ;;  %v15021_v6 = vpop.permute.xlu0 %12383  ;;  %v23651_v48 = vld [vmem:[#allocation33_spill] sm:$0xff]  ;;  %v23656_v31 = vld [vmem:[#allocation92_spill] sm:$0xff] }
 0x11a   :  { %v15010_v4 = vsel %vm2150_vm1, %v23645_v3, %v14846_v39  ;;  %v15015_v35 = vsel %vm2150_vm1, %v23646_v34, %v14875_v54  ;;  %v11531_v24 = vpack.c.bf16 %v2485_v8, %v2293_v23  ;;  %12668 = vrot.lane.b32.xlu1 %v23647_v2, %s13030_s26  ;;  %v23648_v0 = vunpack.i.h.bf16 %v23642_v44  ;;  %11323 = vmatmul.mubr.msk.f32.gmra.mrb[14].mxu1 %vm2541_vm10, %v14623_v14  ;;  %v23657_v8 = vld [vmem:[#allocation17_spill] sm:$0xff] }
 0x11b   :  { %v722_v39 = vsel %vm676_vm0, %v12121_v5, %v12125_v62  ;;  %v12380_v43 = vunpack.i.l.bf16 %v14981_v29  ;;  %11530 = vmatprep.subr.msk.bf16.mxu0 %vm14421_vm12, %v11528_v19  ;;  %v23649_v54 = vunpack.i.l.bf16 %v23643_v12  ;;  %v1518_v57 = vsel %vm1503_vm3, %v12330_v38, %v12331_v41  ;;  %11329 = vmatmul.mubr.msk.f32.gmra.mrb[22].mxu0 %vm2541_vm10, %v14623_v14  ;;  %v23653_v12 = vld [vmem:[#allocation77_spill] sm:$0xff] }
 0x11c   :  { %v723_v20 = vsel %vm676_vm0, %v12125_v62, %v23648_v0  ;;  %v1777_v56 = vsel %vm1762_vm2, %v12340_v59, %v12341_v53  ;;  %11533 = vmatpush1.bf16.msk.msra.mxu0 %vm14421_vm12, %v11531_v24  ;;  %v2036_v27 = vsel %vm2021_vm5, %v12355_v50, %v12356_v7  ;;  %v12371_v38 = vunpack.i.h.bf16 %v14940_v16  ;;  %v23650_v59 = vld [vmem:[#allocation68_spill] sm:$0xff]  ;;  %3256 = vmatprep.mubr.f32.mxu1 %v23606_v37 }
 0x11d   :  { %12663 = vrot.lane.b32.xlu0 %v23637_v63, %s13031_s27  ;;  %v721_v32 = vsel %vm676_vm0, %v23649_v54, %v12121_v5  ;;  %v983_v63 = vsel %vm968_vm4, %v12345_v28, %v12346_v18  ;;  %v12370_v1 = vunpack.i.l.bf16 %v14940_v16  ;;  %v15057_v26 = vsel %vm2150_vm1, %v23650_v59, %v723_v20  ;;  %v23652_v50 = vld [vmem:[#allocation32_spill] sm:$0xff]  ;;  %v12399_v46 = vpop.permute.xlu1 %12398  ;;  %v15067_v16 = vpop.permute.xlu0 %12393  ;;  %3345 = vmatprep.mubr.f32.mxu0 %v23606_v37 }
 0x11e   :  { %v15061_v60 = vsel %vm2150_vm1, %v23651_v48, %v722_v39  ;;  %v12366_v28 = vunpack.i.h.bf16 %v14942_v61  ;;  %v12390_v17 = vunpack.i.l.bf16 %v15019_v10  ;;  %12678 = vrot.lane.b32.xlu1 %v23652_v50, %s13029_s25  ;;  %v2359_v13 = vsel %vm2150_vm1, %v1518_v57, %v1777_v56  ;;  %11332 = vmatmul.mubr.msk.f32.vlgmr.msra.gmra.mrb[16].mxu1 %vm2541_vm10, %v14502_v11 }
 0x11f   :  { %v1778_v44 = vsel %vm1762_vm2, %v12341_v53, %v12380_v43  ;;  %v12385_v62 = vunpack.i.l.bf16 %v15021_v6  ;;  %v23654_v5 = vpack.i.bf16 %v23653_v12, %v23574_v9  ;;  %v12400_v58 = vunpack.i.l.bf16 %v12399_v46  ;;  %11338 = vmatmul.mubr.msk.f32.vlgmr.msra.gmra.mrb[24].mxu0 %vm2541_vm10, %v14502_v11  ;;  %3262 = vmatprep.mubr.f32.mxu1 %v23606_v37 }
 0x120   :  { %v15081_v23 = vsel %vm2150_vm1, %v23655_v42, %v721_v32  ;;  %v12135_v47 = vunpack.i.l.bf16 %v23656_v31  ;;  %v2230_v19 = vsel %vm2215_vm7, %v23657_v8, %v983_v63  ;;  %v2423_v53 = vsel %vm2215_vm7, %v2359_v13, %v2036_v27  ;;  %3351 = vmatprep.mubr.f32.mxu0 %v23606_v37 }
 0x121   :  { %12673 = vrot.lane.b32.xlu0 %v23654_v5, %s13030_s26  ;;  %v1519_v9 = vsel %vm1503_vm3, %v12331_v41, %v12370_v1  ;;  %v1520_v3 = vsel %vm1503_vm3, %v12370_v1, %v12371_v38  ;;  %v12381_v34 = vunpack.i.h.bf16 %v14981_v29  ;;  %v2037_v24 = vsel %vm2021_vm5, %v12356_v7, %v12400_v58  ;;  %v23658_v41 = vld [vmem:[#allocation11_spill] sm:$0xff]  ;;  %v12409_v32 = vpop.permute.xlu1 %12408  ;;  %v15104_v57 = vpop.permute.xlu0 %12403 }
 0x122   :  { %v1259_v0 = vsel %vm1244_vm6, %v12365_v30, %v12366_v28  ;;  %v2360_v20 = vsel %vm2150_vm1, %v1519_v9, %v1778_v44  ;;  %v12375_v39 = vunpack.i.l.bf16 %v14983_v33  ;;  %v984_v54 = vsel %vm968_vm4, %v12346_v18, %v12390_v17  ;;  %12688 = vrot.lane.b32.xlu1 %v23658_v41, %s13028_s24  ;;  %11333 = vmatmul.mubr.msk.f32.gmra.mrb[18].mxu1 %vm2541_vm10, %v14542_v15 }
 0x123   :  { %v12391_v7 = vunpack.i.h.bf16 %v15019_v10  ;;  %v1780_v61 = vsel %vm1762_vm2, %v12381_v34, %v12385_v62  ;;  %v12401_v56 = vunpack.i.h.bf16 %v12399_v46  ;;  %v12410_v30 = vunpack.i.l.bf16 %v12409_v32  ;;  %11339 = vmatmul.mubr.msk.f32.gmra.mrb[26].mxu0 %vm2541_vm10, %v14542_v15  ;;  %3268 = vmatprep.mubr.f32.mxu1 %v23606_v37 }
 0x124   :  { %v12395_v18 = vunpack.i.l.bf16 %v15067_v16  ;;  %v12411_v63 = vunpack.i.h.bf16 %v12409_v32  ;;  %v12405_v27 = vunpack.i.l.bf16 %v15104_v57  ;;  %v2424_v1 = vsel %vm2215_vm7, %v2360_v20, %v2037_v24  ;;  %3357 = vmatprep.mubr.f32.mxu0 %v23606_v37  ;;  %v23661_v32 = vld [vmem:[#allocation62_spill] sm:$0xff] }
 0x125   :  { %12683 = vrot.lane.b32.xlu0 %v23647_v2, %s13029_s25  ;;  %v2487_v10 = vsel %vm2280_vm8, %v2423_v53, 1.0  ;;  %v2295_v48 = vsel %vm2280_vm8, %v2230_v19, %v1259_v0  ;;  %v23659_v2 = vld [vmem:[#allocation59_spill] sm:$0xff]  ;;  %v1260_v46 = vsel %vm1244_vm6, %v12366_v28, %v12410_v30  ;;  %v1779_v13 = vsel %vm1762_vm2, %v12380_v43, %v12381_v34  ;;  %v15138_v28 = vpop.permute.xlu1 %12418  ;;  %v15140_v5 = vpop.permute.xlu0 %12413 }
 0x126   :  { %v2231_v50 = vsel %vm2215_vm7, %v23659_v2, %v984_v54  ;;  %v1521_v44 = vsel %vm1503_vm3, %v12371_v38, %v12375_v39  ;;  %v2039_v12 = vsel %vm2021_vm5, %v12401_v56, %v12405_v27  ;;  %12698 = vrot.lane.b32.xlu1 %v23658_v41, %s13032_s28  ;;  %v985_v29 = vsel %vm968_vm4, %v12390_v17, %v12391_v7 }
 0x127   :  { %v2296_v8 = vsel %vm2280_vm8, %v2231_v50, %v1260_v46  ;;  %v2362_v43 = vsel %vm2150_vm1, %v1521_v44, %v1780_v61  ;;  %v2038_v19 = vsel %vm2021_vm5, %v12400_v58, %v12401_v56  ;;  %v2488_v38 = vsel %vm2280_vm8, %v2424_v1, 1.0  ;;  %11334 = vmatmul.mubr.msk.f32.gmra.mrb[20].mxu1 %vm2541_vm10, %v14588_v21  ;;  %v23660_v58 = vld [vmem:[#allocation93_spill] sm:$0xff]  ;;  %11340 = vmatmul.mubr.msk.f32.gmra.mrb[28].mxu0 %vm2541_vm10, %v14588_v21 }
 0x128   :  { %v986_v53 = vsel %vm968_vm4, %v12391_v7, %v12395_v18  ;;  %v1261_v9 = vsel %vm1244_vm6, %v12410_v30, %v12411_v63  ;;  %v12415_v34 = vunpack.i.l.bf16 %v15140_v5  ;;  %v11534_v17 = vpack.c.bf16 %v2488_v38, %v2296_v8  ;;  %3274 = vmatprep.mubr.f32.mxu1 %v23606_v37  ;;  %3363 = vmatprep.mubr.f32.mxu0 %v23606_v37  ;;  %v23663_v8 = vld [vmem:[#allocation78_spill] sm:$0xff] }
 0x129   :  { %12693 = vrot.lane.b32.xlu0 %v14474_v49, %s13028_s24  ;;  %v12131_v24 = vunpack.i.h.bf16 %v23660_v58  ;;  %v11537_v0 = vpack.c.bf16 %v2487_v10, %v2295_v48  ;;  %v2361_v20 = vsel %vm2150_vm1, %v1520_v3, %v1779_v13  ;;  %v2426_v54 = vsel %vm2215_vm7, %v2362_v43, %v2039_v12  ;;  %v15174_v3 = vpop.permute.xlu1 %12428  ;;  %v15176_v1 = vpop.permute.xlu0 %12423  ;;  %v23662_v10 = vld [vmem:[#allocation60_spill] sm:$0xff] }
 0x12a   :  { %v2232_v7 = vsel %vm2215_vm7, %v23661_v32, %v985_v29  ;;  %v12386_v61 = vunpack.i.h.bf16 %v15021_v6  ;;  %v2425_v56 = vsel %vm2215_vm7, %v2361_v20, %v2038_v19  ;;  %v1262_v30 = vsel %vm1244_vm6, %v12411_v63, %v12415_v34  ;;  %12708 = vrot.lane.b32.xlu1 %v14825_v52, %s13031_s27  ;;  %11536 = vmatprep.subr.msk.bf16.mxu1 %vm14421_vm12, %v11534_v17  ;;  %v23665_v17 = vld [vmem:[#allocation36_spill] sm:$0xff] }
 0x12b   :  { %v2233_v48 = vsel %vm2215_vm7, %v23662_v10, %v986_v53  ;;  %v2297_v2 = vsel %vm2280_vm8, %v2232_v7, %v1261_v9  ;;  %v12406_v50 = vunpack.i.h.bf16 %v15104_v57  ;;  %11539 = vmatpush1.bf16.msk.msra.mxu1 %vm14421_vm12, %v11537_v0  ;;  %v12376_v52 = vunpack.i.h.bf16 %v14983_v33  ;;  %11341 = vmatmul.mubr.msk.f32.gmra.mrb[30].mxu0 %vm2541_vm10, %v14623_v14 }
 0x12c   :  { %v2298_v63 = vsel %vm2280_vm8, %v2233_v48, %v1262_v30  ;;  %v2490_v46 = vsel %vm2280_vm8, %v2426_v54, 1.0  ;;  %v827_v13 = vcombine.low %v23655_v42, %v23655_v42  ;;  %11335 = vmatmul.mubr.msk.f32.gmra.mrb[22].mxu1 %vm2541_vm10, %v14623_v14  ;;  %v2489_v44 = vsel %vm2280_vm8, %v2425_v56, 1.0  ;;  %3523 = vmatprep.mubr.f32.mxu0 %v23606_v37  ;;  %v23668_v56 = vld [vmem:[#allocation39_spill] sm:$0xff] }
 0x12d   :  { %12703 = vrot.lane.b32.xlu0 %v14474_v49, %s13032_s28  ;;  %v12396_v49 = vunpack.i.h.bf16 %v15067_v16  ;;  %v11540_v12 = vpack.c.bf16 %v2490_v46, %v2298_v63  ;;  %v12722_v29 = vpack.i.bf16 %v23663_v8, %v23650_v59  ;;  %3434 = vmatprep.mubr.f32.mxu1 %v23606_v37  ;;  %v23664_v43 = vunpack.i.h.bf16 %v23656_v31  ;;  %v15218_v0 = vpop.permute.xlu1 %12438  ;;  %v15220_v20 = vpop.permute.xlu0 %12433  ;;  %v23669_v63 = vld [vmem:[#allocation13_spill] sm:$0xff] }
 0x12e   :  { %v15211_v38 = vsel %vm676_vm0, %v12131_v24, %v12135_v47  ;;  %v1781_v53 = vsel %vm1762_vm2, %v12385_v62, %v12386_v61  ;;  %v11543_v9 = vpack.c.bf16 %v2489_v44, %v2297_v2  ;;  %12718 = vrot.lane.b32.xlu1 %v23665_v17, %s13030_s26  ;;  %v23666_v54 = vunpack.i.l.bf16 %v23660_v58 }
 0x12f   :  { %v15206_v19 = vsel %vm676_vm0, %v12135_v47, %v23664_v43  ;;  %v2040_v31 = vsel %vm2021_vm5, %v12405_v27, %v12406_v50  ;;  %v12430_v6 = vunpack.i.l.bf16 %v15174_v3  ;;  %11542 = vmatprep.subr.msk.bf16.mxu0 %vm14421_vm12, %v11540_v12  ;;  %v828_v62 = vcombine.low %v23650_v59, %v23650_v59  ;;  %v23667_v27 = vld [vmem:[#allocation30_spill] sm:$0xff] }
 0x130   :  { %v15225_v32 = vsel %vm676_vm0, %v23666_v54, %v12131_v24  ;;  %v1522_v47 = vsel %vm1503_vm3, %v12375_v39, %v12376_v52  ;;  %11545 = vmatpush1.bf16.msk.msra.mxu0 %vm14421_vm12, %v11543_v9  ;;  %v15243_v57 = vpack.i.bf16 %v23655_v42, %v827_v13  ;;  %v987_v24 = vsel %vm968_vm4, %v12395_v18, %v12396_v49 }
 0x131   :  { %12713 = vrot.lane.b32.xlu0 %v23658_v41, %s13031_s27  ;;  %v1108_v41 = vcombine.low %v23667_v27, %v23667_v27  ;;  %v2363_v58 = vsel %vm2150_vm1, %v1522_v47, %v1781_v53  ;;  %v12420_v33 = vunpack.i.l.bf16 %v15138_v28  ;;  %11344 = vmatmul.mubr.msk.f32.vlgmr.msra.gmra.mrb[24].mxu1 %vm2541_vm10, %v14502_v11  ;;  %v12416_v42 = vunpack.i.h.bf16 %v15140_v5  ;;  %v12449_v30 = vpop.permute.xlu1 %12448  ;;  %v15260_v10 = vpop.permute.xlu0 %12443 }
 0x132   :  { %v2427_v39 = vsel %vm2215_vm7, %v2363_v58, %v2040_v31  ;;  %v12440_v7 = vunpack.i.l.bf16 %v15218_v0  ;;  %12728 = vrot.lane.b32.xlu1 %v23668_v56, %s13029_s25  ;;  %v1782_v16 = vsel %vm1762_vm2, %v12386_v61, %v12430_v6  ;;  %v12435_v18 = vunpack.i.l.bf16 %v15220_v20  ;;  %3440 = vmatprep.mubr.f32.mxu1 %v23606_v37 }
 0x133   :  { %v12450_v48 = vunpack.i.l.bf16 %v12449_v30  ;;  %v15266_v2 = vpack.i.bf16 %v23650_v59, %v828_v62  ;;  %11350 = vmatmul.mubr.msk.f32.vlgmr.msra.gmra.mrb[32].mxu0 %vm2541_vm10, %v14502_v11  ;;  %v2234_v46 = vsel %vm2215_vm7, %v23669_v63, %v987_v24  ;;  %v12421_v13 = vunpack.i.h.bf16 %v15138_v28 }
 0x134   :  { %v12757_v44 = vpack.i.bf16 %v23667_v27, %v1108_v41  ;;  %3529 = vmatprep.mubr.f32.mxu0 %v23606_v37  ;;  %v15277_v61 = vsel %vm2280_vm8, %v2427_v39, 1.0  ;;  %v1523_v59 = vsel %vm1503_vm3, %v12376_v52, %v12420_v33  ;;  %v12431_v12 = vunpack.i.h.bf16 %v15174_v3 }
 0x135   :  { %12723 = vrot.lane.b32.xlu0 %v12722_v29, %s13030_s26  ;;  %v2041_v11 = vsel %vm2021_vm5, %v12406_v50, %v12450_v48  ;;  %11345 = vmatmul.mubr.msk.f32.gmra.mrb[26].mxu1 %vm2541_vm10, %v14542_v15  ;;  %v1263_v28 = vsel %vm1244_vm6, %v12415_v34, %v12416_v42  ;;  %v2364_v8 = vsel %vm2150_vm1, %v1523_v59, %v1782_v16  ;;  %v12425_v29 = vunpack.i.l.bf16 %v15176_v1  ;;  %v12459_v52 = vpop.permute.xlu1 %12458  ;;  %v15292_v3 = vpop.permute.xlu0 %12453 }
 0x136   :  { %v988_v43 = vsel %vm968_vm4, %v12396_v49, %v12440_v7  ;;  %12738 = vrot.lane.b32.xlu1 %v15243_v57, %s13028_s24  ;;  %v12441_v50 = vunpack.i.h.bf16 %v15218_v0  ;;  %v1784_v5 = vsel %vm1762_vm2, %v12431_v12, %v12435_v18  ;;  %v12451_v53 = vunpack.i.h.bf16 %v12449_v30  ;;  %3446 = vmatprep.mubr.f32.mxu1 %v23606_v37 }
 0x137   :  { %v12460_v34 = vunpack.i.l.bf16 %v12459_v52  ;;  %11351 = vmatmul.mubr.msk.f32.gmra.mrb[34].mxu0 %vm2541_vm10, %v14542_v15  ;;  %v12445_v49 = vunpack.i.l.bf16 %v15260_v10  ;;  %v12461_v9 = vunpack.i.h.bf16 %v12459_v52  ;;  %v12455_v54 = vunpack.i.l.bf16 %v15292_v3  ;;  %v23672_v52 = vld [vmem:[#allocation57_spill] sm:$0xff] }
 0x138   :  { %v2428_v31 = vsel %vm2215_vm7, %v2364_v8, %v2041_v11  ;;  %3535 = vmatprep.mubr.f32.mxu0 %v23606_v37  ;;  %v1524_v0 = vsel %vm1503_vm3, %v12420_v33, %v12421_v13  ;;  %v2299_v62 = vsel %vm2280_vm8, %v2234_v46, %v1263_v28  ;;  %v1783_v27 = vsel %vm1762_vm2, %v12430_v6, %v12431_v12 }
 0x139   :  { %12733 = vrot.lane.b32.xlu0 %v23665_v17, %s13029_s25  ;;  %v23670_v17 = vld [vmem:[#allocation61_spill] sm:$0xff]  ;;  %v1264_v15 = vsel %vm1244_vm6, %v12416_v42, %v12460_v34  ;;  %11346 = vmatmul.mubr.msk.f32.gmra.mrb[28].mxu1 %vm2541_vm10, %v14588_v21  ;;  %v1525_v41 = vsel %vm1503_vm3, %v12421_v13, %v12425_v29  ;;  %v2043_v58 = vsel %vm2021_vm5, %v12451_v53, %v12455_v54  ;;  %v15323_v24 = vpop.permute.xlu1 %12468  ;;  %v15325_v33 = vpop.permute.xlu0 %12463  ;;  %v2492_v30 = vsel %vm2280_vm8, %v2428_v31, 1.0  ;;  %v23673_v31 = vld [vmem:[#allocation34_spill] sm:$0xff] }
 0x13a   :  { %v2235_v47 = vsel %vm2215_vm7, %v23670_v17, %v988_v43  ;;  %12748 = vrot.lane.b32.xlu1 %v15243_v57, %s13032_s28  ;;  %v989_v42 = vsel %vm968_vm4, %v12440_v7, %v12441_v50  ;;  %v2366_v6 = vsel %vm2150_vm1, %v1525_v41, %v1784_v5  ;;  %v2042_v56 = vsel %vm2021_vm5, %v12450_v48, %v12451_v53 }
 0x13b   :  { %v2300_v39 = vsel %vm2280_vm8, %v2235_v47, %v1264_v15  ;;  %11352 = vmatmul.mubr.msk.f32.gmra.mrb[36].mxu0 %vm2541_vm10, %v14588_v21  ;;  %v990_v16 = vsel %vm968_vm4, %v12441_v50, %v12445_v49  ;;  %v1265_v63 = vsel %vm1244_vm6, %v12460_v34, %v12461_v9  ;;  %v12465_v7 = vunpack.i.l.bf16 %v15325_v33  ;;  %3452 = vmatprep.mubr.f32.mxu1 %v23606_v37  ;;  %v23671_v21 = vld [vmem:[#allocation14_spill] sm:$0xff] }
 0x13c   :  { %v11546_v46 = vpack.c.bf16 %v2492_v30, %v2300_v39  ;;  %3541 = vmatprep.mubr.f32.mxu0 %v23606_v37  ;;  %v11549_v48 = vpack.c.bf16 %v15277_v61, %v2299_v62  ;;  %v2365_v13 = vsel %vm2150_vm1, %v1524_v0, %v1783_v27  ;;  %v2430_v59 = vsel %vm2215_vm7, %v2366_v6, %v2043_v58  ;;  %v23674_v62 = vld [vmem:[#allocation71_spill] sm:$0xff] }
 0x13d   :  { %12743 = vrot.lane.b32.xlu0 %v15266_v2, %s13028_s24  ;;  %11347 = vmatmul.mubr.msk.f32.gmra.mrb[30].mxu1 %vm2541_vm10, %v14623_v14  ;;  %v2236_v12 = vsel %vm2215_vm7, %v23671_v21, %v989_v42  ;;  %v12436_v11 = vunpack.i.h.bf16 %v15220_v20  ;;  %v2429_v28 = vsel %vm2215_vm7, %v2365_v13, %v2042_v56  ;;  %v1266_v8 = vsel %vm1244_vm6, %v12461_v9, %v12465_v7  ;;  %v15358_v61 = vpop.permute.xlu1 %12478  ;;  %v15360_v43 = vpop.permute.xlu0 %12473  ;;  %v23676_v20 = vld [vmem:[#allocation79_spill] sm:$0xff]  ;;  %v23678_v13 = vld [vmem:[#allocation45_spill] sm:$0xff] }
 0x13e   :  { %12758 = vrot.lane.b32.xlu1 %v12757_v44, %s13031_s27  ;;  %11548 = vmatprep.subr.msk.bf16.mxu1 %vm14421_vm12, %v11546_v46  ;;  %v2237_v50 = vsel %vm2215_vm7, %v23672_v52, %v990_v16  ;;  %v2301_v5 = vsel %vm2280_vm8, %v2236_v12, %v1265_v63  ;;  %v12456_v53 = vunpack.i.h.bf16 %v15292_v3  ;;  %v12426_v44 = vunpack.i.h.bf16 %v15176_v1  ;;  %v23677_v56 = vld [vmem:[#allocation35_spill] sm:$0xff]  ;;  %v23679_v52 = vld [vmem:[#allocation9_spill] sm:$0xff] }
 0x13f   :  { %11551 = vmatpush1.bf16.msk.msra.mxu1 %vm14421_vm12, %v11549_v48  ;;  %v2302_v34 = vsel %vm2280_vm8, %v2237_v50, %v1266_v8  ;;  %v2494_v9 = vsel %vm2280_vm8, %v2430_v59, 1.0  ;;  %v829_v0 = vcombine.low %v23673_v31, %v23673_v31  ;;  %11353 = vmatmul.mubr.msk.f32.gmra.mrb[38].mxu0 %vm2541_vm10, %v14623_v14  ;;  %v2493_v17 = vsel %vm2280_vm8, %v2429_v28, 1.0  ;;  %v23675_v14 = vld [vmem:[#allocation44_spill] sm:$0xff] }
 0x140   :  { %3612 = vmatprep.mubr.f32.mxu1 %v23606_v37  ;;  %v12446_v47 = vunpack.i.h.bf16 %v15260_v10  ;;  %v11552_v15 = vpack.c.bf16 %v2494_v9, %v2302_v34  ;;  %3701 = vmatprep.mubr.f32.mxu0 %v23606_v37  ;;  %v1785_v27 = vsel %vm1762_vm2, %v12435_v18, %v12436_v11  ;;  %v11555_v41 = vpack.c.bf16 %v2493_v17, %v2301_v5 }
 0x141   :  { %12753 = vrot.lane.b32.xlu0 %v15266_v2, %s13032_s28  ;;  %v15381_v2 = vsel %vm2150_vm1, %v23674_v62, %v15206_v19  ;;  %v15391_v58 = vpop.permute.xlu1 %12488  ;;  %v15393_v39 = vpop.permute.xlu0 %12483  ;;  %v830_v19 = vcombine.low %v23674_v62, %v23674_v62  ;;  %v2044_v42 = vsel %vm2021_vm5, %v12455_v54, %v12456_v53  ;;  %v12480_v6 = vunpack.i.l.bf16 %v15358_v61 }
 0x142   :  { %12768 = vrot.lane.b32.xlu1 %v23675_v14, %s13030_s26  ;;  %11554 = vmatprep.subr.msk.bf16.mxu0 %vm14421_vm12, %v11552_v15  ;;  %v12772_v18 = vpack.i.bf16 %v23676_v20, %v23674_v62  ;;  %v1109_v30 = vcombine.low %v23677_v56, %v23677_v56  ;;  %v1526_v3 = vsel %vm1503_vm3, %v12425_v29, %v12426_v44  ;;  %v12470_v29 = vunpack.i.l.bf16 %v15323_v24 }
 0x143   :  { %11557 = vmatpush1.bf16.msk.msra.mxu0 %vm14421_vm12, %v11555_v41  ;;  %v15415_v54 = vpack.i.bf16 %v23673_v31, %v829_v0  ;;  %v2367_v16 = vsel %vm2150_vm1, %v1526_v3, %v1785_v27  ;;  %v991_v1 = vsel %vm968_vm4, %v12445_v49, %v12446_v47  ;;  %v12466_v46 = vunpack.i.h.bf16 %v15325_v33 }
 0x144   :  { %v2431_v63 = vsel %vm2215_vm7, %v2367_v16, %v2044_v42  ;;  %v12490_v48 = vunpack.i.l.bf16 %v15391_v58  ;;  %v15438_v10 = vpack.i.bf16 %v23674_v62, %v830_v19  ;;  %v1786_v49 = vsel %vm1762_vm2, %v12436_v11, %v12480_v6  ;;  %v15456_v11 = vld [vmem:[%s22809_s1 + $0x8] sm:$0xff] }
 0x145   :  { %12763 = vrot.lane.b32.xlu0 %v15243_v57, %s13031_s27  ;;  %v15420_v57 = vld [vmem:[%s22809_s1] sm:$0xff]  ;;  %v12499_v59 = vpop.permute.xlu1 %12498  ;;  %v15435_v21 = vpop.permute.xlu0 %12493  ;;  %v12485_v12 = vunpack.i.l.bf16 %v15393_v39  ;;  %v15446_v8 = vpack.i.bf16 %v23677_v56, %v1109_v30  ;;  %v2238_v50 = vsel %vm2215_vm7, %v23679_v52, %v991_v1  ;;  %v12471_v5 = vunpack.i.h.bf16 %v15323_v24  ;;  %v23680_v30 = vld [vmem:[#allocation84_spill] sm:$0xff] }
 0x146   :  { %11356 = vmatmul.mubr.msk.f32.vlgmr.msra.gmra.mrb[32].mxu1 %vm2541_vm10, %v15420_v57  ;;  %12778 = vrot.lane.b32.xlu1 %v23678_v13, %s13029_s25  ;;  %v12500_v28 = vunpack.i.l.bf16 %v12499_v59  ;;  %v15462_v34 = vsel %vm2280_vm8, %v2431_v63, 1.0  ;;  %v1527_v9 = vsel %vm1503_vm3, %v12426_v44, %v12470_v29  ;;  %v12481_v0 = vunpack.i.h.bf16 %v15358_v61 }
 0x147   :  { %3618 = vmatprep.mubr.f32.mxu1 %v23606_v37  ;;  %11362 = vmatmul.mubr.msk.f32.vlgmr.msra.gmra.mrb[40].mxu0 %vm2541_vm10, %v15420_v57  ;;  %v1267_v24 = vsel %vm1244_vm6, %v12465_v7, %v12466_v46  ;;  %v2368_v17 = vsel %vm2150_vm1, %v1527_v9, %v1786_v49  ;;  %v12475_v15 = vunpack.i.l.bf16 %v15360_v43  ;;  %v992_v27 = vsel %vm968_vm4, %v12446_v47, %v12490_v48 }
 0x148   :  { %3707 = vmatprep.mubr.f32.mxu0 %v23606_v37  ;;  %v2045_v62 = vsel %vm2021_vm5, %v12456_v53, %v12500_v28  ;;  %v12491_v53 = vunpack.i.h.bf16 %v15391_v58  ;;  %v1788_v33 = vsel %vm1762_vm2, %v12481_v0, %v12485_v12  ;;  %v12501_v19 = vunpack.i.h.bf16 %v12499_v59  ;;  %v15492_v58 = vld [vmem:[%s22809_s1 + $0x10] sm:$0xff] }
 0x149   :  { %12773 = vrot.lane.b32.xlu0 %v12772_v18, %s13030_s26  ;;  %v12509_v44 = vpop.permute.xlu1 %12508  ;;  %v15476_v41 = vpop.permute.xlu0 %12503  ;;  %v12495_v47 = vunpack.i.l.bf16 %v15435_v21  ;;  %v2432_v18 = vsel %vm2215_vm7, %v2368_v17, %v2045_v62  ;;  %v2303_v56 = vsel %vm2280_vm8, %v2238_v50, %v1267_v24  ;;  %v2239_v3 = vsel %vm2215_vm7, %v23680_v30, %v992_v27  ;;  %v23681_v17 = vld [vmem:[#allocation37_spill] sm:$0xff] }
 0x14a   :  { %11357 = vmatmul.mubr.msk.f32.gmra.mrb[34].mxu1 %vm2541_vm10, %v15456_v11  ;;  %12788 = vrot.lane.b32.xlu1 %v15415_v54, %s13028_s24  ;;  %v12510_v7 = vunpack.i.l.bf16 %v12509_v44  ;;  %v12511_v42 = vunpack.i.h.bf16 %v12509_v44  ;;  %v12505_v20 = vunpack.i.l.bf16 %v15476_v41  ;;  %v1787_v1 = vsel %vm1762_vm2, %v12480_v6, %v12481_v0  ;;  %v23682_v44 = vld [vmem:[#allocation66_spill] sm:$0xff] }
 0x14b   :  { %3624 = vmatprep.mubr.f32.mxu1 %v23606_v37  ;;  %11363 = vmatmul.mubr.msk.f32.gmra.mrb[42].mxu0 %vm2541_vm10, %v15456_v11  ;;  %v1529_v63 = vsel %vm1503_vm3, %v12471_v5, %v12475_v15  ;;  %v993_v61 = vsel %vm968_vm4, %v12490_v48, %v12491_v53  ;;  %v2046_v49 = vsel %vm2021_vm5, %v12500_v28, %v12501_v19  ;;  %v2496_v52 = vsel %vm2280_vm8, %v2432_v18, 1.0  ;;  %v15535_v28 = vld [vmem:[%s22809_s1 + $0x18] sm:$0xff] }
 0x14c   :  { %3713 = vmatprep.mubr.f32.mxu0 %v23606_v37  ;;  %v1268_v16 = vsel %vm1244_vm6, %v12466_v46, %v12510_v7  ;;  %v2370_v6 = vsel %vm2150_vm1, %v1529_v63, %v1788_v33  ;;  %v994_v50 = vsel %vm968_vm4, %v12491_v53, %v12495_v47  ;;  %v11561_v0 = vpack.c.bf16 %v15462_v34, %v2303_v56 }
 0x14d   :  { %12783 = vrot.lane.b32.xlu0 %v23675_v14, %s13029_s25  ;;  %v1528_v14 = vsel %vm1503_vm3, %v12470_v29, %v12471_v5  ;;  %v2047_v29 = vsel %vm2021_vm5, %v12501_v19, %v12505_v20  ;;  %v15514_v13 = vpop.permute.xlu1 %12518  ;;  %v15516_v46 = vpop.permute.xlu0 %12513  ;;  %v2304_v59 = vsel %vm2280_vm8, %v2239_v3, %v1268_v16  ;;  %v1269_v5 = vsel %vm1244_vm6, %v12510_v7, %v12511_v42 }
 0x14e   :  { %11358 = vmatmul.mubr.msk.f32.gmra.mrb[36].mxu1 %vm2541_vm10, %v15492_v58  ;;  %12798 = vrot.lane.b32.xlu1 %v15415_v54, %s13032_s28  ;;  %v12515_v48 = vunpack.i.l.bf16 %v15516_v46  ;;  %v11558_v9 = vpack.c.bf16 %v2496_v52, %v2304_v59  ;;  %v2369_v62 = vsel %vm2150_vm1, %v1528_v14, %v1787_v1  ;;  %v2434_v24 = vsel %vm2215_vm7, %v2370_v6, %v2047_v29  ;;  %v23683_v14 = vld [vmem:[#allocation65_spill] sm:$0xff]  ;;  %v23684_v1 = vld [vmem:[#allocation38_spill] sm:$0xff]  ;;  %v23685_v29 = vld [vmem:[#allocation40_spill] sm:$0xff] }
 0x14f   :  { %3630 = vmatprep.mubr.f32.mxu1 %v23606_v37  ;;  %11364 = vmatmul.mubr.msk.f32.gmra.mrb[44].mxu0 %vm2541_vm10, %v15492_v58  ;;  %v831_v27 = vcombine.low %v23681_v17, %v23681_v17  ;;  %v2240_v53 = vsel %vm2215_vm7, %v23682_v44, %v993_v61  ;;  %v12486_v33 = vunpack.i.h.bf16 %v15393_v39  ;;  %v2433_v19 = vsel %vm2215_vm7, %v2369_v62, %v2046_v49  ;;  %v23686_v49 = vld [vmem:[#allocation95_spill] sm:$0xff]  ;;  %v23688_v39 = vld [vmem:[#allocation73_spill] sm:$0xff] }
 0x150   :  { %3719 = vmatprep.mubr.f32.mxu0 %v23606_v37  ;;  %v1270_v34 = vsel %vm1244_vm6, %v12511_v42, %v12515_v48  ;;  %11560 = vmatprep.subr.msk.bf16.mxu1 %vm14421_vm12, %v11558_v9  ;;  %v2241_v56 = vsel %vm2215_vm7, %v23683_v14, %v994_v50  ;;  %v2305_v30 = vsel %vm2280_vm8, %v2240_v53, %v1269_v5  ;;  %v12506_v3 = vunpack.i.h.bf16 %v15476_v41  ;;  %v23687_v9 = vld [vmem:[#allocation48_spill] sm:$0xff] }
 0x151   :  { %12793 = vrot.lane.b32.xlu0 %v15438_v10, %s13028_s24  ;;  %v15557_v7 = vpop.permute.xlu1 %12528  ;;  %v15559_v18 = vpop.permute.xlu0 %12523  ;;  %11563 = vmatpush1.bf16.msk.msra.mxu1 %vm14421_vm12, %v11561_v0  ;;  %v2306_v42 = vsel %vm2280_vm8, %v2241_v56, %v1270_v34  ;;  %v2498_v16 = vsel %vm2280_vm8, %v2434_v24, 1.0  ;;  %v1110_v63 = vcombine.low %v23684_v1, %v23684_v1  ;;  %v15579_v59 = vsel %vm2150_vm1, %v23685_v29, %v15211_v38  ;;  %v23689_v53 = vld [vmem:[#allocation96_spill] sm:$0xff] }
 0x152   :  { %11359 = vmatmul.mubr.msk.f32.gmra.mrb[38].mxu1 %vm2541_vm10, %v15535_v28  ;;  %12808 = vrot.lane.b32.xlu1 %v15446_v8, %s13031_s27  ;;  %v12476_v8 = vunpack.i.h.bf16 %v15360_v43  ;;  %v12496_v61 = vunpack.i.h.bf16 %v15435_v21  ;;  %v11564_v6 = vpack.c.bf16 %v2498_v16, %v2306_v42  ;;  %v12145_v52 = vunpack.i.l.bf16 %v23686_v49  ;;  %v23690_v21 = vld [vmem:[#allocation80_spill] sm:$0xff] }
 0x153   :  { %3790 = vmatprep.mubr.f32.mxu1 %v23606_v37  ;;  %11365 = vmatmul.mubr.msk.f32.gmra.mrb[46].mxu0 %vm2541_vm10, %v15535_v28  ;;  %v1789_v50 = vsel %vm1762_vm2, %v12485_v12, %v12486_v33  ;;  %v15595_v62 = vpack.i.bf16 %v23681_v17, %v831_v27  ;;  %v2048_v24 = vsel %vm2021_vm5, %v12505_v20, %v12506_v3  ;;  %v12530_v44 = vunpack.i.l.bf16 %v15557_v7 }
 0x154   :  { %3879 = vmatprep.mubr.f32.mxu0 %v23606_v37  ;;  %11566 = vmatprep.subr.msk.bf16.mxu0 %vm14421_vm12, %v11564_v6  ;;  %v832_v12 = vcombine.low %v23688_v39, %v23688_v39  ;;  %v1530_v27 = vsel %vm1503_vm3, %v12475_v15, %v12476_v8  ;;  %v12837_v41 = vpack.i.bf16 %v23684_v1, %v1110_v63  ;;  %v12520_v34 = vunpack.i.l.bf16 %v15514_v13  ;;  %v23691_v1 = vld [vmem:[#allocation49_spill] sm:$0xff] }
 0x155   :  { %12803 = vrot.lane.b32.xlu0 %v15438_v10, %s13032_s28  ;;  %v2497_v10 = vsel %vm2280_vm8, %v2433_v19, 1.0  ;;  %v15590_v0 = vpop.permute.xlu1 %12538  ;;  %v15592_v38 = vpop.permute.xlu0 %12533  ;;  %v12141_v19 = vunpack.i.h.bf16 %v23689_v53  ;;  %v995_v20 = vsel %vm968_vm4, %v12495_v47, %v12496_v61  ;;  %v12516_v15 = vunpack.i.h.bf16 %v15516_v46 }
 0x156   :  { %v11567_v5 = vpack.c.bf16 %v2497_v10, %v2305_v30  ;;  %12818 = vrot.lane.b32.xlu1 %v23687_v9, %s13030_s26  ;;  %11368 = vmatmul.mubr.msk.f32.vlgmr.msra.gmra.mrb[40].mxu1 %vm2541_vm10, %v15420_v57  ;;  %v12540_v14 = vunpack.i.l.bf16 %v15590_v0  ;;  %v12842_v42 = vpack.i.bf16 %v23690_v21, %v23688_v39  ;;  %v1790_v47 = vsel %vm1762_vm2, %v12486_v33, %v12530_v44  ;;  %v23692_v10 = vld [vmem:[#allocation18_spill] sm:$0xff] }
 0x157   :  { %3796 = vmatprep.mubr.f32.mxu1 %v23606_v37  ;;  %v12535_v16 = vunpack.i.l.bf16 %v15592_v38  ;;  %v15636_v29 = vpack.i.bf16 %v23688_v39, %v832_v12  ;;  %v2242_v6 = vsel %vm2215_vm7, %v23692_v10, %v995_v20 }
 0x158   :  { %11569 = vmatpush1.bf16.msk.msra.mxu0 %vm14421_vm12, %v11567_v5  ;;  %v1531_v5 = vsel %vm1503_vm3, %v12476_v8, %v12520_v34  ;;  %v996_v20 = vsel %vm968_vm4, %v12496_v61, %v12540_v14 }
 0x159   :  { %12813 = vrot.lane.b32.xlu0 %v15415_v54, %s13031_s27  ;;  %v2371_v54 = vsel %vm2150_vm1, %v1530_v27, %v1789_v50  ;;  %v12549_v56 = vpop.permute.xlu1 %12548  ;;  %v15627_v30 = vpop.permute.xlu0 %12543  ;;  %v12521_v50 = vunpack.i.h.bf16 %v15514_v13  ;;  %v1271_v13 = vsel %vm1244_vm6, %v12515_v48, %v12516_v15  ;;  %v2372_v27 = vsel %vm2150_vm1, %v1531_v5, %v1790_v47 }
 0x15a   :  { %v2435_v43 = vsel %vm2215_vm7, %v2371_v54, %v2048_v24  ;;  %12828 = vrot.lane.b32.xlu1 %v15595_v62, %s13028_s24  ;;  %v12550_v63 = vunpack.i.l.bf16 %v12549_v56  ;;  %11369 = vmatmul.mubr.msk.f32.gmra.mrb[42].mxu1 %vm2541_vm10, %v15456_v11  ;;  %v12531_v24 = vunpack.i.h.bf16 %v15557_v7  ;;  %v12525_v54 = vunpack.i.l.bf16 %v15559_v18 }
 0x15b   :  { %11374 = vmatmul.mubr.msk.f32.vlgmr.msra.gmra.mrb[48].mxu0 %vm2541_vm10, %v15420_v57  ;;  %v15647_v33 = vsel %vm2280_vm8, %v2435_v43, 1.0  ;;  %3802 = vmatprep.mubr.f32.mxu1 %v23606_v37  ;;  %v12541_v7 = vunpack.i.h.bf16 %v15590_v0  ;;  %v12551_v46 = vunpack.i.h.bf16 %v12549_v56  ;;  %v12545_v61 = vunpack.i.l.bf16 %v15627_v30 }
 0x15c   :  { %3885 = vmatprep.mubr.f32.mxu0 %v23606_v37  ;;  %v2049_v12 = vsel %vm2021_vm5, %v12506_v3, %v12550_v63  ;;  %v1792_v3 = vsel %vm1762_vm2, %v12531_v24, %v12535_v16  ;;  %v1532_v0 = vsel %vm1503_vm3, %v12520_v34, %v12521_v50  ;;  %v2307_v56 = vsel %vm2280_vm8, %v2242_v6, %v1271_v13 }
 0x15d   :  { %12823 = vrot.lane.b32.xlu0 %v23691_v1, %s13029_s25  ;;  %v12559_v43 = vpop.permute.xlu1 %12558  ;;  %v15660_v8 = vpop.permute.xlu0 %12553  ;;  %v2436_v47 = vsel %vm2215_vm7, %v2372_v27, %v2049_v12  ;;  %v23693_v1 = vld [vmem:[#allocation12_spill] sm:$0xff]  ;;  %v1533_v12 = vsel %vm1503_vm3, %v12521_v50, %v12525_v54  ;;  %v997_v13 = vsel %vm968_vm4, %v12540_v14, %v12541_v7 }
 0x15e   :  { %12838 = vrot.lane.b32.xlu1 %v12837_v41, %s13031_s27  ;;  %v12560_v48 = vunpack.i.l.bf16 %v12559_v43  ;;  %v12561_v41 = vunpack.i.h.bf16 %v12559_v43  ;;  %v12555_v21 = vunpack.i.l.bf16 %v15660_v8  ;;  %11370 = vmatmul.mubr.msk.f32.gmra.mrb[44].mxu1 %vm2541_vm10, %v15492_v58  ;;  %v2243_v10 = vsel %vm2215_vm7, %v23693_v1, %v996_v20 }
 0x15f   :  { %11375 = vmatmul.mubr.msk.f32.gmra.mrb[50].mxu0 %vm2541_vm10, %v15456_v11  ;;  %3808 = vmatprep.mubr.f32.mxu1 %v23606_v37  ;;  %v1791_v43 = vsel %vm1762_vm2, %v12530_v44, %v12531_v24  ;;  %v2374_v44 = vsel %vm2150_vm1, %v1533_v12, %v1792_v3  ;;  %v2050_v24 = vsel %vm2021_vm5, %v12550_v63, %v12551_v46  ;;  %v2500_v50 = vsel %vm2280_vm8, %v2436_v47, 1.0 }
 0x160   :  { %3891 = vmatprep.mubr.f32.mxu0 %v23606_v37  ;;  %v1272_v5 = vsel %vm1244_vm6, %v12516_v15, %v12560_v48  ;;  %v2051_v27 = vsel %vm2021_vm5, %v12551_v46, %v12555_v21  ;;  %v1273_v20 = vsel %vm1244_vm6, %v12560_v48, %v12561_v41  ;;  %v2373_v63 = vsel %vm2150_vm1, %v1532_v0, %v1791_v43  ;;  %v23694_v46 = vld [vmem:[#allocation42_spill] sm:$0xff]  ;;  %v23696_v0 = vld [vmem:[#allocation8_spill] sm:$0xff] }
 0x161   :  { %12833 = vrot.lane.b32.xlu0 %v15595_v62, %s13032_s28  ;;  %v15691_v34 = vpop.permute.xlu1 %12568  ;;  %v15693_v6 = vpop.permute.xlu0 %12563  ;;  %v2308_v15 = vsel %vm2280_vm8, %v2243_v10, %v1272_v5  ;;  %v2438_v3 = vsel %vm2215_vm7, %v2374_v44, %v2051_v27  ;;  %v833_v47 = vcombine.low %v23694_v46, %v23694_v46  ;;  %v2437_v10 = vsel %vm2215_vm7, %v2373_v63, %v2050_v24  ;;  %v23698_v44 = vld [vmem:[#allocation43_spill] sm:$0xff] }
 0x162   :  { %12848 = vrot.lane.b32.xlu1 %v23687_v9, %s13029_s25  ;;  %v998_v9 = vsel %vm968_vm4, %v12541_v7, %v12545_v61  ;;  %v12565_v1 = vunpack.i.l.bf16 %v15693_v6  ;;  %v11570_v14 = vpack.c.bf16 %v2500_v50, %v2308_v15  ;;  %11371 = vmatmul.mubr.msk.f32.gmra.mrb[46].mxu1 %vm2541_vm10, %v15535_v28  ;;  %v23695_v7 = vld [vmem:[#allocation64_spill] sm:$0xff]  ;;  %v1111_v24 = vcombine.low %v23698_v44, %v23698_v44 }
 0x163   :  { %11376 = vmatmul.mubr.msk.f32.gmra.mrb[52].mxu0 %vm2541_vm10, %v15492_v58  ;;  %3968 = vmatprep.mubr.f32.mxu1 %v23606_v37  ;;  %v2244_v48 = vsel %vm2215_vm7, %v23695_v7, %v997_v13  ;;  %v2502_v13 = vsel %vm2280_vm8, %v2438_v3, 1.0  ;;  %v730_v50 = vsel %vm676_vm0, %v12141_v19, %v12145_v52  ;;  %v12536_v7 = vunpack.i.h.bf16 %v15592_v38  ;;  %v23706_v38 = vld [vmem:[#allocation47_spill] sm:$0xff] }
 0x164   :  { %3897 = vmatprep.mubr.f32.mxu0 %v23606_v37  ;;  %v1274_v5 = vsel %vm1244_vm6, %v12561_v41, %v12565_v1  ;;  %11572 = vmatprep.subr.msk.bf16.mxu1 %vm14421_vm12, %v11570_v14  ;;  %v2309_v43 = vsel %vm2280_vm8, %v2244_v48, %v1273_v20  ;;  %v23697_v41 = vunpack.i.h.bf16 %v23686_v49  ;;  %v23699_v14 = vunpack.i.l.bf16 %v23689_v53 }
 0x165   :  { %12843 = vrot.lane.b32.xlu0 %v12842_v42, %s13030_s26  ;;  %v11573_v42 = vpack.c.bf16 %v15647_v33, %v2307_v56  ;;  %v15727_v33 = vpop.permute.xlu1 %12578  ;;  %v2245_v56 = vsel %vm2215_vm7, %v23696_v0, %v998_v9  ;;  %v15734_v12 = vpop.permute.xlu0 %12573  ;;  %v2501_v9 = vsel %vm2280_vm8, %v2437_v10, 1.0  ;;  %v15771_v49 = vpack.i.bf16 %v23694_v46, %v833_v47 }
 0x166   :  { %12858 = vrot.lane.b32.xlu1 %v15636_v29, %s13032_s28  ;;  %v731_v27 = vsel %vm676_vm0, %v12145_v52, %v23697_v41  ;;  %v2310_v15 = vsel %vm2280_vm8, %v2245_v56, %v1274_v5  ;;  %v23701_v52 = vld [vmem:[#allocation74_spill] sm:$0xff]  ;;  %v12546_v53 = vunpack.i.h.bf16 %v15627_v30  ;;  %v12526_v10 = vunpack.i.h.bf16 %v15559_v18  ;;  %v23704_v41 = vld [vmem:[#allocation81_spill] sm:$0xff] }
 0x167   :  { %11575 = vmatpush1.bf16.msk.msra.mxu1 %vm14421_vm12, %v11573_v42  ;;  %11377 = vmatmul.mubr.msk.f32.gmra.mrb[54].mxu0 %vm2541_vm10, %v15535_v28  ;;  %v11576_v20 = vpack.c.bf16 %v2502_v13, %v2310_v15  ;;  %v15766_v42 = vsel %vm676_vm0, %v23699_v14, %v12141_v19  ;;  %v834_v63 = vcombine.low %v23701_v52, %v23701_v52  ;;  %v23703_v19 = vld [vmem:[#allocation41_spill] sm:$0xff]  ;;  %v12566_v5 = vunpack.i.h.bf16 %v15693_v6  ;;  %v23707_v18 = vld [vmem:[#allocation10_spill] sm:$0xff] }
 0x168   :  { %4057 = vmatprep.mubr.f32.mxu0 %v23606_v37  ;;  %v15777_v3 = vsel %vm2150_vm1, %v23688_v39, %v731_v27  ;;  %v15787_v47 = vsel %vm2150_vm1, %v23703_v19, %v730_v50  ;;  %v12887_v39 = vpack.i.bf16 %v23698_v44, %v1111_v24  ;;  %v22970_v56 = vunpack.i.h.bf16 %v15691_v34  ;;  %v23705_v50 = vld [vmem:[#allocation53_spill] sm:$0xff] }
 0x169   :  { %12853 = vrot.lane.b32.xlu0 %v15636_v29, %s13028_s24  ;;  %v15752_v29 = vsel %vm2150_vm1, %v23673_v31, %v15225_v32  ;;  %v11579_v32 = vpack.c.bf16 %v2501_v9, %v2309_v43  ;;  %v23700_v31 = vld [vmem:[#allocation52_spill] sm:$0xff]  ;;  %23702 = vst [vmem:[#allocation15_spill] sm:$0xff] %v15777_v3  ;;  %11578 = vmatprep.subr.msk.bf16.mxu0 %vm14421_vm12, %v11576_v20  ;;  %v15789_v48 = vpop.permute.xlu1 %12588  ;;  %v15799_v0 = vpop.permute.xlu0 %12583  ;;  %v12580_v43 = vunpack.i.l.bf16 %v15727_v33  ;;  %v12581_v24 = vunpack.i.h.bf16 %v15727_v33 }
 0x16a   :  { %12868 = vrot.lane.b32.xlu1 %v23700_v31, %s13030_s26  ;;  %11380 = vmatmul.mubr.msk.f32.vlgmr.msra.gmra.mrb[48].mxu1 %vm2541_vm10, %v15420_v57  ;;  %v12892_v27 = vpack.i.bf16 %v23704_v41, %v23701_v52  ;;  %v15809_v15 = vpack.i.bf16 %v23701_v52, %v834_v63  ;;  %v1793_v13 = vsel %vm1762_vm2, %v12535_v16, %v12536_v7  ;;  %v12570_v9 = vunpack.i.l.bf16 %v15691_v34 }
 0x16b   :  { %11581 = vmatpush1.bf16.msk.msra.mxu0 %vm14421_vm12, %v11579_v32  ;;  %3974 = vmatprep.mubr.f32.mxu1 %v23606_v37  ;;  %v999_v44 = vsel %vm968_vm4, %v12545_v61, %v12546_v53  ;;  %v1534_v61 = vsel %vm1503_vm3, %v12525_v54, %v12526_v10  ;;  %v1275_v14 = vsel %vm1244_vm6, %v12565_v1, %v12566_v5  ;;  %v12591_v1 = vunpack.i.h.bf16 %v15789_v48 }
 0x16c   :  { %v2375_v19 = vsel %vm2150_vm1, %v1534_v61, %v1793_v13  ;;  %v2246_v54 = vsel %vm2215_vm7, %v23707_v18, %v999_v44  ;;  %v1795_v6 = vsel %vm1762_vm2, %v12580_v43, %v12581_v24  ;;  %v12590_v41 = vunpack.i.l.bf16 %v15789_v48 }
 0x16d   :  { %12863 = vrot.lane.b32.xlu0 %v15595_v62, %s13031_s27  ;;  %v12556_v62 = vunpack.i.h.bf16 %v15660_v8  ;;  %v12599_v20 = vpop.permute.xlu1 %12598  ;;  %v15838_v63 = vpop.permute.xlu0 %12593  ;;  %v1536_v8 = vsel %vm1503_vm3, %v12570_v9, %v22970_v56  ;;  %v12575_v48 = vunpack.i.l.bf16 %v15734_v12 }
 0x16e   :  { %12878 = vrot.lane.b32.xlu1 %v15771_v49, %s13028_s24  ;;  %11386 = vmatmul.mubr.msk.f32.vlgmr.msra.gmra.mrb[56].mxu0 %vm2541_vm10, %v15420_v57  ;;  %v12600_v32 = vunpack.i.l.bf16 %v12599_v20  ;;  %v12595_v18 = vunpack.i.l.bf16 %v15838_v63 }
 0x16f   :  { %11381 = vmatmul.mubr.msk.f32.gmra.mrb[50].mxu1 %vm2541_vm10, %v15456_v11  ;;  %v2052_v33 = vsel %vm2021_vm5, %v12555_v21, %v12556_v62  ;;  %4063 = vmatprep.mubr.f32.mxu0 %v23606_v37  ;;  %v1794_v21 = vsel %vm1762_vm2, %v12536_v7, %v12580_v43  ;;  %v1535_v7 = vsel %vm1503_vm3, %v12526_v10, %v12570_v9  ;;  %v12601_v43 = vunpack.i.h.bf16 %v12599_v20 }
 0x170   :  { %3980 = vmatprep.mubr.f32.mxu1 %v23606_v37  ;;  %v2439_v13 = vsel %vm2215_vm7, %v2375_v19, %v2052_v33  ;;  %v2053_v61 = vsel %vm2021_vm5, %v12556_v62, %v12600_v32  ;;  %v2376_v10 = vsel %vm2150_vm1, %v1535_v7, %v1794_v21  ;;  %v2377_v9 = vsel %vm2150_vm1, %v1536_v8, %v1795_v6  ;;  %v23708_v62 = vld [vmem:[#allocation99_spill] sm:$0xff] }
 0x171   :  { %12873 = vrot.lane.b32.xlu0 %v23705_v50, %s13029_s25  ;;  %v12585_v50 = vunpack.i.l.bf16 %v15799_v0  ;;  %v15868_v56 = vpop.permute.xlu0 %12603  ;;  %v1000_v19 = vsel %vm968_vm4, %v12546_v53, %v12590_v41  ;;  %v2054_v8 = vsel %vm2021_vm5, %v12600_v32, %v12601_v43  ;;  %v2440_v6 = vsel %vm2215_vm7, %v2376_v10, %v2053_v61 }
 0x172   :  { %12888 = vrot.lane.b32.xlu1 %v12887_v39, %s13031_s27  ;;  %11387 = vmatmul.mubr.msk.f32.gmra.mrb[58].mxu0 %vm2541_vm10, %v15456_v11  ;;  %v15861_v39 = vsel %vm2280_vm8, %v2246_v54, %v1275_v14  ;;  %v12605_v33 = vunpack.i.l.bf16 %v15868_v56  ;;  %v22971_v14 = vunpack.i.l.bf16 %v23708_v62  ;;  %v1001_v54 = vsel %vm968_vm4, %v12590_v41, %v12591_v1 }
 0x173   :  { %v12609_v44 = vpop.permute.xlu1 %12608  ;;  %11382 = vmatmul.mubr.msk.f32.gmra.mrb[52].mxu1 %vm2541_vm10, %v15492_v58  ;;  %4069 = vmatprep.mubr.f32.mxu0 %v23606_v37  ;;  %v1796_v21 = vsel %vm1762_vm2, %v12581_v24, %v12585_v50  ;;  %v23709_v24 = vunpack.i.h.bf16 %v15691_v34  ;;  %v2248_v34 = vsel %vm2215_vm7, %v14446_v40, %v1001_v54  ;;  %v2504_v10 = vsel %vm2280_vm8, %v2440_v6, 1.0 }
 0x174   :  { %v12611_v16 = vunpack.i.h.bf16 %v12609_v44  ;;  %3986 = vmatprep.mubr.f32.mxu1 %v23606_v37  ;;  %v12610_v20 = vunpack.i.l.bf16 %v12609_v44  ;;  %v2055_v30 = vsel %vm2021_vm5, %v12601_v43, %v12605_v33 }
 0x175   :  { %12883 = vrot.lane.b32.xlu0 %v15771_v49, %s13032_s28  ;;  %v1537_v32 = vsel %vm1503_vm3, %v23709_v24, %v12575_v48 }
 0x176   :  { %12898 = vrot.lane.b32.xlu1 %v23700_v31, %s13029_s25  ;;  %11388 = vmatmul.mubr.msk.f32.gmra.mrb[60].mxu0 %vm2541_vm10, %v15492_v58  ;;  %v1276_v31 = vsel %vm1244_vm6, %v12566_v5, %v12610_v20  ;;  %v1002_v5 = vsel %vm968_vm4, %v12591_v1, %v12595_v18  ;;  %v1277_v41 = vsel %vm1244_vm6, %v12610_v20, %v12611_v16  ;;  %v15908_v7 = vpop.permute.xlu0 %12613  ;;  %v23710_v20 = vld [vmem:[#allocation67_spill] sm:$0xff] }
 0x177   :  { %v15893_v53 = vpop.permute.xlu1 %12618  ;;  %11383 = vmatmul.mubr.msk.f32.gmra.mrb[54].mxu1 %vm2541_vm10, %v15535_v28  ;;  %4075 = vmatprep.mubr.f32.mxu0 %v23606_v37  ;;  %v2378_v43 = vsel %vm2150_vm1, %v1537_v32, %v1796_v21  ;;  %v12615_v44 = vunpack.i.l.bf16 %v15908_v7  ;;  %v2441_v1 = vsel %vm2215_vm7, %v2377_v9, %v2054_v8  ;;  %v2249_v40 = vsel %vm2215_vm7, %v23710_v20, %v1002_v5  ;;  %v23716_v20 = vld [vmem:[#allocation72_spill] sm:$0xff] }
 0x178   :  { %4146 = vmatprep.mubr.f32.mxu1 %v23606_v37  ;;  %v2505_v32 = vsel %vm2280_vm8, %v2441_v1, 1.0  ;;  %v23713_v5 = vcombine.low %v23706_v38, %v23706_v38  ;;  %v23714_v1 = vunpack.i.h.bf16 %v23708_v62 }
 0x179   :  { %12893 = vrot.lane.b32.xlu0 %v12892_v27, %s13030_s26  ;;  %v2503_v27 = vsel %vm2280_vm8, %v2439_v13, 1.0  ;;  %v2247_v13 = vsel %vm2215_vm7, %v14480_v45, %v1000_v19  ;;  %v2442_v45 = vsel %vm2215_vm7, %v2378_v43, %v2055_v30  ;;  %v2313_v19 = vsel %vm2280_vm8, %v2248_v34, %v1277_v41  ;;  %v23711_v30 = vld [vmem:[#allocation50_spill] sm:$0xff] }
 0x17a   :  { %12908 = vrot.lane.b32.xlu1 %v15809_v15, %s13032_s28  ;;  %v2312_v61 = vsel %vm2280_vm8, %v2247_v13, %v1276_v31  ;;  %v1278_v54 = vsel %vm1244_vm6, %v12611_v16, %v12615_v44  ;;  %11389 = vmatmul.mubr.msk.f32.gmra.mrb[62].mxu0 %vm2541_vm10, %v15535_v28  ;;  %v2506_v31 = vsel %vm2280_vm8, %v2442_v45, 1.0  ;;  %v1112_v6 = vcombine.low %v23711_v30, %v23711_v30 }
 0x17b   :  { %v11582_v21 = vpack.c.bf16 %v2504_v10, %v2312_v61  ;;  %v2314_v8 = vsel %vm2280_vm8, %v2249_v40, %v1278_v54  ;;  %4235 = vmatprep.mubr.f32.mxu0 %v23606_v37  ;;  %v12586_v16 = vunpack.i.h.bf16 %v15799_v0  ;;  %v15952_v41 = vpack.i.bf16 %v23706_v38, %v23713_v5  ;;  %v23715_v10 = vld [vmem:[#allocation100_spill] sm:$0xff] }
 0x17c   :  { %v15930_v24 = vpop.permute.xlu1 %12628  ;;  %v15957_v13 = vsel %vm2150_vm1, %v23681_v17, %v15766_v42  ;;  %v22974_v34 = vunpack.i.h.bf16 %v15838_v63  ;;  %v11591_v43 = vpack.c.bf16 %v2505_v32, %v2313_v19  ;;  %v15969_v61 = vsel %vm676_vm0, %v22971_v14, %v23714_v1 }
 0x17d   :  { %12903 = vrot.lane.b32.xlu0 %v15809_v15, %s13028_s24  ;;  %v11585_v15 = vpack.c.bf16 %v2503_v27, %v15861_v39  ;;  %11584 = vmatprep.subr.msk.bf16.mxu1 %vm14421_vm12, %v11582_v21  ;;  %v23712_v39 = vld [vmem:[#allocation54_spill] sm:$0xff]  ;;  %v11588_v27 = vpack.c.bf16 %v2506_v31, %v2314_v8  ;;  %v12576_v17 = vunpack.i.h.bf16 %v15734_v12  ;;  %v836_v40 = vcombine.low %v23716_v20, %v23716_v20 }
 0x17e   :  { %12918 = vrot.lane.b32.xlu1 %v23712_v39, %s13030_s26  ;;  %v22972_v19 = vunpack.i.h.bf16 %v15908_v7  ;;  %v12937_v21 = vpack.i.bf16 %v23711_v30, %v1112_v6  ;;  %v22973_v8 = vunpack.i.h.bf16 %v15893_v53  ;;  %v12630_v31 = vunpack.i.l.bf16 %v15930_v24  ;;  %v23718_v6 = vld [vmem:[#allocation76_spill] sm:$0xff] }
 0x17f   :  { %v15935_v9 = vpop.permute.xlu0 %12623  ;;  %11587 = vmatpush1.bf16.msk.msra.mxu1 %vm14421_vm12, %v11585_v15  ;;  %11590 = vmatprep.subr.msk.bf16.mxu0 %vm14421_vm12, %v11588_v27  ;;  %v1797_v15 = vsel %vm1762_vm2, %v12585_v50, %v12586_v16  ;;  %v1003_v30 = vsel %vm968_vm4, %v12595_v18, %v22974_v34  ;;  %v12631_v0 = vunpack.i.h.bf16 %v15930_v24  ;;  %v23717_v50 = vld [vmem:[#allocation55_spill] sm:$0xff]  ;;  %v12942_v32 = vpack.i.bf16 %v23718_v6, %v23716_v20  ;;  %v16008_v27 = vld.sshfl [vmem:[%s22808_s0 + $0x80] sm:$0x3 pattern:$0x76325410] }
 0x180   :  { %v15975_v42 = vpop.permute.xlu1 %12638  ;;  %11593 = vmatpush1.bf16.msk.msra.mxu0 %vm14421_vm12, %v11591_v43  ;;  %v1538_v5 = vsel %vm1503_vm3, %v12575_v48, %v12576_v17  ;;  %v12620_v18 = vunpack.i.l.bf16 %v15893_v53  ;;  %v16016_v43 = vpack.i.bf16 %v23716_v20, %v836_v40  ;;  %v1279_v12 = vsel %vm1244_vm6, %v12615_v44, %v22972_v19  ;;  %v23719_v40 = vld [vmem:[#allocation85_spill] sm:$0xff] }
 0x181   :  { %12913 = vrot.lane.b32.xlu0 %v15771_v49, %s13031_s27  ;;  %v12606_v49 = vunpack.i.h.bf16 %v15868_v56  ;;  %v2379_v1 = vsel %vm2150_vm1, %v1538_v5, %v1797_v15  ;;  %v2250_v14 = vsel %vm2215_vm7, %v23719_v40, %v1003_v30  ;;  %v1798_v56 = vsel %vm1762_vm2, %v12586_v16, %v12630_v31 }
 0x182   :  { %12928 = vrot.lane.b32.xlu1 %v15952_v41, %s13028_s24  ;;  %11392 = vmatmul.mubr.msk.f32.vlgmr.msra.gmra.mrb[56].mxu1 %vm2541_vm10, %v15420_v57  ;;  %v1540_v15 = vsel %vm1503_vm3, %v12620_v18, %v22973_v8  ;;  %v1799_v44 = vsel %vm1762_vm2, %v12630_v31, %v12631_v0  ;;  %v12641_v5 = vunpack.i.h.bf16 %v15975_v42  ;;  %v1539_v40 = vsel %vm1503_vm3, %v12576_v17, %v12620_v18 }
 0x183   :  { %v15981_v54 = vpop.permute.xlu0 %12633  ;;  %4152 = vmatprep.mubr.f32.mxu1 %v23606_v37  ;;  %11398 = vmatmul.mubr.msk.f32.vlgmr.msra.gmra.mrb[64].mxu0 %vm2541_vm10, %v15420_v57  ;;  %v23720_v17 = vunpack.i.h.bf16 %v15838_v63 }
 0x184   :  { %v12649_v24 = vpop.permute.xlu1 %12648  ;;  %4241 = vmatprep.mubr.f32.mxu0 %v23606_v37 }
 0x185   :  { %12923 = vrot.lane.b32.xlu0 %v23717_v50, %s13029_s25  ;;  %v2056_v50 = vsel %vm2021_vm5, %v12605_v33, %v12606_v49  ;;  %v12650_v48 = vunpack.i.l.bf16 %v12649_v24  ;;  %v12640_v33 = vunpack.i.l.bf16 %v15975_v42  ;;  %v12651_v30 = vunpack.i.h.bf16 %v12649_v24 }
 0x186   :  { %12938 = vrot.lane.b32.xlu1 %v12937_v21, %s13031_s27  ;;  %11393 = vmatmul.mubr.msk.f32.gmra.mrb[58].mxu1 %vm2541_vm10, %v15456_v11  ;;  %v2443_v16 = vsel %vm2215_vm7, %v2379_v1, %v2056_v50  ;;  %v16049_v21 = vsel %vm2280_vm8, %v2250_v14, %v1279_v12  ;;  %v2380_v42 = vsel %vm2150_vm1, %v1539_v40, %v1798_v56  ;;  %v12625_v24 = vunpack.i.l.bf16 %v15935_v9 }
 0x187   :  { %v16027_v45 = vpop.permute.xlu0 %12643  ;;  %4158 = vmatprep.mubr.f32.mxu1 %v23606_v37  ;;  %11399 = vmatmul.mubr.msk.f32.gmra.mrb[66].mxu0 %vm2541_vm10, %v15456_v11  ;;  %v2057_v19 = vsel %vm2021_vm5, %v12606_v49, %v12650_v48  ;;  %v2381_v14 = vsel %vm2150_vm1, %v1540_v15, %v1799_v44  ;;  %v1004_v18 = vsel %vm968_vm4, %v23720_v17, %v12640_v33  ;;  %v2507_v49 = vsel %vm2280_vm8, %v2443_v16, 1.0 }
 0x188   :  { %v12645_v8 = vunpack.i.l.bf16 %v16027_v45  ;;  %v12659_v31 = vpop.permute.xlu1 %12658  ;;  %4247 = vmatprep.mubr.f32.mxu0 %v23606_v37  ;;  %v1005_v12 = vsel %vm968_vm4, %v12640_v33, %v12641_v5  ;;  %v23721_v56 = vunpack.i.l.bf16 %v15981_v54  ;;  %v2058_v63 = vsel %vm2021_vm5, %v12650_v48, %v12651_v30 }
 0x189   :  { %12933 = vrot.lane.b32.xlu0 %v15952_v41, %s13032_s28  ;;  %v12661_v34 = vunpack.i.h.bf16 %v12659_v31  ;;  %v12660_v1 = vunpack.i.l.bf16 %v12659_v31  ;;  %v23722_v44 = vunpack.i.h.bf16 %v15908_v7  ;;  %v12636_v31 = vunpack.i.h.bf16 %v15981_v54 }
 0x18a   :  { %12948 = vrot.lane.b32.xlu1 %v23712_v39, %s13029_s25  ;;  %11394 = vmatmul.mubr.msk.f32.gmra.mrb[60].mxu1 %vm2541_vm10, %v15492_v58  ;;  %v1800_v15 = vsel %vm1762_vm2, %v12631_v0, %v23721_v56  ;;  %v1006_v39 = vsel %vm968_vm4, %v12641_v5, %v12645_v8  ;;  %v2444_v0 = vsel %vm2215_vm7, %v2380_v42, %v2057_v19  ;;  %v23724_v5 = vld [vmem:[#allocation86_spill] sm:$0xff] }
 0x18b   :  { %v16057_v3 = vpop.permute.xlu0 %12653  ;;  %4164 = vmatprep.mubr.f32.mxu1 %v23606_v37  ;;  %v1280_v16 = vsel %vm1244_vm6, %v23722_v44, %v12660_v1  ;;  %11400 = vmatmul.mubr.msk.f32.gmra.mrb[68].mxu0 %vm2541_vm10, %v15492_v58  ;;  %v2251_v7 = vsel %vm2215_vm7, %v23724_v5, %v1004_v18  ;;  %v2252_v19 = vsel %vm2215_vm7, %v14815_v36, %v1005_v12 }
 0x18c   :  { %v12655_v50 = vunpack.i.l.bf16 %v16057_v3  ;;  %v16084_v40 = vpop.permute.xlu1 %12668  ;;  %4253 = vmatprep.mubr.f32.mxu0 %v23606_v37  ;;  %v2253_v18 = vsel %vm2215_vm7, %v14810_v25, %v1006_v39  ;;  %v2316_v36 = vsel %vm2280_vm8, %v2251_v7, %v1280_v16  ;;  %v11597_v25 = vpack.c.bf16 %v2507_v49, %v16049_v21 }
 0x18d   :  { %12943 = vrot.lane.b32.xlu0 %v12942_v32, %s13030_s26  ;;  %v23723_v32 = vunpack.i.h.bf16 %v15893_v53  ;;  %v2445_v53 = vsel %vm2215_vm7, %v2381_v14, %v2058_v63  ;;  %v12626_v39 = vunpack.i.h.bf16 %v15935_v9  ;;  %v23727_v49 = vunpack.i.l.bf16 %v15981_v54 }
 0x18e   :  { %v2059_v33 = vsel %vm2021_vm5, %v12651_v30, %v12655_v50  ;;  %v1281_v30 = vsel %vm1244_vm6, %v12660_v1, %v12661_v34  ;;  %1501 = vrot.lane.b32.xlu1 %v16008_v27, %s13030_s26  ;;  %11395 = vmatmul.mubr.msk.f32.gmra.mrb[62].mxu1 %vm2541_vm10, %v15535_v28  ;;  %v2508_v1 = vsel %vm2280_vm8, %v2444_v0, 1.0  ;;  %v2509_v7 = vsel %vm2280_vm8, %v2445_v53, 1.0 }
 0x18f   :  { %v1541_v48 = vsel %vm1503_vm3, %v23723_v32, %v12625_v24  ;;  %v16098_v17 = vpop.permute.xlu0 %12663  ;;  %v2317_v12 = vsel %vm2280_vm8, %v2252_v19, %v1281_v30  ;;  %v11594_v44 = vpack.c.bf16 %v2508_v1, %v2316_v36  ;;  %11401 = vmatmul.mubr.msk.f32.gmra.mrb[70].mxu0 %vm2541_vm10, %v15535_v28  ;;  %4324 = vmatprep.mubr.f32.mxu1 %v23606_v37  ;;  %v12646_v30 = vunpack.i.h.bf16 %v16027_v45 }
 0x190   :  { %v2382_v42 = vsel %vm2150_vm1, %v1541_v48, %v1800_v15  ;;  %v12665_v56 = vunpack.i.l.bf16 %v16098_v17  ;;  %v12656_v15 = vunpack.i.h.bf16 %v16057_v3  ;;  %v16120_v32 = vpop.permute.xlu1 %12678  ;;  %4413 = vmatprep.mubr.f32.mxu0 %v23606_v37  ;;  %v23726_v48 = vunpack.i.h.bf16 %v23715_v10 }
 0x191   :  { %12953 = vrot.lane.b32.xlu0 %v16016_v43, %s13028_s24  ;;  %v2446_v14 = vsel %vm2215_vm7, %v2382_v42, %v2059_v33  ;;  %11596 = vmatprep.subr.msk.bf16.mxu1 %vm14421_vm12, %v11594_v44  ;;  %v11603_v19 = vpack.c.bf16 %v2509_v7, %v2317_v12  ;;  %v23728_v42 = vld [vmem:[#allocation56_spill] sm:$0xff]  ;;  %v837_v53 = vcombine.low %v16008_v27, %v16008_v27  ;;  %v12666_v12 = vunpack.i.h.bf16 %v16098_v17  ;;  %v23731_v27 = vld [vmem:[#allocation3_spill] sm:$0xff] }
 0x192   :  { %v1282_v63 = vsel %vm1244_vm6, %v12661_v34, %v12665_v56  ;;  %v2510_v0 = vsel %vm2280_vm8, %v2446_v14, 1.0  ;;  %v23725_v34 = vunpack.i.l.bf16 %v23708_v62  ;;  %12958 = vrot.lane.b32.xlu1 %v16016_v43, %s13032_s28  ;;  %v1801_v62 = vsel %vm1762_vm2, %v23727_v49, %v12636_v31  ;;  %11599 = vmatpush1.bf16.msk.msra.mxu1 %vm14421_vm12, %v11597_v25 }
 0x193   :  { %v16127_v16 = vpop.permute.xlu0 %12673  ;;  %v2318_v33 = vsel %vm2280_vm8, %v2253_v18, %v1282_v63  ;;  %v23729_v43 = vmov %v23726_v48  ;;  %v23730_v18 = vunpack.i.l.bf16 %v23715_v10  ;;  %v2060_v1 = vsel %vm2021_vm5, %v12655_v50, %v12656_v15 }
 0x194   :  { %v16137_v5 = vsel %vm676_vm0, %v23726_v48, %v23725_v34  ;;  %v11600_v21 = vpack.c.bf16 %v2510_v0, %v2318_v33  ;;  %v12671_v14 = vunpack.i.h.bf16 %v16084_v40  ;;  %v16170_v63 = vpop.permute.xlu1 %12688  ;;  %v12166_v44 = vunpack.i.h.bf16 %v23731_v27 }
 0x195   :  { %1760 = vrot.lane.b32.xlu0 %v23728_v42, %s13029_s25  ;;  %v16161_v36 = vsel %vm676_vm0, %v23730_v18, %v23729_v43  ;;  %v1542_v10 = vsel %vm1503_vm3, %v12625_v24, %v12626_v39  ;;  %v12681_v25 = vunpack.i.h.bf16 %v16120_v32  ;;  %v12680_v33 = vunpack.i.l.bf16 %v16120_v32  ;;  %11404 = vmatmul.mubr.msk.f32.vlgmr.msra.gmra.mrb[64].mxu1 %vm2541_vm10, %v15420_v57 }
 0x196   :  { %11602 = vmatprep.subr.msk.bf16.mxu0 %vm14421_vm12, %v11600_v21  ;;  %v12165_v0 = vunpack.i.l.bf16 %v23731_v27  ;;  %v2383_v34 = vsel %vm2150_vm1, %v1542_v10, %v1801_v62  ;;  %v12670_v48 = vunpack.i.l.bf16 %v16084_v40  ;;  %12963 = vrot.lane.b32.xlu1 %v15952_v41, %s13031_s27  ;;  %v1113_v9 = vcombine.low %v23728_v42, %v23728_v42  ;;  %v23732_v21 = vld [vmem:[#allocation102_spill] sm:$0xff] }
 0x197   :  { %v16178_v50 = vpop.permute.xlu0 %12683  ;;  %11605 = vmatpush1.bf16.msk.msra.mxu0 %vm14421_vm12, %v11603_v19  ;;  %v16194_v24 = vsel %vm2150_vm1, %v23701_v52, %v15969_v61  ;;  %v1007_v32 = vsel %vm968_vm4, %v12645_v8, %v12646_v30  ;;  %v2447_v7 = vsel %vm2215_vm7, %v2383_v34, %v2060_v1  ;;  %4330 = vmatprep.mubr.f32.mxu1 %v23606_v37  ;;  %v12161_v52 = vunpack.i.h.bf16 %v23732_v21 }
 0x198   :  { %v16207_v41 = vsel %vm676_vm0, %v12165_v0, %v12166_v44  ;;  %v1544_v61 = vsel %vm1503_vm3, %v12670_v48, %v12671_v14  ;;  %v1283_v45 = vsel %vm1244_vm6, %v12665_v56, %v12666_v12  ;;  %v12699_v8 = vpop.permute.xlu1 %12698  ;;  %v1802_v49 = vsel %vm1762_vm2, %v12636_v31, %v12680_v33 }
 0x199   :  { %966 = vrot.lane.b32.xlu0 %v837_v53, %s13028_s24  ;;  %v1803_v62 = vsel %vm1762_vm2, %v12680_v33, %v12681_v25  ;;  %v12690_v19 = vunpack.i.l.bf16 %v16170_v63  ;;  %v12700_v42 = vunpack.i.l.bf16 %v12699_v8  ;;  %v2254_v56 = vsel %vm2215_vm7, %v14653_v55, %v1007_v32  ;;  %11405 = vmatmul.mubr.msk.f32.gmra.mrb[66].mxu1 %vm2541_vm10, %v15456_v11 }
 0x19a   :  { %11410 = vmatmul.mubr.msk.f32.vlgmr.msra.gmra.mrb[72].mxu0 %vm2541_vm10, %v15420_v57  ;;  %v16229_v18 = vsel %vm2280_vm8, %v2447_v7, 1.0  ;;  %v12691_v57 = vunpack.i.h.bf16 %v16170_v63  ;;  %v12685_v54 = vunpack.i.l.bf16 %v16178_v50  ;;  %1242 = vrot.lane.b32.xlu1 %v1113_v9, %s13031_s27  ;;  %v1543_v31 = vsel %vm1503_vm3, %v12626_v39, %v12670_v48 }
 0x19b   :  { %v16223_v43 = vpop.permute.xlu0 %12693  ;;  %4419 = vmatprep.mubr.f32.mxu0 %v23606_v37  ;;  %v12675_v1 = vunpack.i.l.bf16 %v16127_v16  ;;  %v12701_v10 = vunpack.i.h.bf16 %v12699_v8  ;;  %4336 = vmatprep.mubr.f32.mxu1 %v23606_v37  ;;  %v16242_v55 = vsel %vm2280_vm8, %v2254_v56, %v1283_v45  ;;  %v2384_v63 = vsel %vm2150_vm1, %v1543_v31, %v1802_v49 }
 0x19c   :  { %v12695_v33 = vunpack.i.l.bf16 %v16223_v43  ;;  %v2385_v34 = vsel %vm2150_vm1, %v1544_v61, %v1803_v62  ;;  %v12676_v9 = vunpack.i.h.bf16 %v16127_v16  ;;  %v12709_v32 = vpop.permute.xlu1 %12708  ;;  %v1008_v39 = vsel %vm968_vm4, %v12646_v30, %v12690_v19  ;;  %v16424_v16 = vld [vmem:[%s22809_s1 + $0x8] sm:$0xff] }
 0x19d   :  { %2019 = vrot.lane.b32.xlu0 %v837_v53, %s13032_s28  ;;  %v12686_v48 = vunpack.i.h.bf16 %v16178_v50  ;;  %v2061_v53 = vsel %vm2021_vm5, %v12656_v15, %v12700_v42  ;;  %v12711_v7 = vunpack.i.h.bf16 %v12709_v32  ;;  %v1009_v61 = vsel %vm968_vm4, %v12690_v19, %v12691_v57  ;;  %11406 = vmatmul.mubr.msk.f32.gmra.mrb[68].mxu1 %vm2541_vm10, %v15492_v58 }
 0x19e   :  { %11411 = vmatmul.mubr.msk.f32.gmra.mrb[74].mxu0 %vm2541_vm10, %v15456_v11  ;;  %v1804_v8 = vsel %vm1762_vm2, %v12681_v25, %v12685_v54  ;;  %v12710_v49 = vunpack.i.l.bf16 %v12709_v32  ;;  %v1545_v3 = vsel %vm1503_vm3, %v12671_v14, %v12675_v1  ;;  %v2062_v15 = vsel %vm2021_vm5, %v12700_v42, %v12701_v10  ;;  %4342 = vmatprep.mubr.f32.mxu1 %v23606_v37  ;;  %v23733_v25 = vld [vmem:[#allocation90_spill] sm:$0xff] }
 0x19f   :  { %v16254_v45 = vpop.permute.xlu0 %12703  ;;  %4425 = vmatprep.mubr.f32.mxu0 %v23606_v37  ;;  %v1010_v30 = vsel %vm968_vm4, %v12691_v57, %v12695_v33  ;;  %v2255_v19 = vsel %vm2215_vm7, %v23733_v25, %v1008_v39  ;;  %v2448_v42 = vsel %vm2215_vm7, %v2384_v63, %v2061_v53  ;;  %v2256_v57 = vsel %vm2215_vm7, %v15015_v35, %v1009_v61 }
 0x1a0   :  { %v12705_v11 = vunpack.i.l.bf16 %v16254_v45  ;;  %v12706_v62 = vunpack.i.h.bf16 %v16254_v45  ;;  %v1284_v56 = vsel %vm1244_vm6, %v12666_v12, %v12710_v49  ;;  %v16277_v14 = vpop.permute.xlu1 %12718  ;;  %v1805_v31 = vsel %vm1762_vm2, %v12685_v54, %v12686_v48 }
 0x1a1   :  { %v2386_v17 = vsel %vm2150_vm1, %v1545_v3, %v1804_v8  ;;  %v1285_v12 = vsel %vm1244_vm6, %v12710_v49, %v12711_v7  ;;  %v12696_v63 = vunpack.i.h.bf16 %v16223_v43  ;;  %11407 = vmatmul.mubr.msk.f32.gmra.mrb[70].mxu1 %vm2541_vm10, %v15535_v28  ;;  %v2320_v39 = vsel %vm2280_vm8, %v2255_v19, %v1284_v56 }
 0x1a2   :  { %v2063_v40 = vsel %vm2021_vm5, %v12701_v10, %v12705_v11  ;;  %11412 = vmatmul.mubr.msk.f32.gmra.mrb[76].mxu0 %vm2541_vm10, %v15492_v58  ;;  %v2449_v10 = vsel %vm2215_vm7, %v2385_v34, %v2062_v15  ;;  %v2257_v58 = vsel %vm2215_vm7, %v15010_v4, %v1010_v30  ;;  %v2064_v54 = vsel %vm2021_vm5, %v12705_v11, %v12706_v62 }
 0x1a3   :  { %v16289_v32 = vpop.permute.xlu0 %12713  ;;  %4431 = vmatprep.mubr.f32.mxu0 %v23606_v37  ;;  %v2512_v53 = vsel %vm2280_vm8, %v2448_v42, 1.0  ;;  %v2450_v34 = vsel %vm2215_vm7, %v2386_v17, %v2063_v40  ;;  %4502 = vmatprep.mubr.f32.mxu1 %v23606_v37  ;;  %v2321_v61 = vsel %vm2280_vm8, %v2256_v57, %v1285_v12  ;;  %v11609_v11 = vpack.c.bf16 %v16229_v18, %v16242_v55  ;;  %v23734_v57 = vld [vmem:[#allocation46_spill] sm:$0xff] }
 0x1a4   :  { %v12715_v35 = vunpack.i.l.bf16 %v16289_v32  ;;  %v12716_v4 = vunpack.i.h.bf16 %v16289_v32  ;;  %v11606_v49 = vpack.c.bf16 %v2512_v53, %v2320_v39  ;;  %v16309_v3 = vpop.permute.xlu1 %12728  ;;  %v1546_v15 = vsel %vm1503_vm3, %v12675_v1, %v12676_v9 }
 0x1a5   :  { %v2514_v19 = vsel %vm2280_vm8, %v2450_v34, 1.0  ;;  %v2513_v56 = vsel %vm2280_vm8, %v2449_v10, 1.0  ;;  %v1011_v1 = vsel %vm968_vm4, %v12695_v33, %v12696_v63  ;;  %v12730_v42 = vunpack.i.l.bf16 %v16309_v3 }
 0x1a6   :  { %v1286_v8 = vsel %vm1244_vm6, %v12711_v7, %v12715_v35  ;;  %11413 = vmatmul.mubr.msk.f32.gmra.mrb[78].mxu0 %vm2541_vm10, %v15535_v28  ;;  %v2387_v7 = vsel %vm2150_vm1, %v1546_v15, %v1805_v31  ;;  %v12721_v28 = vunpack.i.h.bf16 %v16277_v14  ;;  %11608 = vmatprep.subr.msk.bf16.mxu1 %vm14421_vm12, %v11606_v49  ;;  %v11615_v55 = vpack.c.bf16 %v2513_v56, %v2321_v61 }
 0x1a7   :  { %v16318_v30 = vpop.permute.xlu0 %12723  ;;  %v2322_v25 = vsel %vm2280_vm8, %v2257_v58, %v1286_v8  ;;  %4591 = vmatprep.mubr.f32.mxu0 %v23606_v37  ;;  %v2451_v40 = vsel %vm2215_vm7, %v2387_v7, %v2064_v54  ;;  %11611 = vmatpush1.bf16.msk.msra.mxu1 %vm14421_vm12, %v11609_v11  ;;  %v16340_v31 = vsel %vm2150_vm1, %v23734_v57, %v16137_v5  ;;  %v12720_v17 = vunpack.i.l.bf16 %v16277_v14 }
 0x1a8   :  { %v11612_v18 = vpack.c.bf16 %v2514_v19, %v2322_v25  ;;  %v1287_v12 = vsel %vm1244_vm6, %v12715_v35, %v12716_v4  ;;  %v12731_v33 = vunpack.i.h.bf16 %v16309_v3  ;;  %v12739_v10 = vpop.permute.xlu1 %12738  ;;  %v16352_v58 = vsel %vm2150_vm1, %v23694_v46, %v16161_v36 }
 0x1a9   :  { %v16357_v5 = vsel %vm2150_vm1, %v23716_v20, %v16207_v41  ;;  %v16364_v14 = vsel %vm676_vm0, %v12161_v52, %v12165_v0  ;;  %v23735_v35 = vunpack.i.l.bf16 %v23732_v21  ;;  %v23736_v20 = vld [vmem:[#allocation104_spill] sm:$0xff]  ;;  %v2258_v0 = vsel %vm2215_vm7, %v14966_v22, %v1011_v1 }
 0x1aa   :  { %11614 = vmatprep.subr.msk.bf16.mxu0 %vm14421_vm12, %v11612_v18  ;;  %v16381_v36 = vsel %vm676_vm0, %v12166_v44, %v23736_v20  ;;  %v16386_v41 = vsel %vm2280_vm8, %v2451_v40, 1.0  ;;  %v1548_v21 = vsel %vm1503_vm3, %v12720_v17, %v12721_v28  ;;  %v16397_v27 = vsel %vm2280_vm8, %v2258_v0, %v1287_v12  ;;  %v16461_v0 = vld [vmem:[%s22809_s1 + $0x10] sm:$0xff] }
 0x1ab   :  { %v16371_v54 = vsel %vm676_vm0, %v23735_v35, %v12161_v52  ;;  %v16373_v46 = vpop.permute.xlu0 %12733  ;;  %11617 = vmatpush1.bf16.msk.msra.mxu0 %vm14421_vm12, %v11615_v55  ;;  %v16392_v52 = vld [vmem:[%s22809_s1] sm:$0xff]  ;;  %v1806_v22 = vsel %vm1762_vm2, %v12686_v48, %v12730_v42  ;;  %v12726_v44 = vunpack.i.h.bf16 %v16318_v30  ;;  %v12725_v39 = vunpack.i.l.bf16 %v16318_v30 }
 0x1ac   :  { %11416 = vmatmul.mubr.msk.f32.vlgmr.msra.gmra.mrb[72].mxu1 %vm2541_vm10, %v16392_v52  ;;  %v1807_v53 = vsel %vm1762_vm2, %v12730_v42, %v12731_v33  ;;  %v12741_v34 = vunpack.i.h.bf16 %v12739_v10  ;;  %v12740_v61 = vunpack.i.l.bf16 %v12739_v10  ;;  %v12735_v8 = vunpack.i.l.bf16 %v16373_v46  ;;  %v12749_v49 = vpop.permute.xlu1 %12748 }
 0x1ad   :  { %4508 = vmatprep.mubr.f32.mxu1 %v23606_v37  ;;  %v1547_v50 = vsel %vm1503_vm3, %v12676_v9, %v12720_v17  ;;  %v12736_v48 = vunpack.i.h.bf16 %v16373_v46  ;;  %v12751_v3 = vunpack.i.h.bf16 %v12749_v49  ;;  %v12750_v11 = vunpack.i.l.bf16 %v12749_v49 }
 0x1ae   :  { %11422 = vmatmul.mubr.msk.f32.vlgmr.msra.gmra.mrb[80].mxu0 %vm2541_vm10, %v16392_v52  ;;  %v11621_v25 = vpack.c.bf16 %v16386_v41, %v16397_v27  ;;  %v2388_v19 = vsel %vm2150_vm1, %v1547_v50, %v1806_v22  ;;  %v2389_v9 = vsel %vm2150_vm1, %v1548_v21, %v1807_v53  ;;  %v1549_v18 = vsel %vm1503_vm3, %v12721_v28, %v12725_v39  ;;  %v23737_v21 = vld [vmem:[#allocation94_spill] sm:$0xff] }
 0x1af   :  { %v16413_v15 = vpop.permute.xlu0 %12743  ;;  %4597 = vmatprep.mubr.f32.mxu0 %v23606_v37  ;;  %v1550_v1 = vsel %vm1503_vm3, %v12725_v39, %v12726_v44  ;;  %v2066_v55 = vsel %vm2021_vm5, %v12750_v11, %v12751_v3  ;;  %v1012_v40 = vsel %vm968_vm4, %v12696_v63, %v12740_v61  ;;  %v1013_v42 = vsel %vm968_vm4, %v12740_v61, %v12741_v34 }
 0x1b0   :  { %v12746_v7 = vunpack.i.h.bf16 %v16413_v15  ;;  %v12745_v56 = vunpack.i.l.bf16 %v16413_v15  ;;  %11417 = vmatmul.mubr.msk.f32.gmra.mrb[74].mxu1 %vm2541_vm10, %v16424_v16  ;;  %v1808_v57 = vsel %vm1762_vm2, %v12731_v33, %v12735_v8  ;;  %v2065_v28 = vsel %vm2021_vm5, %v12706_v62, %v12750_v11  ;;  %v12759_v17 = vpop.permute.xlu1 %12758 }
 0x1b1   :  { %4514 = vmatprep.mubr.f32.mxu1 %v23606_v37  ;;  %v1809_v12 = vsel %vm1762_vm2, %v12735_v8, %v12736_v48  ;;  %v2453_v43 = vsel %vm2215_vm7, %v2389_v9, %v2066_v55  ;;  %v12761_v10 = vunpack.i.h.bf16 %v12759_v17  ;;  %v12760_v62 = vunpack.i.l.bf16 %v12759_v17 }
 0x1b2   :  { %11423 = vmatmul.mubr.msk.f32.gmra.mrb[82].mxu0 %vm2541_vm10, %v16424_v16  ;;  %v1014_v63 = vsel %vm968_vm4, %v12741_v34, %v12745_v56  ;;  %v1015_v45 = vsel %vm968_vm4, %v12745_v56, %v12746_v7  ;;  %v2259_v22 = vsel %vm2215_vm7, %v23737_v21, %v1012_v40  ;;  %v2260_v39 = vsel %vm2215_vm7, %v15081_v23, %v1013_v42 }
 0x1b3   :  { %v16450_v35 = vpop.permute.xlu0 %12753  ;;  %4603 = vmatprep.mubr.f32.mxu0 %v23606_v37  ;;  %v2390_v53 = vsel %vm2150_vm1, %v1549_v18, %v1808_v57  ;;  %v2452_v34 = vsel %vm2215_vm7, %v2388_v19, %v2065_v28  ;;  %v1288_v61 = vsel %vm1244_vm6, %v12716_v4, %v12760_v62  ;;  %v1289_v8 = vsel %vm1244_vm6, %v12760_v62, %v12761_v10 }
 0x1b4   :  { %v12756_v33 = vunpack.i.h.bf16 %v16450_v35  ;;  %v12755_v20 = vunpack.i.l.bf16 %v16450_v35  ;;  %11418 = vmatmul.mubr.msk.f32.gmra.mrb[76].mxu1 %vm2541_vm10, %v16461_v0  ;;  %v12769_v11 = vpop.permute.xlu1 %12768  ;;  %v2391_v23 = vsel %vm2150_vm1, %v1550_v1, %v1809_v12  ;;  %v2517_v19 = vsel %vm2280_vm8, %v2453_v43, 1.0  ;;  %v16497_v1 = vld [vmem:[%s22809_s1 + $0x18] sm:$0xff] }
 0x1b5   :  { %4520 = vmatprep.mubr.f32.mxu1 %v23606_v37  ;;  %v2261_v32 = vsel %vm2215_vm7, %v15061_v60, %v1014_v63  ;;  %v2262_v4 = vsel %vm2215_vm7, %v15057_v26, %v1015_v45  ;;  %v2516_v55 = vsel %vm2280_vm8, %v2452_v34, 1.0  ;;  %v2325_v26 = vsel %vm2280_vm8, %v2260_v39, %v1289_v8 }
 0x1b6   :  { %v2067_v49 = vsel %vm2021_vm5, %v12751_v3, %v12755_v20  ;;  %v2068_v50 = vsel %vm2021_vm5, %v12755_v20, %v12756_v33  ;;  %11424 = vmatmul.mubr.msk.f32.gmra.mrb[84].mxu0 %vm2541_vm10, %v16461_v0  ;;  %v12771_v3 = vunpack.i.h.bf16 %v12769_v11  ;;  %v2324_v40 = vsel %vm2280_vm8, %v2259_v22, %v1288_v61 }
 0x1b7   :  { %v16488_v56 = vpop.permute.xlu0 %12763  ;;  %4609 = vmatprep.mubr.f32.mxu0 %v23606_v37  ;;  %v2455_v60 = vsel %vm2215_vm7, %v2391_v23, %v2068_v50  ;;  %v2454_v42 = vsel %vm2215_vm7, %v2390_v53, %v2067_v49  ;;  %v12770_v57 = vunpack.i.l.bf16 %v12769_v11  ;;  %v11618_v12 = vpack.c.bf16 %v2516_v55, %v2324_v40  ;;  %v23738_v50 = vld [vmem:[#allocation51_spill] sm:$0xff] }
 0x1b8   :  { %v12766_v9 = vunpack.i.h.bf16 %v16488_v56  ;;  %v12765_v18 = vunpack.i.l.bf16 %v16488_v56  ;;  %11419 = vmatmul.mubr.msk.f32.gmra.mrb[78].mxu1 %vm2541_vm10, %v16497_v1  ;;  %v12779_v43 = vpop.permute.xlu1 %12778  ;;  %v2518_v21 = vsel %vm2280_vm8, %v2454_v42, 1.0  ;;  %v16537_v11 = vsel %vm2150_vm1, %v23738_v50, %v16364_v14 }
 0x1b9   :  { %4680 = vmatprep.mubr.f32.mxu1 %v23606_v37  ;;  %v12781_v63 = vunpack.i.h.bf16 %v12779_v43  ;;  %v12780_v45 = vunpack.i.l.bf16 %v12779_v43  ;;  %v1552_v22 = vsel %vm1503_vm3, %v12770_v57, %v12771_v3  ;;  %11620 = vmatprep.subr.msk.bf16.mxu1 %vm14421_vm12, %v11618_v12  ;;  %v16542_v46 = vsel %vm2150_vm1, %v23706_v38, %v16371_v54 }
 0x1ba   :  { %v1290_v28 = vsel %vm1244_vm6, %v12761_v10, %v12765_v18  ;;  %v1291_v17 = vsel %vm1244_vm6, %v12765_v18, %v12766_v9  ;;  %11425 = vmatmul.mubr.msk.f32.gmra.mrb[86].mxu0 %vm2541_vm10, %v16497_v1  ;;  %v11627_v10 = vpack.c.bf16 %v2517_v19, %v2325_v26  ;;  %11623 = vmatpush1.bf16.msk.msra.mxu1 %vm14421_vm12, %v11621_v25  ;;  %v16550_v41 = vsel %vm2280_vm8, %v2455_v60, 1.0 }
 0x1bb   :  { %v16512_v62 = vpop.permute.xlu0 %12773  ;;  %v2326_v20 = vsel %vm2280_vm8, %v2261_v32, %v1290_v28  ;;  %4769 = vmatprep.mubr.f32.mxu0 %v23606_v37  ;;  %v16519_v39 = vsel %vm2280_vm8, %v2262_v4, %v1291_v17  ;;  %v1810_v34 = vsel %vm1762_vm2, %v12736_v48, %v12780_v45  ;;  %v1811_v61 = vsel %vm1762_vm2, %v12780_v45, %v12781_v63  ;;  %v23739_v28 = vld [vmem:[#allocation98_spill] sm:$0xff] }
 0x1bc   :  { %v11624_v53 = vpack.c.bf16 %v2518_v21, %v2326_v20  ;;  %v12776_v8 = vunpack.i.h.bf16 %v16512_v62  ;;  %v12775_v49 = vunpack.i.l.bf16 %v16512_v62  ;;  %v16547_v48 = vsel %vm2150_vm1, %v23718_v6, %v16381_v36  ;;  %v12789_v27 = vpop.permute.xlu1 %12788  ;;  %v2813_v6 = vpop.f32.mrb[0].mxu0 }
 0x1bd   :  { %v1551_v14 = vsel %vm1503_vm3, %v12726_v44, %v12770_v57  ;;  %v11633_v38 = vpack.c.bf16 %v16550_v41, %v16519_v39  ;;  %v12791_v54 = vunpack.i.h.bf16 %v12789_v27  ;;  %v12790_v25 = vunpack.i.l.bf16 %v12789_v27  ;;  %11428 = vmatmul.mubr.msk.f32.vlgmr.msra.gmra.mrb[80].mxu1 %vm2541_vm10, %v16392_v52  ;;  %v2815_v44 = vpop.f32.mrb[1].mxu0 }
 0x1be   :  { %11626 = vmatprep.subr.msk.bf16.mxu0 %vm14421_vm12, %v11624_v53  ;;  %v2392_v36 = vsel %vm2150_vm1, %v1551_v14, %v1810_v34  ;;  %v2393_v19 = vsel %vm2150_vm1, %v1552_v22, %v1811_v61  ;;  %v1553_v4 = vsel %vm1503_vm3, %v12771_v3, %v12775_v49  ;;  %v1554_v18 = vsel %vm1503_vm3, %v12775_v49, %v12776_v8 }
 0x1bf   :  { %v16559_v23 = vpop.permute.xlu0 %12783  ;;  %11629 = vmatpush1.bf16.msk.msra.mxu0 %vm14421_vm12, %v11627_v10  ;;  %v1016_v55 = vsel %vm968_vm4, %v12746_v7, %v12790_v25  ;;  %v1017_v26 = vsel %vm968_vm4, %v12790_v25, %v12791_v54  ;;  %4686 = vmatprep.mubr.f32.mxu1 %v23606_v37  ;;  %v5595_v3 = vmax.f32 %v2813_v6, 0.0  ;;  %v5596_v57 = vmax.f32 %v2815_v44, 0.0 }
 0x1c0   :  { %v12786_v32 = vunpack.i.h.bf16 %v16559_v23  ;;  %v12785_v30 = vunpack.i.l.bf16 %v16559_v23  ;;  %v12799_v42 = vpop.permute.xlu1 %12798  ;;  %v16586_v15 = vsel %vm2215_vm7, %v23739_v28, %v1016_v55  ;;  %v2264_v7 = vsel %vm2215_vm7, %v15752_v29, %v1017_v26 }
 0x1c1   :  { %v12801_v17 = vunpack.i.h.bf16 %v12799_v42  ;;  %v12800_v12 = vunpack.i.l.bf16 %v12799_v42  ;;  %11429 = vmatmul.mubr.msk.f32.gmra.mrb[82].mxu1 %vm2541_vm10, %v16424_v16 }
 0x1c2   :  { %v1812_v60 = vsel %vm1762_vm2, %v12781_v63, %v12785_v30  ;;  %v1813_v40 = vsel %vm1762_vm2, %v12785_v30, %v12786_v32  ;;  %11434 = vmatmul.mubr.msk.f32.vlgmr.msra.gmra.mrb[88].mxu0 %vm2541_vm10, %v16392_v52  ;;  %v2819_v63 = vpop.f32.mrb[2].mxu0  ;;  %4692 = vmatprep.mubr.f32.mxu1 %v23606_v37 }
 0x1c3   :  { %v16590_v43 = vpop.permute.xlu0 %12793  ;;  %4775 = vmatprep.mubr.f32.mxu0 %v23606_v37  ;;  %v2394_v45 = vsel %vm2150_vm1, %v1553_v4, %v1812_v60  ;;  %v2395_v20 = vsel %vm2150_vm1, %v1554_v18, %v1813_v40  ;;  %v2821_v22 = vpop.f32.mrb[3].mxu0  ;;  %v2069_v29 = vsel %vm2021_vm5, %v12756_v33, %v12800_v12  ;;  %v2070_v53 = vsel %vm2021_vm5, %v12800_v12, %v12801_v17 }
 0x1c4   :  { %v12796_v21 = vunpack.i.h.bf16 %v16590_v43  ;;  %v12795_v10 = vunpack.i.l.bf16 %v16590_v43  ;;  %v5659_v34 = vmax.f32 %v2819_v63, 0.0  ;;  %v5660_v61 = vmax.f32 %v2821_v22, 0.0  ;;  %v12809_v14 = vpop.permute.xlu1 %12808  ;;  %v16622_v30 = vpop.f32.mrb[4].mxu0 }
 0x1c5   :  { %v2457_v49 = vsel %vm2215_vm7, %v2393_v19, %v2070_v53  ;;  %v2456_v35 = vsel %vm2215_vm7, %v2392_v36, %v2069_v29  ;;  %v12810_v44 = vunpack.i.l.bf16 %v12809_v14  ;;  %11430 = vmatmul.mubr.msk.f32.gmra.mrb[84].mxu1 %vm2541_vm10, %v16461_v0  ;;  %v16629_v18 = vpop.f32.mrb[5].mxu0  ;;  %v5723_v26 = vmax.f32 %v16622_v30, 0.0 }
 0x1c6   :  { %v1018_v50 = vsel %vm968_vm4, %v12791_v54, %v12795_v10  ;;  %v1019_v27 = vsel %vm968_vm4, %v12795_v10, %v12796_v21  ;;  %11435 = vmatmul.mubr.msk.f32.gmra.mrb[90].mxu0 %vm2541_vm10, %v16424_v16  ;;  %v16613_v33 = vsel %vm2280_vm8, %v2457_v49, 1.0  ;;  %v12811_v54 = vunpack.i.h.bf16 %v12809_v14  ;;  %4698 = vmatprep.mubr.f32.mxu1 %v23606_v37 }
 0x1c7   :  { %v2265_v25 = vsel %vm2215_vm7, %v15579_v59, %v1018_v50  ;;  %v2266_v6 = vsel %vm2215_vm7, %v15381_v2, %v1019_v27  ;;  %v16619_v19 = vpop.permute.xlu0 %12803  ;;  %4781 = vmatprep.mubr.f32.mxu0 %v23606_v37  ;;  %v2520_v59 = vsel %vm2280_vm8, %v2456_v35, 1.0  ;;  %v16632_v2 = vpack.c.bf16 %v5659_v34, %v5595_v3 }
 0x1c8   :  { %v12806_v4 = vunpack.i.h.bf16 %v16619_v19  ;;  %v12805_v36 = vunpack.i.l.bf16 %v16619_v19  ;;  %v16634_v55 = vpack.c.bf16 %v5660_v61, %v5596_v57  ;;  %v5724_v60 = vmax.f32 %v16629_v18, 0.0  ;;  %v16646_v3 = vpop.permute.xlu1 %12818 }
 0x1c9   :  { %v1292_v40 = vsel %vm1244_vm6, %v12766_v9, %v12810_v44  ;;  %v1293_v42 = vsel %vm1244_vm6, %v12810_v44, %v12811_v54  ;;  %v12821_v56 = vunpack.i.h.bf16 %v16646_v3  ;;  %v12820_v9 = vunpack.i.l.bf16 %v16646_v3  ;;  %11431 = vmatmul.mubr.msk.f32.gmra.mrb[86].mxu1 %vm2541_vm10, %v16497_v1 }
 0x1ca   :  { %v2071_v28 = vsel %vm2021_vm5, %v12801_v17, %v12805_v36  ;;  %v2072_v12 = vsel %vm2021_vm5, %v12805_v36, %v12806_v4  ;;  %11436 = vmatmul.mubr.msk.f32.gmra.mrb[92].mxu0 %vm2541_vm10, %v16461_v0  ;;  %v2329_v57 = vsel %vm2280_vm8, %v2264_v7, %v1293_v42  ;;  %v2831_v17 = vpop.f32.mrb[6].mxu0  ;;  %v2328_v49 = vsel %vm2280_vm8, %v16586_v15, %v1292_v40 }
 0x1cb   :  { %v2459_v63 = vsel %vm2215_vm7, %v2395_v20, %v2072_v12  ;;  %v12814_v10 = vpop.permute.xlu0 %12813  ;;  %4787 = vmatprep.mubr.f32.mxu0 %v23606_v37  ;;  %v11639_v22 = vpack.c.bf16 %v16613_v33, %v2329_v57  ;;  %v2833_v7 = vpop.f32.mrb[7].mxu0  ;;  %v1555_v20 = vsel %vm1503_vm3, %v12776_v8, %v12820_v9  ;;  %v1556_v61 = vsel %vm1503_vm3, %v12820_v9, %v12821_v56 }
 0x1cc   :  { %v16657_v29 = vsel %vm2280_vm8, %v2459_v63, 1.0  ;;  %v12816_v53 = vunpack.i.h.bf16 %v12814_v10  ;;  %v12815_v34 = vunpack.i.l.bf16 %v12814_v10  ;;  %v2458_v50 = vsel %vm2215_vm7, %v2394_v45, %v2071_v28  ;;  %4858 = vmatprep.mubr.f32.mxu1 %v23606_v37  ;;  %v16673_v33 = vpop.permute.xlu1 %12828  ;;  %v16693_v42 = vpop.f32.mrb[0].mxu1  ;;  %v23740_v10 = vld [vmem:[#allocation101_spill] sm:$0xff] }
 0x1cd   :  { %v11630_v35 = vpack.c.bf16 %v2520_v59, %v2328_v49  ;;  %v2522_v62 = vsel %vm2280_vm8, %v2458_v50, 1.0  ;;  %v12831_v15 = vunpack.i.h.bf16 %v16673_v33  ;;  %v12830_v45 = vunpack.i.l.bf16 %v16673_v33  ;;  %v16706_v63 = vpop.f32.mrb[8].mxu0  ;;  %v16708_v9 = vpop.f32.mrb[1].mxu1  ;;  %v23743_v33 = vld [vmem:[#allocation15_spill] sm:$0xff] }
 0x1ce   :  { %v1294_v27 = vsel %vm1244_vm6, %v12811_v54, %v12815_v34  ;;  %v1295_v14 = vsel %vm1244_vm6, %v12815_v34, %v12816_v53  ;;  %11437 = vmatmul.mubr.msk.f32.gmra.mrb[94].mxu0 %vm2541_vm10, %v16497_v1  ;;  %v5787_v12 = vmax.f32 %v2831_v17, 0.0  ;;  %v5788_v57 = vmax.f32 %v2833_v7, 0.0 }
 0x1cf   :  { %v16679_v8 = vsel %vm2280_vm8, %v2266_v6, %v1295_v14  ;;  %v16683_v44 = vpop.permute.xlu0 %12823  ;;  %v2330_v54 = vsel %vm2280_vm8, %v2265_v25, %v1294_v27  ;;  %4947 = vmatprep.mubr.f32.mxu0 %v23606_v37  ;;  %11632 = vmatprep.subr.msk.bf16.mxu1 %vm14421_vm12, %v11630_v35  ;;  %v1020_v28 = vsel %vm968_vm4, %v12796_v21, %v12830_v45  ;;  %v5599_v35 = vmax.f32 %v16706_v63, 0.0 }
 0x1d0   :  { %v11645_v36 = vpack.c.bf16 %v16657_v29, %v16679_v8  ;;  %v12826_v59 = vunpack.i.h.bf16 %v16683_v44  ;;  %v12825_v6 = vunpack.i.l.bf16 %v16683_v44  ;;  %v11636_v40 = vpack.c.bf16 %v2522_v62, %v2330_v54  ;;  %11635 = vmatpush1.bf16.msk.msra.mxu1 %vm14421_vm12, %v11633_v38  ;;  %v16720_v41 = vpop.permute.xlu1 %12838  ;;  %v16722_v38 = vpop.f32.mrb[9].mxu0 }
 0x1d1   :  { %v1021_v25 = vsel %vm968_vm4, %v12830_v45, %v12831_v15  ;;  %v2267_v43 = vsel %vm2215_vm7, %v23740_v10, %v1020_v28  ;;  %v12841_v49 = vunpack.i.h.bf16 %v16720_v41  ;;  %v16734_v27 = vpack.c.bf16 %v5787_v12, %v5723_v26 }
 0x1d2   :  { %v2268_v21 = vsel %vm2215_vm7, %v15957_v13, %v1021_v25  ;;  %v1814_v34 = vsel %vm1762_vm2, %v12786_v32, %v12825_v6  ;;  %v1815_v39 = vsel %vm1762_vm2, %v12825_v6, %v12826_v59  ;;  %11638 = vmatprep.subr.msk.bf16.mxu0 %vm14421_vm12, %v11636_v40  ;;  %v12840_v13 = vunpack.i.l.bf16 %v16720_v41  ;;  %v2997_v26 = vpop.f32.mrb[10].mxu0 }
 0x1d3   :  { %v2396_v17 = vsel %vm2150_vm1, %v1555_v20, %v1814_v34  ;;  %v2397_v7 = vsel %vm2150_vm1, %v1556_v61, %v1815_v39  ;;  %v12834_v23 = vpop.permute.xlu0 %12833  ;;  %11641 = vmatpush1.bf16.msk.msra.mxu0 %vm14421_vm12, %v11639_v22  ;;  %11440 = vmatmul.mubr.msk.f32.vlgmr.msra.gmra.mrb[88].mxu1 %vm2541_vm10, %v16392_v52  ;;  %v16738_v20 = vpack.c.bf16 %v5788_v57, %v5724_v60  ;;  %v16740_v61 = vpop.f32.mrb[2].mxu1  ;;  %v5600_v30 = vmax.f32 %v16722_v38, 0.0 }
 0x1d4   :  { %v12836_v32 = vunpack.i.h.bf16 %v12834_v23  ;;  %v12835_v50 = vunpack.i.l.bf16 %v12834_v23  ;;  %v1296_v14 = vsel %vm1244_vm6, %v12816_v53, %v12840_v13  ;;  %v1297_v22 = vsel %vm1244_vm6, %v12840_v13, %v12841_v49  ;;  %4864 = vmatprep.mubr.f32.mxu1 %v23606_v37  ;;  %v16749_v62 = vpop.f32.mrb[3].mxu1  ;;  %v16760_v45 = vpop.permute.xlu1 %12848 }
 0x1d5   :  { %v16752_v18 = vsel %vm2280_vm8, %v2268_v21, %v1297_v22  ;;  %v2332_v44 = vsel %vm2280_vm8, %v2267_v43, %v1296_v14  ;;  %v2999_v54 = vpop.f32.mrb[11].mxu0  ;;  %v12851_v40 = vunpack.i.h.bf16 %v16760_v45  ;;  %v12850_v28 = vunpack.i.l.bf16 %v16760_v45  ;;  %v16778_v10 = vpop.f32.mrb[4].mxu1 }
 0x1d6   :  { %v2073_v60 = vsel %vm2021_vm5, %v12806_v4, %v12835_v50  ;;  %v2074_v53 = vsel %vm2021_vm5, %v12835_v50, %v12836_v32  ;;  %11446 = vmatmul.mubr.msk.f32.vlgmr.msra.gmra.mrb[96].mxu0 %vm2541_vm10, %v16392_v52  ;;  %v16787_v38 = vpop.f32.mrb[12].mxu0  ;;  %v5663_v23 = vmax.f32 %v2997_v26, 0.0  ;;  %v5664_v50 = vmax.f32 %v2999_v54, 0.0 }
 0x1d7   :  { %v2461_v6 = vsel %vm2215_vm7, %v2397_v7, %v2074_v53  ;;  %v16766_v25 = vpop.permute.xlu0 %12843  ;;  %4953 = vmatprep.mubr.f32.mxu0 %v23606_v37  ;;  %v2460_v19 = vsel %vm2215_vm7, %v2396_v17, %v2073_v60  ;;  %11441 = vmatmul.mubr.msk.f32.gmra.mrb[90].mxu1 %vm2541_vm10, %v16424_v16  ;;  %v1816_v43 = vsel %vm1762_vm2, %v12826_v59, %v12850_v28  ;;  %v16789_v17 = vpop.f32.mrb[5].mxu1  ;;  %v5597_v29 = vmax.f32 %v16693_v42, 0.0 }
 0x1d8   :  { %v16771_v4 = vsel %vm2280_vm8, %v2461_v6, 1.0  ;;  %v12846_v12 = vunpack.i.h.bf16 %v16766_v25  ;;  %v12845_v57 = vunpack.i.l.bf16 %v16766_v25  ;;  %v2524_v63 = vsel %vm2280_vm8, %v2460_v19, 1.0  ;;  %4870 = vmatprep.mubr.f32.mxu1 %v23606_v37  ;;  %v16797_v13 = vpop.permute.xlu1 %12858  ;;  %v16799_v14 = vpop.f32.mrb[13].mxu0 }
 0x1d9   :  { %v1817_v21 = vsel %vm1762_vm2, %v12850_v28, %v12851_v40  ;;  %v11642_v34 = vpack.c.bf16 %v2524_v63, %v2332_v44  ;;  %v11651_v39 = vpack.c.bf16 %v16771_v4, %v16752_v18  ;;  %v12861_v53 = vunpack.i.h.bf16 %v16797_v13 }
 0x1da   :  { %v1557_v7 = vsel %vm1503_vm3, %v12821_v56, %v12845_v57  ;;  %v1558_v59 = vsel %vm1503_vm3, %v12845_v57, %v12846_v12  ;;  %11447 = vmatmul.mubr.msk.f32.gmra.mrb[98].mxu0 %vm2541_vm10, %v16424_v16  ;;  %v12860_v3 = vunpack.i.l.bf16 %v16797_v13  ;;  %v16813_v26 = vpack.c.bf16 %v5663_v23, %v5599_v35  ;;  %v16847_v23 = vpop.f32.mrb[6].mxu1 }
 0x1db   :  { %v2398_v22 = vsel %vm2150_vm1, %v1557_v7, %v1816_v43  ;;  %v2399_v60 = vsel %vm2150_vm1, %v1558_v59, %v1817_v21  ;;  %v12854_v56 = vpop.permute.xlu0 %12853  ;;  %11644 = vmatprep.subr.msk.bf16.mxu1 %vm14421_vm12, %v11642_v34  ;;  %4959 = vmatprep.mubr.f32.mxu0 %v23606_v37  ;;  %v16815_v54 = vpack.c.bf16 %v5664_v50, %v5600_v30  ;;  %v5727_v19 = vmax.f32 %v16787_v38, 0.0 }
 0x1dc   :  { %v12856_v44 = vunpack.i.h.bf16 %v12854_v56  ;;  %v12855_v6 = vunpack.i.l.bf16 %v12854_v56  ;;  %11647 = vmatpush1.bf16.msk.msra.mxu1 %vm14421_vm12, %v11645_v36  ;;  %23741 = vst [vmem:[#allocation69_spill] sm:$0xff] %v16813_v26  ;;  %v2075_v28 = vsel %vm2021_vm5, %v12836_v32, %v12860_v3  ;;  %v2076_v25 = vsel %vm2021_vm5, %v12860_v3, %v12861_v53  ;;  %v16832_v32 = vpop.permute.xlu1 %12868 }
 0x1dd   :  { %23742 = vst [vmem:[#allocation70_spill] sm:$0xff] %v16815_v54  ;;  %11442 = vmatmul.mubr.msk.f32.gmra.mrb[92].mxu1 %vm2541_vm10, %v16461_v0  ;;  %v2463_v8 = vsel %vm2215_vm7, %v2399_v60, %v2076_v25  ;;  %v5728_v30 = vmax.f32 %v16799_v14, 0.0  ;;  %v12871_v63 = vunpack.i.h.bf16 %v16832_v32  ;;  %v12870_v21 = vunpack.i.l.bf16 %v16832_v32  ;;  %v3009_v60 = vpop.f32.mrb[14].mxu0 }
 0x1de   :  { %v1022_v36 = vsel %vm968_vm4, %v12831_v15, %v12855_v6  ;;  %v1023_v35 = vsel %vm968_vm4, %v12855_v6, %v12856_v44  ;;  %11448 = vmatmul.mubr.msk.f32.gmra.mrb[100].mxu0 %vm2541_vm10, %v16461_v0  ;;  %4876 = vmatprep.mubr.f32.mxu1 %v23606_v37  ;;  %v16837_v57 = vsel %vm2280_vm8, %v2463_v8, 1.0  ;;  %v2462_v59 = vsel %vm2215_vm7, %v2398_v22, %v2075_v28  ;;  %v16855_v6 = vpop.f32.mrb[7].mxu1 }
 0x1df   :  { %v2269_v42 = vsel %vm2215_vm7, %v15787_v47, %v1022_v36  ;;  %v2270_v15 = vsel %vm2215_vm7, %v23743_v33, %v1023_v35  ;;  %v12864_v43 = vpop.permute.xlu0 %12863  ;;  %4965 = vmatprep.mubr.f32.mxu0 %v23606_v37  ;;  %v2526_v47 = vsel %vm2280_vm8, %v2462_v59, 1.0  ;;  %v5598_v50 = vmax.f32 %v16708_v9, 0.0 }
 0x1e0   :  { %v12866_v34 = vunpack.i.h.bf16 %v12864_v43  ;;  %v12865_v7 = vunpack.i.l.bf16 %v12864_v43  ;;  %v5661_v3 = vmax.f32 %v16740_v61, 0.0  ;;  %v5662_v56 = vmax.f32 %v16749_v62, 0.0  ;;  %v16867_v9 = vpop.permute.xlu1 %12878  ;;  %v16869_v61 = vpop.f32.mrb[15].mxu0 }
 0x1e1   :  { %11443 = vmatmul.mubr.msk.f32.gmra.mrb[94].mxu1 %vm2541_vm10, %v16497_v1  ;;  %v1559_v25 = vsel %vm1503_vm3, %v12846_v12, %v12870_v21  ;;  %v1560_v22 = vsel %vm1503_vm3, %v12870_v21, %v12871_v63  ;;  %v12881_v12 = vunpack.i.h.bf16 %v16867_v9  ;;  %v12880_v36 = vunpack.i.l.bf16 %v16867_v9 }
 0x1e2   :  { %v1298_v28 = vsel %vm1244_vm6, %v12841_v49, %v12865_v7  ;;  %v1299_v8 = vsel %vm1244_vm6, %v12865_v7, %v12866_v34  ;;  %11449 = vmatmul.mubr.msk.f32.gmra.mrb[102].mxu0 %vm2541_vm10, %v16497_v1  ;;  %5036 = vmatprep.mubr.f32.mxu1 %v23606_v37  ;;  %v16881_v7 = vpop.f32.mrb[8].mxu1  ;;  %v16936_v4 = vpack.c.bf16 %v5662_v56, %v5598_v50 }
 0x1e3   :  { %v16872_v62 = vsel %vm2280_vm8, %v2270_v15, %v1299_v8  ;;  %v12874_v35 = vpop.permute.xlu0 %12873  ;;  %v2334_v41 = vsel %vm2280_vm8, %v2269_v42, %v1298_v28  ;;  %5125 = vmatprep.mubr.f32.mxu0 %v23606_v37  ;;  %v1024_v15 = vsel %vm968_vm4, %v12856_v44, %v12880_v36  ;;  %v1025_v59 = vsel %vm968_vm4, %v12880_v36, %v12881_v12  ;;  %v16891_v8 = vpop.f32.mrb[16].mxu0 }
 0x1e4   :  { %v12876_v33 = vunpack.i.h.bf16 %v12874_v35  ;;  %v12875_v43 = vunpack.i.l.bf16 %v12874_v35  ;;  %v11648_v21 = vpack.c.bf16 %v2526_v47, %v2334_v41  ;;  %v5791_v42 = vmax.f32 %v3009_v60, 0.0  ;;  %v16893_v49 = vpop.f32.mrb[9].mxu1  ;;  %v23744_v35 = vld [vmem:[#allocation103_spill] sm:$0xff]  ;;  %v16907_v60 = vpop.f32.mrb[17].mxu0 }
 0x1e5   :  { %11452 = vmatmul.mubr.msk.f32.vlgmr.msra.gmra.mrb[96].mxu1 %vm2541_vm10, %v16392_v52  ;;  %v16889_v28 = vpack.c.bf16 %v5661_v3, %v5597_v29  ;;  %v2271_v47 = vsel %vm2215_vm7, %v23744_v35, %v1024_v15  ;;  %v2272_v44 = vsel %vm2215_vm7, %v16352_v58, %v1025_v59  ;;  %v16905_v29 = vpop.permute.xlu1 %12888 }
 0x1e6   :  { %v1818_v36 = vsel %vm1762_vm2, %v12851_v40, %v12875_v43  ;;  %v1819_v41 = vsel %vm1762_vm2, %v12875_v43, %v12876_v33  ;;  %11650 = vmatprep.subr.msk.bf16.mxu0 %vm14421_vm12, %v11648_v21  ;;  %v22976_v35 = vunpack.i.h.bf16 %v16905_v29  ;;  %v12890_v58 = vunpack.i.l.bf16 %v16905_v29  ;;  %5042 = vmatprep.mubr.f32.mxu1 %v23606_v37  ;;  %v16928_v21 = vpop.f32.mrb[10].mxu1  ;;  %v16939_v38 = vpop.f32.mrb[18].mxu0 }
 0x1e7   :  { %v2400_v3 = vsel %vm2150_vm1, %v1559_v25, %v1818_v36  ;;  %v2401_v15 = vsel %vm2150_vm1, %v1560_v22, %v1819_v41  ;;  %v16913_v45 = vpop.permute.xlu0 %12883  ;;  %11653 = vmatpush1.bf16.msk.msra.mxu0 %vm14421_vm12, %v11651_v39  ;;  %v16925_v22 = vpack.c.bf16 %v5791_v42, %v5727_v19  ;;  %v5792_v43 = vmax.f32 %v16869_v61, 0.0  ;;  %v16941_v19 = vpop.f32.mrb[11].mxu1 }
 0x1e8   :  { %v12886_v40 = vunpack.i.h.bf16 %v16913_v45  ;;  %v12885_v25 = vunpack.i.l.bf16 %v16913_v45  ;;  %v1300_v59 = vsel %vm1244_vm6, %v12866_v34, %v12890_v58  ;;  %v1301_v18 = vsel %vm1244_vm6, %v12890_v58, %v22976_v35  ;;  %v16954_v56 = vpop.f32.mrb[19].mxu0 }
 0x1e9   :  { %23745 = vst [vmem:[#allocation16_spill] sm:$0xff] %v16925_v22  ;;  %11453 = vmatmul.mubr.msk.f32.gmra.mrb[98].mxu1 %vm2541_vm10, %v16424_v16  ;;  %v5603_v39 = vmax.f32 %v16891_v8, 0.0  ;;  %v16944_v61 = vsel %vm2280_vm8, %v2272_v44, %v1301_v18  ;;  %v16950_v36 = vpop.permute.xlu1 %12898  ;;  %v2336_v50 = vsel %vm2280_vm8, %v2271_v47, %v1300_v59  ;;  %v23750_v8 = vunpack.i.h.bf16 %v16905_v29 }
 0x1ea   :  { %v2077_v34 = vsel %vm2021_vm5, %v12861_v53, %v12885_v25  ;;  %v2078_v42 = vsel %vm2021_vm5, %v12885_v25, %v12886_v40  ;;  %5048 = vmatprep.mubr.f32.mxu1 %v23606_v37  ;;  %v22975_v58 = vunpack.i.h.bf16 %v16950_v36  ;;  %v12900_v44 = vunpack.i.l.bf16 %v16950_v36  ;;  %11458 = vmatmul.mubr.msk.f32.vlgmr.msra.gmra.mrb[104].mxu0 %vm2541_vm10, %v16392_v52 }
 0x1eb   :  { %v2465_v41 = vsel %vm2215_vm7, %v2401_v15, %v2078_v42  ;;  %v16959_v45 = vpop.permute.xlu0 %12893  ;;  %v2464_v13 = vsel %vm2215_vm7, %v2400_v3, %v2077_v34  ;;  %5131 = vmatprep.mubr.f32.mxu0 %v23606_v37  ;;  %v16979_v42 = vpop.f32.mrb[20].mxu0 }
 0x1ec   :  { %v16965_v53 = vsel %vm2280_vm8, %v2465_v41, 1.0  ;;  %v12896_v47 = vunpack.i.h.bf16 %v16959_v45  ;;  %v12895_v25 = vunpack.i.l.bf16 %v16959_v45  ;;  %v2528_v15 = vsel %vm2280_vm8, %v2464_v13, 1.0  ;;  %v16981_v41 = vpop.f32.mrb[12].mxu1  ;;  %v16997_v34 = vpop.f32.mrb[21].mxu0 }
 0x1ed   :  { %v1820_v59 = vsel %vm1762_vm2, %v12876_v33, %v12900_v44  ;;  %v1821_v3 = vsel %vm1762_vm2, %v12900_v44, %v22975_v58  ;;  %11454 = vmatmul.mubr.msk.f32.gmra.mrb[100].mxu1 %vm2541_vm10, %v16461_v0  ;;  %v11654_v18 = vpack.c.bf16 %v2528_v15, %v2336_v50  ;;  %v16989_v44 = vpop.permute.xlu1 %12908  ;;  %v16994_v50 = vpack.c.bf16 %v5792_v43, %v5728_v30  ;;  %v17009_v14 = vpop.f32.mrb[13].mxu1 }
 0x1ee   :  { %v1561_v13 = vsel %vm1503_vm3, %v12871_v63, %v12895_v25  ;;  %v1562_v33 = vsel %vm1503_vm3, %v12895_v25, %v12896_v47  ;;  %5054 = vmatprep.mubr.f32.mxu1 %v23606_v37  ;;  %v5604_v15 = vmax.f32 %v16907_v60, 0.0  ;;  %v22977_v58 = vunpack.i.h.bf16 %v16989_v44  ;;  %11459 = vmatmul.mubr.msk.f32.gmra.mrb[106].mxu0 %vm2541_vm10, %v16424_v16 }
 0x1ef   :  { %23746 = vst [vmem:[#allocation19_spill] sm:$0xff] %v16994_v50  ;;  %v2402_v32 = vsel %vm2150_vm1, %v1561_v13, %v1820_v59  ;;  %v2403_v63 = vsel %vm2150_vm1, %v1562_v33, %v1821_v3  ;;  %v12910_v25 = vunpack.i.l.bf16 %v16989_v44  ;;  %v17003_v35 = vpop.permute.xlu0 %12903  ;;  %11656 = vmatprep.subr.msk.bf16.mxu1 %vm14421_vm12, %v11654_v18  ;;  %v23747_v43 = vpack.c.bf16 %v16837_v57, %v16872_v62 }
 0x1f0   :  { %v12906_v30 = vunpack.i.h.bf16 %v17003_v35  ;;  %v12905_v60 = vunpack.i.l.bf16 %v17003_v35  ;;  %5137 = vmatprep.mubr.f32.mxu0 %v23606_v37  ;;  %v5667_v59 = vmax.f32 %v16939_v38, 0.0  ;;  %v5668_v3 = vmax.f32 %v16954_v56, 0.0  ;;  %v17029_v35 = vpop.f32.mrb[14].mxu1 }
 0x1f1   :  { %11659 = vmatpush1.bf16.msk.msra.mxu1 %vm14421_vm12, %v23747_v43  ;;  %v2079_v18 = vsel %vm2021_vm5, %v12886_v40, %v12910_v25  ;;  %v2080_v13 = vsel %vm2021_vm5, %v12910_v25, %v22977_v58  ;;  %v17036_v56 = vpop.permute.xlu1 %12918  ;;  %v17040_v43 = vpop.f32.mrb[22].mxu0 }
 0x1f2   :  { %11455 = vmatmul.mubr.msk.f32.gmra.mrb[102].mxu1 %vm2541_vm10, %v16497_v1  ;;  %v2467_v33 = vsel %vm2215_vm7, %v2403_v63, %v2080_v13  ;;  %v1026_v38 = vsel %vm968_vm4, %v12881_v12, %v12905_v60  ;;  %v1027_v40 = vsel %vm968_vm4, %v12905_v60, %v12906_v30  ;;  %v2466_v25 = vsel %vm2215_vm7, %v2402_v32, %v2079_v18  ;;  %v17054_v32 = vpop.f32.mrb[23].mxu0 }
 0x1f3   :  { %5214 = vmatprep.mubr.f32.mxu1 %v23606_v37  ;;  %v17043_v58 = vsel %vm2280_vm8, %v2467_v33, 1.0  ;;  %v2273_v63 = vsel %vm2215_vm7, %v16340_v31, %v1026_v38  ;;  %v2274_v9 = vsel %vm2215_vm7, %v16194_v24, %v1027_v40  ;;  %v22978_v12 = vunpack.i.h.bf16 %v17036_v56  ;;  %v17050_v60 = vpop.permute.xlu0 %12913  ;;  %11460 = vmatmul.mubr.msk.f32.gmra.mrb[108].mxu0 %vm2541_vm10, %v16461_v0  ;;  %v17061_v24 = vpop.f32.mrb[15].mxu1 }
 0x1f4   :  { %v12920_v18 = vunpack.i.l.bf16 %v17036_v56  ;;  %v12916_v13 = vunpack.i.h.bf16 %v17050_v60  ;;  %v12915_v33 = vunpack.i.l.bf16 %v17050_v60  ;;  %v2530_v31 = vsel %vm2280_vm8, %v2466_v25, 1.0  ;;  %5143 = vmatprep.mubr.f32.mxu0 %v23606_v37  ;;  %v17073_v60 = vpop.f32.mrb[16].mxu1 }
 0x1f5   :  { %v17067_v38 = vpack.c.bf16 %v5667_v59, %v5603_v39  ;;  %v17069_v40 = vpack.c.bf16 %v5668_v3, %v5604_v15  ;;  %v17085_v59 = vpop.permute.xlu1 %12928  ;;  %v17088_v3 = vpop.f32.mrb[24].mxu0 }
 0x1f6   :  { %11464 = vmatmul.mubr.msk.f32.vlgmr.msra.gmra.mrb[104].mxu1 %vm2541_vm10, %v16392_v52  ;;  %v1563_v25 = vsel %vm1503_vm3, %v12896_v47, %v12920_v18  ;;  %v1564_v22 = vsel %vm1503_vm3, %v12920_v18, %v22978_v12  ;;  %v1302_v39 = vsel %vm1244_vm6, %v23750_v8, %v12915_v33  ;;  %v1303_v15 = vsel %vm1244_vm6, %v12915_v33, %v12916_v13  ;;  %v17100_v33 = vpop.f32.mrb[25].mxu0  ;;  %v17107_v62 = vpop.f32.mrb[17].mxu1 }
 0x1f7   :  { %23748 = vst [vmem:[#allocation20_spill] sm:$0xff] %v17067_v38  ;;  %23749 = vst [vmem:[#allocation23_spill] sm:$0xff] %v17069_v40  ;;  %5220 = vmatprep.mubr.f32.mxu1 %v23606_v37  ;;  %v17091_v45 = vsel %vm2280_vm8, %v2274_v9, %v1303_v15  ;;  %v12930_v57 = vunpack.i.l.bf16 %v17085_v59  ;;  %v17095_v18 = vpop.permute.xlu0 %12923  ;;  %v2338_v29 = vsel %vm2280_vm8, %v2273_v63, %v1302_v39  ;;  %11461 = vmatmul.mubr.msk.f32.gmra.mrb[110].mxu0 %vm2541_vm10, %v16497_v1  ;;  %v17117_v40 = vpop.f32.mrb[18].mxu1 }
 0x1f8   :  { %v12926_v12 = vunpack.i.h.bf16 %v17095_v18  ;;  %v12925_v9 = vunpack.i.l.bf16 %v17095_v18  ;;  %v11660_v15 = vpack.c.bf16 %v2530_v31, %v2338_v29  ;;  %5303 = vmatprep.mubr.f32.mxu0 %v23606_v37  ;;  %v23751_v63 = vunpack.i.h.bf16 %v17085_v59  ;;  %v23752_v31 = vld [vmem:[#allocation4_spill] sm:$0xff] }
 0x1f9   :  { %v1028_v47 = vsel %vm968_vm4, %v12906_v30, %v12930_v57  ;;  %v5789_v8 = vmax.f32 %v16847_v23, 0.0  ;;  %v5795_v38 = vmax.f32 %v17040_v43, 0.0  ;;  %v23753_v30 = vunpack.i.h.bf16 %v16950_v36  ;;  %v17131_v23 = vpop.f32.mrb[26].mxu0 }
 0x1fa   :  { %v1029_v39 = vsel %vm968_vm4, %v12930_v57, %v23751_v63  ;;  %11465 = vmatmul.mubr.msk.f32.gmra.mrb[106].mxu1 %vm2541_vm10, %v16424_v16  ;;  %v2275_v18 = vsel %vm2215_vm7, %v23752_v31, %v1028_v47  ;;  %v1823_v57 = vsel %vm1762_vm2, %v12925_v9, %v12926_v12  ;;  %11662 = vmatprep.subr.msk.bf16.mxu0 %vm14421_vm12, %v11660_v15  ;;  %v17129_v16 = vpop.permute.xlu1 %12938  ;;  %v17145_v15 = vpop.f32.mrb[27].mxu0  ;;  %v23756_v31 = vmax.f32 %v16979_v42, 0.0 }
 0x1fb   :  { %v2276_v29 = vsel %vm2215_vm7, %v16542_v46, %v1029_v39  ;;  %v1822_v50 = vsel %vm1762_vm2, %v23753_v30, %v12925_v9  ;;  %v2405_v47 = vsel %vm2150_vm1, %v1564_v22, %v1823_v57  ;;  %v22979_v63 = vunpack.i.h.bf16 %v17129_v16  ;;  %v17137_v36 = vpop.permute.xlu0 %12933  ;;  %5226 = vmatprep.mubr.f32.mxu1 %v23606_v37 }
 0x1fc   :  { %v2404_v43 = vsel %vm2150_vm1, %v1563_v25, %v1822_v50  ;;  %v12940_v46 = vunpack.i.l.bf16 %v17129_v16  ;;  %v23754_v9 = vpack.c.bf16 %v16965_v53, %v16944_v61  ;;  %v22980_v50 = vunpack.i.h.bf16 %v17137_v36  ;;  %v17157_v61 = vpop.f32.mrb[19].mxu1 }
 0x1fd   :  { %v12935_v22 = vunpack.i.l.bf16 %v17137_v36  ;;  %v23755_v25 = vmax.f32 %v16778_v10, 0.0  ;;  %v17155_v30 = vpack.c.bf16 %v5795_v38, %v23756_v31  ;;  %v5796_v10 = vmax.f32 %v17054_v32, 0.0 }
 0x1fe   :  { %11665 = vmatpush1.bf16.msk.msra.mxu0 %vm14421_vm12, %v23754_v9  ;;  %v1304_v53 = vsel %vm1244_vm6, %v12916_v13, %v12940_v46  ;;  %v1305_v57 = vsel %vm1244_vm6, %v12940_v46, %v22979_v63  ;;  %11466 = vmatmul.mubr.msk.f32.gmra.mrb[108].mxu1 %vm2541_vm10, %v16461_v0  ;;  %v5790_v9 = vmax.f32 %v16855_v6, 0.0  ;;  %v23758_v38 = vunpack.i.h.bf16 %v16989_v44  ;;  %v17182_v6 = vpop.f32.mrb[28].mxu0 }
 0x1ff   :  { %v17151_v39 = vpack.c.bf16 %v5789_v8, %v23755_v25  ;;  %23757 = vst [vmem:[#allocation89_spill] sm:$0xff] %v17155_v30  ;;  %v17167_v8 = vpop.f32.mrb[20].mxu1  ;;  %v17170_v42 = vsel %vm2280_vm8, %v2276_v29, %v1305_v57  ;;  %v2082_v46 = vsel %vm2021_vm5, %v12935_v22, %v22980_v50  ;;  %v17178_v25 = vpop.permute.xlu1 %12948  ;;  %v2340_v0 = vsel %vm2280_vm8, %v2275_v18, %v1304_v53 }
 0x200   :  { %v2081_v13 = vsel %vm2021_vm5, %v23758_v38, %v12935_v22  ;;  %5232 = vmatprep.mubr.f32.mxu1 %v23606_v37  ;;  %v2469_v32 = vsel %vm2215_vm7, %v2405_v47, %v2082_v46  ;;  %v12951_v29 = vunpack.i.h.bf16 %v17178_v25  ;;  %v12950_v44 = vunpack.i.l.bf16 %v17178_v25  ;;  %v12944_v31 = vpop.permute.xlu0 %12943  ;;  %v17190_v22 = vpop.f32.mrb[29].mxu0 }
 0x201   :  { %v2468_v57 = vsel %vm2215_vm7, %v2404_v43, %v2081_v13  ;;  %11470 = vmatmul.mubr.msk.f32.vlgmr.msra.gmra.mrb[112].mxu0 %vm2541_vm10, %v16392_v52  ;;  %v17193_v18 = vsel %vm2280_vm8, %v2469_v32, 1.0  ;;  %v12946_v53 = vunpack.i.h.bf16 %v12944_v31  ;;  %v12945_v38 = vunpack.i.l.bf16 %v12944_v31  ;;  %v17197_v47 = vpop.f32.mrb[21].mxu1 }
 0x202   :  { %v2532_v63 = vsel %vm2280_vm8, %v2468_v57, 1.0  ;;  %5309 = vmatprep.mubr.f32.mxu0 %v23606_v37  ;;  %v1824_v46 = vsel %vm1762_vm2, %v12926_v12, %v12950_v44  ;;  %v1825_v43 = vsel %vm1762_vm2, %v12950_v44, %v12951_v29  ;;  %11467 = vmatmul.mubr.msk.f32.gmra.mrb[110].mxu1 %vm2541_vm10, %v16497_v1  ;;  %v23759_v52 = vmax.f32 %v16789_v17, 0.0  ;;  %v17207_v32 = vpop.f32.mrb[22].mxu1  ;;  %v17219_v1 = vpop.f32.mrb[30].mxu0 }
 0x203   :  { %v11666_v13 = vpack.c.bf16 %v2532_v63, %v2340_v0  ;;  %v23760_v31 = vunpack.i.h.bf16 %v17036_v56  ;;  %v1566_v50 = vsel %vm1503_vm3, %v12945_v38, %v12946_v53  ;;  %v1502_v30 = vpop.permute.xlu1 %1501  ;;  %v23761_v12 = vmax.f32 %v16997_v34, 0.0  ;;  %5392 = vmatprep.mubr.f32.mxu1 %v23606_v37 }
 0x204   :  { %v17205_v25 = vpack.c.bf16 %v5790_v9, %v23759_v52  ;;  %v5601_v63 = vmax.f32 %v16881_v7, 0.0  ;;  %v2407_v9 = vsel %vm2150_vm1, %v1566_v50, %v1825_v43  ;;  %v1567_v56 = vsel %vm1503_vm3, %v12946_v53, %v1502_v30  ;;  %v12954_v0 = vpop.permute.xlu0 %12953  ;;  %v17230_v7 = vld [vmem:[%s22809_s1 + $0x8] sm:$0xff] }
 0x205   :  { %v1565_v57 = vsel %vm1503_vm3, %v23760_v31, %v12945_v38  ;;  %v17215_v44 = vpack.c.bf16 %v5796_v10, %v23761_v12  ;;  %11668 = vmatprep.subr.msk.bf16.mxu1 %vm14421_vm12, %v11666_v13  ;;  %v5607_v34 = vmax.f32 %v17088_v3, 0.0  ;;  %11471 = vmatmul.mubr.msk.f32.gmra.mrb[114].mxu0 %vm2541_vm10, %v17230_v7  ;;  %v17234_v10 = vpop.f32.mrb[31].mxu0  ;;  %v12956_v38 = vunpack.i.h.bf16 %v12954_v0 }
 0x206   :  { %v2406_v17 = vsel %vm2150_vm1, %v1565_v57, %v1824_v46  ;;  %v12955_v50 = vunpack.i.l.bf16 %v12954_v0  ;;  %v23763_v30 = vpack.c.bf16 %v17043_v58, %v17091_v45  ;;  %v5602_v3 = vmax.f32 %v16893_v49, 0.0  ;;  %5315 = vmatprep.mubr.f32.mxu0 %v23606_v37  ;;  %v17244_v46 = vpop.f32.mrb[23].mxu1 }
 0x207   :  { %23762 = vst [vmem:[#allocation75_spill] sm:$0xff] %v17215_v44  ;;  %v5608_v53 = vmax.f32 %v17100_v33, 0.0  ;;  %v5665_v43 = vmax.f32 %v16928_v21, 0.0  ;;  %v5671_v13 = vmax.f32 %v17131_v23, 0.0  ;;  %v5666_v52 = vmax.f32 %v16941_v19, 0.0  ;;  %v17254_v57 = vpop.permute.xlu1 %12958  ;;  %v17258_v0 = vpop.f32.mrb[24].mxu1 }
 0x208   :  { %11671 = vmatpush1.bf16.msk.msra.mxu1 %vm14421_vm12, %v23763_v30  ;;  %v5672_v31 = vmax.f32 %v17145_v15, 0.0  ;;  %v23764_v58 = vunpack.i.h.bf16 %v17085_v59  ;;  %v1031_v49 = vsel %vm968_vm4, %v12955_v50, %v12956_v38  ;;  %v5729_v33 = vmax.f32 %v16981_v41, 0.0  ;;  %v1761_v15 = vpop.permute.xlu0 %1760 }
 0x209   :  { %v5735_v12 = vmax.f32 %v17182_v6, 0.0  ;;  %v2278_v19 = vsel %vm2215_vm7, %v16357_v5, %v1031_v49  ;;  %v12961_v59 = vunpack.i.h.bf16 %v17254_v57  ;;  %v12960_v23 = vunpack.i.l.bf16 %v17254_v57  ;;  %v17280_v5 = vpop.f32.mrb[25].mxu1 }
 0x20a   :  { %v1030_v45 = vsel %vm968_vm4, %v23764_v58, %v12955_v50  ;;  %v17269_v50 = vld [vmem:[%s22809_s1] sm:$0xff]  ;;  %v1826_v41 = vsel %vm1762_vm2, %v12951_v29, %v1761_v15  ;;  %v17283_v6 = vpack.c.bf16 %v5665_v43, %v5601_v63  ;;  %v17285_v30 = vpack.c.bf16 %v5671_v13, %v5607_v34  ;;  %v17306_v13 = vpop.f32.mrb[26].mxu1 }
 0x20b   :  { %v2277_v21 = vsel %vm2215_vm7, %v16537_v11, %v1030_v45  ;;  %11476 = vmatmul.mubr.msk.f32.vlgmr.msra.gmra.mrb[112].mxu1 %vm2541_vm10, %v17269_v50  ;;  %v17276_v11 = vld [vmem:[%s22809_s1 + $0x10] sm:$0xff]  ;;  %v17287_v58 = vpack.c.bf16 %v5666_v52, %v5602_v3  ;;  %v17290_v45 = vpop.f32.mrb[32].mxu0  ;;  %v23766_v49 = vunpack.i.h.bf16 %v17137_v36  ;;  %v2084_v44 = vsel %vm2021_vm5, %v12960_v23, %v12961_v59  ;;  %v12964_v34 = vpop.permute.xlu1 %12963 }
 0x20c   :  { %11472 = vmatmul.mubr.msk.f32.gmra.mrb[116].mxu0 %vm2541_vm10, %v17276_v11  ;;  %23765 = vst [vmem:[#allocation91_spill] sm:$0xff] %v17285_v30  ;;  %5398 = vmatprep.mubr.f32.mxu1 %v23606_v37  ;;  %v2408_v26 = vsel %vm2150_vm1, %v1567_v56, %v1826_v41  ;;  %v17297_v54 = vpack.c.bf16 %v5672_v31, %v5608_v53  ;;  %v17299_v29 = vpop.f32.mrb[33].mxu0  ;;  %v5730_v43 = vmax.f32 %v17009_v14, 0.0  ;;  %v5736_v36 = vmax.f32 %v17190_v22, 0.0  ;;  %v967_v31 = vpop.permute.xlu0 %966 }
 0x20d   :  { %v2083_v57 = vsel %vm2021_vm5, %v23766_v49, %v12960_v23  ;;  %5321 = vmatprep.mubr.f32.mxu0 %v23606_v37  ;;  %v2471_v63 = vsel %vm2215_vm7, %v2407_v9, %v2084_v44  ;;  %v12966_v56 = vunpack.i.h.bf16 %v12964_v34  ;;  %v12965_v53 = vunpack.i.l.bf16 %v12964_v34  ;;  %v17317_v44 = vld [vmem:[%s22809_s1 + $0x18] sm:$0xff]  ;;  %v17321_v14 = vpop.f32.mrb[27].mxu1  ;;  %v3531_v41 = vpop.f32.mrb[34].mxu0 }
 0x20e   :  { %v2470_v3 = vsel %vm2215_vm7, %v2406_v17, %v2083_v57  ;;  %v17309_v52 = vsel %vm2280_vm8, %v2471_v63, 1.0  ;;  %v1032_v22 = vsel %vm968_vm4, %v12956_v38, %v967_v31  ;;  %v11675_v17 = vpack.c.bf16 %v17193_v18, %v17170_v42  ;;  %v3533_v18 = vpop.f32.mrb[35].mxu0 }
 0x20f   :  { %v2534_v23 = vsel %vm2280_vm8, %v2470_v3, 1.0  ;;  %11477 = vmatmul.mubr.msk.f32.gmra.mrb[114].mxu1 %vm2541_vm10, %v17230_v7  ;;  %v5793_v9 = vmax.f32 %v17029_v35, 0.0  ;;  %v5799_v15 = vmax.f32 %v17219_v1, 0.0  ;;  %v23767_v49 = vunpack.i.h.bf16 %v17129_v16  ;;  %v1243_v1 = vpop.permute.xlu1 %1242  ;;  %v17343_v16 = vpop.f32.mrb[28].mxu1 }
 0x210   :  { %11473 = vmatmul.mubr.msk.f32.gmra.mrb[118].mxu0 %vm2541_vm10, %v17317_v44  ;;  %5404 = vmatprep.mubr.f32.mxu1 %v23606_v37  ;;  %v1307_v63 = vsel %vm1244_vm6, %v12965_v53, %v12966_v56  ;;  %v2279_v38 = vsel %vm2215_vm7, %v16547_v48, %v1032_v22  ;;  %v5794_v42 = vmax.f32 %v17061_v24, 0.0  ;;  %v2020_v30 = vpop.permute.xlu0 %2019  ;;  %v17351_v24 = vpop.f32.mrb[29].mxu1  ;;  %v5737_v51 = vmax.f32 %v17343_v16, 0.0  ;;  %v17413_v16 = vld [vmem:[%s22810_s3] sm:$0xff] }
 0x211   :  { %5481 = vmatprep.mubr.f32.mxu0 %v23606_v37  ;;  %v1306_v57 = vsel %vm1244_vm6, %v23767_v49, %v12965_v53  ;;  %v2343_v35 = vsel %vm2280_vm8, %v2278_v19, %v1307_v63  ;;  %v17339_v3 = vpack.c.bf16 %v5793_v9, %v5729_v33  ;;  %v17341_v31 = vpack.c.bf16 %v5799_v15, %v5735_v12 }
 0x212   :  { %v2342_v34 = vsel %vm2280_vm8, %v2277_v21, %v1306_v57  ;;  %v11681_v49 = vpack.c.bf16 %v17309_v52, %v2343_v35  ;;  %v1308_v53 = vsel %vm1244_vm6, %v12966_v56, %v1243_v1  ;;  %v17347_v22 = vpack.c.bf16 %v5794_v42, %v5730_v43  ;;  %v3537_v52 = vpop.f32.mrb[36].mxu0 }
 0x213   :  { %v11672_v48 = vpack.c.bf16 %v2534_v23, %v2342_v34  ;;  %11478 = vmatmul.mubr.msk.f32.gmra.mrb[116].mxu1 %vm2541_vm10, %v17276_v11  ;;  %v2344_v33 = vsel %vm2280_vm8, %v2279_v38, %v1308_v53  ;;  %v2085_v12 = vsel %vm2021_vm5, %v12961_v59, %v2020_v30  ;;  %v5800_v21 = vmax.f32 %v17234_v10, 0.0  ;;  %v3539_v15 = vpop.f32.mrb[37].mxu0  ;;  %v3454_v30 = vpop.f32.mrb[30].mxu1 }
 0x214   :  { %v5605_v19 = vmax.f32 %v17073_v60, 0.0  ;;  %5410 = vmatprep.mubr.f32.mxu1 %v23606_v37  ;;  %v2472_v56 = vsel %vm2215_vm7, %v2408_v26, %v2085_v12  ;;  %v5611_v43 = vmax.f32 %v17290_v45, 0.0  ;;  %v5606_v23 = vmax.f32 %v17107_v62, 0.0  ;;  %v3456_v63 = vpop.f32.mrb[31].mxu1  ;;  %v3543_v42 = vpop.f32.mrb[38].mxu0 }
 0x215   :  { %11674 = vmatprep.subr.msk.bf16.mxu0 %vm14421_vm12, %v11672_v48  ;;  %v5612_v9 = vmax.f32 %v17299_v29, 0.0  ;;  %v2536_v59 = vsel %vm2280_vm8, %v2472_v56, 1.0  ;;  %v17367_v60 = vpack.c.bf16 %v5800_v21, %v5736_v36  ;;  %v5669_v10 = vmax.f32 %v17117_v40, 0.0  ;;  %v3545_v1 = vpop.f32.mrb[39].mxu0 }
 0x216   :  { %11677 = vmatpush1.bf16.msk.msra.mxu0 %vm14421_vm12, %v11675_v17  ;;  %v5675_v26 = vmax.f32 %v3531_v41, 0.0  ;;  %v11678_v57 = vpack.c.bf16 %v2536_v59, %v2344_v33  ;;  %v5670_v45 = vmax.f32 %v17157_v61, 0.0  ;;  %v5676_v62 = vmax.f32 %v3533_v18, 0.0 }
 0x217   :  { %11685 = vmatprep.subr.bf16.mxu0 %v16634_v55  ;;  %v5733_v29 = vmax.f32 %v17167_v8, 0.0  ;;  %11479 = vmatmul.mubr.msk.f32.gmra.mrb[118].mxu1 %vm2541_vm10, %v17317_v44  ;;  %v17375_v38 = vpack.c.bf16 %v5669_v10, %v5605_v19  ;;  %v5734_v17 = vmax.f32 %v17197_v47, 0.0  ;;  %v5797_v40 = vmax.f32 %v17207_v32, 0.0 }
 0x218   :  { %v11750_v36 = vpack.c.bf16 %v5675_v26, %v5611_v43  ;;  %5570 = vmatprep.mubr.f32.mxu1 %v23606_v37  ;;  %11680 = vmatprep.subr.msk.bf16.mxu1 %vm14421_vm12, %v11678_v57  ;;  %v17382_v55 = vpack.c.bf16 %v5670_v45, %v5606_v23  ;;  %v11748_v61 = vpack.c.bf16 %v5676_v62, %v5612_v9  ;;  %v5798_v8 = vmax.f32 %v17244_v46, 0.0  ;;  %v17437_v57 = vld [vmem:[%s22811_s2 + $0x8] sm:$0xff] }
 0x219   :  { %11482 = vmatmul.mubr.msk.f32.vlgmr.msra.gmra.mrb[120].mxu0 %vm2541_vm10, %v17269_v50  ;;  %v5609_v41 = vmax.f32 %v17258_v0, 0.0  ;;  %11683 = vmatpush1.bf16.msk.msra.mxu1 %vm14421_vm12, %v11681_v49  ;;  %v17390_v47 = vpack.c.bf16 %v5797_v40, %v5733_v29  ;;  %v5739_v32 = vmax.f32 %v3537_v52, 0.0  ;;  %v5610_v18 = vmax.f32 %v17280_v5, 0.0  ;;  %v23768_v52 = vld [vmem:[#allocation2_spill] sm:$0xff] }
 0x21a   :  { %v5740_v35 = vmax.f32 %v3539_v15, 0.0  ;;  %5487 = vmatprep.mubr.f32.mxu0 %v23606_v37  ;;  %v17394_v34 = vpack.c.bf16 %v5798_v8, %v5734_v17  ;;  %11749 = vmatprep.subr.bf16.mxu1 %v11748_v61  ;;  %v5673_v46 = vmax.f32 %v17306_v13, 0.0  ;;  %v5803_v53 = vmax.f32 %v3543_v42, 0.0  ;;  %v3703_v9 = vpop.f32.mrb[40].mxu0 }
 0x21b   :  { %v5674_v0 = vmax.f32 %v17321_v14, 0.0  ;;  %v5804_v48 = vmax.f32 %v3545_v1, 0.0  ;;  %v5738_v49 = vmax.f32 %v17351_v24, 0.0  ;;  %v5801_v33 = vmax.f32 %v3454_v30, 0.0  ;;  %v3614_v14 = vpop.f32.mrb[32].mxu1  ;;  %v3705_v26 = vpop.f32.mrb[41].mxu0 }
 0x21c   :  { %11488 = vmatmul.mubr.msk.f32.vlgmr.msra.gmra.mrb[120].mxu1 %vm2541_vm10, %v17269_v50  ;;  %v17402_v5 = vpack.c.bf16 %v5673_v46, %v5609_v41  ;;  %v17404_v12 = vpack.c.bf16 %v5803_v53, %v5739_v32  ;;  %v5802_v21 = vmax.f32 %v3456_v63, 0.0  ;;  %v3616_v19 = vpop.f32.mrb[33].mxu1  ;;  %v17420_v56 = vsub.s32 0, %v23768_v52 }
 0x21d   :  { %11483 = vmatmul.mubr.msk.f32.gmra.mrb[122].mxu0 %vm2541_vm10, %v17230_v7  ;;  %v17408_v13 = vpack.c.bf16 %v5674_v0, %v5610_v18  ;;  %v11752_v24 = vpack.c.bf16 %v5804_v48, %v5740_v35  ;;  %5576 = vmatprep.mubr.f32.mxu1 %v23606_v37  ;;  %v17417_v50 = vpack.c.bf16 %v5801_v33, %v5737_v51  ;;  %v5613_v23 = vmax.f32 %v3614_v14, 0.0  ;;  %v3620_v10 = vpop.f32.mrb[34].mxu1 }
 0x21e   :  { %5493 = vmatprep.mubr.f32.mxu0 %v23606_v37  ;;  %23769 = vst [vmem:[#allocation24_spill] sm:$0xff] %v17420_v56  ;;  %v17423_v43 = vpack.c.bf16 %v5802_v21, %v5738_v49  ;;  %v8114_v15 = vrot.slane %v17413_v16, %v17420_v56  ;;  %v5614_v59 = vmax.f32 %v3616_v19, 0.0  ;;  %v17440_v45 = vsub.s32 1, %v23768_v52  ;;  %v3709_v63 = vpop.f32.mrb[42].mxu0 }
 0x21f   :  { %11687 = vmatpush1.bf16.xpose.msra.mxu0 %v16632_v2  ;;  %v5677_v2 = vmax.f32 %v3620_v10, 0.0  ;;  %v5616_v29 = vmax.f32 %v3705_v26, 0.0  ;;  %v5679_v40 = vmax.f32 %v3709_v63, 0.0  ;;  %v3711_v61 = vpop.f32.mrb[43].mxu0  ;;  %v17471_v49 = vsub.s32 2, %v23768_v52 }
 0x220   :  { %11689 = vmatprep.subr.bf16.mxu0 %v16738_v20  ;;  %11489 = vmatmul.mubr.msk.f32.gmra.mrb[122].mxu1 %vm2541_vm10, %v17230_v7  ;;  %v3622_v20 = vpop.f32.mrb[35].mxu1  ;;  %v5615_v7 = vmax.f32 %v3703_v9, 0.0  ;;  %v5680_v41 = vmax.f32 %v3711_v61, 0.0 }
 0x221   :  { %11484 = vmatmul.mubr.msk.f32.gmra.mrb[124].mxu0 %vm2541_vm10, %v17276_v11  ;;  %5582 = vmatprep.mubr.f32.mxu1 %v23606_v37  ;;  %v5678_v30 = vmax.f32 %v3622_v20, 0.0  ;;  %v11758_v62 = vpack.c.bf16 %v5677_v2, %v5613_v23  ;;  %v3626_v17 = vpop.f32.mrb[36].mxu1  ;;  %v8152_v9 = vrot.slane %v17413_v16, %v17471_v49 }
 0x222   :  { %5499 = vmatprep.mubr.f32.mxu0 %v23606_v37  ;;  %11751 = vmatpush1.bf16.xpose.msra.mxu1 %v11750_v36  ;;  %v3628_v8 = vpop.f32.mrb[37].mxu1  ;;  %v17449_v42 = vpack.c.bf16 %v5679_v40, %v5615_v7  ;;  %v5741_v32 = vmax.f32 %v3626_v17, 0.0  ;;  %v17454_v18 = vpack.c.bf16 %v5680_v41, %v5616_v29  ;;  %v3715_v35 = vpop.f32.mrb[44].mxu0 }
 0x223   :  { %8120 = vbcast.lane.b32.xlu1 %v8114_v15, 264  ;;  %11753 = vmatprep.subr.bf16.mxu1 %v11752_v24  ;;  %v11756_v36 = vpack.c.bf16 %v5678_v30, %v5614_v59  ;;  %v3717_v46 = vpop.f32.mrb[45].mxu0  ;;  %v5743_v51 = vmax.f32 %v3715_v35, 0.0 }
 0x224   :  { %8116 = vbcast.lane.b32.xlu0 %v8114_v15, 256  ;;  %11490 = vmatmul.mubr.msk.f32.gmra.mrb[124].mxu1 %vm2541_vm10, %v17276_v11  ;;  %v8133_v11 = vrot.slane %v17413_v16, %v17440_v45 }
 0x225   :  { %11485 = vmatmul.mubr.msk.f32.gmra.mrb[126].mxu0 %vm2541_vm10, %v17317_v44  ;;  %5588 = vmatprep.mubr.f32.mxu1 %v23606_v37  ;;  %v5742_v37 = vmax.f32 %v3628_v8, 0.0  ;;  %v3632_v1 = vpop.f32.mrb[38].mxu1 }
 0x226   :  { %5931 = vmatprep.mubr.f32.mxu0 %v17437_v57  ;;  %v3634_v53 = vpop.f32.mrb[39].mxu1  ;;  %v3721_v21 = vpop.f32.mrb[46].mxu0 }
 0x227   :  { %11691 = vmatpush1.bf16.xpose.msra.mxu0 %v16734_v27  ;;  %8128 = vbcast.lane.b32.xlu1 %v8114_v15, 280  ;;  %v5805_v27 = vmax.f32 %v3632_v1, 0.0  ;;  %v5806_v0 = vmax.f32 %v3634_v53, 0.0  ;;  %v5807_v14 = vmax.f32 %v3721_v21, 0.0  ;;  %v3723_v24 = vpop.f32.mrb[47].mxu0  ;;  %v17499_v1 = vld [vmem:[%s22811_s2 + $0x10] sm:$0xff] }
 0x228   :  { %11693 = vmatprep.subr.bf16.mxu0 %v16936_v4  ;;  %8124 = vbcast.lane.b32.xlu0 %v8114_v15, 272  ;;  %v17463_v4 = vld [vmem:[%s22811_s2] sm:$0xff]  ;;  %v5808_v19 = vmax.f32 %v3723_v24, 0.0  ;;  %v23771_v24 = vld [vmem:[#allocation69_spill] sm:$0xff] }
 0x229   :  { %11491 = vmatmul.mubr.msk.f32.gmra.mrb[126].mxu1 %vm2541_vm10, %v17317_v44  ;;  %v11762_v48 = vpack.c.bf16 %v5805_v27, %v5741_v32  ;;  %v17468_v44 = vld [vmem:[%s22811_s2 + $0x18] sm:$0xff]  ;;  %v11760_v33 = vpack.c.bf16 %v5806_v0, %v5742_v37  ;;  %v17477_v23 = vpack.c.bf16 %v5807_v14, %v5743_v51  ;;  %v3792_v59 = vpop.f32.mrb[40].mxu1  ;;  %v17507_v27 = vld [vmem:[%s22811_s2 + $0x28] sm:$0xff] }
 0x22a   :  { %6491 = vmatprep.mubr.f32.mxu1 %v17437_v57  ;;  %11755 = vmatpush1.bf16.xpose.msra.mxu1 %v17404_v12  ;;  %v5744_v12 = vmax.f32 %v3717_v46, 0.0  ;;  %v3794_v10 = vpop.f32.mrb[41].mxu1 }
 0x22b   :  { %8139 = vbcast.lane.b32.xlu1 %v8133_v11, 264  ;;  %11757 = vmatprep.subr.bf16.mxu1 %v11756_v36  ;;  %v5618_v2 = vmax.f32 %v3794_v10, 0.0 }
 0x22c   :  { %8135 = vbcast.lane.b32.xlu0 %v8133_v11, 256  ;;  %v17481_v15 = vpack.c.bf16 %v5808_v19, %v5744_v12 }
 0x22d   :  { %v3798_v20 = vpop.f32.mrb[42].mxu1 }
 0x22e   :  { %5932 = vmatmul.mubr.f32.vlgmr.msra.gmra.mrb[128].mxu0 %v17463_v4  ;;  %v3881_v26 = vpop.f32.mrb[48].mxu0  ;;  %v5681_v7 = vmax.f32 %v3798_v20, 0.0  ;;  %v3800_v29 = vpop.f32.mrb[43].mxu1 }
 0x22f   :  { %11695 = vmatpush1.bf16.xpose.msra.mxu0 %v16889_v28  ;;  %6001 = vmatprep.mubr.f32.mxu0 %v17468_v44  ;;  %v5617_v28 = vmax.f32 %v3792_v59, 0.0  ;;  %v3883_v30 = vpop.f32.mrb[49].mxu0  ;;  %v5682_v63 = vmax.f32 %v3800_v29, 0.0  ;;  %v5619_v36 = vmax.f32 %v3881_v26, 0.0 }
 0x230   :  { %11697 = vmatprep.subr.bf16.mxu0 %v17205_v25  ;;  %8147 = vbcast.lane.b32.xlu1 %v8133_v11, 280  ;;  %v17486_v25 = vsub.s32 3, %v23768_v52  ;;  %v5620_v40 = vmax.f32 %v3883_v30, 0.0 }
 0x231   :  { %8143 = vbcast.lane.b32.xlu0 %v8133_v11, 272  ;;  %6492 = vmatmul.mubr.f32.vlgmr.msra.gmra.mrb[128].mxu1 %v17463_v4  ;;  %v17490_v17 = vpack.c.bf16 %v5681_v7, %v5617_v28  ;;  %v17494_v41 = vpack.c.bf16 %v5682_v63, %v5618_v2  ;;  %v3804_v11 = vpop.f32.mrb[44].mxu1 }
 0x232   :  { %11759 = vmatpush1.bf16.xpose.msra.mxu1 %v11758_v62  ;;  %6561 = vmatprep.mubr.f32.mxu1 %v17468_v44  ;;  %v23770_v62 = vld [vmem:[#allocation70_spill] sm:$0xff]  ;;  %v3887_v61 = vpop.f32.mrb[50].mxu0  ;;  %v8171_v8 = vrot.slane %v17413_v16, %v17486_v25  ;;  %v3806_v37 = vpop.f32.mrb[45].mxu1  ;;  %v5745_v53 = vmax.f32 %v3804_v11, 0.0 }
 0x233   :  { %11761 = vmatprep.subr.bf16.mxu1 %v11760_v33  ;;  %v5683_v32 = vmax.f32 %v3887_v61, 0.0  ;;  %v3889_v35 = vpop.f32.mrb[51].mxu0  ;;  %v5746_v33 = vmax.f32 %v3806_v37, 0.0 }
 0x234   :  { %8158 = vbcast.lane.b32.xlu1 %v8152_v9, 264 }
 0x235   :  { %8154 = vbcast.lane.b32.xlu0 %v8152_v9, 256  ;;  %v17501_v46 = vpack.c.bf16 %v5683_v32, %v5619_v36  ;;  %v3810_v12 = vpop.f32.mrb[46].mxu1  ;;  %v17531_v36 = vsub.s32 5, %v23768_v52 }
 0x236   :  { %v3893_v51 = vpop.f32.mrb[52].mxu0  ;;  %v3812_v14 = vpop.f32.mrb[47].mxu1 }
 0x237   :  { %11699 = vmatpush1.bf16.xpose.msra.mxu0 %v17151_v39  ;;  %v5684_v39 = vmax.f32 %v3889_v35, 0.0  ;;  %v3895_v21 = vpop.f32.mrb[53].mxu0  ;;  %v5810_v19 = vmax.f32 %v3812_v14, 0.0  ;;  %v5747_v10 = vmax.f32 %v3893_v51, 0.0  ;;  %v17543_v51 = vld [vmem:[%s22811_s2 + $0x20] sm:$0xff] }
 0x238   :  { %11701 = vmatprep.subr.bf16.mxu0 %v23770_v62  ;;  %8166 = vbcast.lane.b32.xlu1 %v8152_v9, 280  ;;  %v5748_v2 = vmax.f32 %v3895_v21, 0.0 }
 0x239   :  { %8162 = vbcast.lane.b32.xlu0 %v8152_v9, 272  ;;  %v17509_v0 = vpack.c.bf16 %v5684_v39, %v5620_v40  ;;  %v23772_v9 = vld [vmem:[#allocation19_spill] sm:$0xff]  ;;  %v17522_v26 = vpack.c.bf16 %v5810_v19, %v5746_v33 }
 0x23a   :  { %11763 = vmatpush1.bf16.xpose.msra.mxu1 %v11762_v48  ;;  %v17512_v48 = vsub.s32 4, %v23768_v52  ;;  %v3899_v20 = vpop.f32.mrb[54].mxu0 }
 0x23b   :  { %11765 = vmatprep.subr.bf16.mxu1 %v17454_v18  ;;  %v5809_v18 = vmax.f32 %v3810_v12, 0.0  ;;  %v5811_v30 = vmax.f32 %v3899_v20, 0.0  ;;  %v3901_v7 = vpop.f32.mrb[55].mxu0  ;;  %v17549_v12 = vld [vmem:[%s22811_s2 + $0x38] sm:$0xff] }
 0x23c   :  { %8177 = vbcast.lane.b32.xlu1 %v8171_v8, 264  ;;  %v8190_v28 = vrot.slane %v17413_v16, %v17512_v48  ;;  %v5812_v29 = vmax.f32 %v3901_v7, 0.0 }
 0x23d   :  { %8173 = vbcast.lane.b32.xlu0 %v8171_v8, 256  ;;  %v17518_v59 = vpack.c.bf16 %v5809_v18, %v5745_v53  ;;  %v17528_v63 = vpack.c.bf16 %v5811_v30, %v5747_v10  ;;  %v3970_v40 = vpop.f32.mrb[48].mxu1 }
 0x23e   :  { %6002 = vmatmul.mubr.f32.vlgmr.msra.gmra.mrb[128].mxu0 %v17499_v1  ;;  %v17533_v62 = vpack.c.bf16 %v5812_v29, %v5748_v2  ;;  %v3972_v61 = vpop.f32.mrb[49].mxu1 }
 0x23f   :  { %11703 = vmatpush1.bf16.xpose.msra.mxu0 %v23771_v24  ;;  %6071 = vmatprep.mubr.f32.mxu0 %v17507_v27  ;;  %v5622_v32 = vmax.f32 %v3972_v61, 0.0 }
 0x240   :  { %11705 = vmatprep.subr.bf16.mxu0 %v23772_v9  ;;  %8185 = vbcast.lane.b32.xlu1 %v8171_v8, 280 }
 0x241   :  { %8181 = vbcast.lane.b32.xlu0 %v8171_v8, 272  ;;  %6562 = vmatmul.mubr.f32.vlgmr.msra.gmra.mrb[128].mxu1 %v17499_v1  ;;  %v23773_v8 = vld [vmem:[#allocation16_spill] sm:$0xff]  ;;  %v4059_v11 = vpop.f32.mrb[56].mxu0 }
 0x242   :  { %11767 = vmatpush1.bf16.xpose.msra.mxu1 %v17449_v42  ;;  %6631 = vmatprep.mubr.f32.mxu1 %v17507_v27  ;;  %v5621_v42 = vmax.f32 %v3970_v40, 0.0  ;;  %v4061_v35 = vpop.f32.mrb[57].mxu0  ;;  %v3976_v37 = vpop.f32.mrb[50].mxu1 }
 0x243   :  { %11769 = vmatprep.subr.bf16.mxu1 %v17481_v15  ;;  %v8209_v15 = vrot.slane %v17413_v16, %v17531_v36  ;;  %v5685_v39 = vmax.f32 %v3976_v37, 0.0  ;;  %v3978_v53 = vpop.f32.mrb[51].mxu1  ;;  %v5624_v21 = vmax.f32 %v4061_v35, 0.0  ;;  %v17575_v35 = vsub.s32 7, %v23768_v52 }
 0x244   :  { %8196 = vbcast.lane.b32.xlu1 %v8190_v28, 264  ;;  %v5686_v33 = vmax.f32 %v3978_v53, 0.0 }
 0x245   :  { %8192 = vbcast.lane.b32.xlu0 %v8190_v28, 256  ;;  %v17551_v18 = vpack.c.bf16 %v5685_v39, %v5621_v42  ;;  %v4065_v14 = vpop.f32.mrb[58].mxu0 }
 0x246   :  { %v5687_v24 = vmax.f32 %v4065_v14, 0.0  ;;  %v17556_v19 = vpack.c.bf16 %v5686_v33, %v5622_v32  ;;  %v4067_v9 = vpop.f32.mrb[59].mxu0  ;;  %v3982_v10 = vpop.f32.mrb[52].mxu1  ;;  %v23774_v33 = vld [vmem:[#allocation23_spill] sm:$0xff] }
 0x247   :  { %11707 = vmatpush1.bf16.xpose.msra.mxu0 %v23773_v8  ;;  %v5749_v30 = vmax.f32 %v3982_v10, 0.0 }
 0x248   :  { %11709 = vmatprep.subr.bf16.mxu0 %v17287_v58  ;;  %8204 = vbcast.lane.b32.xlu1 %v8190_v28, 280  ;;  %v5623_v58 = vmax.f32 %v4059_v11, 0.0 }
 0x249   :  { %8200 = vbcast.lane.b32.xlu0 %v8190_v28, 272  ;;  %v3984_v28 = vpop.f32.mrb[53].mxu1  ;;  %v4071_v7 = vpop.f32.mrb[60].mxu0 }
 0x24a   :  { %11771 = vmatpush1.bf16.xpose.msra.mxu1 %v17477_v23  ;;  %v17554_v23 = vsub.s32 6, %v23768_v52  ;;  %v17561_v2 = vpack.c.bf16 %v5687_v24, %v5623_v58  ;;  %v5750_v40 = vmax.f32 %v3984_v28, 0.0  ;;  %v4073_v61 = vpop.f32.mrb[61].mxu0  ;;  %v3988_v8 = vpop.f32.mrb[54].mxu1  ;;  %v5751_v11 = vmax.f32 %v4071_v7, 0.0  ;;  %v17591_v24 = vld [vmem:[%s22811_s2 + $0x30] sm:$0xff] }
 0x24b   :  { %11773 = vmatprep.subr.bf16.mxu1 %v17494_v41  ;;  %v5688_v41 = vmax.f32 %v4067_v9, 0.0  ;;  %v3990_v42 = vpop.f32.mrb[55].mxu1  ;;  %v5752_v37 = vmax.f32 %v4073_v61, 0.0  ;;  %v17597_v9 = vld [vmem:[%s22811_s2 + $0x48] sm:$0xff] }
 0x24c   :  { %8215 = vbcast.lane.b32.xlu1 %v8209_v15, 264  ;;  %v8228_v29 = vrot.slane %v17413_v16, %v17554_v23 }
 0x24d   :  { %8211 = vbcast.lane.b32.xlu0 %v8209_v15, 256  ;;  %v17564_v20 = vpack.c.bf16 %v5688_v41, %v5624_v21  ;;  %v8247_v21 = vrot.slane %v17413_v16, %v17575_v35 }
 0x24e   :  { %6072 = vmatmul.mubr.f32.vlgmr.msra.gmra.mrb[128].mxu0 %v17543_v51 }
 0x24f   :  { %11711 = vmatpush1.bf16.xpose.msra.mxu0 %v17283_v6  ;;  %6141 = vmatprep.mubr.f32.mxu0 %v17549_v12  ;;  %v5813_v6 = vmax.f32 %v3988_v8, 0.0 }
 0x250   :  { %11713 = vmatprep.subr.bf16.mxu0 %v17347_v22  ;;  %8223 = vbcast.lane.b32.xlu1 %v8209_v15, 280  ;;  %v5814_v22 = vmax.f32 %v3990_v42, 0.0 }
 0x251   :  { %8219 = vbcast.lane.b32.xlu0 %v8209_v15, 272  ;;  %6632 = vmatmul.mubr.f32.vlgmr.msra.gmra.mrb[128].mxu1 %v17543_v51  ;;  %v17572_v32 = vpack.c.bf16 %v5813_v6, %v5749_v30  ;;  %v4077_v15 = vpop.f32.mrb[62].mxu0  ;;  %v23775_v30 = vld [vmem:[#allocation20_spill] sm:$0xff] }
 0x252   :  { %11775 = vmatpush1.bf16.xpose.msra.mxu1 %v17490_v17  ;;  %6701 = vmatprep.mubr.f32.mxu1 %v17549_v12  ;;  %v17577_v39 = vpack.c.bf16 %v5814_v22, %v5750_v40  ;;  %v5815_v53 = vmax.f32 %v4077_v15, 0.0  ;;  %v4079_v58 = vpop.f32.mrb[63].mxu0 }
 0x253   :  { %11777 = vmatprep.subr.bf16.mxu1 %v17522_v26  ;;  %v5816_v17 = vmax.f32 %v4079_v58, 0.0 }
 0x254   :  { %8234 = vbcast.lane.b32.xlu1 %v8228_v29, 264  ;;  %v17581_v26 = vpack.c.bf16 %v5815_v53, %v5751_v11 }
 0x255   :  { %8230 = vbcast.lane.b32.xlu0 %v8228_v29, 256  ;;  %v17585_v14 = vpack.c.bf16 %v5816_v17, %v5752_v37 }
 0x256   :  { %v4237_v16 = vpop.f32.mrb[64].mxu0 }
 0x257   :  { %11715 = vmatpush1.bf16.xpose.msra.mxu0 %v17339_v3  ;;  %v4148_v3 = vpop.f32.mrb[56].mxu1  ;;  %v4239_v28 = vpop.f32.mrb[65].mxu0  ;;  %v5627_v40 = vmax.f32 %v4237_v16, 0.0 }
 0x258   :  { %11717 = vmatprep.subr.bf16.mxu0 %v23774_v33  ;;  %8242 = vbcast.lane.b32.xlu1 %v8228_v29, 280  ;;  %v4150_v10 = vpop.f32.mrb[57].mxu1  ;;  %v5625_v41 = vmax.f32 %v4148_v3, 0.0  ;;  %v5628_v42 = vmax.f32 %v4239_v28, 0.0 }
 0x259   :  { %8238 = vbcast.lane.b32.xlu0 %v8228_v29, 272  ;;  %v4154_v7 = vpop.f32.mrb[58].mxu1  ;;  %v23776_v29 = vld [vmem:[#allocation75_spill] sm:$0xff] }
 0x25a   :  { %11779 = vmatpush1.bf16.xpose.msra.mxu1 %v17518_v59  ;;  %v17602_v59 = vld [vmem:[%s22810_s3 + $0x8] sm:$0xff]  ;;  %v5689_v61 = vmax.f32 %v4154_v7, 0.0  ;;  %v4156_v8 = vpop.f32.mrb[59].mxu1  ;;  %v4243_v22 = vpop.f32.mrb[66].mxu0 }
 0x25b   :  { %11781 = vmatprep.subr.bf16.mxu1 %v17509_v0  ;;  %v5626_v0 = vmax.f32 %v4150_v10, 0.0  ;;  %v8266_v6 = vrot.slane %v17602_v59, %v17420_v56  ;;  %v5690_v11 = vmax.f32 %v4156_v8, 0.0  ;;  %v5691_v15 = vmax.f32 %v4243_v22, 0.0  ;;  %v4245_v53 = vpop.f32.mrb[67].mxu0 }
 0x25c   :  { %8253 = vbcast.lane.b32.xlu1 %v8247_v21, 264  ;;  %v17611_v37 = vpack.c.bf16 %v5689_v61, %v5625_v41  ;;  %v5692_v17 = vmax.f32 %v4245_v53, 0.0 }
 0x25d   :  { %8249 = vbcast.lane.b32.xlu0 %v8247_v21, 256  ;;  %v17615_v58 = vpack.c.bf16 %v5690_v11, %v5626_v0  ;;  %v4160_v33 = vpop.f32.mrb[60].mxu1  ;;  %v17618_v3 = vpack.c.bf16 %v5691_v15, %v5627_v40 }
 0x25e   :  { %6142 = vmatmul.mubr.f32.vlgmr.msra.gmra.mrb[128].mxu0 %v17591_v24  ;;  %v4162_v10 = vpop.f32.mrb[61].mxu1  ;;  %v4249_v16 = vpop.f32.mrb[68].mxu0  ;;  %v5753_v41 = vmax.f32 %v4160_v33, 0.0 }
 0x25f   :  { %11719 = vmatpush1.bf16.xpose.msra.mxu0 %v23775_v30  ;;  %6211 = vmatprep.mubr.f32.mxu0 %v17597_v9  ;;  %v4251_v28 = vpop.f32.mrb[69].mxu0  ;;  %v23777_v30 = vld [vmem:[#allocation89_spill] sm:$0xff]  ;;  %v5755_v0 = vmax.f32 %v4249_v16, 0.0  ;;  %v8304_v16 = vrot.slane %v17602_v59, %v17471_v49 }
 0x260   :  { %11721 = vmatprep.subr.bf16.mxu0 %v23776_v29  ;;  %8261 = vbcast.lane.b32.xlu1 %v8247_v21, 280  ;;  %v5756_v40 = vmax.f32 %v4251_v28, 0.0 }
 0x261   :  { %8257 = vbcast.lane.b32.xlu0 %v8247_v21, 272  ;;  %6702 = vmatmul.mubr.f32.vlgmr.msra.gmra.mrb[128].mxu1 %v17591_v24  ;;  %v17620_v21 = vpack.c.bf16 %v5692_v17, %v5628_v42  ;;  %v4166_v7 = vpop.f32.mrb[62].mxu1 }
 0x262   :  { %11783 = vmatpush1.bf16.xpose.msra.mxu1 %v17501_v46  ;;  %6771 = vmatprep.mubr.f32.mxu1 %v17597_v9  ;;  %v5754_v46 = vmax.f32 %v4162_v10, 0.0  ;;  %v5817_v29 = vmax.f32 %v4166_v7, 0.0  ;;  %v4168_v61 = vpop.f32.mrb[63].mxu1  ;;  %v4255_v8 = vpop.f32.mrb[70].mxu0 }
 0x263   :  { %11785 = vmatprep.subr.bf16.mxu1 %v17533_v62  ;;  %v8285_v62 = vrot.slane %v17602_v59, %v17440_v45  ;;  %v5818_v42 = vmax.f32 %v4168_v61, 0.0  ;;  %v5819_v11 = vmax.f32 %v4255_v8, 0.0  ;;  %v4257_v15 = vpop.f32.mrb[71].mxu0 }
 0x264   :  { %8272 = vbcast.lane.b32.xlu1 %v8266_v6, 264  ;;  %v17626_v22 = vpack.c.bf16 %v5817_v29, %v5753_v41  ;;  %v5820_v17 = vmax.f32 %v4257_v15, 0.0 }
 0x265   :  { %8268 = vbcast.lane.b32.xlu0 %v8266_v6, 256  ;;  %v17634_v53 = vpack.c.bf16 %v5818_v42, %v5754_v46  ;;  %v17642_v33 = vpack.c.bf16 %v5819_v11, %v5755_v0 }
 0x266   :  { %v17644_v10 = vpack.c.bf16 %v5820_v17, %v5756_v40 }
 0x267   :  { %11723 = vmatpush1.bf16.xpose.msra.mxu0 %v23777_v30 }
 0x268   :  { %11725 = vmatprep.subr.bf16.mxu0 %v17382_v55  ;;  %8280 = vbcast.lane.b32.xlu1 %v8266_v6, 280  ;;  %v17632_v55 = vld [vmem:[%s22811_s2 + $0x40] sm:$0xff] }
 0x269   :  { %8276 = vbcast.lane.b32.xlu0 %v8266_v6, 272  ;;  %v17640_v6 = vld [vmem:[%s22811_s2 + $0x58] sm:$0xff] }
 0x26a   :  { %11787 = vmatpush1.bf16.xpose.msra.mxu1 %v17528_v63  ;;  %v4326_v63 = vpop.f32.mrb[64].mxu1 }
 0x26b   :  { %11789 = vmatprep.subr.bf16.mxu1 %v17556_v19  ;;  %v4328_v19 = vpop.f32.mrb[65].mxu1  ;;  %v5629_v28 = vmax.f32 %v4326_v63, 0.0  ;;  %v8323_v63 = vrot.slane %v17602_v59, %v17486_v25 }
 0x26c   :  { %8291 = vbcast.lane.b32.xlu1 %v8285_v62, 264  ;;  %v4332_v46 = vpop.f32.mrb[66].mxu1 }
 0x26d   :  { %8287 = vbcast.lane.b32.xlu0 %v8285_v62, 256  ;;  %v4415_v41 = vpop.f32.mrb[72].mxu0  ;;  %v5693_v7 = vmax.f32 %v4332_v46, 0.0  ;;  %v4334_v0 = vpop.f32.mrb[67].mxu1 }
 0x26e   :  { %6212 = vmatmul.mubr.f32.vlgmr.msra.gmra.mrb[128].mxu0 %v17632_v55  ;;  %v4417_v30 = vpop.f32.mrb[73].mxu0  ;;  %v5694_v40 = vmax.f32 %v4334_v0, 0.0 }
 0x26f   :  { %11727 = vmatpush1.bf16.xpose.msra.mxu0 %v17375_v38  ;;  %6281 = vmatprep.mubr.f32.mxu0 %v17640_v6  ;;  %v5630_v38 = vmax.f32 %v4328_v19, 0.0  ;;  %v5632_v29 = vmax.f32 %v4417_v30, 0.0 }
 0x270   :  { %11729 = vmatprep.subr.bf16.mxu0 %v17394_v34  ;;  %8299 = vbcast.lane.b32.xlu1 %v8285_v62, 280  ;;  %v5631_v34 = vmax.f32 %v4415_v41, 0.0  ;;  %v4338_v15 = vpop.f32.mrb[68].mxu1 }
 0x271   :  { %8295 = vbcast.lane.b32.xlu0 %v8285_v62, 272  ;;  %6772 = vmatmul.mubr.f32.vlgmr.msra.gmra.mrb[128].mxu1 %v17632_v55  ;;  %v4421_v61 = vpop.f32.mrb[74].mxu0  ;;  %v17656_v62 = vpack.c.bf16 %v5693_v7, %v5629_v28  ;;  %v4340_v17 = vpop.f32.mrb[69].mxu1  ;;  %v5757_v28 = vmax.f32 %v4338_v15, 0.0 }
 0x272   :  { %11791 = vmatpush1.bf16.xpose.msra.mxu1 %v17551_v18  ;;  %6841 = vmatprep.mubr.f32.mxu1 %v17640_v6  ;;  %v5695_v8 = vmax.f32 %v4421_v61, 0.0  ;;  %v4423_v42 = vpop.f32.mrb[75].mxu0  ;;  %v17659_v18 = vpack.c.bf16 %v5694_v40, %v5630_v38 }
 0x273   :  { %11793 = vmatprep.subr.bf16.mxu1 %v17577_v39  ;;  %v5696_v11 = vmax.f32 %v4423_v42, 0.0 }
 0x274   :  { %8310 = vbcast.lane.b32.xlu1 %v8304_v16, 264  ;;  %v17662_v39 = vpack.c.bf16 %v5695_v8, %v5631_v34  ;;  %v4344_v38 = vpop.f32.mrb[70].mxu1  ;;  %v17678_v34 = vld [vmem:[%s22811_s2 + $0x68] sm:$0xff] }
 0x275   :  { %8306 = vbcast.lane.b32.xlu0 %v8304_v16, 256  ;;  %v17666_v19 = vpack.c.bf16 %v5696_v11, %v5632_v29  ;;  %v4427_v41 = vpop.f32.mrb[76].mxu0  ;;  %v4346_v7 = vpop.f32.mrb[71].mxu1 }
 0x276   :  { %v4429_v30 = vpop.f32.mrb[77].mxu0  ;;  %v5759_v46 = vmax.f32 %v4427_v41, 0.0  ;;  %v5822_v29 = vmax.f32 %v4346_v7, 0.0 }
 0x277   :  { %11731 = vmatpush1.bf16.xpose.msra.mxu0 %v17390_v47  ;;  %v17672_v47 = vld [vmem:[%s22811_s2 + $0x50] sm:$0xff]  ;;  %v5760_v0 = vmax.f32 %v4429_v30, 0.0 }
 0x278   :  { %11733 = vmatprep.subr.bf16.mxu0 %v17297_v54  ;;  %8318 = vbcast.lane.b32.xlu1 %v8304_v16, 280  ;;  %v5758_v54 = vmax.f32 %v4340_v17, 0.0  ;;  %v8342_v17 = vrot.slane %v17602_v59, %v17512_v48 }
 0x279   :  { %8314 = vbcast.lane.b32.xlu0 %v8304_v16, 272  ;;  %v5821_v16 = vmax.f32 %v4344_v38, 0.0 }
 0x27a   :  { %11795 = vmatpush1.bf16.xpose.msra.mxu1 %v17572_v32  ;;  %v4433_v32 = vpop.f32.mrb[78].mxu0  ;;  %v17685_v42 = vpack.c.bf16 %v5822_v29, %v5758_v54 }
 0x27b   :  { %11797 = vmatprep.subr.bf16.mxu1 %v17564_v20  ;;  %v17681_v61 = vpack.c.bf16 %v5821_v16, %v5757_v28  ;;  %v5823_v40 = vmax.f32 %v4433_v32, 0.0  ;;  %v4435_v8 = vpop.f32.mrb[79].mxu0  ;;  %v23778_v20 = vld [vmem:[#allocation91_spill] sm:$0xff] }
 0x27c   :  { %8329 = vbcast.lane.b32.xlu1 %v8323_v63, 264  ;;  %v5824_v11 = vmax.f32 %v4435_v8, 0.0 }
 0x27d   :  { %8325 = vbcast.lane.b32.xlu0 %v8323_v63, 256  ;;  %v17688_v15 = vpack.c.bf16 %v5823_v40, %v5759_v46 }
 0x27e   :  { %6282 = vmatmul.mubr.f32.vlgmr.msra.gmra.mrb[128].mxu0 %v17672_v47  ;;  %v17692_v41 = vpack.c.bf16 %v5824_v11, %v5760_v0  ;;  %v8361_v0 = vrot.slane %v17602_v59, %v17531_v36 }
 0x27f   :  { %11735 = vmatpush1.bf16.xpose.msra.mxu0 %v23778_v20  ;;  %6351 = vmatprep.mubr.f32.mxu0 %v17678_v34  ;;  %v4504_v28 = vpop.f32.mrb[72].mxu1 }
 0x280   :  { %11737 = vmatprep.subr.bf16.mxu0 %v17367_v60  ;;  %8337 = vbcast.lane.b32.xlu1 %v8323_v63, 280  ;;  %v4506_v30 = vpop.f32.mrb[73].mxu1  ;;  %v5633_v54 = vmax.f32 %v4504_v28, 0.0 }
 0x281   :  { %8333 = vbcast.lane.b32.xlu0 %v8323_v63, 272  ;;  %6842 = vmatmul.mubr.f32.vlgmr.msra.gmra.mrb[128].mxu1 %v17672_v47  ;;  %v4593_v60 = vpop.f32.mrb[80].mxu0  ;;  %v5634_v46 = vmax.f32 %v4506_v30, 0.0 }
 0x282   :  { %11799 = vmatpush1.bf16.xpose.msra.mxu1 %v17561_v2  ;;  %6911 = vmatprep.mubr.f32.mxu1 %v17678_v34  ;;  %v4595_v38 = vpop.f32.mrb[81].mxu0  ;;  %v5635_v63 = vmax.f32 %v4593_v60, 0.0 }
 0x283   :  { %11801 = vmatprep.subr.bf16.mxu1 %v17585_v14  ;;  %v4510_v16 = vpop.f32.mrb[74].mxu1  ;;  %v5636_v14 = vmax.f32 %v4595_v38, 0.0 }
 0x284   :  { %8348 = vbcast.lane.b32.xlu1 %v8342_v17, 264  ;;  %v5697_v7 = vmax.f32 %v4510_v16, 0.0  ;;  %v4512_v2 = vpop.f32.mrb[75].mxu1 }
 0x285   :  { %8344 = vbcast.lane.b32.xlu0 %v8342_v17, 256  ;;  %v4599_v32 = vpop.f32.mrb[82].mxu0  ;;  %v5698_v29 = vmax.f32 %v4512_v2, 0.0 }
 0x286   :  { %v17702_v40 = vpack.c.bf16 %v5697_v7, %v5633_v54  ;;  %v5699_v8 = vmax.f32 %v4599_v32, 0.0  ;;  %v4601_v20 = vpop.f32.mrb[83].mxu0 }
 0x287   :  { %11739 = vmatpush1.bf16.xpose.msra.mxu0 %v17341_v31  ;;  %v17708_v31 = vld [vmem:[%s22811_s2 + $0x60] sm:$0xff]  ;;  %v5700_v11 = vmax.f32 %v4601_v20, 0.0  ;;  %v4516_v28 = vpop.f32.mrb[76].mxu1 }
 0x288   :  { %11741 = vmatprep.subr.bf16.mxu0 %v17408_v13  ;;  %8356 = vbcast.lane.b32.xlu1 %v8342_v17, 280  ;;  %v17710_v13 = vpack.c.bf16 %v5698_v29, %v5634_v46  ;;  %v17713_v30 = vpack.c.bf16 %v5699_v8, %v5635_v63  ;;  %v4518_v60 = vpop.f32.mrb[77].mxu1  ;;  %v5761_v38 = vmax.f32 %v4516_v28, 0.0 }
 0x289   :  { %8352 = vbcast.lane.b32.xlu0 %v8342_v17, 272  ;;  %v17718_v17 = vld [vmem:[%s22811_s2 + $0x78] sm:$0xff]  ;;  %v4605_v54 = vpop.f32.mrb[84].mxu0 }
 0x28a   :  { %11803 = vmatpush1.bf16.xpose.msra.mxu1 %v17581_v26  ;;  %23779 = vst [vmem:[#allocation25_spill] sm:$0xff] %v17718_v17  ;;  %v17720_v26 = vpack.c.bf16 %v5700_v11, %v5636_v14  ;;  %v4607_v46 = vpop.f32.mrb[85].mxu0  ;;  %v5763_v63 = vmax.f32 %v4605_v54, 0.0  ;;  %v8380_v14 = vrot.slane %v17602_v59, %v17554_v23 }
 0x28b   :  { %11805 = vmatprep.subr.bf16.mxu1 %v17615_v58  ;;  %v5762_v58 = vmax.f32 %v4518_v60, 0.0  ;;  %v4522_v16 = vpop.f32.mrb[78].mxu1  ;;  %v5764_v32 = vmax.f32 %v4607_v46, 0.0  ;;  %v8399_v46 = vrot.slane %v17602_v59, %v17575_v35 }
 0x28c   :  { %8367 = vbcast.lane.b32.xlu1 %v8361_v0, 264  ;;  %v5825_v7 = vmax.f32 %v4522_v16, 0.0  ;;  %v4524_v2 = vpop.f32.mrb[79].mxu1 }
 0x28d   :  { %8363 = vbcast.lane.b32.xlu0 %v8361_v0, 256  ;;  %v4611_v29 = vpop.f32.mrb[86].mxu0  ;;  %v5826_v8 = vmax.f32 %v4524_v2, 0.0 }
 0x28e   :  { %6352 = vmatmul.mubr.f32.vlgmr.msra.gmra.mrb[128].mxu0 %v17708_v31  ;;  %v5827_v20 = vmax.f32 %v4611_v29, 0.0  ;;  %v4613_v11 = vpop.f32.mrb[87].mxu0 }
 0x28f   :  { %11743 = vmatpush1.bf16.xpose.msra.mxu0 %v17402_v5  ;;  %6421 = vmatprep.mubr.f32.mxu0 %v17718_v17  ;;  %v17729_v5 = vpack.c.bf16 %v5825_v7, %v5761_v38  ;;  %v5828_v28 = vmax.f32 %v4613_v11, 0.0 }
 0x290   :  { %11745 = vmatprep.subr.bf16.mxu0 %v17423_v43  ;;  %8375 = vbcast.lane.b32.xlu1 %v8361_v0, 280  ;;  %v17733_v43 = vpack.c.bf16 %v5826_v8, %v5762_v58  ;;  %v17736_v60 = vpack.c.bf16 %v5827_v20, %v5763_v63 }
 0x291   :  { %8371 = vbcast.lane.b32.xlu0 %v8361_v0, 272  ;;  %6912 = vmatmul.mubr.f32.vlgmr.msra.gmra.mrb[128].mxu1 %v17708_v31  ;;  %v17738_v54 = vpack.c.bf16 %v5828_v28, %v5764_v32  ;;  %v4682_v0 = vpop.f32.mrb[80].mxu1 }
 0x292   :  { %11807 = vmatpush1.bf16.xpose.msra.mxu1 %v17611_v37  ;;  %6981 = vmatprep.mubr.f32.mxu1 %v17718_v17  ;;  %v4684_v38 = vpop.f32.mrb[81].mxu1  ;;  %v5637_v16 = vmax.f32 %v4682_v0, 0.0  ;;  %v17762_v0 = vld [vmem:[%s22810_s3 + $0x10] sm:$0xff] }
 0x293   :  { %11809 = vmatprep.subr.bf16.mxu1 %v17634_v53 }
 0x294   :  { %8386 = vbcast.lane.b32.xlu1 %v8380_v14, 264  ;;  %v4688_v7 = vpop.f32.mrb[82].mxu1 }
 0x295   :  { %8382 = vbcast.lane.b32.xlu0 %v8380_v14, 256  ;;  %v17742_v37 = vpop.permute.xlu1 %8120  ;;  %v4771_v58 = vpop.f32.mrb[88].mxu0  ;;  %v5701_v32 = vmax.f32 %v4688_v7, 0.0 }
 0x296   :  { %23780 = vst [vmem:[#allocation82_spill] sm:$0xff] %v17742_v37  ;;  %v17746_v53 = vpop.permute.xlu0 %8116  ;;  %v4773_v63 = vpop.f32.mrb[89].mxu0  ;;  %v5639_v2 = vmax.f32 %v4771_v58, 0.0 }
 0x297   :  { %11747 = vmatpush1.bf16.xpose.msra.mxu0 %v17417_v50  ;;  %23781 = vst [vmem:[#allocation83_spill] sm:$0xff] %v17746_v53  ;;  %v17752_v50 = vld [vmem:[%s22811_s2 + $0x70] sm:$0xff]  ;;  %v4690_v29 = vpop.f32.mrb[83].mxu1  ;;  %v5640_v59 = vmax.f32 %v4773_v63, 0.0 }
 0x298   :  { %11813 = vmatprep.subr.bf16.mxu0 %v17620_v21  ;;  %8394 = vbcast.lane.b32.xlu1 %v8380_v14, 280  ;;  %23782 = vst [vmem:[#allocation97_spill] sm:$0xff] %v17752_v50  ;;  %v5638_v21 = vmax.f32 %v4684_v38, 0.0  ;;  %v5702_v20 = vmax.f32 %v4690_v29, 0.0  ;;  %v4694_v63 = vpop.f32.mrb[84].mxu1  ;;  %v8418_v29 = vrot.slane %v17762_v0, %v17420_v56 }
 0x299   :  { %8390 = vbcast.lane.b32.xlu0 %v8380_v14, 272  ;;  %v4777_v8 = vpop.f32.mrb[90].mxu0  ;;  %v17755_v14 = vpack.c.bf16 %v5701_v32, %v5637_v16  ;;  %v17757_v28 = vpop.permute.xlu1 %8128 }
 0x29a   :  { %11811 = vmatpush1.bf16.xpose.msra.mxu1 %v17626_v22  ;;  %v5703_v22 = vmax.f32 %v4777_v8, 0.0  ;;  %v4779_v11 = vpop.f32.mrb[91].mxu0  ;;  %23783 = vst [vmem:[#allocation28_spill] sm:$0xff] %v17757_v28  ;;  %v17765_v38 = vpack.c.bf16 %v5702_v20, %v5638_v21  ;;  %v17768_v7 = vpop.permute.xlu0 %8124  ;;  %v5765_v20 = vmax.f32 %v4694_v63, 0.0 }
 0x29b   :  { %v5704_v58 = vmax.f32 %v4779_v11, 0.0  ;;  %23784 = vst [vmem:[#allocation21_spill] sm:$0xff] %v17768_v7  ;;  %v4696_v32 = vpop.f32.mrb[85].mxu1 }
 0x29c   :  { %8405 = vbcast.lane.b32.xlu1 %v8399_v46, 264  ;;  %v17771_v16 = vpack.c.bf16 %v5703_v22, %v5639_v2  ;;  %v5766_v11 = vmax.f32 %v4696_v32, 0.0  ;;  %v4700_v28 = vpop.f32.mrb[86].mxu1  ;;  %v8437_v32 = vrot.slane %v17762_v0, %v17440_v45 }
 0x29d   :  { %8401 = vbcast.lane.b32.xlu0 %v8399_v46, 256  ;;  %v17775_v8 = vpack.c.bf16 %v5704_v58, %v5640_v59  ;;  %v5829_v2 = vmax.f32 %v4700_v28, 0.0  ;;  %v4702_v22 = vpop.f32.mrb[87].mxu1  ;;  %v17779_v7 = vpop.permute.xlu1 %8139 }
 0x29e   :  { %6422 = vmatmul.mubr.f32.vlgmr.msra.gmra.mrb[128].mxu0 %v17752_v50  ;;  %23785 = vst [vmem:[#allocation29_spill] sm:$0xff] %v17779_v7  ;;  %v5830_v59 = vmax.f32 %v4702_v22, 0.0  ;;  %v17781_v58 = vpop.permute.xlu0 %8135 }
 0x29f   :  { %11815 = vmatpush1.bf16.xpose.msra.mxu0 %v17618_v3  ;;  %7051 = vmatprep.mubr.f32.mxu0 %v17437_v57  ;;  %v4783_v3 = vpop.f32.mrb[92].mxu0  ;;  %23786 = vst [vmem:[#allocation58_spill] sm:$0xff] %v17781_v58 }
 0x2a0   :  { %11817 = vmatprep.subr.bf16.mxu0 %v17644_v10  ;;  %8413 = vbcast.lane.b32.xlu1 %v8399_v46, 280  ;;  %v4785_v21 = vpop.f32.mrb[93].mxu0  ;;  %v5767_v10 = vmax.f32 %v4783_v3, 0.0 }
 0x2a1   :  { %8409 = vbcast.lane.b32.xlu0 %v8399_v46, 272  ;;  %6982 = vmatmul.mubr.f32.vlgmr.msra.gmra.mrb[128].mxu1 %v17752_v50  ;;  %v5768_v53 = vmax.f32 %v4785_v21, 0.0  ;;  %v4789_v37 = vpop.f32.mrb[94].mxu0  ;;  %v17783_v50 = vpack.c.bf16 %v5829_v2, %v5765_v20 }
 0x2a2   :  { %7611 = vmatprep.mubr.f32.mxu1 %v17437_v57  ;;  %v5831_v46 = vmax.f32 %v4789_v37, 0.0  ;;  %v4791_v52 = vpop.f32.mrb[95].mxu0  ;;  %v17786_v57 = vpack.c.bf16 %v5830_v59, %v5766_v11  ;;  %v17795_v37 = vpop.permute.xlu1 %8147  ;;  %v17807_v59 = vrot.slane %v17762_v0, %v17471_v49 }
 0x2a3   :  { %v5832_v63 = vmax.f32 %v4791_v52, 0.0  ;;  %23787 = vst [vmem:[#allocation105_spill] sm:$0xff] %v17795_v37  ;;  %v17797_v20 = vpop.permute.xlu0 %8143 }
 0x2a4   :  { %8424 = vbcast.lane.b32.xlu1 %v8418_v29, 264  ;;  %v17789_v28 = vpack.c.bf16 %v5831_v46, %v5767_v10  ;;  %23788 = vst [vmem:[#allocation63_spill] sm:$0xff] %v17797_v20 }
 0x2a5   :  { %8420 = vbcast.lane.b32.xlu0 %v8418_v29, 256  ;;  %v17793_v3 = vpack.c.bf16 %v5832_v63, %v5768_v53 }
 0x2a6   :  { %v4860_v21 = vpop.f32.mrb[88].mxu1  ;;  %v17803_v22 = vpop.permute.xlu1 %8158 }
 0x2a7   :  { %11819 = vmatpush1.bf16.xpose.msra.mxu0 %v17642_v33  ;;  %v4862_v33 = vpop.f32.mrb[89].mxu1  ;;  %23789 = vst [vmem:[#allocation5_spill] sm:$0xff] %v17803_v22  ;;  %v17809_v63 = vpop.permute.xlu0 %8154 }
 0x2a8   :  { %11821 = vmatprep.subr.bf16.mxu0 %v17659_v18  ;;  %8432 = vbcast.lane.b32.xlu1 %v8418_v29, 280  ;;  %v5641_v18 = vmax.f32 %v4860_v21, 0.0  ;;  %v5642_v10 = vmax.f32 %v4862_v33, 0.0  ;;  %23790 = vst [vmem:[#allocation7_spill] sm:$0xff] %v17809_v63 }
 0x2a9   :  { %8428 = vbcast.lane.b32.xlu0 %v8418_v29, 272  ;;  %v4949_v52 = vpop.f32.mrb[96].mxu0 }
 0x2aa   :  { %v4951_v11 = vpop.f32.mrb[97].mxu0  ;;  %v4866_v2 = vpop.f32.mrb[90].mxu1 }
 0x2ab   :  { %v5705_v53 = vmax.f32 %v4866_v2, 0.0  ;;  %v4868_v29 = vpop.f32.mrb[91].mxu1  ;;  %v5644_v2 = vmax.f32 %v4951_v11, 0.0 }
 0x2ac   :  { %8443 = vbcast.lane.b32.xlu1 %v8437_v32, 264 }
 0x2ad   :  { %8439 = vbcast.lane.b32.xlu0 %v8437_v32, 256  ;;  %v4955_v46 = vpop.f32.mrb[98].mxu0 }
 0x2ae   :  { %7052 = vmatmul.mubr.f32.vlgmr.msra.gmra.mrb[130].mxu0 %v17463_v4  ;;  %v5706_v4 = vmax.f32 %v4868_v29, 0.0  ;;  %v5707_v21 = vmax.f32 %v4955_v46, 0.0  ;;  %v4957_v33 = vpop.f32.mrb[99].mxu0  ;;  %v17826_v46 = vpop.permute.xlu1 %8166 }
 0x2af   :  { %11823 = vmatpush1.bf16.xpose.msra.mxu0 %v17656_v62  ;;  %7121 = vmatprep.mubr.f32.mxu0 %v17468_v44  ;;  %v5643_v62 = vmax.f32 %v4949_v52, 0.0  ;;  %v17811_v44 = vpack.c.bf16 %v5705_v53, %v5641_v18  ;;  %v5708_v37 = vmax.f32 %v4957_v33, 0.0  ;;  %23792 = vst [vmem:[#allocation88_spill] sm:$0xff] %v17826_v46  ;;  %v17835_v33 = vrot.slane %v17762_v0, %v17486_v25 }
 0x2b0   :  { %11825 = vmatprep.subr.bf16.mxu0 %v17685_v42  ;;  %8451 = vbcast.lane.b32.xlu1 %v8437_v32, 280  ;;  %v17816_v42 = vld [vmem:[%s22810_s3 + $0x18] sm:$0xff]  ;;  %v17818_v20 = vpack.c.bf16 %v5706_v4, %v5642_v10  ;;  %v4872_v22 = vpop.f32.mrb[92].mxu1  ;;  %v17829_v10 = vpop.permute.xlu0 %8162 }
 0x2b1   :  { %8447 = vbcast.lane.b32.xlu0 %v8437_v32, 272  ;;  %23791 = vst [vmem:[#allocation87_spill] sm:$0xff] %v17811_v44  ;;  %v11878_v58 = vpack.c.bf16 %v5707_v21, %v5643_v62  ;;  %v11876_v29 = vpack.c.bf16 %v5708_v37, %v5644_v2  ;;  %v4961_v32 = vpop.f32.mrb[100].mxu0  ;;  %v4874_v52 = vpop.f32.mrb[93].mxu1  ;;  %v17823_v18 = vrot.slane %v17816_v42, %v17440_v45  ;;  %v5769_v11 = vmax.f32 %v4872_v22, 0.0 }
 0x2b2   :  { %v4963_v53 = vpop.f32.mrb[101].mxu0  ;;  %23793 = vst [vmem:[#allocation6_spill] sm:$0xff] %v17829_v10  ;;  %v5770_v37 = vmax.f32 %v4874_v52, 0.0  ;;  %v17842_v63 = vpop.permute.xlu1 %8177 }
 0x2b3   :  { %11877 = vmatprep.subr.bf16.mxu1 %v11876_v29 }
 0x2b4   :  { %8462 = vbcast.lane.b32.xlu1 %v17807_v59, 264  ;;  %11879 = vmatpush1.bf16.xpose.msra.mxu1 %v11878_v58  ;;  %v4878_v4 = vpop.f32.mrb[94].mxu1  ;;  %v5772_v58 = vmax.f32 %v4963_v53, 0.0  ;;  %v17844_v44 = vpop.permute.xlu0 %8173 }
 0x2b5   :  { %8458 = vbcast.lane.b32.xlu0 %v17807_v59, 256  ;;  %v4967_v62 = vpop.f32.mrb[102].mxu0  ;;  %v5833_v21 = vmax.f32 %v4878_v4, 0.0  ;;  %v4880_v45 = vpop.f32.mrb[95].mxu1 }
 0x2b6   :  { %v5835_v22 = vmax.f32 %v4967_v62, 0.0  ;;  %v4969_v2 = vpop.f32.mrb[103].mxu0  ;;  %v5834_v29 = vmax.f32 %v4880_v45, 0.0 }
 0x2b7   :  { %11827 = vmatpush1.bf16.xpose.msra.mxu0 %v17681_v61  ;;  %v5771_v61 = vmax.f32 %v4961_v32, 0.0  ;;  %v5836_v10 = vmax.f32 %v4969_v2, 0.0  ;;  %v17849_v32 = vrot.slane %v17816_v42, %v17471_v49  ;;  %v17859_v49 = vrot.slane %v17762_v0, %v17512_v48 }
 0x2b8   :  { %11829 = vmatprep.subr.bf16.mxu0 %v17666_v19  ;;  %8595 = vbcast.lane.b32.xlu1 %v17823_v18, 264  ;;  %v17838_v19 = vpack.c.bf16 %v5833_v21, %v5769_v11  ;;  %v17840_v46 = vpack.c.bf16 %v5834_v29, %v5770_v37  ;;  %v5038_v4 = vpop.f32.mrb[96].mxu1  ;;  %v17864_v45 = vpop.permute.xlu0 %8181  ;;  %v17869_v2 = vrot.slane %v17816_v42, %v17420_v56 }
 0x2b9   :  { %8591 = vbcast.lane.b32.xlu0 %v17823_v18, 256  ;;  %v11882_v52 = vpack.c.bf16 %v5835_v22, %v5771_v61  ;;  %v11880_v7 = vpack.c.bf16 %v5836_v10, %v5772_v58  ;;  %v5040_v17 = vpop.f32.mrb[97].mxu1  ;;  %v5645_v53 = vmax.f32 %v5038_v4, 0.0  ;;  %23795 = vst [vmem:[#allocation22_spill] sm:$0xff] %v17864_v45  ;;  %v13013_v4 = vld [vmem:[%s22811_s2] sm:$0xff] }
 0x2ba   :  { %v5646_v11 = vmax.f32 %v5040_v17, 0.0 }
 0x2bb   :  { %11881 = vmatprep.subr.bf16.mxu1 %v11880_v7  ;;  %v17861_v7 = vpop.permute.xlu1 %8185 }
 0x2bc   :  { %8481 = vbcast.lane.b32.xlu1 %v17835_v33, 264  ;;  %11883 = vmatpush1.bf16.xpose.msra.mxu1 %v11882_v52  ;;  %v5044_v10 = vpop.f32.mrb[98].mxu1  ;;  %23794 = vst [vmem:[#allocation26_spill] sm:$0xff] %v17861_v7 }
 0x2bd   :  { %8477 = vbcast.lane.b32.xlu0 %v17835_v33, 256  ;;  %v5709_v37 = vmax.f32 %v5044_v10, 0.0  ;;  %v5046_v62 = vpop.f32.mrb[99].mxu1  ;;  %v5127_v21 = vpop.f32.mrb[104].mxu0 }
 0x2be   :  { %7122 = vmatmul.mubr.f32.vlgmr.msra.gmra.mrb[130].mxu0 %v17499_v1  ;;  %v5710_v1 = vmax.f32 %v5046_v62, 0.0  ;;  %v5129_v17 = vpop.f32.mrb[105].mxu0 }
 0x2bf   :  { %11831 = vmatpush1.bf16.xpose.msra.mxu0 %v17662_v39  ;;  %7191 = vmatprep.mubr.f32.mxu0 %v17507_v27  ;;  %v11886_v39 = vpack.c.bf16 %v5709_v37, %v5645_v53  ;;  %v5647_v27 = vmax.f32 %v5127_v21, 0.0  ;;  %v5648_v29 = vmax.f32 %v5129_v17, 0.0 }
 0x2c0   :  { %11833 = vmatprep.subr.bf16.mxu0 %v17692_v41  ;;  %8614 = vbcast.lane.b32.xlu1 %v17849_v32, 264  ;;  %v11884_v41 = vpack.c.bf16 %v5710_v1, %v5646_v11  ;;  %v5050_v61 = vpop.f32.mrb[100].mxu1  ;;  %v17877_v1 = vpop.permute.xlu1 %8196 }
 0x2c1   :  { %8610 = vbcast.lane.b32.xlu0 %v17849_v32, 256  ;;  %v5052_v22 = vpop.f32.mrb[101].mxu1  ;;  %v5133_v58 = vpop.f32.mrb[106].mxu0  ;;  %v5773_v52 = vmax.f32 %v5050_v61, 0.0 }
 0x2c2   :  { %11885 = vmatprep.subr.bf16.mxu1 %v11884_v41  ;;  %v5711_v53 = vmax.f32 %v5133_v58, 0.0  ;;  %v5135_v11 = vpop.f32.mrb[107].mxu0  ;;  %v5774_v10 = vmax.f32 %v5052_v22, 0.0  ;;  %v17882_v61 = vpop.permute.xlu0 %8192 }
 0x2c3   :  { %7612 = vmatmul.mubr.f32.vlgmr.msra.gmra.mrb[130].mxu1 %v13013_v4  ;;  %v5712_v62 = vmax.f32 %v5135_v11, 0.0 }
 0x2c4   :  { %8496 = vbcast.lane.b32.xlu1 %v17859_v49, 256  ;;  %11887 = vmatpush1.bf16.xpose.msra.mxu1 %v11886_v39  ;;  %v11894_v41 = vpack.c.bf16 %v5711_v53, %v5647_v27  ;;  %v17889_v53 = vrot.slane %v17816_v42, %v17486_v25 }
 0x2c5   :  { %8466 = vbcast.lane.b32.xlu0 %v17807_v59, 272  ;;  %v5056_v37 = vpop.f32.mrb[102].mxu1  ;;  %v11892_v39 = vpack.c.bf16 %v5712_v62, %v5648_v29  ;;  %v17892_v62 = vpop.permute.xlu1 %8204 }
 0x2c6   :  { %v5837_v21 = vmax.f32 %v5056_v37, 0.0  ;;  %v5058_v17 = vpop.f32.mrb[103].mxu1  ;;  %v5139_v58 = vpop.f32.mrb[108].mxu0  ;;  %23796 = vst [vmem:[#allocation31_spill] sm:$0xff] %v17892_v62 }
 0x2c7   :  { %11835 = vmatpush1.bf16.xpose.msra.mxu0 %v17688_v15  ;;  %v13014_v15 = vld [vmem:[%s22811_s2 + $0x18] sm:$0xff]  ;;  %v5838_v22 = vmax.f32 %v5058_v17, 0.0  ;;  %v5141_v4 = vpop.f32.mrb[109].mxu0  ;;  %v5775_v45 = vmax.f32 %v5139_v58, 0.0 }
 0x2c8   :  { %11837 = vmatprep.subr.bf16.mxu0 %v17710_v13  ;;  %7681 = vmatprep.mubr.f32.mxu1 %v13014_v15  ;;  %v11890_v13 = vpack.c.bf16 %v5837_v21, %v5773_v52  ;;  %v5776_v17 = vmax.f32 %v5141_v4, 0.0  ;;  %v17896_v15 = vpop.permute.xlu0 %8200 }
 0x2c9   :  { %8572 = vbcast.lane.b32.xlu1 %v17869_v2, 256  ;;  %8500 = vbcast.lane.b32.xlu0 %v17859_v49, 264  ;;  %v11888_v11 = vpack.c.bf16 %v5838_v22, %v5774_v10  ;;  %v5216_v37 = vpop.f32.mrb[104].mxu1  ;;  %23797 = vst [vmem:[#allocation68_spill] sm:$0xff] %v17896_v15 }
 0x2ca   :  { %v5218_v27 = vpop.f32.mrb[105].mxu1  ;;  %v5145_v29 = vpop.f32.mrb[110].mxu0  ;;  %v5649_v21 = vmax.f32 %v5216_v37, 0.0 }
 0x2cb   :  { %11889 = vmatprep.subr.bf16.mxu1 %v11888_v11  ;;  %v5839_v52 = vmax.f32 %v5145_v29, 0.0  ;;  %v5147_v10 = vpop.f32.mrb[111].mxu0  ;;  %v5650_v22 = vmax.f32 %v5218_v27, 0.0  ;;  %v17907_v27 = vpop.permute.xlu1 %8215 }
 0x2cc   :  { %11891 = vmatpush1.bf16.xpose.msra.mxu1 %v11890_v13  ;;  %v5840_v25 = vmax.f32 %v5147_v10, 0.0 }
 0x2cd   :  { %8599 = vbcast.lane.b32.xlu1 %v17823_v18, 272  ;;  %v5222_v58 = vpop.f32.mrb[106].mxu1  ;;  %11893 = vmatprep.subr.bf16.mxu1 %v11892_v39 }
 0x2ce   :  { %7192 = vmatmul.mubr.f32.vlgmr.msra.gmra.mrb[130].mxu0 %v17543_v51  ;;  %v11898_v51 = vpack.c.bf16 %v5839_v52, %v5775_v45  ;;  %v5713_v4 = vmax.f32 %v5222_v58, 0.0  ;;  %v5224_v11 = vpop.f32.mrb[107].mxu1  ;;  %v11896_v37 = vpack.c.bf16 %v5840_v25, %v5776_v17  ;;  %8576 = vbcast.lane.b32.xlu0 %v17869_v2, 264  ;;  %v17909_v45 = vpop.permute.xlu0 %8211  ;;  %v13015_v17 = vld [vmem:[%s22811_s2 + $0x10] sm:$0xff]  ;;  %v13016_v58 = vld [vmem:[%s22811_s2 + $0x28] sm:$0xff] }
 0x2cf   :  { %11839 = vmatpush1.bf16.xpose.msra.mxu0 %v17702_v40  ;;  %7261 = vmatprep.mubr.f32.mxu0 %v17549_v12  ;;  %v17902_v40 = vrot.slane %v17762_v0, %v17531_v36  ;;  %v5714_v12 = vmax.f32 %v5224_v11, 0.0 }
 0x2d0   :  { %11841 = vmatprep.subr.bf16.mxu0 %v17733_v43  ;;  %v17905_v13 = vpack.c.bf16 %v5713_v4, %v5649_v21 }
 0x2d1   :  { %8633 = vbcast.lane.b32.xlu1 %v17889_v53, 264  ;;  %v11900_v43 = vpack.c.bf16 %v5714_v12, %v5650_v22  ;;  %v5228_v29 = vpop.f32.mrb[108].mxu1 }
 0x2d2   :  { %v5230_v39 = vpop.f32.mrb[109].mxu1  ;;  %8629 = vbcast.lane.b32.xlu0 %v17889_v53, 256  ;;  %v5777_v10 = vmax.f32 %v5228_v29, 0.0 }
 0x2d3   :  { %7682 = vmatmul.mubr.f32.vlgmr.msra.gmra.mrb[130].mxu1 %v13015_v17  ;;  %v5778_v25 = vmax.f32 %v5230_v39, 0.0  ;;  %v17921_v17 = vpop.permute.xlu1 %8223  ;;  %v17931_v39 = vpop.permute.xlu0 %8219 }
 0x2d4   :  { %v5305_v52 = vpop.f32.mrb[112].mxu0  ;;  %11895 = vmatpush1.bf16.xpose.msra.mxu1 %v11894_v41  ;;  %7751 = vmatprep.mubr.f32.mxu1 %v13016_v58  ;;  %23798 = vst [vmem:[#allocation33_spill] sm:$0xff] %v17921_v17  ;;  %23799 = vst [vmem:[#allocation32_spill] sm:$0xff] %v17931_v39 }
 0x2d5   :  { %8515 = vbcast.lane.b32.xlu1 %v17902_v40, 256  ;;  %v5307_v21 = vpop.f32.mrb[113].mxu0  ;;  %v5234_v22 = vpop.f32.mrb[110].mxu1  ;;  %11897 = vmatprep.subr.bf16.mxu1 %v11896_v37  ;;  %v5651_v11 = vmax.f32 %v5305_v52, 0.0 }
 0x2d6   :  { %v5841_v4 = vmax.f32 %v5234_v22, 0.0  ;;  %v5652_v15 = vmax.f32 %v5307_v21, 0.0  ;;  %8485 = vbcast.lane.b32.xlu0 %v17835_v33, 272 }
 0x2d7   :  { %11843 = vmatpush1.bf16.xpose.msra.mxu0 %v17729_v5  ;;  %v5236_v5 = vpop.f32.mrb[111].mxu1 }
 0x2d8   :  { %11845 = vmatprep.subr.bf16.mxu0 %v17720_v26  ;;  %v5842_v12 = vmax.f32 %v5236_v5, 0.0  ;;  %v5311_v62 = vpop.f32.mrb[114].mxu0  ;;  %v17927_v26 = vrot.slane %v17816_v42, %v17512_v48  ;;  %v17929_v41 = vpack.c.bf16 %v5841_v4, %v5777_v10  ;;  %v17942_v4 = vpop.permute.xlu1 %8234 }
 0x2d9   :  { %8618 = vbcast.lane.b32.xlu1 %v17849_v32, 272  ;;  %v5715_v37 = vmax.f32 %v5311_v62, 0.0  ;;  %v5313_v29 = vpop.f32.mrb[115].mxu0 }
 0x2da   :  { %v11904_v52 = vpack.c.bf16 %v5842_v12, %v5778_v25  ;;  %v5716_v22 = vmax.f32 %v5313_v29, 0.0  ;;  %8519 = vbcast.lane.b32.xlu0 %v17902_v40, 264 }
 0x2db   :  { %v17933_v21 = vpack.c.bf16 %v5715_v37, %v5651_v11 }
 0x2dc   :  { %v17936_v58 = vpack.c.bf16 %v5716_v22, %v5652_v15  ;;  %11899 = vmatpush1.bf16.xpose.msra.mxu1 %v11898_v51 }
 0x2dd   :  { %8652 = vbcast.lane.b32.xlu1 %v17927_v26, 264  ;;  %11901 = vmatprep.subr.bf16.mxu1 %v11900_v43 }
 0x2de   :  { %7262 = vmatmul.mubr.f32.vlgmr.msra.gmra.mrb[130].mxu0 %v17591_v24  ;;  %v5394_v17 = vpop.f32.mrb[112].mxu1  ;;  %v17944_v24 = vpop.permute.xlu0 %8230  ;;  %8648 = vbcast.lane.b32.xlu0 %v17927_v26, 256 }
 0x2df   :  { %v5317_v5 = vpop.f32.mrb[116].mxu0  ;;  %11847 = vmatpush1.bf16.xpose.msra.mxu0 %v17713_v30  ;;  %7331 = vmatprep.mubr.f32.mxu0 %v17597_v9  ;;  %v5396_v62 = vpop.f32.mrb[113].mxu1  ;;  %v5653_v25 = vmax.f32 %v5394_v17, 0.0  ;;  %v17950_v9 = vrot.slane %v17762_v0, %v17554_v23 }
 0x2e0   :  { %v5319_v48 = vpop.f32.mrb[117].mxu0  ;;  %11849 = vmatprep.subr.bf16.mxu0 %v17738_v54  ;;  %v5779_v10 = vmax.f32 %v5317_v5, 0.0  ;;  %v5654_v12 = vmax.f32 %v5396_v62, 0.0 }
 0x2e1   :  { %v5780_v15 = vmax.f32 %v5319_v48, 0.0  ;;  %8504 = vbcast.lane.b32.xlu1 %v17859_v49, 272 }
 0x2e2   :  { %v5400_v30 = vpop.f32.mrb[114].mxu1  ;;  %8470 = vbcast.lane.b32.xlu0 %v17807_v59, 280 }
 0x2e3   :  { %v5323_v11 = vpop.f32.mrb[118].mxu0  ;;  %v5717_v43 = vmax.f32 %v5400_v30, 0.0  ;;  %v5402_v17 = vpop.f32.mrb[115].mxu1 }
 0x2e4   :  { %v5843_v54 = vmax.f32 %v5323_v11, 0.0  ;;  %v5325_v51 = vpop.f32.mrb[119].mxu0  ;;  %v5718_v29 = vmax.f32 %v5402_v17, 0.0  ;;  %v13017_v11 = vld [vmem:[%s22811_s2 + $0x20] sm:$0xff]  ;;  %v17966_v30 = vpop.permute.xlu1 %8242 }
 0x2e5   :  { %v5844_v37 = vmax.f32 %v5325_v51, 0.0  ;;  %v17954_v5 = vpack.c.bf16 %v5717_v43, %v5653_v25  ;;  %8538 = vbcast.lane.b32.xlu1 %v17950_v9, 264  ;;  %7752 = vmatmul.mubr.f32.vlgmr.msra.gmra.mrb[130].mxu1 %v13017_v11  ;;  %23800 = vst [vmem:[#allocation77_spill] sm:$0xff] %v17966_v30  ;;  %v13018_v25 = vld [vmem:[%s22811_s2 + $0x38] sm:$0xff] }
 0x2e6   :  { %v17952_v22 = vpack.c.bf16 %v5843_v54, %v5779_v10  ;;  %v17959_v62 = vpack.c.bf16 %v5718_v29, %v5654_v12  ;;  %v5406_v39 = vpop.f32.mrb[116].mxu1  ;;  %11903 = vmatpush1.bf16.xpose.msra.mxu1 %v17905_v13  ;;  %7821 = vmatprep.mubr.f32.mxu1 %v13018_v25 }
 0x2e7   :  { %v17957_v48 = vpack.c.bf16 %v5844_v37, %v5780_v15  ;;  %11851 = vmatpush1.bf16.xpose.msra.mxu0 %v17736_v60  ;;  %v5408_v10 = vpop.f32.mrb[117].mxu1  ;;  %11905 = vmatprep.subr.bf16.mxu1 %v11904_v52  ;;  %v5781_v15 = vmax.f32 %v5406_v39, 0.0  ;;  %v17973_v60 = vpop.permute.xlu0 %8238  ;;  %v17983_v39 = vrot.slane %v17816_v42, %v17531_v36 }
 0x2e8   :  { %11853 = vmatprep.subr.bf16.mxu0 %v17765_v38  ;;  %23801 = vst [vmem:[#allocation27_spill] sm:$0xff] %v17973_v60  ;;  %v5782_v12 = vmax.f32 %v5408_v10, 0.0  ;;  %v17979_v37 = vpop.permute.xlu1 %8253  ;;  %8534 = vbcast.lane.b32.xlu0 %v17950_v9, 256 }
 0x2e9   :  { %8603 = vbcast.lane.b32.xlu1 %v17823_v18, 280  ;;  %23802 = vst [vmem:[#allocation92_spill] sm:$0xff] %v17979_v37 }
 0x2ea   :  { %v5412_v54 = vpop.f32.mrb[118].mxu1 }
 0x2eb   :  { %v5845_v51 = vmax.f32 %v5412_v54, 0.0  ;;  %v5414_v43 = vpop.f32.mrb[119].mxu1  ;;  %v17991_v18 = vpop.permute.xlu0 %8249 }
 0x2ec   :  { %v5846_v13 = vmax.f32 %v5414_v43, 0.0  ;;  %v5483_v17 = vpop.f32.mrb[120].mxu0  ;;  %23803 = vst [vmem:[#allocation17_spill] sm:$0xff] %v17991_v18  ;;  %8580 = vbcast.lane.b32.xlu0 %v17869_v2, 272  ;;  %v18000_v54 = vpop.permute.xlu1 %8261 }
 0x2ed   :  { %v17977_v38 = vpack.c.bf16 %v5845_v51, %v5781_v15  ;;  %v5485_v52 = vpop.f32.mrb[121].mxu0  ;;  %v5655_v59 = vmax.f32 %v5483_v17, 0.0  ;;  %8667 = vbcast.lane.b32.xlu1 %v17983_v39, 256  ;;  %23804 = vst [vmem:[#allocation11_spill] sm:$0xff] %v18000_v54 }
 0x2ee   :  { %7332 = vmatmul.mubr.f32.vlgmr.msra.gmra.mrb[130].mxu0 %v17632_v55  ;;  %v17986_v29 = vpack.c.bf16 %v5846_v13, %v5782_v12  ;;  %11907 = vmatpush1.bf16.xpose.msra.mxu1 %v17929_v41  ;;  %v5656_v11 = vmax.f32 %v5485_v52, 0.0 }
 0x2ef   :  { %11855 = vmatpush1.bf16.xpose.msra.mxu0 %v17755_v14  ;;  %7401 = vmatprep.mubr.f32.mxu0 %v17640_v6  ;;  %v5572_v10 = vpop.f32.mrb[120].mxu1 }
 0x2f0   :  { %11857 = vmatprep.subr.bf16.mxu0 %v17786_v57  ;;  %v5489_v36 = vpop.f32.mrb[122].mxu0  ;;  %11909 = vmatprep.subr.bf16.mxu1 %v17936_v58  ;;  %v5574_v15 = vpop.f32.mrb[121].mxu1  ;;  %v5657_v12 = vmax.f32 %v5572_v10, 0.0 }
 0x2f1   :  { %v5719_v55 = vmax.f32 %v5489_v36, 0.0  ;;  %v5491_v25 = vpop.f32.mrb[123].mxu0  ;;  %v5658_v57 = vmax.f32 %v5574_v15, 0.0  ;;  %8489 = vbcast.lane.b32.xlu1 %v17835_v33, 280  ;;  %8637 = vbcast.lane.b32.xlu0 %v17889_v53, 272 }
 0x2f2   :  { %v5720_v14 = vmax.f32 %v5491_v25, 0.0 }
 0x2f3   :  { %v17998_v6 = vpack.c.bf16 %v5719_v55, %v5655_v59  ;;  %v5578_v43 = vpop.f32.mrb[122].mxu1  ;;  %v18008_v59 = vrot.slane %v17762_v0, %v17575_v35  ;;  %v18016_v55 = vpop.permute.xlu0 %8257 }
 0x2f4   :  { %v18002_v41 = vpack.c.bf16 %v5720_v14, %v5656_v11  ;;  %v5495_v51 = vpop.f32.mrb[124].mxu0  ;;  %v5721_v13 = vmax.f32 %v5578_v43, 0.0  ;;  %v5580_v17 = vpop.f32.mrb[123].mxu1  ;;  %v13019_v11 = vld [vmem:[%s22811_s2 + $0x30] sm:$0xff]  ;;  %23805 = vst [vmem:[#allocation59_spill] sm:$0xff] %v18016_v55 }
 0x2f5   :  { %v5497_v58 = vpop.f32.mrb[125].mxu0  ;;  %v5722_v52 = vmax.f32 %v5580_v17, 0.0  ;;  %7822 = vmatmul.mubr.f32.vlgmr.msra.gmra.mrb[130].mxu1 %v13019_v11  ;;  %v5783_v36 = vmax.f32 %v5495_v51, 0.0  ;;  %8553 = vbcast.lane.b32.xlu1 %v18008_v59, 256 }
 0x2f6   :  { %v18014_v10 = vpack.c.bf16 %v5721_v13, %v5657_v12  ;;  %11911 = vmatpush1.bf16.xpose.msra.mxu1 %v17933_v21  ;;  %v5784_v33 = vmax.f32 %v5497_v58, 0.0  ;;  %8671 = vbcast.lane.b32.xlu0 %v17983_v39, 264 }
 0x2f7   :  { %11859 = vmatpush1.bf16.xpose.msra.mxu0 %v17783_v50  ;;  %v18020_v25 = vpack.c.bf16 %v5722_v52, %v5658_v57  ;;  %v5584_v15 = vpop.f32.mrb[124].mxu1  ;;  %11913 = vmatprep.subr.bf16.mxu1 %v17957_v48  ;;  %v13020_v50 = vld [vmem:[%s22811_s2 + $0x48] sm:$0xff]  ;;  %v18030_v57 = vpop.permute.xlu1 %8272 }
 0x2f8   :  { %11861 = vmatprep.subr.bf16.mxu0 %v17775_v8  ;;  %v5501_v0 = vpop.f32.mrb[126].mxu0  ;;  %7891 = vmatprep.mubr.f32.mxu1 %v13020_v50  ;;  %v5586_v51 = vpop.f32.mrb[125].mxu1  ;;  %v5785_v21 = vmax.f32 %v5584_v15, 0.0  ;;  %v18038_v50 = vrot.slane %v17816_v42, %v17554_v23 }
 0x2f9   :  { %v5847_v14 = vmax.f32 %v5501_v0, 0.0  ;;  %v5503_v12 = vpop.f32.mrb[127].mxu0  ;;  %v5786_v48 = vmax.f32 %v5586_v51, 0.0  ;;  %v18033_v0 = vpop.permute.xlu0 %8268  ;;  %8622 = vbcast.lane.b32.xlu1 %v17849_v32, 280 }
 0x2fa   :  { %v5848_v43 = vmax.f32 %v5503_v12, 0.0  ;;  %8523 = vbcast.lane.b32.xlu0 %v17902_v40, 272 }
 0x2fb   :  { %v18028_v8 = vpack.c.bf16 %v5847_v14, %v5783_v36 }
 0x2fc   :  { %v11928_v13 = vpack.c.bf16 %v5848_v43, %v5784_v33  ;;  %v5590_v58 = vpop.f32.mrb[126].mxu1  ;;  %v18047_v33 = vpop.permute.xlu1 %8280 }
 0x2fd   :  { %v5849_v17 = vmax.f32 %v5590_v58, 0.0  ;;  %v5592_v52 = vpop.f32.mrb[127].mxu1  ;;  %23806 = vst [vmem:[#allocation93_spill] sm:$0xff] %v18047_v33  ;;  %8686 = vbcast.lane.b32.xlu1 %v18038_v50, 256  ;;  %v18051_v23 = vpop.permute.xlu0 %8276  ;;  %v23962_v33 = vmov 0 }
 0x2fe   :  { %7402 = vmatmul.mubr.f32.vlgmr.msra.gmra.mrb[130].mxu0 %v17672_v47  ;;  %v5850_v11 = vmax.f32 %v5592_v52, 0.0  ;;  %11915 = vmatpush1.bf16.xpose.msra.mxu1 %v17952_v22 }
 0x2ff   :  { %11863 = vmatpush1.bf16.xpose.msra.mxu0 %v17771_v16  ;;  %7471 = vmatprep.mubr.f32.mxu0 %v17678_v34  ;;  %v18042_v36 = vpack.c.bf16 %v5849_v17, %v5785_v21  ;;  %v13021_v34 = vld [vmem:[%s22811_s2 + $0x40] sm:$0xff] }
 0x300   :  { %11865 = vmatprep.subr.bf16.mxu0 %v17793_v3  ;;  %v11936_v47 = vpack.c.bf16 %v5850_v11, %v5786_v48  ;;  %11917 = vmatprep.subr.bf16.mxu1 %v17959_v62  ;;  %v18059_v16 = vpop.permute.xlu1 %8291  ;;  %v13022_v3 = vld [vmem:[%s22811_s2 + $0x58] sm:$0xff] }
 0x301   :  { %8557 = vbcast.lane.b32.xlu0 %v18008_v59, 264  ;;  %8508 = vbcast.lane.b32.xlu1 %v17859_v49, 280  ;;  %v18067_v32 = vpop.permute.xlu0 %8287  ;;  %v23809_v49 = vld [vmem:[#allocation25_spill] sm:$0xff] }
 0x305   :  { %7892 = vmatmul.mubr.f32.vlgmr.msra.gmra.mrb[130].mxu1 %v13021_v34  ;;  %8656 = vbcast.lane.b32.xlu0 %v17927_v26, 272  ;;  %v18079_v22 = vpop.permute.xlu0 %8295 }
 0x306   :  { %11919 = vmatpush1.bf16.xpose.msra.mxu1 %v17954_v5  ;;  %7961 = vmatprep.mubr.f32.mxu1 %v13022_v3  ;;  %23810 = vst [vmem:[#allocation60_spill] sm:$0xff] %v18079_v22 }
 0x307   :  { %11867 = vmatpush1.bf16.xpose.msra.mxu0 %v17789_v28  ;;  %11921 = vmatprep.subr.bf16.mxu1 %v17986_v29  ;;  %v18071_v28 = vpop.permute.xlu1 %8299 }
 0x308   :  { %11869 = vmatprep.subr.bf16.mxu0 %v17818_v20  ;;  %8584 = vbcast.lane.b32.xlu1 %v17869_v2, 280  ;;  %23807 = vst [vmem:[#allocation62_spill] sm:$0xff] %v18071_v28  ;;  %v23808_v20 = vld [vmem:[#allocation87_spill] sm:$0xff]  ;;  %v8703_v2 = vrot.slane %v17816_v42, %v17575_v35  ;;  %v23959_v28 = vmov 0 }
 0x309   :  { %8690 = vbcast.lane.b32.xlu0 %v18038_v50, 264  ;;  %v18088_v62 = vpop.permute.xlu0 %8306  ;;  %v13024_v35 = vld [vmem:[%s22811_s2 + $0x68] sm:$0xff] }
 0x30b   :  { %v18086_v5 = vpop.permute.xlu1 %8310 }
 0x30c   :  { %8675 = vbcast.lane.b32.xlu1 %v17983_v39, 272 }
 0x30d   :  { %8542 = vbcast.lane.b32.xlu0 %v17950_v9, 272 }
 0x30e   :  { %7472 = vmatmul.mubr.f32.vlgmr.msra.gmra.mrb[130].mxu0 %v17708_v31  ;;  %11923 = vmatpush1.bf16.xpose.msra.mxu1 %v17977_v38 }
 0x30f   :  { %11871 = vmatpush1.bf16.xpose.msra.mxu0 %v23808_v20  ;;  %7541 = vmatprep.mubr.f32.mxu0 %v23809_v49  ;;  %v18099_v42 = vpop.permute.xlu1 %8318  ;;  %v23831_v20 = vld [vmem:[#allocation2_spill] sm:$0xff] }
 0x310   :  { %11873 = vmatprep.subr.bf16.mxu0 %v17840_v46  ;;  %11925 = vmatprep.subr.bf16.mxu1 %v18002_v41  ;;  %v13023_v46 = vld [vmem:[%s22811_s2 + $0x50] sm:$0xff]  ;;  %23811 = vst [vmem:[#allocation78_spill] sm:$0xff] %v18099_v42 }
 0x311   :  { %8709 = vbcast.lane.b32.xlu1 %v8703_v2, 264  ;;  %8641 = vbcast.lane.b32.xlu0 %v17889_v53, 280  ;;  %v18102_v53 = vpop.permute.xlu0 %8314 }
 0x312   :  { %23812 = vst [vmem:[#allocation36_spill] sm:$0xff] %v18102_v53 }
 0x313   :  { %v18107_v38 = vpop.permute.xlu1 %8329 }
 0x315   :  { %7962 = vmatmul.mubr.f32.vlgmr.msra.gmra.mrb[130].mxu1 %v13023_v46  ;;  %8561 = vbcast.lane.b32.xlu1 %v18008_v59, 272  ;;  %v18112_v29 = vpop.permute.xlu0 %8325 }
 0x316   :  { %11927 = vmatpush1.bf16.xpose.msra.mxu1 %v17998_v6  ;;  %8031 = vmatprep.mubr.f32.mxu1 %v13024_v35 }
 0x317   :  { %11875 = vmatpush1.bf16.xpose.msra.mxu0 %v17838_v19  ;;  %11929 = vmatprep.subr.bf16.mxu1 %v11928_v13  ;;  %v23813_v19 = vld [vmem:[#allocation97_spill] sm:$0xff]  ;;  %v18115_v6 = vpop.permute.xlu1 %8337 }
 0x318   :  { %8705 = vbcast.lane.b32.xlu0 %v8703_v2, 256  ;;  %23814 = vst [vmem:[#allocation30_spill] sm:$0xff] %v18115_v6  ;;  %v23935_v6 = vmov 0 }
 0x319   :  { %8694 = vbcast.lane.b32.xlu1 %v18038_v50, 272 }
 0x31c   :  { %8527 = vbcast.lane.b32.xlu0 %v17902_v40, 280  ;;  %v18122_v40 = vpop.permute.xlu0 %8333 }
 0x31d   :  { %8679 = vbcast.lane.b32.xlu1 %v17983_v39, 280  ;;  %23815 = vst [vmem:[#allocation39_spill] sm:$0xff] %v18122_v40  ;;  %v18124_v39 = vpop.permute.xlu1 %8348  ;;  %v23938_v40 = vmov 0 }
 0x31e   :  { %7542 = vmatmul.mubr.f32.vlgmr.msra.gmra.mrb[130].mxu0 %v23813_v19  ;;  %11931 = vmatpush1.bf16.xpose.msra.mxu1 %v18028_v8 }
 0x31f   :  { %11933 = vmatprep.subr.bf16.mxu1 %v18020_v25 }
 0x320   :  { %8660 = vbcast.lane.b32.xlu0 %v17927_v26, 280  ;;  %v18126_v26 = vpop.permute.xlu0 %8344 }
 0x321   :  { %8565 = vbcast.lane.b32.xlu1 %v18008_v59, 280 }
 0x324   :  { %8546 = vbcast.lane.b32.xlu0 %v17950_v9, 280  ;;  %v18130_v9 = vpop.permute.xlu1 %8356 }
 0x325   :  { %8032 = vmatmul.mubr.f32.vlgmr.msra.gmra.mrb[130].mxu1 %v17708_v31  ;;  %8717 = vbcast.lane.b32.xlu1 %v8703_v2, 280  ;;  %23816 = vst [vmem:[#allocation13_spill] sm:$0xff] %v18130_v9  ;;  %v18132_v31 = vpop.permute.xlu0 %8352 }
 0x326   :  { %11935 = vmatpush1.bf16.xpose.msra.mxu1 %v18014_v10  ;;  %8101 = vmatprep.mubr.f32.mxu1 %v23809_v49  ;;  %23817 = vst [vmem:[#allocation61_spill] sm:$0xff] %v18132_v31 }
 0x327   :  { %11937 = vmatprep.subr.bf16.mxu1 %v11936_v47 }
 0x328   :  { %8713 = vbcast.lane.b32.xlu0 %v8703_v2, 272  ;;  %v18135_v41 = vpop.permute.xlu1 %8367 }
 0x329   :  { %v18137_v59 = vpop.permute.xlu0 %8363 }
 0x32c   :  { %8698 = vbcast.lane.b32.xlu0 %v18038_v50, 280  ;;  %v18139_v10 = vpop.permute.xlu1 %8375  ;;  %v13035_v50 = vmov 1966171168  }
 0x32d   :  { %23818 = vst [vmem:[#allocation14_spill] sm:$0xff] %v18139_v10  ;;  %v18141_v25 = vpop.permute.xlu0 %8371 }
 0x32e   :  { %11939 = vmatpush1.bf16.xpose.msra.mxu1 %v18042_v36  ;;  %23819 = vst [vmem:[#allocation57_spill] sm:$0xff] %v18141_v25  ;;  %v8725_v36 = vunpack.c.l.s4 %v13035_v50 }
 0x330   :  { %v18143_v15 = vpop.permute.xlu1 %8386  ;;  %v8726_v34 = vunpack.c.0.s8 %v8725_v36 }
 0x331   :  { %v18145_v14 = vpop.permute.xlu0 %8382  ;;  %vm9264_vm13 = vcmp.ge.s32.totalorder %v18143_v15, 1  ;;  %vm9904_vm15 = vcmp.eq.s32.totalorder %v18143_v15, 2 }
 0x332   :  { %v18174_v49 = vsub.s32 %v8726_v34, %v23831_v20  ;;  %vm9263_vm0 = vcmp.ge.s32.totalorder %v18145_v14, 1  ;;  %vm9903_vm1 = vcmp.eq.s32.totalorder %v18145_v14, 2 }
 0x334   :  { %v18147_v12 = vpop.permute.xlu1 %8394 }
 0x335   :  { %8102 = vmatmul.mubr.f32.vlgmr.msra.gmra.mrb[130].mxu1 %v23813_v19  ;;  %23820 = vst [vmem:[#allocation34_spill] sm:$0xff] %v18147_v12  ;;  %v18149_v51 = vpop.permute.xlu0 %8390  ;;  %v23897_v12 = vmov 0 }
 0x336   :  { %23821 = vst [vmem:[#allocation71_spill] sm:$0xff] %v18149_v51  ;;  %v23900_v51 = vmov 0 }
 0x338   :  { %v18151_v43 = vpop.permute.xlu1 %8405 }
 0x339   :  { %v18153_v8 = vpop.permute.xlu0 %8401  ;;  %vm9268_vm7 = vcmp.ge.s32.totalorder %v18151_v43, 1  ;;  %vm9908_vm8 = vcmp.eq.s32.totalorder %v18151_v43, 2 }
 0x33c   :  { %v18155_v21 = vpop.permute.xlu1 %8413 }
 0x33d   :  { %23822 = vst [vmem:[#allocation44_spill] sm:$0xff] %v18155_v21  ;;  %v18157_v13 = vpop.permute.xlu0 %8409 }
 0x33e   :  { %23823 = vst [vmem:[#allocation79_spill] sm:$0xff] %v18157_v13 }
 0x340   :  { %v18159_v48 = vpop.permute.xlu1 %8424 }
 0x341   :  { %23824 = vst [vmem:[#allocation35_spill] sm:$0xff] %v18159_v48  ;;  %v18161_v58 = vpop.permute.xlu0 %8420 }
 0x342   :  { %23825 = vst [vmem:[#allocation45_spill] sm:$0xff] %v18161_v58  ;;  %v23893_v58 = vmov 0 }
 0x344   :  { %v18163_v17 = vpop.permute.xlu1 %8432 }
 0x345   :  { %23826 = vst [vmem:[#allocation9_spill] sm:$0xff] %v18163_v17  ;;  %v18165_v52 = vpop.permute.xlu0 %8428 }
 0x346   :  { %23827 = vst [vmem:[#allocation84_spill] sm:$0xff] %v18165_v52 }
 0x348   :  { %v18167_v11 = vpop.permute.xlu1 %8443 }
 0x349   :  { %23828 = vst [vmem:[#allocation37_spill] sm:$0xff] %v18167_v11  ;;  %v18169_v47 = vpop.permute.xlu0 %8439 }
 0x34a   :  { %23829 = vst [vmem:[#allocation66_spill] sm:$0xff] %v18169_v47 }
 0x34c   :  { %v18171_v3 = vpop.permute.xlu1 %8451 }
 0x34d   :  { %23830 = vst [vmem:[#allocation65_spill] sm:$0xff] %v18171_v3  ;;  %v18176_v2 = vpop.permute.xlu0 %8447 }
 0x34e   :  { %23832 = vst [vmem:[#allocation38_spill] sm:$0xff] %v18176_v2 }
 0x350   :  { %v18180_v35 = vpop.permute.xlu1 %8462 }
 0x351   :  { %23834 = vst [vmem:[#allocation95_spill] sm:$0xff] %v18180_v35  ;;  %v18186_v37 = vpop.permute.xlu0 %8458 }
 0x352   :  { %23835 = vst [vmem:[#allocation48_spill] sm:$0xff] %v18186_v37 }
 0x354   :  { %v18192_v13 = vpop.permute.xlu1 %8595 }
 0x355   :  { %23837 = vst [vmem:[#allocation96_spill] sm:$0xff] %v18192_v13 }
 0x371   :  { %v18178_v46 = vpop.f32.mrb[128].mxu0 }
 0x372   :  { %23833 = vst [vmem:[#allocation40_spill] sm:$0xff] %v18178_v46  ;;  %v6425_v19 = vpop.f32.mrb[129].mxu0  ;;  %v8730_v18 = vrot.slane %v18178_v46, %v18174_v49  ;;  %v8723_v50 = vcombine.high %v18178_v46, %v18178_v46 }
 0x374   :  { %v18188_v36 = vpop.f32.mrb[128].mxu1  ;;  %v8738_v20 = vcombine.high %v8730_v18, %v8730_v18  ;;  %v8737_v54 = vrot.slane %v8723_v50, %v18174_v49  ;;  %v8746_v60 = vrot.slane %v8730_v18, %v18174_v49  ;;  %v18215_v18 = vpop.permute.xlu1 %8481 }
 0x375   :  { %23836 = vst [vmem:[#allocation73_spill] sm:$0xff] %v18188_v36  ;;  %v6985_v21 = vpop.f32.mrb[129].mxu1  ;;  %v8772_v34 = vcombine.high %v18188_v36, %v18188_v36  ;;  %v8779_v19 = vrot.slane %v18188_v36, %v18174_v49  ;;  %23839 = vst [vmem:[#allocation49_spill] sm:$0xff] %v18215_v18 }
 0x376   :  { %v18202_v21 = vpop.permute.xlu0 %8591  ;;  %v8760_v35 = vrot.slane %v8738_v20, %v18174_v49  ;;  %v8739_v37 = vcombine.high %v8737_v54, %v8737_v54  ;;  %v8753_v13 = vrot.slane %v8737_v54, %v18174_v49 }
 0x377   :  { %v8786_v55 = vrot.slane %v8772_v34, %v18174_v49  ;;  %23838 = vst [vmem:[#allocation80_spill] sm:$0xff] %v18202_v21  ;;  %v8787_v3 = vcombine.high %v8779_v19, %v8779_v19  ;;  %v8795_v47 = vrot.slane %v8779_v19, %v18174_v49 }
 0x378   :  { %v8770_v21 = vcombine.high %v8760_v35, %v8760_v35  ;;  %v18226_v2 = vrot.slane %v8739_v37, %v18174_v49  ;;  %v8769_v11 = vcombine.high %v8753_v13, %v8753_v13  ;;  %v18252_v19 = vrot.slane %v8760_v35, %v17420_v56  ;;  %v18273_v15 = vpop.permute.xlu1 %8614 }
 0x379   :  { %v18200_v30 = vrot.slane %v8786_v55, %v18174_v49  ;;  %v8788_v7 = vcombine.high %v8786_v55, %v8786_v55  ;;  %v8768_v55 = vcombine.high %v8746_v60, %v8746_v60  ;;  %v8809_v17 = vrot.slane %v8787_v3, %v18174_v49  ;;  %23851 = vst [vmem:[#allocation81_spill] sm:$0xff] %v18273_v15 }
 0x37a   :  { %23842 = vst [vmem:[#allocation42_spill] sm:$0xff] %v18226_v2  ;;  %23847 = vst [vmem:[#allocation43_spill] sm:$0xff] %v18252_v19  ;;  %v18260_v18 = vrot.slane %v8770_v21, %v17420_v56  ;;  %v8817_v35 = vcombine.high %v8795_v47, %v8795_v47  ;;  %v18289_v37 = vrot.slane %v18226_v2, %v17420_v56  ;;  %v23857_v2 = vmov 0  }
 0x37b   :  { %v8818_v50 = vcombine.high %v18200_v30, %v18200_v30  ;;  %v18210_v34 = vrot.slane %v8788_v7, %v18174_v49  ;;  %v18223_v7 = vrot.slane %v8746_v60, %v17420_v56  ;;  %v18238_v60 = vpop.permute.xlu0 %8477  ;;  %v8819_v21 = vcombine.high %v8809_v17, %v8809_v17 }
 0x37c   :  { %23843 = vst [vmem:[#allocation64_spill] sm:$0xff] %v18238_v60  ;;  %23849 = vst [vmem:[#allocation74_spill] sm:$0xff] %v18260_v18  ;;  %v18263_v60 = vrot.slane %v8753_v13, %v17420_v56  ;;  %v18292_v15 = vrot.slane %v8769_v11, %v17420_v56  ;;  %v18311_v11 = vrot.slane %v8795_v47, %v17420_v56  ;;  %v18350_v43 = vpop.permute.xlu1 %8496 }
 0x37d   :  { %v18218_v54 = vrot.slane %v8818_v50, %v17420_v56  ;;  %v8820_v20 = vcombine.high %v18210_v34, %v18210_v34  ;;  %23841 = vst [vmem:[#allocation12_spill] sm:$0xff] %v18223_v7  ;;  %v18257_v50 = vrot.slane %v8768_v55, %v17420_v56  ;;  %v23024_v55 = vmov 0   ;;  %23854 = vst [vmem:[#allocation53_spill] sm:$0xff] %v18289_v37 }
 0x37e   :  { %23850 = vst [vmem:[#allocation41_spill] sm:$0xff] %v18263_v60  ;;  %23855 = vst [vmem:[#allocation47_spill] sm:$0xff] %v18292_v15  ;;  %v18327_v47 = vrot.slane %v8817_v35, %v17420_v56  ;;  %v18354_v35 = vrot.slane %v18210_v34, %v17420_v56 }
 0x37f   :  { %23840 = vst [vmem:[#allocation18_spill] sm:$0xff] %v18218_v54  ;;  %vm9136_vm2 = vcmp.lt.f32.partialorder %v18188_v36, %v18218_v54  ;;  %vm9776_vm3 = vcmp.eq.f32.partialorder %v18188_v36, %v18218_v54  ;;  %vm9135_vm4 = vcmp.lt.f32.partialorder %v18178_v46, %v18218_v54  ;;  %vm9775_vm5 = vcmp.eq.f32.partialorder %v18178_v46, %v18218_v54  ;;  %v18308_v14 = vpop.permute.xlu0 %8610 }
 0x380   :  { %vm18242_vm6 = vmand %vm9136_vm2, %vm9264_vm13  ;;  %v18247_v3 = vrot.slane %v8820_v20, %v17420_v56  ;;  %23848 = vst [vmem:[#allocation52_spill] sm:$0xff] %v18257_v50  ;;  %vm9120_vm10 = vcmp.lt.f32.partialorder %v18188_v36, %v18327_v47  ;;  %v23969_v54 = vmov 0 }
 0x381   :  { %vm10288_vm9 = vmand %vm9776_vm3, %vm9904_vm15  ;;  %23856 = vst [vmem:[#allocation10_spill] sm:$0xff] %v18308_v14  ;;  %v18338_v14 = vrot.slane %v8819_v21, %v17420_v56 }
 0x382   :  { %23846 = vst [vmem:[#allocation8_spill] sm:$0xff] %v18247_v3  ;;  %vm10416_vm11 = vmor %vm18242_vm6, %vm10288_vm9  ;;  %vm9139_vm12 = vcmp.lt.f32.partialorder %v18178_v46, %v18247_v3  ;;  %vm9779_vm13 = vcmp.eq.f32.partialorder %v18178_v46, %v18247_v3  ;;  %vm9140_vm2 = vcmp.lt.f32.partialorder %v18188_v36, %v18247_v3  ;;  %vm9907_vm6 = vcmp.eq.s32.totalorder %v18153_v8, 2 }
 0x383   :  { %v10544_v13 = vsel %vm10416_vm11, 1, %v23024_v55  ;;  %vm18281_vm15 = vmand %vm9135_vm4, %vm9263_vm0  ;;  %vm9780_vm0 = vcmp.eq.f32.partialorder %v18188_v36, %v18247_v3  ;;  %vm9267_vm4 = vcmp.ge.s32.totalorder %v18153_v8, 1  ;;  %23860 = vst [vmem:[#allocation50_spill] sm:$0xff] %v18350_v43  ;;  %v18374_v34 = vpop.permute.xlu0 %8466  ;;  %v23871_v3 = vmov 0 }
 0x384   :  { %vm10287_vm3 = vmand %vm9775_vm5, %vm9903_vm1  ;;  %v10799_v55 = vsel %vm23029_vm14, %v10544_v13, 0  ;;  %v18324_v13 = vrot.slane %v8809_v17, %v17420_v56  ;;  %v18346_v17 = vrot.slane %v18200_v30, %v17420_v56  ;;  %23861 = vst [vmem:[#allocation54_spill] sm:$0xff] %v18354_v35  ;;  %vm9112_vm5 = vcmp.lt.f32.partialorder %v18188_v36, %v18311_v11 }
 0x385   :  { %vm10415_vm11 = vmor %vm18281_vm15, %vm10287_vm3  ;;  %23862 = vst [vmem:[#allocation100_spill] sm:$0xff] %v18374_v34  ;;  %vm9239_vm1 = vcmp.ge.s32.totalorder %v18033_v0, 1  ;;  %vm9243_vm15 = vcmp.ge.s32.totalorder %v18067_v32, 1  ;;  %v23883_v43 = vmov 0  ;;  %v23886_v34 = vmov 0 }
 0x386   :  { %v10543_v52 = vsel %vm10415_vm11, 1, %v23857_v2  ;;  %vm9652_vm9 = vmand %vm9140_vm2, %vm9268_vm7  ;;  %23858 = vst [vmem:[#allocation99_spill] sm:$0xff] %v18346_v17  ;;  %v23984_v56 = vmov 0 }
 0x387   :  { %v10798_v20 = vsel %vm23029_vm14, %v10543_v52, 0  ;;  %vm10292_vm3 = vmand %vm9780_vm0, %vm9908_vm8  ;;  %vm9111_vm0 = vcmp.lt.f32.partialorder %v18178_v46, %v18311_v11 }
 0x388   :  { %v18348_v52 = vadd.s32 %v10799_v55, %v10798_v20  ;;  %vm10420_vm11 = vmor %vm9652_vm9, %vm10292_vm3  ;;  %vm9115_vm3 = vcmp.lt.f32.partialorder %v18178_v46, %v18324_v13 }
 0x389   :  { %v10548_v21 = vsel %vm10420_vm11, 1, %v23857_v2  ;;  %vm9651_vm8 = vmand %vm9139_vm12, %vm9267_vm4  ;;  %vm9119_vm11 = vcmp.lt.f32.partialorder %v18178_v46, %v18327_v47  ;;  %vm9123_vm12 = vcmp.lt.f32.partialorder %v18178_v46, %v18338_v14  ;;  %vm9256_vm4 = vcmp.ge.s32.totalorder %v18124_v39, 1 }
 0x38a   :  { %23859 = vst [vmem:[#allocation67_spill] sm:$0xff] %v18348_v52  ;;  %vm10291_vm9 = vmand %vm9779_vm13, %vm9907_vm6  ;;  %v10812_v30 = vsel %vm23029_vm14, %v10548_v21, 0  ;;  %v18386_v52 = vpop.permute.xlu1 %8572  ;;  %v18400_v21 = vpop.permute.xlu0 %8500  ;;  %vm9244_vm6 = vcmp.ge.s32.totalorder %v18059_v16, 1  ;;  %vm9255_vm13 = vcmp.ge.s32.totalorder %v18126_v26, 1 }
 0x38b   :  { %vm10419_vm2 = vmor %vm9651_vm8, %vm10291_vm9  ;;  %23864 = vst [vmem:[#allocation55_spill] sm:$0xff] %v18386_v52  ;;  %v23878_v52 = vmov 0 }
 0x38c   :  { %v10547_v8 = vsel %vm10419_vm2, 1, %v23857_v2  ;;  %23865 = vst [vmem:[#allocation76_spill] sm:$0xff] %v18400_v21  ;;  %vm9240_vm2 = vcmp.ge.s32.totalorder %v18030_v57, 1  ;;  %vm18431_vm7 = vmand %vm9111_vm0, %vm9239_vm1  ;;  %vm9247_vm1 = vcmp.ge.s32.totalorder %v18088_v62, 1  ;;  %vm9248_vm0 = vcmp.ge.s32.totalorder %v18086_v5, 1 }
 0x38d   :  { %v10811_v55 = vsel %vm23029_vm14, %v10547_v8, 0  ;;  %vm9116_vm14 = vcmp.lt.f32.partialorder %v18188_v36, %v18324_v13  ;;  %vm18436_vm9 = vmand %vm9112_vm5, %vm9240_vm2  ;;  %vm9124_vm2 = vcmp.lt.f32.partialorder %v18188_v36, %v18338_v14 }
 0x38e   :  { %v18384_v20 = vadd.s32 %v10812_v30, %v10811_v55  ;;  %v18406_v30 = vpop.permute.xlu1 %8599  ;;  %v18418_v8 = vpop.permute.xlu0 %8576  ;;  %v23872_v3 = vsel %vm18436_vm9, 4294967295, %v23871_v3  ;;  %vm18446_vm8 = vmand %vm9115_vm3, %vm9243_vm15  ;;  %vm9251_vm3 = vcmp.ge.s32.totalorder %v18112_v29, 1 }
 0x38f   :  { %23866 = vst [vmem:[#allocation85_spill] sm:$0xff] %v18406_v30  ;;  %23867 = vst [vmem:[#allocation86_spill] sm:$0xff] %v18418_v8  ;;  %v23876_v8 = vmov 0 }
 0x390   :  { %23863 = vst [vmem:[#allocation72_spill] sm:$0xff] %v18384_v20  ;;  %v23869_v20 = vmov 0  ;;  %vm18453_vm5 = vmand %vm9116_vm14, %vm9244_vm6  ;;  %vm9252_vm6 = vcmp.ge.s32.totalorder %v18107_v38, 1 }
 0x391   :  { %v23870_v20 = vsel %vm18431_vm7, 4294967295, %v23869_v20  ;;  %v23877_v8 = vsel %vm18453_vm5, 4294967295, %v23876_v8  ;;  %vm18463_vm15 = vmand %vm9119_vm11, %vm9247_vm1  ;;  %vm9128_vm11 = vcmp.lt.f32.partialorder %v18188_v36, %v18346_v17  ;;  %vm23889_vm5 = vcmp.lt.f32.partialorder %v18178_v46, %v18346_v17 }
 0x392   :  { %v18424_v55 = vpop.permute.xlu1 %8633  ;;  %v18451_v30 = vpop.permute.xlu0 %8629  ;;  %v23879_v52 = vsel %vm18463_vm15, 4294967295, %v23878_v52  ;;  %vm18469_vm14 = vmand %vm9120_vm10, %vm9248_vm0  ;;  %vm9259_vm10 = vcmp.ge.s32.totalorder %v18137_v59, 1  ;;  %vm9132_vm15 = vcmp.lt.f32.partialorder %v18188_v36, %v18354_v35  ;;  %vm9896_vm7 = vcmp.eq.s32.totalorder %v18124_v39, 2 }
 0x393   :  { %23868 = vst [vmem:[#allocation56_spill] sm:$0xff] %v18424_v55  ;;  %v23873_v55 = vmov 0  ;;  %23875 = vst [vmem:[#allocation3_spill] sm:$0xff] %v18451_v30  ;;  %v23880_v30 = vmov 0  ;;  %v23944_v39 = vmov 0 }
 0x394   :  { %v23874_v55 = vsel %vm18446_vm8, 4294967295, %v23873_v55  ;;  %v23881_v30 = vsel %vm18469_vm14, 4294967295, %v23880_v30  ;;  %vm18482_vm1 = vmand %vm9123_vm12, %vm9251_vm3  ;;  %vm9260_vm14 = vcmp.ge.s32.totalorder %v18135_v41, 1 }
 0x395   :  { %v23884_v43 = vsel %vm18482_vm1, 4294967295, %v23883_v43  ;;  %vm18487_vm0 = vmand %vm9124_vm2, %vm9252_vm6  ;;  %vm23896_vm2 = vcmp.lt.f32.partialorder %v18178_v46, %v18354_v35 }
 0x396   :  { %v18475_v21 = vpop.permute.xlu1 %8515  ;;  %23885 = vst [vmem:[#allocation90_spill] sm:$0xff] %v23884_v43  ;;  %v23887_v34 = vsel %vm18487_vm0, 4294967295, %v23886_v34  ;;  %vm18497_vm8 = vmand %vm23889_vm5, %vm9255_vm13  ;;  %v18501_v48 = vpop.permute.xlu0 %8485  ;;  %vm9879_vm13 = vcmp.eq.s32.totalorder %v18033_v0, 2  ;;  %vm9880_vm5 = vcmp.eq.s32.totalorder %v18030_v57, 2  ;;  %v23913_v57 = vmov 0 }
 0x397   :  { %23882 = vst [vmem:[#allocation102_spill] sm:$0xff] %v18475_v21  ;;  %23888 = vst [vmem:[#allocation46_spill] sm:$0xff] %v23887_v34  ;;  %v23890_v21 = vmov 0  ;;  %v23916_v0 = vmov 0  ;;  %vm23918_vm0 = vcmp.eq.f32.partialorder %v18188_v36, %v18223_v7  ;;  %v24026_v34 = vld [vmem:[#allocation7_spill] sm:$0xff] }
 0x398   :  { %v23891_v21 = vsel %vm18497_vm8, 4294967295, %v23890_v21  ;;  %23892 = vst [vmem:[#allocation104_spill] sm:$0xff] %v18501_v48  ;;  %vm18503_vm12 = vmand %vm9128_vm11, %vm9256_vm4  ;;  %vm9752_vm4 = vcmp.eq.f32.partialorder %v18188_v36, %v18311_v11  ;;  %vm9760_vm8 = vcmp.eq.f32.partialorder %v18188_v36, %v18327_v47 }
 0x399   :  { %v23894_v58 = vsel %vm18503_vm12, 4294967295, %v23893_v58  ;;  %vm18510_vm3 = vmand %vm23896_vm2, %vm9259_vm10  ;;  %vm9884_vm12 = vcmp.eq.s32.totalorder %v18059_v16, 2  ;;  %v23922_v16 = vmov 0 }
 0x39a   :  { %23895 = vst [vmem:[#allocation94_spill] sm:$0xff] %v23894_v58  ;;  %v23898_v12 = vsel %vm18510_vm3, 4294967295, %v23897_v12  ;;  %vm18514_vm6 = vmand %vm9132_vm15, %vm9260_vm14  ;;  %v18518_v10 = vpop.permute.xlu1 %8618  ;;  %v18520_v25 = vpop.permute.xlu0 %8519  ;;  %vm9756_vm15 = vcmp.eq.f32.partialorder %v18188_v36, %v18324_v13  ;;  %vm23908_vm14 = vcmp.eq.f32.partialorder %v18178_v46, %v18311_v11 }
 0x39b   :  { %23899 = vst [vmem:[#allocation51_spill] sm:$0xff] %v23898_v12  ;;  %v23901_v51 = vsel %vm18514_vm6, 4294967295, %v23900_v51  ;;  %23903 = vst [vmem:[#allocation101_spill] sm:$0xff] %v18518_v10  ;;  %v23909_v10 = vmov 0  ;;  %vm9883_vm6 = vcmp.eq.s32.totalorder %v18067_v32, 2  ;;  %v23919_v32 = vmov 0 }
 0x39c   :  { %23902 = vst [vmem:[#allocation98_spill] sm:$0xff] %v23901_v51  ;;  %23904 = vst [vmem:[#allocation15_spill] sm:$0xff] %v18520_v25  ;;  %v23928_v25 = vmov 0  ;;  %v24033_v12 = vmov 0  ;;  %v24036_v51 = vmov 0 }
 0x39d   :  { %vm18537_vm11 = vmand %vm23908_vm14, %vm9879_vm13  ;;  %vm23915_vm13 = vcmp.lt.f32.partialorder %v18188_v36, %v18223_v7 }
 0x39e   :  { %v18522_v48 = vpop.permute.xlu1 %8652  ;;  %v18524_v9 = vpop.permute.xlu0 %8648  ;;  %v23910_v10 = vsel %vm18537_vm11, 4294967295, %v23909_v10  ;;  %vm18546_vm3 = vmand %vm9752_vm4, %vm9880_vm5  ;;  %vm23921_vm4 = vcmp.eq.f32.partialorder %v18178_v46, %v18324_v13  ;;  %vm9899_vm11 = vcmp.eq.s32.totalorder %v18137_v59, 2  ;;  %v23951_v59 = vmov 0 }
 0x39f   :  { %23905 = vst [vmem:[#allocation103_spill] sm:$0xff] %v18522_v48  ;;  %23906 = vst [vmem:[#allocation4_spill] sm:$0xff] %v18524_v9  ;;  %v23911_v48 = vld [vmem:[#allocation82_spill] sm:$0xff]  ;;  %v23914_v57 = vsel %vm18546_vm3, 4294967295, %v23913_v57 }
 0x3a0   :  { %vm9208_vm10 = vcmp.ge.s32.totalorder %v23911_v48, 1  ;;  %vm9848_vm2 = vcmp.eq.s32.totalorder %v23911_v48, 2  ;;  %vm18570_vm5 = vmand %vm23921_vm4, %vm9883_vm6  ;;  %v23924_v48 = vld [vmem:[#allocation29_spill] sm:$0xff]  ;;  %vm9764_vm6 = vcmp.eq.f32.partialorder %v18188_v36, %v18338_v14 }
 0x3a1   :  { %vm18554_vm14 = vmand %vm23915_vm13, %vm9208_vm10  ;;  %v23923_v16 = vsel %vm18570_vm5, 4294967295, %v23922_v16  ;;  %vm9212_vm10 = vcmp.ge.s32.totalorder %v23924_v48, 1  ;;  %vm9887_vm13 = vcmp.eq.s32.totalorder %v18088_v62, 2  ;;  %v23931_v62 = vmov 0 }
 0x3a2   :  { %v18526_v31 = vpop.permute.xlu1 %8504  ;;  %v18544_v9 = vpop.permute.xlu0 %8470  ;;  %v23917_v0 = vsel %vm18554_vm14, 4294967295, %v23916_v0  ;;  %vm18563_vm1 = vmand %vm23918_vm0, %vm9848_vm2  ;;  %vm9888_vm0 = vcmp.eq.s32.totalorder %v18086_v5, 2  ;;  %vm23927_vm2 = vcmp.lt.f32.partialorder %v18188_v36, %v18252_v19  ;;  %v23934_v5 = vld [vmem:[#allocation5_spill] sm:$0xff]  ;;  %vm9895_vm5 = vcmp.eq.s32.totalorder %v18126_v26, 2 }
 0x3a3   :  { %23907 = vst [vmem:[#allocation70_spill] sm:$0xff] %v18526_v31  ;;  %23912 = vst [vmem:[#allocation69_spill] sm:$0xff] %v18544_v9  ;;  %v23920_v32 = vsel %vm18563_vm1, 4294967295, %v23919_v32  ;;  %v23925_v31 = vmov 0  ;;  %vm9216_vm4 = vcmp.ge.s32.totalorder %v23934_v5, 1  ;;  %v23948_v26 = vmov 0 }
 0x3a4   :  { %vm18576_vm9 = vmand %vm9756_vm15, %vm9884_vm12  ;;  %vm23930_vm12 = vcmp.eq.f32.partialorder %v18178_v46, %v18327_v47 }
 0x3a5   :  { %v23926_v31 = vsel %vm18576_vm9, 4294967295, %v23925_v31  ;;  %vm18586_vm3 = vmand %vm23927_vm2, %vm9212_vm10  ;;  %vm9891_vm9 = vcmp.eq.s32.totalorder %v18112_v29, 2  ;;  %vm9892_vm2 = vcmp.eq.s32.totalorder %v18107_v38, 2  ;;  %v23941_v29 = vmov 0 }
 0x3a6   :  { %v18581_v9 = vpop.permute.xlu1 %8538  ;;  %v23929_v25 = vsel %vm18586_vm3, 4294967295, %v23928_v25  ;;  %vm18595_vm15 = vmand %vm23930_vm12, %vm9887_vm13  ;;  %vm23937_vm13 = vcmp.lt.f32.partialorder %v18188_v36, %v18257_v50  ;;  %v18626_v38 = vpop.permute.xlu0 %8534 }
 0x3a7   :  { %v23932_v62 = vsel %vm18595_vm15, 4294967295, %v23931_v62  ;;  %vm18602_vm10 = vmand %vm9760_vm8, %vm9888_vm0  ;;  %vm9768_vm15 = vcmp.eq.f32.partialorder %v18188_v36, %v18346_v17  ;;  %vm23940_vm8 = vcmp.eq.f32.partialorder %v18178_v46, %v18338_v14 }
 0x3a8   :  { %23933 = vst [vmem:[#allocation19_spill] sm:$0xff] %v23932_v62  ;;  %v23936_v6 = vsel %vm18602_vm10, 4294967295, %v23935_v6  ;;  %vm18611_vm12 = vmand %vm23937_vm13, %vm9216_vm4  ;;  %vm9220_vm10 = vcmp.ge.s32.totalorder %v17842_v63, 1  ;;  %vm9900_vm13 = vcmp.eq.s32.totalorder %v18135_v41, 2  ;;  %v23954_v41 = vmov 0  ;;  %v24015_v62 = vld [vmem:[#allocation83_spill] sm:$0xff] }
 0x3a9   :  { %v23939_v40 = vsel %vm18611_vm12, 4294967295, %v23938_v40  ;;  %vm18620_vm0 = vmand %vm23940_vm8, %vm9891_vm9  ;;  %vm23947_vm12 = vcmp.lt.f32.partialorder %v18188_v36, %v18260_v18  ;;  %vm9772_vm9 = vcmp.eq.f32.partialorder %v18188_v36, %v18354_v35  ;;  %vm23950_vm8 = vcmp.eq.f32.partialorder %v18178_v46, %v18346_v17 }
 0x3aa   :  { %v23942_v29 = vsel %vm18620_vm0, 4294967295, %v23941_v29  ;;  %vm18628_vm4 = vmand %vm9764_vm6, %vm9892_vm2  ;;  %vm9224_vm6 = vcmp.ge.s32.totalorder %v17877_v1, 1  ;;  %v18654_v42 = vpop.permute.xlu1 %8603  ;;  %v23976_v17 = vmov 0 }
 0x3ab   :  { %23943 = vst [vmem:[#allocation16_spill] sm:$0xff] %v23942_v29  ;;  %v23945_v39 = vsel %vm18628_vm4, 4294967295, %v23944_v39  ;;  %vm18636_vm3 = vmand %vm23947_vm12, %vm9220_vm10  ;;  %vm23958_vm10 = vcmp.lt.f32.partialorder %v18188_v36, %v18263_v60  ;;  %vm9723_vm4 = vcmp.eq.f32.partialorder %v18178_v46, %v18252_v19 }
 0x3ac   :  { %23946 = vst [vmem:[#allocation23_spill] sm:$0xff] %v23945_v39  ;;  %v23949_v26 = vsel %vm18636_vm3, 4294967295, %v23948_v26  ;;  %vm18645_vm0 = vmand %vm23950_vm8, %vm9895_vm5  ;;  %vm23961_vm5 = vcmp.eq.f32.partialorder %v18178_v46, %v18354_v35  ;;  %v23972_v35 = vmov 0  ;;  %vm9847_vm3 = vcmp.eq.s32.totalorder %v24015_v62, 2 }
 0x3ad   :  { %v23952_v59 = vsel %vm18645_vm0, 4294967295, %v23951_v59  ;;  %vm18650_vm2 = vmand %vm9768_vm15, %vm9896_vm7  ;;  %23957 = vst [vmem:[#allocation89_spill] sm:$0xff] %v18654_v42  ;;  %vm9852_vm7 = vcmp.eq.s32.totalorder %v23924_v48, 2  ;;  %vm9228_vm15 = vcmp.ge.s32.totalorder %v17907_v27, 1  ;;  %v23965_v42 = vmov 0  ;;  %v18692_v48 = vpop.permute.xlu0 %8580 }
 0x3ae   :  { %23953 = vst [vmem:[#allocation20_spill] sm:$0xff] %v23952_v59  ;;  %v23955_v41 = vsel %vm18650_vm2, 4294967295, %v23954_v41  ;;  %vm18659_vm12 = vmand %vm23958_vm10, %vm9224_vm6  ;;  %vm23968_vm6 = vcmp.lt.f32.partialorder %v18188_v36, %v18289_v37  ;;  %vm23987_vm0 = vcmp.eq.f32.partialorder %v18188_v36, %v18263_v60 }
 0x3af   :  { %23956 = vst [vmem:[#allocation75_spill] sm:$0xff] %v23955_v41  ;;  %v23960_v28 = vsel %vm18659_vm12, 4294967295, %v23959_v28  ;;  %vm18666_vm8 = vmand %vm23961_vm5, %vm9899_vm11  ;;  %vm23971_vm11 = vcmp.eq.f32.partialorder %v18188_v36, %v18252_v19  ;;  %vm9083_vm12 = vcmp.lt.f32.partialorder %v18178_v46, %v18252_v19  ;;  %v24038_v41 = vmov 0 }
 0x3b0   :  { %v23963_v33 = vsel %vm18666_vm8, 4294967295, %v23962_v33  ;;  %vm18672_vm2 = vmand %vm9772_vm9, %vm9900_vm13  ;;  %vm9856_vm8 = vcmp.eq.s32.totalorder %v23934_v5, 2  ;;  %vm9232_vm13 = vcmp.ge.s32.totalorder %v17942_v4, 1  ;;  %23974 = vst [vmem:[#allocation25_spill] sm:$0xff] %v18692_v48  ;;  %v23979_v5 = vmov 0  ;;  %v18717_v48 = vpop.permute.xlu1 %8667 }
 0x3b1   :  { %23964 = vst [vmem:[#allocation91_spill] sm:$0xff] %v23963_v33  ;;  %v23966_v42 = vsel %vm18672_vm2, 4294967295, %v23965_v42  ;;  %vm18679_vm10 = vmand %vm23968_vm6, %vm9228_vm15  ;;  %vm23975_vm15 = vcmp.lt.f32.partialorder %v18188_v36, %v18292_v15  ;;  %vm9860_vm2 = vcmp.eq.s32.totalorder %v17842_v63, 2  ;;  %v23988_v63 = vmov 0 }
 0x3b2   :  { %23967 = vst [vmem:[#allocation87_spill] sm:$0xff] %v23966_v42  ;;  %v23970_v54 = vsel %vm18679_vm10, 4294967295, %v23969_v54  ;;  %vm18686_vm5 = vmand %vm23971_vm11, %vm9852_vm7  ;;  %vm23978_vm7 = vcmp.eq.f32.partialorder %v18188_v36, %v18257_v50  ;;  %vm9079_vm10 = vcmp.lt.f32.partialorder %v18178_v46, %v18223_v7  ;;  %vm9731_vm9 = vcmp.eq.f32.partialorder %v18178_v46, %v18260_v18 }
 0x3b3   :  { %v23973_v35 = vsel %vm18686_vm5, 4294967295, %v23972_v35  ;;  %vm18701_vm6 = vmand %vm23975_vm15, %vm9232_vm13  ;;  %23982 = vst [vmem:[#allocation97_spill] sm:$0xff] %v18717_v48  ;;  %vm23983_vm13 = vcmp.eq.f32.partialorder %v18188_v36, %v18260_v18  ;;  %vm9868_vm5 = vcmp.eq.s32.totalorder %v17907_v27, 2  ;;  %v18739_v48 = vpop.permute.xlu0 %8637  ;;  %v24479_v19 = vmov 0 }
 0x3b4   :  { %v23977_v17 = vsel %vm18701_vm6, 4294967295, %v23976_v17  ;;  %vm18708_vm11 = vmand %vm23978_vm7, %vm9856_vm8  ;;  %vm9864_vm8 = vcmp.eq.s32.totalorder %v17877_v1, 2  ;;  %23990 = vst [vmem:[#allocation2_spill] sm:$0xff] %v18739_v48  ;;  %v23992_v1 = vmov 0  ;;  %v18757_v27 = vpop.permute.xlu1 %8489  ;;  %v23996_v48 = vmov 0 }
 0x3b5   :  { %v23980_v5 = vsel %vm18708_vm11, 4294967295, %v23979_v5  ;;  %vm18722_vm15 = vmand %vm23983_vm13, %vm9860_vm2  ;;  %vm23991_vm13 = vcmp.eq.f32.partialorder %v18188_v36, %v18289_v37  ;;  %23994 = vst [vmem:[#allocation82_spill] sm:$0xff] %v18757_v27  ;;  %vm23995_vm11 = vcmp.eq.f32.partialorder %v18188_v36, %v18292_v15  ;;  %vm9207_vm6 = vcmp.ge.s32.totalorder %v24015_v62, 1 }
 0x3b6   :  { %v23985_v56 = vsel %vm18722_vm15, 4294967295, %v23984_v56  ;;  %vm18734_vm1 = vmand %vm23987_vm0, %vm9864_vm8  ;;  %vm9872_vm0 = vcmp.eq.s32.totalorder %v17942_v4, 2  ;;  %vm9219_vm7 = vcmp.ge.s32.totalorder %v17844_v44, 1  ;;  %vm9099_vm15 = vcmp.lt.f32.partialorder %v18178_v46, %v18289_v37 }
 0x3b7   :  { %v23989_v63 = vsel %vm18734_vm1, 4294967295, %v23988_v63  ;;  %vm18748_vm14 = vmand %vm23991_vm13, %vm9868_vm5  ;;  %v18770_v4 = vpop.permute.xlu0 %8671  ;;  %vm9091_vm13 = vcmp.lt.f32.partialorder %v18178_v46, %v18260_v18  ;;  %vm9227_vm8 = vcmp.ge.s32.totalorder %v17909_v45, 1  ;;  %v24321_v18 = vmov 0 }
 0x3b8   :  { %v23993_v1 = vsel %vm18748_vm14, 4294967295, %v23992_v1  ;;  %vm18762_vm2 = vmand %vm23995_vm11, %vm9872_vm0  ;;  %23998 = vst [vmem:[#allocation29_spill] sm:$0xff] %v18770_v4  ;;  %v18784_v27 = vpop.permute.xlu1 %8553 }
 0x3b9   :  { %v23997_v48 = vsel %vm18762_vm2, 4294967295, %v23996_v48  ;;  %vm9087_vm2 = vcmp.lt.f32.partialorder %v18178_v46, %v18257_v50  ;;  %vm18825_vm5 = vmand %vm9079_vm10, %vm9207_vm6  ;;  %vm9215_vm10 = vcmp.ge.s32.totalorder %v24026_v34, 1  ;;  %vm9095_vm6 = vcmp.lt.f32.partialorder %v18178_v46, %v18263_v60 }
 0x3ba   :  { %vm18856_vm1 = vmand %vm9087_vm2, %vm9215_vm10  ;;  %vm9727_vm10 = vcmp.eq.f32.partialorder %v18178_v46, %v18257_v50  ;;  %v24468_v50 = vld [vmem:[#allocation56_spill] sm:$0xff] }
 0x3bb   :  { %v18798_v4 = vpop.permute.xlu0 %8523  ;;  %vm18863_vm11 = vmand %vm9091_vm13, %vm9219_vm7 }
 0x3bc   :  { %24009 = vst [vmem:[#allocation5_spill] sm:$0xff] %v18798_v4  ;;  %v18815_v4 = vpop.permute.xlu1 %8622  ;;  %v24034_v12 = vsel %vm18863_vm11, 4294967295, %v24033_v12  ;;  %vm18880_vm13 = vmand %vm9099_vm15, %vm9227_vm8  ;;  %vm9859_vm15 = vcmp.eq.s32.totalorder %v17844_v44, 2 }
 0x3bd   :  { %24016 = vst [vmem:[#allocation83_spill] sm:$0xff] %v18815_v4  ;;  %v24023_v4 = vld [vmem:[#allocation58_spill] sm:$0xff]  ;;  %v24039_v41 = vsel %vm18880_vm13, 4294967295, %v24038_v41  ;;  %vm18907_vm13 = vmand %vm9731_vm9, %vm9859_vm15  ;;  %vm24056_vm15 = vnez %v23917_v0 }
 0x3be   :  { %vm9211_vm14 = vcmp.ge.s32.totalorder %v24023_v4, 1  ;;  %vm9851_vm7 = vcmp.eq.s32.totalorder %v24023_v4, 2 }
 0x3bf   :  { %v18841_v29 = vpop.permute.xlu0 %8557  ;;  %vm18845_vm0 = vmand %vm9083_vm12, %vm9211_vm14  ;;  %vm9719_vm14 = vcmp.eq.f32.partialorder %v18178_v46, %v18223_v7  ;;  %vm9223_vm12 = vcmp.ge.s32.totalorder %v17882_v61, 1  ;;  %v24260_v7 = vmov 0 }
 0x3c0   :  { %v18871_v42 = vpop.permute.xlu1 %8686  ;;  %vm18873_vm2 = vmand %vm9095_vm6, %vm9223_vm12  ;;  %vm9855_vm6 = vcmp.eq.s32.totalorder %v24026_v34, 2  ;;  %vm9735_vm12 = vcmp.eq.f32.partialorder %v18178_v46, %v18263_v60  ;;  %v24315_v60 = vmov 0 }
 0x3c1   :  { %24035 = vst [vmem:[#allocation58_spill] sm:$0xff] %v18871_v42  ;;  %v24037_v51 = vsel %vm18873_vm2, 4294967295, %v24036_v51  ;;  %vm18886_vm11 = vmand %vm9719_vm14, %vm9847_vm3  ;;  %vm9863_vm3 = vcmp.eq.s32.totalorder %v17882_v61, 2  ;;  %vm9739_vm14 = vcmp.eq.f32.partialorder %v18178_v46, %v18289_v37  ;;  %v24293_v37 = vld [vmem:[#allocation38_spill] sm:$0xff] }
 0x3c2   :  { %vm18893_vm2 = vmand %vm9723_vm4, %vm9851_vm7  ;;  %vm9867_vm7 = vcmp.eq.s32.totalorder %v17909_v45, 2 }
 0x3c3   :  { %v18898_v4 = vpop.permute.xlu0 %8656  ;;  %vm18900_vm8 = vmand %vm9727_vm10, %vm9855_vm6 }
 0x3c4   :  { %24044 = vst [vmem:[#allocation7_spill] sm:$0xff] %v18898_v4  ;;  %vm18911_vm4 = vmand %vm9735_vm12, %vm9863_vm3  ;;  %v18916_v44 = vpop.permute.xlu1 %8508  ;;  %vm24057_vm3 = vnez %v23920_v32 }
 0x3c5   :  { %24051 = vst [vmem:[#allocation106_spill] sm:$0xff] %v18916_v44  ;;  %vm10359_vm10 = vmor %vm18825_vm5, %vm18886_vm11  ;;  %vm24055_vm5 = vnez %v24034_v12 }
 0x3c6   :  { %vm18922_vm6 = vmand %vm9739_vm14, %vm9867_vm7  ;;  %v10487_v45 = vsel %vm10359_vm10, 1, %v23857_v2  ;;  %vm24063_vm7 = vnez %v23929_v25  ;;  %vm24064_vm10 = vnez %v23973_v35 }
 0x3c7   :  { %vm10363_vm9 = vmor %vm18845_vm0, %vm18893_vm2  ;;  %v18930_v4 = vpop.permute.xlu0 %8690  ;;  %vm24059_vm2 = vnez %v24037_v51 }
 0x3c8   :  { %24054 = vst [vmem:[#allocation107_spill] sm:$0xff] %v18930_v4  ;;  %vm10367_vm12 = vmor %vm18856_vm1, %vm18900_vm8  ;;  %v18951_v33 = vpop.permute.xlu1 %8584  ;;  %vm24061_vm1 = vnez %v24039_v41  ;;  %v10491_v58 = vsel %vm10363_vm9, 1, %v23857_v2  ;;  %vm24070_vm9 = vnez %v23949_v26 }
 0x3c9   :  { %vm10371_vm11 = vmor %vm24055_vm5, %vm18907_vm13  ;;  %24060 = vst [vmem:[#allocation108_spill] sm:$0xff] %v18951_v33  ;;  %vm24062_vm13 = vcmask 261120   ;;  %v10495_v51 = vsel %vm10367_vm12, 1, %v23857_v2  ;;  %vm24073_vm12 = vnez %v23960_v28 }
 0x3ca   :  { %vm24058_vm0 = vmor %vm24056_vm15, %vm24057_vm3  ;;  %v10616_v12 = vsel %vm24062_vm13, %v10487_v45, 0  ;;  %vm24067_vm15 = vnez %v23939_v40  ;;  %v10499_v39 = vsel %vm10371_vm11, 1, %v23857_v2  ;;  %vm24076_vm11 = vnez %v23970_v54 }
 0x3cb   :  { %v10488_v42 = vsel %vm24058_vm0, 1, %v23857_v2  ;;  %vm10375_vm14 = vmor %vm24059_vm2, %vm18911_vm4  ;;  %vm24071_vm0 = vnez %v23985_v56  ;;  %v18980_v35 = vpop.permute.xlu0 %8542 }
 0x3cc   :  { %vm10379_vm8 = vmor %vm24061_vm1, %vm18922_vm6  ;;  %vm24068_vm6 = vnez %v23980_v5  ;;  %v10503_v59 = vsel %vm10375_vm14, 1, %v23857_v2  ;;  %vm24074_vm1 = vnez %v23989_v63 }
 0x3cd   :  { %vm24065_vm5 = vmor %vm24063_vm7, %vm24064_vm10  ;;  %v10507_v41 = vsel %vm10379_vm8, 1, %v23857_v2  ;;  %vm24077_vm7 = vnez %v23993_v1  ;;  %v19007_v1 = vpop.permute.xlu1 %8675 }
 0x3ce   :  { %v10492_v43 = vsel %vm24065_vm5, 1, %v23857_v2  ;;  %vm24066_vm4 = vmmov %vm24062_vm13  ;;  %24086 = vst [vmem:[#allocation111_spill] sm:$0xff] %v19007_v1 }
 0x3cf   :  { %v10617_v0 = vsel %vm24066_vm4, %v10488_v42, 0  ;;  %vm24069_vm3 = vmor %vm24067_vm15, %vm24068_vm6  ;;  %v10642_v28 = vsel %vm24066_vm4, %v10495_v51, 0 }
 0x3d0   :  { %v10496_v32 = vsel %vm24069_vm3, 1, %v23857_v2  ;;  %vm24072_vm2 = vmor %vm24070_vm9, %vm24071_vm0  ;;  %v18996_v26 = vadd.s32 %v10617_v0, %v10616_v12  ;;  %vm9231_vm3 = vcmp.ge.s32.totalorder %v17944_v24, 1 }
 0x3d1   :  { %v10500_v25 = vsel %vm24072_vm2, 1, %v23857_v2  ;;  %vm24075_vm13 = vmor %vm24073_vm12, %vm24074_vm1  ;;  %vm9871_vm2 = vcmp.eq.s32.totalorder %v17944_v24, 2  ;;  %v24105_v24 = vmov 0 }
 0x3d2   :  { %v10504_v40 = vsel %vm24075_vm13, 1, %v23857_v2  ;;  %vm24078_vm10 = vmor %vm24076_vm11, %vm24077_vm7  ;;  %24079 = vst [vmem:[#allocation109_spill] sm:$0xff] %v18996_v26  ;;  %vm9241_vm13 = vcmp.ge.s32.totalorder %v18051_v23, 1  ;;  %vm9103_vm11 = vcmp.lt.f32.partialorder %v18178_v46, %v18292_v15  ;;  %vm9743_vm7 = vcmp.eq.f32.partialorder %v18178_v46, %v18292_v15  ;;  %v24225_v26 = vld [vmem:[#allocation57_spill] sm:$0xff] }
 0x3d3   :  { %v10508_v56 = vsel %vm24078_vm10, 1, %v23857_v2  ;;  %vm24080_vm5 = vmmov %vm24066_vm4  ;;  %vm9245_vm10 = vcmp.ge.s32.totalorder %v18079_v22, 1 }
 0x3d4   :  { %v10629_v5 = vsel %vm24080_vm5, %v10491_v58, 0  ;;  %vm24081_vm14 = vmmov %vm24066_vm4 }
 0x3d5   :  { %v10630_v62 = vsel %vm24081_vm14, %v10492_v43, 0  ;;  %vm24083_vm15 = vmmov %vm24066_vm4 }
 0x3d6   :  { %v19001_v63 = vadd.s32 %v10630_v62, %v10629_v5  ;;  %v10643_v34 = vsel %vm24083_vm15, %v10496_v32, 0  ;;  %vm24084_vm8 = vmmov %vm24066_vm4 }
 0x3d7   :  { %v10655_v61 = vsel %vm24084_vm8, %v10499_v39, 0  ;;  %vm24085_vm6 = vmmov %vm24066_vm4  ;;  %v19009_v45 = vadd.s32 %v10643_v34, %v10642_v28  ;;  %v19055_v28 = vpop.permute.xlu1 %8709 }
 0x3d8   :  { %24082 = vst [vmem:[#allocation110_spill] sm:$0xff] %v19001_v63  ;;  %v10656_v54 = vsel %vm24085_vm6, %v10500_v25, 0  ;;  %vm24089_vm9 = vmmov %vm24066_vm4 }
 0x3d9   :  { %24087 = vst [vmem:[#allocation112_spill] sm:$0xff] %v19009_v45  ;;  %v19011_v42 = vadd.s32 %v10656_v54, %v10655_v61  ;;  %v10668_v12 = vsel %vm24089_vm9, %v10503_v59, 0  ;;  %vm24090_vm0 = vmmov %vm24066_vm4  ;;  %vm9249_vm4 = vcmp.ge.s32.totalorder %v18102_v53, 1 }
 0x3da   :  { %v10669_v58 = vsel %vm24090_vm0, %v10504_v40, 0  ;;  %vm24092_vm12 = vmmov %vm24090_vm0  ;;  %v19032_v40 = vpop.permute.xlu0 %8641 }
 0x3db   :  { %24088 = vst [vmem:[#allocation113_spill] sm:$0xff] %v19011_v42  ;;  %v19016_v43 = vadd.s32 %v10669_v58, %v10668_v12  ;;  %v10681_v51 = vsel %vm24092_vm12, %v10507_v41, 0  ;;  %vm24093_vm1 = vmmov %vm24090_vm0  ;;  %vm9295_vm0 = vcmp.ge.s32.totalorder %v18626_v38, 1  ;;  %v24096_v58 = vld [vmem:[#allocation24_spill] sm:$0xff] }
 0x3dc   :  { %v10682_v0 = vsel %vm24093_vm1, %v10508_v56, 0  ;;  %24095 = vst [vmem:[#allocation116_spill] sm:$0xff] %v19032_v40  ;;  %vm19086_vm12 = vmand %vm9103_vm11, %vm9231_vm3  ;;  %vm9297_vm11 = vcmp.ge.s32.totalorder %v18980_v35, 1 }
 0x3dd   :  { %24091 = vst [vmem:[#allocation114_spill] sm:$0xff] %v19016_v43  ;;  %v19027_v39 = vadd.s32 %v10682_v0, %v10681_v51  ;;  %v24097_v0 = vld [vmem:[#allocation99_spill] sm:$0xff]  ;;  %vm19105_vm3 = vmand %vm9743_vm7, %vm9871_vm2 }
 0x3df   :  { %24094 = vst [vmem:[#allocation115_spill] sm:$0xff] %v19027_v39 }
 0x3f1   :  { %v19021_v32 = vpop.f32.mrb[130].mxu0 }
 0x3f2   :  { %v7545_v25 = vpop.f32.mrb[131].mxu0  ;;  %v8821_v59 = vcombine.high %v19021_v32, %v19021_v32  ;;  %v8828_v41 = vrot.slane %v19021_v32, %v18174_v49  ;;  %vm9113_vm6 = vcmp.lt.f32.partialorder %v19021_v32, %v18311_v11  ;;  %vm9117_vm9 = vcmp.lt.f32.partialorder %v19021_v32, %v18324_v13 }
 0x3f3   :  { %vm9121_vm8 = vcmp.lt.f32.partialorder %v19021_v32, %v18327_v47  ;;  %v24098_v25 = vld [vmem:[#allocation54_spill] sm:$0xff]  ;;  %vm19121_vm14 = vmand %vm9113_vm6, %vm9241_vm13 }
 0x3f4   :  { %v8835_v56 = vrot.slane %v8821_v59, %v18174_v49  ;;  %v8836_v5 = vcombine.high %v8828_v41, %v8828_v41  ;;  %v8844_v62 = vrot.slane %v8828_v41, %v18174_v49  ;;  %v24099_v59 = vld [vmem:[#allocation18_spill] sm:$0xff]  ;;  %v24106_v24 = vsel %vm19121_vm14, 4294967295, %v24105_v24  ;;  %vm19140_vm13 = vmand %vm9117_vm9, %vm9245_vm10 }
 0x3f5   :  { %24107 = vst [vmem:[#allocation99_spill] sm:$0xff] %v24106_v24  ;;  %vm19157_vm10 = vmand %vm9121_vm8, %vm9249_vm4  ;;  %vm24117_vm9 = vcmp.ge.s32.totalorder %v18581_v9, 1  ;;  %vm24123_vm8 = vcmp.eq.s32.totalorder %v18626_v38, 2  ;;  %vm24127_vm4 = vnez %v23870_v20 }
 0x3f6   :  { %v8851_v34 = vrot.slane %v8835_v56, %v18174_v49  ;;  %v8837_v61 = vcombine.high %v8835_v56, %v8835_v56  ;;  %v8858_v54 = vrot.slane %v8836_v5, %v18174_v49  ;;  %v8866_v12 = vcombine.high %v8844_v62, %v8844_v62  ;;  %v19079_v5 = vpop.permute.xlu0 %8705 }
 0x3f7   :  { %v19068_v51 = vrot.slane %v8844_v62, %v24096_v58 }
 0x3f8   :  { %v8867_v41 = vcombine.high %v8851_v34, %v8851_v34  ;;  %v8865_v56 = vrot.slane %v8837_v61, %v18174_v49  ;;  %v8868_v62 = vcombine.high %v8858_v54, %v8858_v54  ;;  %v19091_v1 = vrot.slane %v8858_v54, %v24096_v58 }
 0x3f9   :  { %v19094_v40 = vrot.slane %v8866_v12, %v24096_v58  ;;  %v19126_v44 = vrot.slane %v8851_v34, %v24096_v58  ;;  %v24111_v34 = vmov 0 }
 0x3fa   :  { %v19110_v54 = vrot.slane %v8867_v41, %v24096_v58  ;;  %v8869_v12 = vcombine.high %v8865_v56, %v8865_v56  ;;  %v19114_v33 = vrot.slane %v8868_v62, %v24096_v58  ;;  %v19129_v41 = vpop.permute.xlu1 %8561  ;;  %v24108_v62 = vmov 0  ;;  %v19190_v43 = vpop.permute.xlu0 %8527 }
 0x3fb   :  { %v24109_v62 = vsel %vm19140_vm13, 4294967295, %v24108_v62  ;;  %v24112_v34 = vsel %vm19157_vm10, 4294967295, %v24111_v34  ;;  %24120 = vst [vmem:[#allocation118_spill] sm:$0xff] %v19190_v43 }
 0x3fc   :  { %24104 = vst [vmem:[#allocation24_spill] sm:$0xff] %v19110_v54  ;;  %24110 = vst [vmem:[#allocation54_spill] sm:$0xff] %v24109_v62  ;;  %vm9167_vm6 = vcmp.lt.f32.partialorder %v18178_v46, %v19110_v54  ;;  %vm9168_vm2 = vcmp.lt.f32.partialorder %v18188_v36, %v19110_v54  ;;  %vm9169_vm7 = vcmp.lt.f32.partialorder %v19021_v32, %v19110_v54 }
 0x3fd   :  { %24113 = vst [vmem:[#allocation18_spill] sm:$0xff] %v24112_v34  ;;  %vm19168_vm1 = vmand %vm9167_vm6, %vm9295_vm0  ;;  %v19175_v62 = vrot.slane %v8865_v56, %v24096_v58  ;;  %v19178_v34 = vrot.slane %v8869_v12, %v24096_v58  ;;  %vm24128_vm6 = vnez %v23910_v10  ;;  %vm24131_vm15 = vcmp.eq.f32.partialorder %v18188_v36, %v19110_v54 }
 0x3fe   :  { %vm19185_vm0 = vmand %vm9168_vm2, %vm24117_vm9  ;;  %v19296_v20 = vpop.permute.xlu0 %8660 }
 0x3ff   :  { %24116 = vst [vmem:[#allocation117_spill] sm:$0xff] %v19178_v34  ;;  %vm19203_vm2 = vmand %vm9169_vm7, %vm9297_vm11  ;;  %vm24124_vm11 = vcmp.eq.f32.partialorder %v18178_v46, %v19110_v54  ;;  %vm24145_vm9 = vcmp.lt.f32.partialorder %v18178_v46, %v19178_v34 }
 0x400   :  { %vm19221_vm7 = vmand %vm24124_vm11, %vm24123_vm8  ;;  %vm24130_vm11 = vcmp.eq.s32.totalorder %v18581_v9, 2  ;;  %24141 = vst [vmem:[#allocation119_spill] sm:$0xff] %v19296_v20 }
 0x401   :  { %vm24129_vm10 = vmor %vm24127_vm4, %vm24128_vm6  ;;  %vm24134_vm4 = vnez %v23872_v3  ;;  %vm24135_vm6 = vnez %v23914_v57 }
 0x402   :  { %v19236_v38 = vsel %vm24129_vm10, 1, %v23857_v2  ;;  %vm19244_vm13 = vmand %vm24131_vm15, %vm24130_vm11  ;;  %vm24137_vm15 = vcmp.eq.s32.totalorder %v18980_v35, 2  ;;  %vm24138_vm11 = vcmp.eq.f32.partialorder %v19021_v32, %v19110_v54  ;;  %vm9173_vm10 = vcmp.lt.f32.partialorder %v19021_v32, %v19178_v34  ;;  %v24312_v54 = vld [vmem:[#allocation95_spill] sm:$0xff] }
 0x403   :  { %vm24136_vm8 = vmor %vm24134_vm4, %vm24135_vm6 }
 0x404   :  { %v19260_v9 = vsel %vm24136_vm8, 1, %v23857_v2  ;;  %vm19267_vm5 = vmand %vm24138_vm11, %vm24137_vm15  ;;  %vm24144_vm15 = vcmp.ge.s32.totalorder %v18784_v27, 1 }
 0x405   :  { %vm10447_vm6 = vmor %vm19168_vm1, %vm19221_vm7  ;;  %vm24187_vm7 = vnez %v23881_v30  ;;  %vm24188_vm1 = vnez %v23936_v6 }
 0x406   :  { %vm10448_vm8 = vmor %vm19185_vm0, %vm19244_vm13  ;;  %v10575_v3 = vsel %vm10447_vm6, 1, %v23857_v2  ;;  %vm24142_vm13 = vcmask 261120   ;;  %vm24165_vm0 = vcmp.eq.s32.totalorder %v18841_v29, 2 }
 0x407   :  { %vm10449_vm4 = vmor %vm19203_vm2, %vm19267_vm5  ;;  %v10576_v57 = vsel %vm10448_vm8, 1, %v23857_v2  ;;  %v10902_v35 = vsel %vm24142_vm13, %v10575_v3, 0  ;;  %vm24153_vm2 = vcmask 261120  }
 0x408   :  { %v10577_v43 = vsel %vm10449_vm4, 1, %v23857_v2  ;;  %vm24143_vm11 = vmmov %vm24142_vm13  ;;  %vm24148_vm4 = vcmp.ge.s32.totalorder %v18841_v29, 1 }
 0x409   :  { %v10903_v39 = vsel %vm24143_vm11, %v10576_v57, 0  ;;  %vm19321_vm5 = vmand %vm24145_vm9, %vm24144_vm15  ;;  %vm24149_vm11 = vcmp.lt.f32.partialorder %v18188_v36, %v19178_v34  ;;  %v10905_v3 = vsel %vm24153_vm2, %v10577_v43, 0  ;;  %vm9813_vm15 = vcmp.eq.f32.partialorder %v19021_v32, %v19178_v34  ;;  %v19398_v43 = vpop.permute.xlu0 %8546 }
 0x40a   :  { %v10904_v56 = vadd.s32 %v10903_v39, %v10902_v35  ;;  %vm19334_vm13 = vmand %vm24149_vm11, %vm24148_vm4  ;;  %vm24154_vm4 = vcmp.ge.s32.totalorder %v19129_v41, 1  ;;  %vm24159_vm2 = vcmp.eq.f32.partialorder %v18178_v46, %v19178_v34  ;;  %vm24163_vm9 = vnez %v23997_v48  ;;  %24169 = vst [vmem:[#allocation121_spill] sm:$0xff] %v19398_v43  ;;  %v19400_v39 = vpop.f32.mrb[130].mxu1 }
 0x40b   :  { %vm24152_vm8 = vmor %vm19086_vm12, %vm19105_vm3  ;;  %vm24158_vm3 = vcmp.eq.s32.totalorder %v18784_v27, 2  ;;  %vm24162_vm12 = vnez %v23977_v17  ;;  %v8105_v48 = vpop.f32.mrb[131].mxu1 }
 0x40c   :  { %v19348_v10 = vsel %vm24152_vm8, 1, %v23857_v2  ;;  %vm19356_vm11 = vmand %vm9173_vm10, %vm24154_vm4  ;;  %v19366_v4 = vadd.s32 %v10905_v3, %v10904_v56  ;;  %vm24173_vm8 = vcmp.eq.s32.totalorder %v19129_v41, 2  ;;  %v8870_v56 = vcombine.high %v19400_v39, %v19400_v39  ;;  %v24177_v48 = vld [vmem:[#allocation62_spill] sm:$0xff] }
 0x40d   :  { %vm19373_vm10 = vmand %vm24159_vm2, %vm24158_vm3  ;;  %vm24166_vm3 = vcmp.eq.f32.partialorder %v18188_v36, %v19178_v34  ;;  %v19460_v12 = vpop.permute.xlu0 %8713 }
 0x40e   :  { %24157 = vst [vmem:[#allocation120_spill] sm:$0xff] %v19366_v4  ;;  %vm24164_vm6 = vmor %vm24162_vm12, %vm24163_vm9  ;;  %vm24170_vm12 = vnez %v23874_v55  ;;  %v8877_v55 = vrot.slane %v19400_v39, %v18174_v49  ;;  %v8884_v24 = vrot.slane %v8870_v56, %v18174_v49  ;;  %vm9331_vm9 = vcmp.ge.s32.totalorder %v19079_v5, 1 }
 0x40f   :  { %v19387_v27 = vsel %vm24164_vm6, 1, %v23857_v2  ;;  %vm19394_vm2 = vmand %vm24166_vm3, %vm24165_vm0  ;;  %vm24171_vm0 = vnez %v23923_v16  ;;  %v24176_v16 = vld [vmem:[#allocation93_spill] sm:$0xff] }
 0x410   :  { %vm24172_vm3 = vmor %vm24170_vm12, %vm24171_vm0  ;;  %vm9242_vm6 = vcmp.ge.s32.totalorder %v24176_v16, 1  ;;  %v8885_v3 = vcombine.high %v8877_v55, %v8877_v55  ;;  %v8893_v61 = vrot.slane %v8877_v55, %v18174_v49  ;;  %vm24178_vm12 = vcmask 261120   ;;  %v24249_v16 = vld [vmem:[#allocation45_spill] sm:$0xff] }
 0x411   :  { %v19414_v17 = vsel %vm24172_vm3, 1, %v23857_v2  ;;  %vm19421_vm4 = vmand %vm9813_vm15, %vm24173_vm8  ;;  %v8886_v57 = vcombine.high %v8884_v24, %v8884_v24  ;;  %v8900_v29 = vrot.slane %v8884_v24, %v18174_v49  ;;  %v24184_v24 = vld [vmem:[#allocation19_spill] sm:$0xff] }
 0x412   :  { %vm10451_vm15 = vmor %vm19321_vm5, %vm19373_vm10  ;;  %vm9246_vm5 = vcmp.ge.s32.totalorder %v24177_v48, 1  ;;  %v8907_v20 = vrot.slane %v8885_v3, %v18174_v49  ;;  %v8915_v43 = vcombine.high %v8893_v61, %v8893_v61  ;;  %vm24185_vm3 = vnez %v24184_v24  ;;  %v24246_v48 = vld [vmem:[#allocation23_spill] sm:$0xff] }
 0x413   :  { %vm10452_vm0 = vmor %vm19334_vm13, %vm19394_vm2  ;;  %v10579_v41 = vsel %vm10451_vm15, 1, %v23857_v2  ;;  %vm9114_vm2 = vcmp.lt.f32.partialorder %v19400_v39, %v18311_v11  ;;  %v8914_v45 = vrot.slane %v8886_v57, %v18174_v49  ;;  %vm24183_vm13 = vnez %v23879_v52 }
 0x414   :  { %vm10453_vm10 = vmor %vm19356_vm11, %vm19421_vm4  ;;  %v10580_v4 = vsel %vm10452_vm0, 1, %v23857_v2  ;;  %v10915_v35 = vsel %vm24178_vm12, %v10579_v41, 0  ;;  %vm9333_vm11 = vcmp.ge.s32.totalorder %v19460_v12, 1  ;;  %vm9332_vm4 = vcmp.ge.s32.totalorder %v19055_v28, 1 }
 0x415   :  { %v10581_v56 = vsel %vm10453_vm10, 1, %v23857_v2  ;;  %vm24179_vm15 = vmmov %vm24178_vm12  ;;  %vm24180_vm12 = vnez %v23877_v8  ;;  %vm24181_vm0 = vnez %v23926_v31  ;;  %v8916_v49 = vcombine.high %v8900_v29, %v8900_v29 }
 0x416   :  { %v10916_v55 = vsel %vm24179_vm15, %v10580_v4, 0  ;;  %vm24182_vm10 = vmor %vm24180_vm12, %vm24181_vm0  ;;  %v10918_v42 = vsel %vm24179_vm15, %v10581_v56, 0  ;;  %vm9971_vm0 = vcmp.eq.s32.totalorder %v19079_v5, 2  ;;  %v8917_v52 = vcombine.high %v8907_v20, %v8907_v20  ;;  %v24217_v5 = vld [vmem:[#allocation13_spill] sm:$0xff] }
 0x417   :  { %v10917_v41 = vadd.s32 %v10916_v55, %v10915_v35  ;;  %v19479_v4 = vsel %vm24182_vm10, 1, %v23857_v2  ;;  %vm24186_vm8 = vmor %vm24183_vm13, %vm24185_vm3  ;;  %v19504_v35 = vrot.slane %v8893_v61, %v24096_v58  ;;  %v8918_v56 = vcombine.high %v8914_v45, %v8914_v45  ;;  %v24201_v55 = vld [vmem:[#allocation78_spill] sm:$0xff] }
 0x418   :  { %v19489_v3 = vsel %vm24186_vm8, 1, %v23857_v2  ;;  %vm24189_vm12 = vmor %vm24187_vm7, %vm24188_vm1  ;;  %v19508_v30 = vrot.slane %v8907_v20, %v24096_v58  ;;  %v19511_v6 = vrot.slane %v8915_v43, %v24096_v58  ;;  %vm9118_vm1 = vcmp.lt.f32.partialorder %v19400_v39, %v18324_v13 }
 0x419   :  { %v19497_v31 = vsel %vm24189_vm12, 1, %v23857_v2  ;;  %v19499_v8 = vadd.s32 %v10918_v42, %v10917_v41  ;;  %v19516_v42 = vrot.slane %v8917_v52, %v24096_v58  ;;  %v19525_v20 = vrot.slane %v8918_v56, %v24096_v58  ;;  %vm19546_vm12 = vmand %vm9114_vm2, %vm9242_vm6  ;;  %v24204_v41 = vld [vmem:[#allocation39_spill] sm:$0xff]  ;;  %v24208_v56 = vld [vmem:[#allocation30_spill] sm:$0xff] }
 0x41a   :  { %24191 = vst [vmem:[#allocation122_spill] sm:$0xff] %v19508_v30  ;;  %24192 = vst [vmem:[#allocation123_spill] sm:$0xff] %v19511_v6  ;;  %v24195_v43 = vmov 0  ;;  %v24198_v61 = vmov 0  ;;  %v19590_v52 = vrot.slane %v8900_v29, %v24096_v58 }
 0x41b   :  { %24190 = vst [vmem:[#allocation19_spill] sm:$0xff] %v19499_v8  ;;  %24193 = vst [vmem:[#allocation124_spill] sm:$0xff] %v19516_v42  ;;  %v24196_v43 = vsel %vm19546_vm12, 4294967295, %v24195_v43  ;;  %vm9203_vm7 = vcmp.lt.f32.partialorder %v18178_v46, %v19525_v20  ;;  %vm9204_vm3 = vcmp.lt.f32.partialorder %v18188_v36, %v19525_v20  ;;  %vm9205_vm13 = vcmp.lt.f32.partialorder %v19021_v32, %v19525_v20 }
 0x41c   :  { %24194 = vst [vmem:[#allocation125_spill] sm:$0xff] %v19525_v20  ;;  %24197 = vst [vmem:[#allocation126_spill] sm:$0xff] %v24196_v43  ;;  %vm9844_vm15 = vcmp.eq.f32.partialorder %v18188_v36, %v19525_v20  ;;  %v19600_v8 = vrot.slane %v8914_v45, %v24096_v58  ;;  %v24212_v45 = vld [vmem:[#allocation61_spill] sm:$0xff]  ;;  %vm24213_vm2 = vcmp.eq.f32.partialorder %v18178_v46, %v19525_v20 }
 0x41d   :  { %vm19563_vm6 = vmand %vm9118_vm1, %vm9246_vm5  ;;  %24207 = vst [vmem:[#allocation78_spill] sm:$0xff] %v19590_v52  ;;  %v19628_v43 = vrot.slane %v8916_v49, %v24096_v58  ;;  %vm24247_vm1 = vnez %v24246_v48  ;;  %v24256_v48 = vld [vmem:[#allocation35_spill] sm:$0xff]  ;;  %v24341_v52 = vld [vmem:[#allocation98_spill] sm:$0xff] }
 0x41e   :  { %v24199_v61 = vsel %vm19563_vm6, 4294967295, %v24198_v61  ;;  %vm19570_vm10 = vmand %vm9203_vm7, %vm9331_vm9  ;;  %24209 = vst [vmem:[#allocation39_spill] sm:$0xff] %v19600_v8  ;;  %vm24218_vm7 = vcmp.eq.s32.totalorder %v19055_v28, 2  ;;  %v24222_v28 = vld [vmem:[#allocation20_spill] sm:$0xff]  ;;  %v24348_v8 = vmov 0 }
 0x41f   :  { %24200 = vst [vmem:[#allocation127_spill] sm:$0xff] %v24199_v61  ;;  %vm19585_vm9 = vmand %vm9204_vm3, %vm9332_vm4  ;;  %vm24223_vm3 = vnez %v24222_v28  ;;  %v24241_v61 = vld [vmem:[#allocation71_spill] sm:$0xff] }
 0x420   :  { %vm19607_vm4 = vmand %vm9205_vm13, %vm9333_vm11  ;;  %24216 = vst [vmem:[#allocation30_spill] sm:$0xff] %v19628_v43  ;;  %vm24221_vm13 = vnez %v23891_v21  ;;  %v24230_v21 = vld [vmem:[#allocation94_spill] sm:$0xff] }
 0x421   :  { %vm19623_vm11 = vmand %vm24213_vm2, %vm9971_vm0  ;;  %vm24227_vm2 = vcmp.eq.f32.partialorder %v19021_v32, %v19525_v20  ;;  %v24235_v20 = vld [vmem:[#allocation14_spill] sm:$0xff] }
 0x422   :  { %vm19642_vm0 = vmand %vm9844_vm15, %vm24218_vm7  ;;  %vm24226_vm7 = vcmp.eq.s32.totalorder %v19460_v12, 2  ;;  %v24232_v12 = vld [vmem:[#allocation75_spill] sm:$0xff] }
 0x423   :  { %vm24224_vm8 = vmor %vm24221_vm13, %vm24223_vm3  ;;  %vm24231_vm3 = vnez %v24230_v21  ;;  %vm24233_vm13 = vnez %v24232_v12  ;;  %v24236_v21 = vld [vmem:[#allocation90_spill] sm:$0xff]  ;;  %v24238_v12 = vld [vmem:[#allocation16_spill] sm:$0xff] }
 0x424   :  { %v19658_v49 = vsel %vm24224_vm8, 1, %v23857_v2  ;;  %vm19666_vm6 = vmand %vm24227_vm2, %vm24226_vm7  ;;  %vm24259_vm8 = vcmp.lt.f32.partialorder %v19021_v32, %v18338_v14 }
 0x425   :  { %vm24234_vm15 = vmor %vm24231_vm3, %vm24233_vm13  ;;  %vm24239_vm3 = vnez %v24238_v12  ;;  %v24244_v12 = vld [vmem:[#allocation46_spill] sm:$0xff] }
 0x426   :  { %v19682_v28 = vsel %vm24234_vm15, 1, %v23857_v2  ;;  %vm10483_vm7 = vmor %vm19570_vm10, %vm19623_vm11  ;;  %vm24237_vm15 = vnez %v24236_v21  ;;  %v24242_v21 = vld [vmem:[#allocation34_spill] sm:$0xff]  ;;  %vm24278_vm11 = vcmp.lt.f32.partialorder %v19400_v39, %v24097_v0 }
 0x427   :  { %vm24240_vm13 = vmor %vm24237_vm15, %vm24239_vm3  ;;  %v10611_v57 = vsel %vm10483_vm7, 1, %v23857_v2  ;;  %vm24245_vm7 = vnez %v24244_v12  ;;  %vm24283_vm3 = vcmp.ge.s32.totalorder %v24225_v26, 1 }
 0x428   :  { %v19701_v53 = vsel %vm24240_vm13, 1, %v23857_v2  ;;  %vm10484_vm10 = vmor %vm19585_vm9, %vm19642_vm0  ;;  %vm24243_vm9 = vcmask 261120  }
 0x429   :  { %vm10485_vm13 = vmor %vm19607_vm4, %vm19666_vm6  ;;  %v10612_v63 = vsel %vm10484_vm10, 1, %v23857_v2  ;;  %v11019_v24 = vsel %vm24243_vm9, %v10611_v57, 0  ;;  %vm24251_vm4 = vcmp.ge.s32.totalorder %v24201_v55, 1  ;;  %vm24252_vm10 = vcmp.lt.f32.partialorder %v19400_v39, %v18327_v47 }
 0x42a   :  { %vm24248_vm15 = vmor %vm24245_vm7, %vm24247_vm1  ;;  %v10613_v34 = vsel %vm10485_vm13, 1, %v23857_v2  ;;  %v24253_v57 = vmov 0  ;;  %vm24264_vm1 = vcmp.ge.s32.totalorder %v24208_v56, 1 }
 0x42b   :  { %v19730_v22 = vsel %vm24248_vm15, 1, %v23857_v2  ;;  %vm24250_vm6 = vmmov %vm24243_vm9  ;;  %vm24277_vm15 = vcmp.ge.s32.totalorder %v24217_v5, 1 }
 0x42c   :  { %v11020_v29 = vsel %vm24250_vm6, %v10612_v63, 0  ;;  %vm19740_vm9 = vmand %vm24252_vm10, %vm24251_vm4 }
 0x42d   :  { %v24254_v57 = vsel %vm19740_vm9, 4294967295, %v24253_v57  ;;  %v11021_v12 = vadd.s32 %v11020_v29, %v11019_v24  ;;  %vm24257_vm13 = vmmov %vm24250_vm6  ;;  %vm24258_vm6 = vcmp.ge.s32.totalorder %v24204_v41, 1  ;;  %v24266_v24 = vmov 0 }
 0x42e   :  { %24255 = vst [vmem:[#allocation61_spill] sm:$0xff] %v24254_v57  ;;  %v11022_v63 = vsel %vm24257_vm13, %v10613_v34, 0  ;;  %vm19755_vm4 = vmand %vm24259_vm8, %vm24258_vm6  ;;  %v24263_v57 = vld [vmem:[#allocation84_spill] sm:$0xff]  ;;  %vm24265_vm13 = vcmp.lt.f32.partialorder %v19400_v39, %v18338_v14  ;;  %v24269_v34 = vld [vmem:[#allocation9_spill] sm:$0xff]  ;;  %vm24295_vm8 = vcmp.lt.f32.partialorder %v19400_v39, %v24098_v25 }
 0x42f   :  { %v24261_v7 = vsel %vm19755_vm4, 4294967295, %v24260_v7  ;;  %vm19769_vm0 = vmand %vm24265_vm13, %vm24264_vm1  ;;  %v19782_v29 = vadd.s32 %v11022_v63, %v11021_v12  ;;  %vm24271_vm1 = vcmp.ge.s32.totalorder %v24212_v45, 1  ;;  %vm24272_vm13 = vcmp.lt.f32.partialorder %v19021_v32, %v24097_v0  ;;  %v24276_v12 = vld [vmem:[#allocation66_spill] sm:$0xff] }
 0x430   :  { %24262 = vst [vmem:[#allocation13_spill] sm:$0xff] %v24261_v7  ;;  %v24267_v24 = vsel %vm19769_vm0, 4294967295, %v24266_v24  ;;  %vm19789_vm7 = vmand %vm24272_vm13, %vm24271_vm1  ;;  %v24279_v63 = vmov 0  ;;  %v24290_v7 = vld [vmem:[#allocation91_spill] sm:$0xff] }
 0x431   :  { %24268 = vst [vmem:[#allocation20_spill] sm:$0xff] %v24267_v24  ;;  %24270 = vst [vmem:[#allocation57_spill] sm:$0xff] %v19782_v29  ;;  %v24273_v24 = vmov 0  ;;  %v24282_v29 = vld [vmem:[#allocation37_spill] sm:$0xff]  ;;  %vm24291_vm5 = vnez %v24290_v7 }
 0x432   :  { %v24274_v24 = vsel %vm19789_vm7, 4294967295, %v24273_v24  ;;  %vm19805_vm1 = vmand %vm24278_vm11, %vm24277_vm15  ;;  %vm24284_vm11 = vcmp.lt.f32.partialorder %v19021_v32, %v24098_v25 }
 0x433   :  { %24275 = vst [vmem:[#allocation94_spill] sm:$0xff] %v24274_v24  ;;  %v24280_v63 = vsel %vm19805_vm1, 4294967295, %v24279_v63  ;;  %vm19823_vm15 = vmand %vm24284_vm11, %vm24283_vm3  ;;  %v24288_v24 = vld [vmem:[#allocation51_spill] sm:$0xff]  ;;  %vm24294_vm11 = vcmp.ge.s32.totalorder %v24235_v20, 1  ;;  %vm24301_vm3 = vcmp.ge.s32.totalorder %v24241_v61, 1 }
 0x434   :  { %24281 = vst [vmem:[#allocation75_spill] sm:$0xff] %v24280_v63  ;;  %v24285_v63 = vmov 0  ;;  %vm24289_vm13 = vnez %v24288_v24  ;;  %v24300_v24 = vld [vmem:[#allocation65_spill] sm:$0xff] }
 0x435   :  { %v24286_v63 = vsel %vm19823_vm15, 4294967295, %v24285_v63  ;;  %vm24292_vm2 = vmor %vm24289_vm13, %vm24291_vm5  ;;  %vm24319_vm13 = vcmp.ge.s32.totalorder %v24256_v48, 1 }
 0x436   :  { %24287 = vst [vmem:[#allocation14_spill] sm:$0xff] %v24286_v63  ;;  %v19839_v15 = vsel %vm24292_vm2, 1, %v23857_v2  ;;  %vm19847_vm15 = vmand %vm24295_vm8, %vm24294_vm11  ;;  %v24296_v63 = vmov 0  ;;  %vm24299_vm2 = vcmask 261120   ;;  %vm24302_vm8 = vcmp.lt.f32.partialorder %v19021_v32, %v24099_v59 }
 0x437   :  { %v24297_v63 = vsel %vm19847_vm15, 4294967295, %v24296_v63  ;;  %v10694_v7 = vsel %vm24299_vm2, %v19348_v10, 0  ;;  %vm19865_vm11 = vmand %vm24302_vm8, %vm24301_vm3  ;;  %v24306_v10 = vld [vmem:[#allocation48_spill] sm:$0xff]  ;;  %vm24307_vm8 = vcmp.ge.s32.totalorder %v24242_v21, 1  ;;  %vm24313_vm3 = vcmp.ge.s32.totalorder %v24249_v16, 1 }
 0x438   :  { %24298 = vst [vmem:[#allocation90_spill] sm:$0xff] %v24297_v63  ;;  %v24303_v63 = vmov 0  ;;  %vm24314_vm15 = vcmp.lt.f32.partialorder %v18178_v46, %v19068_v51  ;;  %vm24318_vm6 = vmmov %vm24299_vm2 }
 0x439   :  { %v24304_v63 = vsel %vm19865_vm11, 4294967295, %v24303_v63  ;;  %vm24308_vm11 = vcmp.lt.f32.partialorder %v19400_v39, %v24099_v59 }
 0x43a   :  { %24305 = vst [vmem:[#allocation16_spill] sm:$0xff] %v24304_v63  ;;  %vm19885_vm10 = vmand %vm24308_vm11, %vm24307_vm8  ;;  %v24309_v63 = vmov 0  ;;  %vm24336_vm8 = vcmp.ge.s32.totalorder %v24276_v12, 1 }
 0x43b   :  { %v24310_v63 = vsel %vm19885_vm10, 4294967295, %v24309_v63  ;;  %vm19901_vm11 = vmand %vm24314_vm15, %vm24313_vm3  ;;  %vm24320_vm15 = vcmp.lt.f32.partialorder %v18188_v36, %v19068_v51 }
 0x43c   :  { %24311 = vst [vmem:[#allocation71_spill] sm:$0xff] %v24310_v63  ;;  %v24316_v60 = vsel %vm19901_vm11, 4294967295, %v24315_v60  ;;  %v10695_v63 = vsel %vm24318_vm6, %v19387_v27, 0  ;;  %vm19918_vm3 = vmand %vm24320_vm15, %vm24319_vm13  ;;  %vm24325_vm11 = vcmp.ge.s32.totalorder %v24263_v57, 1  ;;  %vm24326_vm13 = vcmp.lt.f32.partialorder %v19021_v32, %v19068_v51 }
 0x43d   :  { %24317 = vst [vmem:[#allocation34_spill] sm:$0xff] %v24316_v60  ;;  %v24322_v18 = vsel %vm19918_vm3, 4294967295, %v24321_v18  ;;  %vm24324_vm6 = vmmov %vm24299_vm2  ;;  %v24327_v60 = vmov 0  ;;  %vm24337_vm3 = vcmp.lt.f32.partialorder %v18178_v46, %v19091_v1 }
 0x43e   :  { %24323 = vst [vmem:[#allocation46_spill] sm:$0xff] %v24322_v18  ;;  %v10720_v27 = vsel %vm24324_vm6, %v19236_v38, 0  ;;  %vm19935_vm15 = vmand %vm24326_vm13, %vm24325_vm11  ;;  %vm24331_vm11 = vcmp.ge.s32.totalorder %v24269_v34, 1  ;;  %vm24332_vm13 = vcmp.lt.f32.partialorder %v19400_v39, %v19068_v51 }
 0x43f   :  { %v24328_v60 = vsel %vm19935_vm15, 4294967295, %v24327_v60  ;;  %vm24330_vm6 = vmmov %vm24299_vm2 }
 0x440   :  { %24329 = vst [vmem:[#allocation23_spill] sm:$0xff] %v24328_v60  ;;  %v10721_v38 = vsel %vm24330_vm6, %v19260_v9, 0  ;;  %vm19954_vm15 = vmand %vm24332_vm13, %vm24331_vm11  ;;  %v24333_v60 = vmov 0  ;;  %v24338_v9 = vmov 0  ;;  %vm24342_vm6 = vnez %v24341_v52 }
 0x441   :  { %v24334_v60 = vsel %vm19954_vm15, 4294967295, %v24333_v60  ;;  %vm19969_vm10 = vmand %vm24337_vm3, %vm24336_vm8  ;;  %vm24346_vm3 = vcmp.ge.s32.totalorder %v24282_v29, 1  ;;  %vm24347_vm11 = vcmp.lt.f32.partialorder %v18188_v36, %v19091_v1  ;;  %v19998_v52 = vadd.s32 %v10695_v63, %v10694_v7 }
 0x442   :  { %24335 = vst [vmem:[#allocation45_spill] sm:$0xff] %v24334_v60  ;;  %v24339_v9 = vsel %vm19969_vm10, 4294967295, %v24338_v9  ;;  %v24343_v60 = vld [vmem:[#allocation87_spill] sm:$0xff]  ;;  %vm19992_vm10 = vmand %vm24347_vm11, %vm24346_vm3  ;;  %v10746_v63 = vsel %vm24299_vm2, %v19489_v3, 0  ;;  %vm24361_vm8 = vcmp.ge.s32.totalorder %v24300_v24, 1  ;;  %v10760_v3 = vsel %vm24299_vm2, %v19730_v22, 0 }
 0x443   :  { %24340 = vst [vmem:[#allocation35_spill] sm:$0xff] %v24339_v9  ;;  %vm24344_vm5 = vnez %v24343_v60  ;;  %v24349_v8 = vsel %vm19992_vm10, 4294967295, %v24348_v8  ;;  %24351 = vst [vmem:[#allocation9_spill] sm:$0xff] %v19998_v52  ;;  %v20000_v60 = vadd.s32 %v10721_v38, %v10720_v27  ;;  %v24355_v9 = vmov 0  ;;  %v24467_v52 = vld [vmem:[#allocation3_spill] sm:$0xff] }
 0x444   :  { %vm24345_vm15 = vmor %vm24342_vm6, %vm24344_vm5  ;;  %24350 = vst [vmem:[#allocation84_spill] sm:$0xff] %v24349_v8  ;;  %vm24353_vm5 = vcmp.ge.s32.totalorder %v24293_v37, 1  ;;  %v24363_v27 = vmov 0 }
 0x445   :  { %v10540_v18 = vsel %vm24345_vm15, 1, %v23857_v2  ;;  %24352 = vst [vmem:[#allocation66_spill] sm:$0xff] %v20000_v60  ;;  %vm24354_vm15 = vcmp.lt.f32.partialorder %v19021_v32, %v19091_v1  ;;  %vm24358_vm11 = vmmov %vm24299_vm2  ;;  %v24458_v60 = vld [vmem:[#allocation101_spill] sm:$0xff] }
 0x446   :  { %vm20007_vm6 = vmand %vm24354_vm15, %vm24353_vm5  ;;  %v10733_v2 = vsel %vm24358_vm11, %v19414_v17, 0  ;;  %vm24362_vm5 = vcmp.lt.f32.partialorder %v19400_v39, %v19091_v1 }
 0x447   :  { %v24356_v9 = vsel %vm20007_vm6, 4294967295, %v24355_v9  ;;  %vm24359_vm3 = vmmov %vm24299_vm2 }
 0x448   :  { %24357 = vst [vmem:[#allocation37_spill] sm:$0xff] %v24356_v9  ;;  %v10734_v8 = vsel %vm24359_vm3, %v19479_v4, 0  ;;  %vm24360_vm13 = vmmov %vm24299_vm2  ;;  %vm24370_vm3 = vcmp.lt.f32.partialorder %v18178_v46, %v19094_v40  ;;  %v24440_v9 = vmov 0 }
 0x449   :  { %v10747_v7 = vsel %vm24360_vm13, %v19497_v31, 0  ;;  %vm20024_vm15 = vmand %vm24362_vm5, %vm24361_vm8  ;;  %v20028_v38 = vadd.s32 %v10734_v8, %v10733_v2  ;;  %vm24369_vm13 = vcmp.ge.s32.totalorder %v24306_v10, 1  ;;  %v24371_v31 = vmov 0  ;;  %v24378_v8 = vld [vmem:[#allocation100_spill] sm:$0xff] }
 0x44a   :  { %v24364_v27 = vsel %vm20024_vm15, 4294967295, %v24363_v27  ;;  %v20030_v17 = vadd.s32 %v10747_v7, %v10746_v63  ;;  %vm24368_vm11 = vmmov %vm24299_vm2  ;;  %vm24379_vm15 = vcmp.ge.s32.totalorder %v24312_v54, 1  ;;  %v24381_v63 = vmov 0 }
 0x44b   :  { %24365 = vst [vmem:[#allocation51_spill] sm:$0xff] %v24364_v27  ;;  %24366 = vst [vmem:[#allocation91_spill] sm:$0xff] %v20028_v38  ;;  %v10759_v4 = vsel %vm24368_vm11, %v19701_v53, 0  ;;  %v24437_v27 = vld [vmem:[#allocation80_spill] sm:$0xff]  ;;  %v24453_v38 = vld [vmem:[#allocation81_spill] sm:$0xff] }
 0x44c   :  { %24367 = vst [vmem:[#allocation38_spill] sm:$0xff] %v20030_v17  ;;  %vm20041_vm6 = vmand %vm24370_vm3, %vm24369_vm13  ;;  %v20045_v43 = vadd.s32 %v10760_v3, %v10759_v4  ;;  %vm24380_vm13 = vcmp.lt.f32.partialorder %v18188_v36, %v19094_v40  ;;  %v24391_v4 = vld [vmem:[#allocation64_spill] sm:$0xff]  ;;  %v24392_v3 = vld [vmem:[#allocation49_spill] sm:$0xff] }
 0x44d   :  { %v24372_v31 = vsel %vm20041_vm6, 4294967295, %v24371_v31  ;;  %vm24375_vm8 = vmmov %vm24299_vm2  ;;  %v24452_v17 = vld [vmem:[#allocation10_spill] sm:$0xff] }
 0x44e   :  { %24373 = vst [vmem:[#allocation65_spill] sm:$0xff] %v24372_v31  ;;  %24374 = vst [vmem:[#allocation48_spill] sm:$0xff] %v20045_v43  ;;  %v10772_v2 = vsel %vm24375_vm8, %v19658_v49, 0  ;;  %v24430_v31 = vmov 0  ;;  %v24443_v43 = vld [vmem:[#allocation85_spill] sm:$0xff] }
 0x44f   :  { %vm24376_vm5 = vmmov %vm24299_vm2 }
 0x450   :  { %v10773_v53 = vsel %vm24376_vm5, %v19682_v28, 0  ;;  %vm24377_vm11 = vmmov %vm24299_vm2  ;;  %vm9281_vm2 = vcmp.ge.s32.totalorder %v24378_v8, 1 }
 0x451   :  { %v10785_v22 = vsel %vm24377_vm11, %v19839_v15, 0  ;;  %vm20059_vm3 = vmand %vm24380_vm13, %vm24379_vm15  ;;  %v20063_v7 = vadd.s32 %v10773_v53, %v10772_v2  ;;  %v24387_v15 = vmov 0  ;;  %vm9283_vm11 = vcmp.ge.s32.totalorder %v24391_v4, 1  ;;  %v24397_v2 = vld [vmem:[#allocation42_spill] sm:$0xff] }
 0x452   :  { %v24382_v63 = vsel %vm20059_vm3, 4294967295, %v24381_v63  ;;  %vm24385_vm8 = vmmov %vm24376_vm5  ;;  %vm24386_vm5 = vcmp.lt.f32.partialorder %v19021_v32, %v19094_v40  ;;  %vm9157_vm15 = vcmp.lt.f32.partialorder %v19021_v32, %v19114_v33  ;;  %vm9284_vm13 = vcmp.ge.s32.totalorder %v24392_v3, 1 }
 0x453   :  { %24383 = vst [vmem:[#allocation95_spill] sm:$0xff] %v24382_v63  ;;  %24384 = vst [vmem:[#allocation98_spill] sm:$0xff] %v20063_v7  ;;  %v10786_v49 = vsel %vm24385_vm8, %v10540_v18, 0  ;;  %vm24393_vm3 = vcmp.lt.f32.partialorder %v18178_v46, %v19114_v33  ;;  %v24394_v18 = vmov 0  ;;  %v8771_v53 = vcombine.high %v24397_v2, %v24397_v2  ;;  %v24408_v7 = vld [vmem:[#allocation76_spill] sm:$0xff]  ;;  %v24427_v63 = vld [vmem:[#allocation55_spill] sm:$0xff] }
 0x454   :  { %vm20069_vm6 = vmand %vm24386_vm5, %vm9281_vm2  ;;  %v20073_v28 = vadd.s32 %v10786_v49, %v10785_v22  ;;  %vm24399_vm5 = vcmp.lt.f32.partialorder %v18188_v36, %v19114_v33  ;;  %v24400_v22 = vmov 0  ;;  %v24403_v49 = vmov 0 }
 0x455   :  { %v24388_v15 = vsel %vm20069_vm6, 4294967295, %v24387_v15  ;;  %vm20082_vm8 = vmand %vm24393_vm3, %vm9283_vm11  ;;  %vm9288_vm11 = vcmp.ge.s32.totalorder %v24408_v7, 1  ;;  %v24410_v2 = vmov 0 }
 0x456   :  { %24389 = vst [vmem:[#allocation87_spill] sm:$0xff] %v24388_v15  ;;  %24390 = vst [vmem:[#allocation100_spill] sm:$0xff] %v20073_v28  ;;  %v24395_v18 = vsel %vm20082_vm8, 4294967295, %v24394_v18  ;;  %v24398_v15 = vld [vmem:[#allocation104_spill] sm:$0xff]  ;;  %v20101_v28 = vrot.slane %v8771_v53, %v24096_v58  ;;  %vm24409_vm8 = vcmp.lt.f32.partialorder %v18178_v46, %v19126_v44  ;;  %v24414_v58 = vmov 0  ;;  %v24417_v53 = vld [vmem:[#allocation102_spill] sm:$0xff] }
 0x457   :  { %24396 = vst [vmem:[#allocation64_spill] sm:$0xff] %v24395_v18  ;;  %vm9285_vm2 = vcmp.ge.s32.totalorder %v24398_v15, 1  ;;  %vm20092_vm6 = vmand %vm24399_vm5, %vm9284_vm13  ;;  %v24407_v18 = vld [vmem:[#allocation50_spill] sm:$0xff]  ;;  %vm24413_vm13 = vcmp.lt.f32.partialorder %v18188_v36, %v19126_v44  ;;  %vm9291_vm5 = vcmp.ge.s32.totalorder %v24417_v53, 1 }
 0x458   :  { %v24401_v22 = vsel %vm20092_vm6, 4294967295, %v24400_v22  ;;  %vm20096_vm10 = vmand %vm9157_vm15, %vm9285_vm2  ;;  %24406 = vst [vmem:[#allocation104_spill] sm:$0xff] %v20101_v28  ;;  %vm9287_vm3 = vcmp.ge.s32.totalorder %v24407_v18, 1  ;;  %vm24423_vm15 = vcmp.lt.f32.partialorder %v18188_v36, %v19175_v62 }
 0x459   :  { %24402 = vst [vmem:[#allocation49_spill] sm:$0xff] %v24401_v22  ;;  %v24404_v49 = vsel %vm20096_vm10, 4294967295, %v24403_v49  ;;  %vm20108_vm1 = vmand %vm24409_vm8, %vm9287_vm3  ;;  %vm24419_vm8 = vcmp.lt.f32.partialorder %v18178_v46, %v19175_v62  ;;  %v24420_v22 = vmov 0 }
 0x45a   :  { %24405 = vst [vmem:[#allocation42_spill] sm:$0xff] %v24404_v49  ;;  %v24411_v2 = vsel %vm20108_vm1, 4294967295, %v24410_v2  ;;  %vm20117_vm2 = vmand %vm24413_vm13, %vm9288_vm11  ;;  %v24418_v49 = vld [vmem:[#allocation15_spill] sm:$0xff]  ;;  %vm9303_vm11 = vcmp.ge.s32.totalorder %v24427_v63, 1 }
 0x45b   :  { %24412 = vst [vmem:[#allocation50_spill] sm:$0xff] %v24411_v2  ;;  %v24415_v58 = vsel %vm20117_vm2, 4294967295, %v24414_v58  ;;  %vm9292_vm10 = vcmp.ge.s32.totalorder %v24418_v49, 1  ;;  %vm20126_vm3 = vmand %vm24419_vm8, %vm9291_vm5  ;;  %v24424_v2 = vmov 0  ;;  %vm24429_vm2 = vcmp.lt.f32.partialorder %v18178_v46, %v19504_v35 }
 0x45c   :  { %24416 = vst [vmem:[#allocation76_spill] sm:$0xff] %v24415_v58  ;;  %v24421_v22 = vsel %vm20126_vm3, 4294967295, %v24420_v22  ;;  %vm20133_vm1 = vmand %vm24423_vm15, %vm9292_vm10  ;;  %v24428_v58 = vld [vmem:[#allocation86_spill] sm:$0xff]  ;;  %vm24433_vm5 = vcmp.lt.f32.partialorder %v18188_v36, %v19504_v35  ;;  %vm9307_vm10 = vcmp.ge.s32.totalorder %v24437_v27, 1 }
 0x45d   :  { %24422 = vst [vmem:[#allocation102_spill] sm:$0xff] %v24421_v22  ;;  %v24425_v2 = vsel %vm20133_vm1, 4294967295, %v24424_v2  ;;  %vm9304_vm13 = vcmp.ge.s32.totalorder %v24428_v58, 1  ;;  %vm20142_vm6 = vmand %vm24429_vm2, %vm9303_vm11  ;;  %v24434_v22 = vmov 0  ;;  %vm24439_vm1 = vcmp.lt.f32.partialorder %v18178_v46, %v19508_v30 }
 0x45e   :  { %24426 = vst [vmem:[#allocation15_spill] sm:$0xff] %v24425_v2  ;;  %v24431_v31 = vsel %vm20142_vm6, 4294967295, %v24430_v31  ;;  %vm20149_vm8 = vmand %vm24433_vm5, %vm9304_vm13  ;;  %v24438_v2 = vld [vmem:[#allocation96_spill] sm:$0xff]  ;;  %vm9309_vm2 = vcmp.ge.s32.totalorder %v24443_v43, 1  ;;  %vm24444_vm11 = vcmp.lt.f32.partialorder %v18188_v36, %v19508_v30  ;;  %vm24448_vm5 = vcmp.lt.f32.partialorder %v19021_v32, %v19508_v30 }
 0x45f   :  { %24432 = vst [vmem:[#allocation55_spill] sm:$0xff] %v24431_v31  ;;  %v24435_v22 = vsel %vm20149_vm8, 4294967295, %v24434_v22  ;;  %vm9308_vm15 = vcmp.ge.s32.totalorder %v24438_v2, 1  ;;  %vm20158_vm3 = vmand %vm24439_vm1, %vm9307_vm10  ;;  %v24445_v31 = vmov 0  ;;  %vm9311_vm1 = vcmp.ge.s32.totalorder %v24452_v17, 1 }
 0x460   :  { %24436 = vst [vmem:[#allocation86_spill] sm:$0xff] %v24435_v22  ;;  %v24441_v9 = vsel %vm20158_vm3, 4294967295, %v24440_v9  ;;  %vm20166_vm13 = vmand %vm24444_vm11, %vm9308_vm15  ;;  %v24449_v22 = vmov 0  ;;  %vm9312_vm10 = vcmp.ge.s32.totalorder %v24453_v38, 1  ;;  %vm24454_vm3 = vcmp.lt.f32.partialorder %v18178_v46, %v19511_v6 }
 0x461   :  { %24442 = vst [vmem:[#allocation80_spill] sm:$0xff] %v24441_v9  ;;  %v24446_v31 = vsel %vm20166_vm13, 4294967295, %v24445_v31  ;;  %vm20173_vm8 = vmand %vm24448_vm5, %vm9309_vm2  ;;  %v24455_v9 = vmov 0  ;;  %vm9313_vm15 = vcmp.ge.s32.totalorder %v24458_v60, 1  ;;  %vm24459_vm11 = vcmp.lt.f32.partialorder %v18188_v36, %v19511_v6 }
 0x462   :  { %24447 = vst [vmem:[#allocation96_spill] sm:$0xff] %v24446_v31  ;;  %v24450_v22 = vsel %vm20173_vm8, 4294967295, %v24449_v22  ;;  %vm20182_vm6 = vmand %vm24454_vm3, %vm9311_vm1  ;;  %v24460_v31 = vmov 0  ;;  %vm24463_vm5 = vcmp.lt.f32.partialorder %v19021_v32, %v19511_v6  ;;  %vm9315_vm3 = vcmp.ge.s32.totalorder %v24467_v52, 1 }
 0x463   :  { %24451 = vst [vmem:[#allocation85_spill] sm:$0xff] %v24450_v22  ;;  %v24456_v9 = vsel %vm20182_vm6, 4294967295, %v24455_v9  ;;  %vm20190_vm2 = vmand %vm24459_vm11, %vm9312_vm10  ;;  %v24464_v22 = vmov 0  ;;  %vm9316_vm1 = vcmp.ge.s32.totalorder %v24468_v50, 1  ;;  %vm24469_vm6 = vcmp.lt.f32.partialorder %v18178_v46, %v19516_v42  ;;  %v24481_v50 = vld [vmem:[#allocation60_spill] sm:$0xff] }
 0x464   :  { %24457 = vst [vmem:[#allocation10_spill] sm:$0xff] %v24456_v9  ;;  %v24461_v31 = vsel %vm20190_vm2, 4294967295, %v24460_v31  ;;  %vm20197_vm8 = vmand %vm24463_vm5, %vm9313_vm15  ;;  %v24470_v9 = vmov 0  ;;  %vm24473_vm10 = vcmp.lt.f32.partialorder %v18188_v36, %v19516_v42  ;;  %vm9881_vm15 = vcmp.eq.s32.totalorder %v18051_v23, 2 }
 0x465   :  { %24462 = vst [vmem:[#allocation81_spill] sm:$0xff] %v24461_v31  ;;  %v24465_v22 = vsel %vm20197_vm8, 4294967295, %v24464_v22  ;;  %vm20206_vm13 = vmand %vm24469_vm6, %vm9315_vm3  ;;  %v24474_v31 = vmov 0  ;;  %vm24478_vm8 = vcmp.eq.f32.partialorder %v19021_v32, %v18311_v11  ;;  %vm9885_vm6 = vcmp.eq.s32.totalorder %v24481_v50, 2 }
 0x466   :  { %24466 = vst [vmem:[#allocation101_spill] sm:$0xff] %v24465_v22  ;;  %v24471_v9 = vsel %vm20206_vm13, 4294967295, %v24470_v9  ;;  %vm20213_vm11 = vmand %vm24473_vm10, %vm9316_vm1  ;;  %v24477_v22 = vld [vmem:[#allocation93_spill] sm:$0xff]  ;;  %vm24482_vm3 = vcmp.eq.f32.partialorder %v19400_v39, %v18311_v11  ;;  %v24487_v23 = vmov 0  ;;  %v24491_v50 = vmov 0 }
 0x467   :  { %24472 = vst [vmem:[#allocation3_spill] sm:$0xff] %v24471_v9  ;;  %v24475_v31 = vsel %vm20213_vm11, 4294967295, %v24474_v31  ;;  %vm9882_vm5 = vcmp.eq.s32.totalorder %v24477_v22, 2  ;;  %vm20222_vm2 = vmand %vm24478_vm8, %vm9881_vm15  ;;  %v24483_v9 = vmov 0  ;;  %vm24486_vm11 = vcmp.eq.f32.partialorder %v19021_v32, %v18324_v13  ;;  %v24489_v22 = vld [vmem:[#allocation36_spill] sm:$0xff] }
 0x468   :  { %24476 = vst [vmem:[#allocation128_spill] sm:$0xff] %v24475_v31  ;;  %v24480_v19 = vsel %vm20222_vm2, 4294967295, %v24479_v19  ;;  %vm20230_vm1 = vmand %vm24482_vm3, %vm9882_vm5  ;;  %v24485_v31 = vld [vmem:[#allocation62_spill] sm:$0xff]  ;;  %vm9889_vm8 = vcmp.eq.s32.totalorder %v24489_v22, 2  ;;  %vm24490_vm15 = vcmp.eq.f32.partialorder %v19400_v39, %v18324_v13  ;;  %vm9890_vm5 = vcmp.eq.s32.totalorder %v24201_v55, 2  ;;  %v24635_v22 = vld [vmem:[#allocation63_spill] sm:$0xff] }
 0x469   :  { %v24484_v9 = vsel %vm20230_vm1, 4294967295, %v24483_v9  ;;  %vm9886_vm10 = vcmp.eq.s32.totalorder %v24485_v31, 2  ;;  %vm20238_vm13 = vmand %vm24486_vm11, %vm9885_vm6  ;;  %vm24493_vm3 = vcmp.eq.f32.partialorder %v19021_v32, %v18327_v47  ;;  %v24494_v11 = vmov 0 }
 0x46a   :  { %v24488_v23 = vsel %vm20238_vm13, 4294967295, %v24487_v23  ;;  %vm20246_vm7 = vmand %vm24490_vm15, %vm9886_vm10  ;;  %vm9893_vm11 = vcmp.eq.s32.totalorder %v24204_v41, 2  ;;  %vm24496_vm6 = vcmp.eq.f32.partialorder %v19400_v39, %v18327_v47  ;;  %v24497_v13 = vmov 0 }
 0x46b   :  { %v24492_v50 = vsel %vm20246_vm7, 4294967295, %v24491_v50  ;;  %vm20254_vm0 = vmand %vm24493_vm3, %vm9889_vm8  ;;  %vm9894_vm10 = vcmp.eq.s32.totalorder %v24208_v56, 2  ;;  %vm24499_vm15 = vcmp.eq.f32.partialorder %v19021_v32, %v18338_v14  ;;  %v24500_v55 = vmov 0 }
 0x46c   :  { %v24495_v11 = vsel %vm20254_vm0, 4294967295, %v24494_v11  ;;  %vm20262_vm4 = vmand %vm24496_vm6, %vm9890_vm5  ;;  %vm9897_vm8 = vcmp.eq.s32.totalorder %v24212_v45, 2  ;;  %vm24502_vm3 = vcmp.eq.f32.partialorder %v19400_v39, %v18338_v14  ;;  %v24503_v47 = vmov 0 }
 0x46d   :  { %v24498_v13 = vsel %vm20262_vm4, 4294967295, %v24497_v13  ;;  %vm20270_vm9 = vmand %vm24499_vm15, %vm9893_vm11  ;;  %vm9898_vm5 = vcmp.eq.s32.totalorder %v24217_v5, 2  ;;  %vm24505_vm6 = vcmp.eq.f32.partialorder %v19021_v32, %v24097_v0  ;;  %v24506_v41 = vmov 0 }
 0x46e   :  { %v24501_v55 = vsel %vm20270_vm9, 4294967295, %v24500_v55  ;;  %vm20278_vm0 = vmand %vm24502_vm3, %vm9894_vm10  ;;  %vm9901_vm11 = vcmp.eq.s32.totalorder %v24225_v26, 2  ;;  %vm24508_vm15 = vcmp.eq.f32.partialorder %v19400_v39, %v24097_v0  ;;  %v24509_v14 = vmov 0 }
 0x46f   :  { %v24504_v47 = vsel %vm20278_vm0, 4294967295, %v24503_v47  ;;  %vm20286_vm4 = vmand %vm24505_vm6, %vm9897_vm8  ;;  %vm9902_vm10 = vcmp.eq.s32.totalorder %v24235_v20, 2  ;;  %vm24511_vm3 = vcmp.eq.f32.partialorder %v19021_v32, %v24098_v25  ;;  %v24512_v56 = vmov 0 }
 0x470   :  { %v24507_v41 = vsel %vm20286_vm4, 4294967295, %v24506_v41  ;;  %vm20294_vm9 = vmand %vm24508_vm15, %vm9898_vm5  ;;  %vm9905_vm8 = vcmp.eq.s32.totalorder %v24241_v61, 2  ;;  %vm24514_vm6 = vcmp.eq.f32.partialorder %v19400_v39, %v24098_v25  ;;  %v24515_v26 = vmov 0  ;;  %v25144_v61 = vld [vmem:[#allocation85_spill] sm:$0xff] }
 0x471   :  { %v24510_v14 = vsel %vm20294_vm9, 4294967295, %v24509_v14  ;;  %vm20302_vm0 = vmand %vm24511_vm3, %vm9901_vm11  ;;  %vm9906_vm5 = vcmp.eq.s32.totalorder %v24242_v21, 2  ;;  %vm24517_vm15 = vcmp.eq.f32.partialorder %v19021_v32, %v24099_v59  ;;  %v24518_v0 = vmov 0 }
 0x472   :  { %v24513_v56 = vsel %vm20302_vm0, 4294967295, %v24512_v56  ;;  %vm20310_vm4 = vmand %vm24514_vm6, %vm9902_vm10  ;;  %vm9911_vm11 = vcmp.eq.s32.totalorder %v24249_v16, 2  ;;  %vm9785_vm3 = vcmp.eq.f32.partialorder %v19021_v32, %v19068_v51  ;;  %vm24520_vm10 = vcmp.eq.f32.partialorder %v19400_v39, %v24099_v59 }
 0x473   :  { %v24516_v26 = vsel %vm20310_vm4, 4294967295, %v24515_v26  ;;  %vm20318_vm9 = vmand %vm24517_vm15, %vm9905_vm8  ;;  %v24521_v25 = vmov 0  ;;  %vm9912_vm4 = vcmp.eq.s32.totalorder %v24256_v48, 2  ;;  %vm24523_vm8 = vcmp.eq.f32.partialorder %v18178_v46, %v19068_v51 }
 0x474   :  { %v24519_v0 = vsel %vm20318_vm9, 4294967295, %v24518_v0  ;;  %vm20328_vm6 = vmand %vm24520_vm10, %vm9906_vm5  ;;  %v24524_v20 = vmov 0  ;;  %vm9913_vm9 = vcmp.eq.s32.totalorder %v24263_v57, 2  ;;  %vm24526_vm0 = vcmp.eq.f32.partialorder %v18188_v36, %v19068_v51 }
 0x475   :  { %v24522_v25 = vsel %vm20328_vm6, 4294967295, %v24521_v25  ;;  %vm20336_vm15 = vmand %vm24523_vm8, %vm9911_vm11  ;;  %v24527_v59 = vmov 0  ;;  %vm9914_vm5 = vcmp.eq.s32.totalorder %v24269_v34, 2  ;;  %v24529_v16 = vmov 0 }
 0x476   :  { %v24525_v20 = vsel %vm20336_vm15, 4294967295, %v24524_v20  ;;  %vm20344_vm7 = vmand %vm24526_vm0, %vm9912_vm4  ;;  %vm9915_vm11 = vcmp.eq.s32.totalorder %v24276_v12, 2  ;;  %vm9789_vm8 = vcmp.eq.f32.partialorder %v19021_v32, %v19091_v1  ;;  %vm24531_vm15 = vcmp.eq.f32.partialorder %v19400_v39, %v19068_v51 }
 0x477   :  { %v24528_v59 = vsel %vm20344_vm7, 4294967295, %v24527_v59  ;;  %vm20349_vm10 = vmand %vm9785_vm3, %vm9913_vm9  ;;  %v24532_v45 = vmov 0  ;;  %vm9916_vm0 = vcmp.eq.s32.totalorder %v24282_v29, 2  ;;  %vm24534_vm9 = vcmp.eq.f32.partialorder %v18178_v46, %v19091_v1 }
 0x478   :  { %v24530_v16 = vsel %vm20349_vm10, 4294967295, %v24529_v16  ;;  %vm20359_vm6 = vmand %vm24531_vm15, %vm9914_vm5  ;;  %v24535_v5 = vmov 0  ;;  %vm9917_vm15 = vcmp.eq.s32.totalorder %v24293_v37, 2  ;;  %vm24538_vm5 = vcmp.eq.f32.partialorder %v18188_v36, %v19091_v1 }
 0x479   :  { %v24533_v45 = vsel %vm20359_vm6, 4294967295, %v24532_v45  ;;  %vm20367_vm4 = vmand %vm24534_vm9, %vm9915_vm11  ;;  %v24539_v51 = vmov 0  ;;  %vm9918_vm11 = vcmp.eq.s32.totalorder %v24300_v24, 2  ;;  %v24541_v21 = vmov 0 }
 0x47a   :  { %v24536_v5 = vsel %vm20367_vm4, 4294967295, %v24535_v5  ;;  %vm20379_vm6 = vmand %vm24538_vm5, %vm9916_vm0  ;;  %vm9919_vm10 = vcmp.eq.s32.totalorder %v24306_v10, 2  ;;  %vm9793_vm4 = vcmp.eq.f32.partialorder %v19021_v32, %v19094_v40  ;;  %vm24543_vm0 = vcmp.eq.f32.partialorder %v19400_v39, %v19091_v1 }
 0x47b   :  { %v24540_v51 = vsel %vm20379_vm6, 4294967295, %v24539_v51  ;;  %vm20384_vm9 = vmand %vm9789_vm8, %vm9917_vm15  ;;  %v24544_v37 = vmov 0  ;;  %vm9920_vm8 = vcmp.eq.s32.totalorder %v24312_v54, 2  ;;  %vm24546_vm15 = vcmp.eq.f32.partialorder %v18178_v46, %v19094_v40 }
 0x47c   :  { %v24542_v21 = vsel %vm20384_vm9, 4294967295, %v24541_v21  ;;  %vm20396_vm5 = vmand %vm24543_vm0, %vm9918_vm11  ;;  %v24547_v57 = vmov 0  ;;  %vm9921_vm3 = vcmp.eq.s32.totalorder %v24378_v8, 2  ;;  %vm24550_vm6 = vcmp.eq.f32.partialorder %v18188_v36, %v19094_v40 }
 0x47d   :  { %v24545_v37 = vsel %vm20396_vm5, 4294967295, %v24544_v37  ;;  %vm20404_vm9 = vmand %vm24546_vm15, %vm9919_vm10  ;;  %v24551_v1 = vmov 0  ;;  %v24554_v48 = vmov 0  ;;  %vm9923_vm0 = vcmp.eq.s32.totalorder %v24391_v4, 2 }
 0x47e   :  { %v24548_v57 = vsel %vm20404_vm9, 4294967295, %v24547_v57  ;;  %vm20412_vm7 = vmand %vm24550_vm6, %vm9920_vm8  ;;  %vm9797_vm10 = vcmp.eq.f32.partialorder %v19021_v32, %v19114_v33  ;;  %vm9924_vm15 = vcmp.eq.s32.totalorder %v24392_v3, 2  ;;  %vm24557_vm9 = vcmp.eq.f32.partialorder %v18178_v46, %v19114_v33 }
 0x47f   :  { %24549 = vst [vmem:[#allocation93_spill] sm:$0xff] %v24548_v57  ;;  %v24552_v1 = vsel %vm20412_vm7, 4294967295, %v24551_v1  ;;  %vm20416_vm11 = vmand %vm9793_vm4, %vm9921_vm3  ;;  %v24558_v54 = vmov 0  ;;  %vm9925_vm6 = vcmp.eq.s32.totalorder %v24398_v15, 2  ;;  %vm24561_vm4 = vcmp.eq.f32.partialorder %v18188_v36, %v19114_v33  ;;  %v24712_v57 = vld [vmem:[#allocation53_spill] sm:$0xff] }
 0x480   :  { %24553 = vst [vmem:[#allocation60_spill] sm:$0xff] %v24552_v1  ;;  %v24555_v48 = vsel %vm20416_vm11, 4294967295, %v24554_v48  ;;  %vm20427_vm5 = vmand %vm24557_vm9, %vm9923_vm0  ;;  %v24562_v34 = vmov 0  ;;  %v24565_v29 = vmov 0  ;;  %vm9927_vm11 = vcmp.eq.s32.totalorder %v24407_v18, 2  ;;  %v24751_v1 = vld [vmem:[#allocation109_spill] sm:$0xff] }
 0x481   :  { %24556 = vst [vmem:[#allocation62_spill] sm:$0xff] %v24555_v48  ;;  %v24559_v54 = vsel %vm20427_vm5, 4294967295, %v24558_v54  ;;  %vm20435_vm3 = vmand %vm24561_vm4, %vm9924_vm15  ;;  %vm9928_vm9 = vcmp.eq.s32.totalorder %v24408_v7, 2  ;;  %vm24568_vm0 = vcmp.eq.f32.partialorder %v18178_v46, %v19126_v44  ;;  %v24569_v12 = vmov 0 }
 0x482   :  { %24560 = vst [vmem:[#allocation36_spill] sm:$0xff] %v24559_v54  ;;  %v24563_v34 = vsel %vm20435_vm3, 4294967295, %v24562_v34  ;;  %vm20439_vm8 = vmand %vm9797_vm10, %vm9925_vm6  ;;  %vm24572_vm15 = vcmp.eq.f32.partialorder %v18188_v36, %v19126_v44  ;;  %v24573_v24 = vmov 0  ;;  %vm9931_vm10 = vcmp.eq.s32.totalorder %v24417_v53, 2 }
 0x483   :  { %24564 = vst [vmem:[#allocation129_spill] sm:$0xff] %v24563_v34  ;;  %v24566_v29 = vsel %vm20439_vm8, 4294967295, %v24565_v29  ;;  %vm20448_vm5 = vmand %vm24568_vm0, %vm9927_vm11  ;;  %vm9932_vm6 = vcmp.eq.s32.totalorder %v24418_v49, 2  ;;  %vm24576_vm8 = vcmp.eq.f32.partialorder %v18178_v46, %v19175_v62  ;;  %v24577_v10 = vmov 0  ;;  %v24626_v49 = vld [vmem:[#allocation21_spill] sm:$0xff] }
 0x484   :  { %24567 = vst [vmem:[#allocation130_spill] sm:$0xff] %v24566_v29  ;;  %v24570_v12 = vsel %vm20448_vm5, 4294967295, %v24569_v12  ;;  %vm20455_vm4 = vmand %vm24572_vm15, %vm9928_vm9  ;;  %vm24580_vm11 = vcmp.eq.f32.partialorder %v18188_v36, %v19175_v62  ;;  %v24581_v31 = vmov 0  ;;  %vm9943_vm9 = vcmp.eq.s32.totalorder %v24427_v63, 2 }
 0x485   :  { %24571 = vst [vmem:[#allocation131_spill] sm:$0xff] %v24570_v12  ;;  %v24574_v24 = vsel %vm20455_vm4, 4294967295, %v24573_v24  ;;  %vm20464_vm3 = vmand %vm24576_vm8, %vm9931_vm10  ;;  %vm9944_vm15 = vcmp.eq.s32.totalorder %v24428_v58, 2  ;;  %vm24584_vm4 = vcmp.eq.f32.partialorder %v18178_v46, %v19504_v35  ;;  %v24585_v8 = vmov 0 }
 0x486   :  { %24575 = vst [vmem:[#allocation132_spill] sm:$0xff] %v24574_v24  ;;  %v24578_v10 = vsel %vm20464_vm3, 4294967295, %v24577_v10  ;;  %vm20471_vm0 = vmand %vm24580_vm11, %vm9932_vm6  ;;  %vm24588_vm8 = vcmp.eq.f32.partialorder %v18188_v36, %v19504_v35  ;;  %v24589_v7 = vmov 0  ;;  %vm9947_vm6 = vcmp.eq.s32.totalorder %v24437_v27, 2  ;;  %v24686_v24 = vld [vmem:[#allocation27_spill] sm:$0xff] }
 0x487   :  { %24579 = vst [vmem:[#allocation133_spill] sm:$0xff] %v24578_v10  ;;  %v24582_v31 = vsel %vm20471_vm0, 4294967295, %v24581_v31  ;;  %vm20480_vm5 = vmand %vm24584_vm4, %vm9943_vm9  ;;  %vm9948_vm9 = vcmp.eq.s32.totalorder %v24438_v2, 2  ;;  %v24594_v15 = vmov 0  ;;  %vm24597_vm11 = vcmp.eq.f32.partialorder %v18188_v36, %v19508_v30  ;;  %v24628_v2 = vld [vmem:[#allocation12_spill] sm:$0xff] }
 0x488   :  { %24583 = vst [vmem:[#allocation134_spill] sm:$0xff] %v24582_v31  ;;  %v24586_v8 = vsel %vm20480_vm5, 4294967295, %v24585_v8  ;;  %vm20487_vm10 = vmand %vm24588_vm8, %vm9944_vm15  ;;  %vm24593_vm5 = vcmp.eq.f32.partialorder %v18178_v46, %v19508_v30  ;;  %vm9949_vm8 = vcmp.eq.s32.totalorder %v24443_v43, 2  ;;  %v24598_v27 = vmov 0  ;;  %v24678_v31 = vld [vmem:[#allocation74_spill] sm:$0xff] }
 0x489   :  { %24587 = vst [vmem:[#allocation135_spill] sm:$0xff] %v24586_v8  ;;  %v24590_v7 = vsel %vm20487_vm10, 4294967295, %v24589_v7  ;;  %vm20502_vm15 = vmand %vm24593_vm5, %vm9947_vm6  ;;  %vm24601_vm4 = vcmp.eq.f32.partialorder %v19021_v32, %v19508_v30  ;;  %v24602_v4 = vmov 0  ;;  %vm9951_vm5 = vcmp.eq.s32.totalorder %v24452_v17, 2  ;;  %v24617_v17 = vld [vmem:[#allocation56_spill] sm:$0xff]  ;;  %v24676_v8 = vld [vmem:[#allocation33_spill] sm:$0xff] }
 0x48a   :  { %24591 = vst [vmem:[#allocation136_spill] sm:$0xff] %v24590_v7  ;;  %v24595_v15 = vsel %vm20502_vm15, 4294967295, %v24594_v15  ;;  %vm20510_vm10 = vmand %vm24597_vm11, %vm9948_vm9  ;;  %vm9952_vm6 = vcmp.eq.s32.totalorder %v24453_v38, 2  ;;  %vm24605_vm15 = vcmp.eq.f32.partialorder %v18178_v46, %v19511_v6  ;;  %v24606_v43 = vmov 0 }
 0x48b   :  { %24596 = vst [vmem:[#allocation137_spill] sm:$0xff] %v24595_v15  ;;  %v24599_v27 = vsel %vm20510_vm10, 4294967295, %v24598_v27  ;;  %vm20517_vm0 = vmand %vm24601_vm4, %vm9949_vm8  ;;  %vm9953_vm11 = vcmp.eq.s32.totalorder %v24458_v60, 2  ;;  %vm24609_vm9 = vcmp.eq.f32.partialorder %v18188_v36, %v19511_v6  ;;  %v24610_v3 = vmov 0  ;;  %v24668_v15 = vld [vmem:[#allocation68_spill] sm:$0xff] }
 0x48c   :  { %24600 = vst [vmem:[#allocation138_spill] sm:$0xff] %v24599_v27  ;;  %v24603_v4 = vsel %vm20517_vm0, 4294967295, %v24602_v4  ;;  %vm20526_vm3 = vmand %vm24605_vm15, %vm9951_vm5  ;;  %vm24613_vm8 = vcmp.eq.f32.partialorder %v19021_v32, %v19511_v6  ;;  %v24614_v38 = vmov 0  ;;  %vm9955_vm15 = vcmp.eq.s32.totalorder %v24467_v52, 2  ;;  %v24627_v52 = vld [vmem:[#allocation28_spill] sm:$0xff]  ;;  %v24667_v27 = vld [vmem:[#allocation31_spill] sm:$0xff] }
 0x48d   :  { %24604 = vst [vmem:[#allocation139_spill] sm:$0xff] %v24603_v4  ;;  %v24607_v43 = vsel %vm20526_vm3, 4294967295, %v24606_v43  ;;  %vm20534_vm4 = vmand %vm24609_vm9, %vm9952_vm6  ;;  %vm9956_vm5 = vcmp.eq.s32.totalorder %v24617_v17, 2  ;;  %vm24618_vm3 = vcmp.eq.f32.partialorder %v18178_v46, %v19516_v42  ;;  %v24619_v60 = vmov 0  ;;  %v24696_v6 = vld [vmem:[#allocation41_spill] sm:$0xff] }
 0x48e   :  { %24608 = vst [vmem:[#allocation140_spill] sm:$0xff] %v24607_v43  ;;  %v24611_v3 = vsel %vm20534_vm4, 4294967295, %v24610_v3  ;;  %vm20541_vm0 = vmand %vm24613_vm8, %vm9953_vm11  ;;  %vm24622_vm6 = vcmp.eq.f32.partialorder %v18188_v36, %v19516_v42  ;;  %v24623_v18 = vmov 0  ;;  %vm9209_vm11 = vcmp.ge.s32.totalorder %v24626_v49, 1  ;;  %v24660_v43 = vld [vmem:[#allocation52_spill] sm:$0xff]  ;;  %v24685_v42 = vld [vmem:[#allocation77_spill] sm:$0xff] }
 0x48f   :  { %24612 = vst [vmem:[#allocation141_spill] sm:$0xff] %v24611_v3  ;;  %v24615_v38 = vsel %vm20541_vm0, 4294967295, %v24614_v38  ;;  %vm20550_vm10 = vmand %vm24618_vm3, %vm9955_vm15  ;;  %vm9849_vm8 = vcmp.eq.s32.totalorder %v24626_v49, 2  ;;  %vm9210_vm0 = vcmp.ge.s32.totalorder %v24627_v52, 1  ;;  %vm9850_vm4 = vcmp.eq.s32.totalorder %v24627_v52, 2  ;;  %v24642_v52 = vld [vmem:[#allocation105_spill] sm:$0xff] }
 0x490   :  { %24616 = vst [vmem:[#allocation142_spill] sm:$0xff] %v24615_v38  ;;  %v24620_v60 = vsel %vm20550_vm10, 4294967295, %v24619_v60  ;;  %vm20557_vm9 = vmand %vm24622_vm6, %vm9956_vm5  ;;  %vm24629_vm3 = vcmp.lt.f32.partialorder %v19021_v32, %v24628_v2  ;;  %vm24632_vm5 = vcmp.eq.f32.partialorder %v19021_v32, %v24628_v2  ;;  %vm9853_vm10 = vcmp.eq.s32.totalorder %v24635_v22, 2  ;;  %v24658_v3 = vld [vmem:[#allocation26_spill] sm:$0xff] }
 0x491   :  { %24621 = vst [vmem:[#allocation56_spill] sm:$0xff] %v24620_v60  ;;  %v24624_v18 = vsel %vm20557_vm9, 4294967295, %v24623_v18  ;;  %vm20568_vm15 = vmand %vm24629_vm3, %vm9209_vm11  ;;  %vm9213_vm9 = vcmp.ge.s32.totalorder %v24635_v22, 1  ;;  %vm24636_vm7 = vcmp.lt.f32.partialorder %v19400_v39, %v24628_v2  ;;  %vm24639_vm11 = vcmp.eq.f32.partialorder %v19400_v39, %v24628_v2  ;;  %v24643_v22 = vld [vmem:[#allocation43_spill] sm:$0xff]  ;;  %v24651_v60 = vld [vmem:[#allocation6_spill] sm:$0xff] }
 0x492   :  { %24625 = vst [vmem:[#allocation143_spill] sm:$0xff] %v24624_v18  ;;  %vm20575_vm6 = vmand %vm24632_vm5, %vm9849_vm8  ;;  %vm9214_vm8 = vcmp.ge.s32.totalorder %v24642_v52, 1  ;;  %vm9854_vm5 = vcmp.eq.s32.totalorder %v24642_v52, 2  ;;  %vm24644_vm12 = vcmp.lt.f32.partialorder %v19021_v32, %v24643_v22  ;;  %v24645_v63 = vmov 0  ;;  %v24650_v18 = vld [vmem:[#allocation88_spill] sm:$0xff] }
 0x493   :  { %vm20584_vm13 = vmand %vm24636_vm7, %vm9210_vm0  ;;  %vm24647_vm7 = vcmp.eq.f32.partialorder %v19021_v32, %v24643_v22  ;;  %v24648_v2 = vmov 0  ;;  %vm9857_vm14 = vcmp.eq.s32.totalorder %v24651_v60, 2  ;;  %vm24652_vm2 = vcmp.lt.f32.partialorder %v19400_v39, %v24643_v22 }
 0x494   :  { %vm20591_vm3 = vmand %vm24639_vm11, %vm9850_vm4  ;;  %vm9217_vm11 = vcmp.ge.s32.totalorder %v24651_v60, 1  ;;  %v24653_v52 = vmov 0  ;;  %v24656_v38 = vmov 0  ;;  %v24659_v60 = vld [vmem:[#allocation22_spill] sm:$0xff]  ;;  %v24662_v4 = vmov 0 }
 0x495   :  { %vm20600_vm1 = vmand %vm24644_vm12, %vm9213_vm9  ;;  %vm24655_vm9 = vcmp.eq.f32.partialorder %v19400_v39, %v24643_v22  ;;  %v24665_v22 = vmov 0  ;;  %vm9861_vm4 = vcmp.eq.s32.totalorder %v24659_v60, 2  ;;  %v24671_v7 = vmov 0 }
 0x496   :  { %v24646_v63 = vsel %vm20600_vm1, 4294967295, %v24645_v63  ;;  %vm20607_vm0 = vmand %vm24647_vm7, %vm9853_vm10  ;;  %vm9858_vm7 = vcmp.eq.s32.totalorder %v24650_v18, 2  ;;  %v24680_v10 = vmov 0  ;;  %v24689_v12 = vmov 0 }
 0x497   :  { %v24649_v2 = vsel %vm20607_vm0, 4294967295, %v24648_v2  ;;  %vm20617_vm12 = vmand %vm24652_vm2, %vm9214_vm8  ;;  %vm9221_vm0 = vcmp.ge.s32.totalorder %v24659_v60, 1  ;;  %vm24661_vm2 = vcmp.lt.f32.partialorder %v19021_v32, %v24660_v43  ;;  %v24705_v48 = vmov 0 }
 0x498   :  { %v24654_v52 = vsel %vm20617_vm12, 4294967295, %v24653_v52  ;;  %vm20624_vm10 = vmand %vm24655_vm9, %vm9854_vm5  ;;  %vm24664_vm5 = vcmp.eq.f32.partialorder %v19021_v32, %v24660_v43  ;;  %vm9865_vm12 = vcmp.eq.s32.totalorder %v24668_v15, 2  ;;  %v24731_v46 = vmov 0 }
 0x499   :  { %v24657_v38 = vsel %vm20624_vm10, 4294967295, %v24656_v38  ;;  %vm20635_vm8 = vmand %vm24661_vm2, %vm9217_vm11  ;;  %vm24669_vm11 = vcmp.ge.s32.totalorder %v24650_v18, 1  ;;  %vm24670_vm2 = vcmp.lt.f32.partialorder %v19400_v39, %v24660_v43  ;;  %v24677_v18 = vld [vmem:[#allocation32_spill] sm:$0xff]  ;;  %vm24695_vm10 = vcmp.ge.s32.totalorder %v24668_v15, 1 }
 0x49a   :  { %v24663_v4 = vsel %vm20635_vm8, 4294967295, %v24662_v4  ;;  %vm20642_vm9 = vmand %vm24664_vm5, %vm9857_vm14  ;;  %vm24673_vm14 = vcmp.eq.f32.partialorder %v19400_v39, %v24660_v43  ;;  %v24735_v58 = vmov 0  ;;  %v24737_v53 = vmov 0   ;;  %v24761_v43 = vld [vmem:[#allocation112_spill] sm:$0xff] }
 0x49b   :  { %v24666_v22 = vsel %vm20642_vm9, 4294967295, %v24665_v22  ;;  %vm20655_vm8 = vmand %vm24670_vm2, %vm24669_vm11  ;;  %vm24679_vm11 = vcmp.lt.f32.partialorder %v19021_v32, %v24678_v31  ;;  %v24740_v15 = vmov 0  ;;  %v24960_v36 = vmov 0 }
 0x49c   :  { %v24672_v7 = vsel %vm20655_vm8, 4294967295, %v24671_v7  ;;  %vm20662_vm5 = vmand %vm24673_vm14, %vm9858_vm7  ;;  %vm24682_vm7 = vcmp.eq.f32.partialorder %v19021_v32, %v24678_v31  ;;  %vm24697_vm8 = vcmp.lt.f32.partialorder %v19021_v32, %v24696_v6 }
 0x49d   :  { %vm20673_vm2 = vmand %vm24679_vm11, %vm9221_vm0  ;;  %vm24687_vm0 = vcmp.ge.s32.totalorder %v24658_v3, 1  ;;  %vm24688_vm11 = vcmp.lt.f32.partialorder %v19400_v39, %v24678_v31 }
 0x49e   :  { %v24681_v10 = vsel %vm20673_vm2, 4294967295, %v24680_v10  ;;  %vm20680_vm14 = vmand %vm24682_vm7, %vm9861_vm4  ;;  %vm24691_vm4 = vcmp.eq.s32.totalorder %v24658_v3, 2  ;;  %vm24692_vm7 = vcmp.eq.f32.partialorder %v19400_v39, %v24678_v31  ;;  %v24709_v3 = vmov 0 }
 0x49f   :  { %vm20693_vm2 = vmand %vm24688_vm11, %vm24687_vm0  ;;  %vm24700_vm11 = vcmp.eq.f32.partialorder %v19021_v32, %v24696_v6 }
 0x4a0   :  { %v24690_v12 = vsel %vm20693_vm2, 4294967295, %v24689_v12  ;;  %vm20702_vm1 = vmand %vm24692_vm7, %vm24691_vm4  ;;  %vm24703_vm4 = vcmp.ge.s32.totalorder %v24667_v27, 1  ;;  %vm24708_vm7 = vcmp.eq.f32.partialorder %v19400_v39, %v24696_v6 }
 0x4a1   :  { %vm20712_vm0 = vmand %vm24697_vm8, %vm24695_vm10  ;;  %vm24704_vm10 = vcmp.lt.f32.partialorder %v19400_v39, %v24696_v6  ;;  %v24718_v6 = vmov 0 }
 0x4a2   :  { %vm20719_vm2 = vmand %vm24700_vm11, %vm9865_vm12  ;;  %vm24707_vm12 = vcmp.eq.s32.totalorder %v24667_v27, 2  ;;  %v24714_v27 = vmov 0 }
 0x4a3   :  { %vm20731_vm8 = vmand %vm24704_vm10, %vm24703_vm4  ;;  %vm24711_vm4 = vcmp.ge.s32.totalorder %v24677_v18, 1  ;;  %vm24713_vm10 = vcmp.lt.f32.partialorder %v19021_v32, %v24712_v57 }
 0x4a4   :  { %v24706_v48 = vsel %vm20731_vm8, 4294967295, %v24705_v48  ;;  %vm20740_vm11 = vmand %vm24708_vm7, %vm24707_vm12  ;;  %vm24716_vm12 = vcmp.eq.s32.totalorder %v24677_v18, 2  ;;  %vm24717_vm7 = vcmp.eq.f32.partialorder %v19021_v32, %v24712_v57  ;;  %v24722_v18 = vmov 0 }
 0x4a5   :  { %v24710_v3 = vsel %vm20740_vm11, 4294967295, %v24709_v3  ;;  %vm20753_vm9 = vmand %vm24713_vm10, %vm24711_vm4  ;;  %vm24720_vm4 = vcmp.ge.s32.totalorder %v24676_v8, 1  ;;  %vm24721_vm10 = vcmp.lt.f32.partialorder %v19400_v39, %v24712_v57 }
 0x4a6   :  { %v24715_v27 = vsel %vm20753_vm9, 4294967295, %v24714_v27  ;;  %vm20762_vm8 = vmand %vm24717_vm7, %vm24716_vm12  ;;  %vm24724_vm12 = vcmp.eq.s32.totalorder %v24676_v8, 2  ;;  %vm24725_vm7 = vcmp.eq.f32.partialorder %v19400_v39, %v24712_v57  ;;  %v24729_v57 = vld [vmem:[#allocation47_spill] sm:$0xff] }
 0x4a7   :  { %v24719_v6 = vsel %vm20762_vm8, 4294967295, %v24718_v6  ;;  %vm20775_vm9 = vmand %vm24721_vm10, %vm24720_vm4  ;;  %vm24728_vm4 = vcmp.ge.s32.totalorder %v24686_v24, 1  ;;  %vm24730_vm10 = vcmp.lt.f32.partialorder %v19021_v32, %v24729_v57 }
 0x4a8   :  { %v24723_v18 = vsel %vm20775_vm9, 4294967295, %v24722_v18  ;;  %vm20784_vm8 = vmand %vm24725_vm7, %vm24724_vm12  ;;  %vm24733_vm7 = vcmp.eq.s32.totalorder %v24686_v24, 2 }
 0x4a9   :  { %vm10361_vm11 = vmor %vm20568_vm15, %vm20575_vm6  ;;  %vm24734_vm15 = vcmp.eq.f32.partialorder %v19021_v32, %v24729_v57 }
 0x4aa   :  { %vm20801_vm12 = vmand %vm24730_vm10, %vm24728_vm4  ;;  %v10489_v8 = vsel %vm10361_vm11, 1, %v24737_v53  ;;  %vm24738_vm4 = vcmp.ge.s32.totalorder %v24685_v42, 1  ;;  %vm24739_vm10 = vcmp.lt.f32.partialorder %v19400_v39, %v24729_v57  ;;  %vm24746_vm11 = vnez %v24649_v2 }
 0x4ab   :  { %v24732_v46 = vsel %vm20801_vm12, 4294967295, %v24731_v46  ;;  %vm20810_vm6 = vmand %vm24734_vm15, %vm24733_vm7  ;;  %vm24742_vm15 = vcmp.eq.s32.totalorder %v24685_v42, 2  ;;  %vm24747_vm12 = vnez %v24646_v63  ;;  %v24975_v42 = vld [vmem:[#allocation42_spill] sm:$0xff] }
 0x4ac   :  { %v24736_v58 = vsel %vm20810_vm6, 4294967295, %v24735_v58  ;;  %vm10362_vm9 = vmor %vm20584_vm13, %vm20591_vm3  ;;  %vm24743_vm13 = vcmp.eq.f32.partialorder %v19400_v39, %v24729_v57 }
 0x4ad   :  { %vm20827_vm7 = vmand %vm24739_vm10, %vm24738_vm4  ;;  %v10490_v49 = vsel %vm10362_vm9, 1, %v24737_v53  ;;  %vm24748_vm4 = vcmask 261120   ;;  %vm24749_vm10 = vnez %v24657_v38  ;;  %vm24753_vm9 = vnez %v24666_v22 }
 0x4ae   :  { %v24741_v15 = vsel %vm20827_vm7, 4294967295, %v24740_v15  ;;  %vm20836_vm3 = vmand %vm24743_vm13, %vm24742_vm15  ;;  %v10619_v24 = vsel %vm24748_vm4, %v10489_v8, 0  ;;  %vm24750_vm15 = vnez %v24654_v52 }
 0x4af   :  { %vm10365_vm6 = vmor %vm24747_vm12, %vm24746_vm11  ;;  %v10620_v2 = vadd.s32 %v10619_v24, %v24751_v1  ;;  %vm24754_vm12 = vnez %v24663_v4  ;;  %v24756_v24 = vld [vmem:[#allocation110_spill] sm:$0xff] }
 0x4b0   :  { %vm10366_vm13 = vmor %vm24750_vm15, %vm24749_vm10  ;;  %v10493_v57 = vsel %vm10365_vm6, 1, %v24737_v53 }
 0x4b1   :  { %vm24752_vm7 = vmmov %vm24748_vm4  ;;  %v10494_v8 = vsel %vm10366_vm13, 1, %v24737_v53  ;;  %v10632_v38 = vsel %vm24748_vm4, %v10493_v57, 0  ;;  %vm24758_vm13 = vnez %v24681_v10 }
 0x4b2   :  { %v10621_v63 = vsel %vm24752_vm7, %v10490_v49, 0  ;;  %vm10369_vm11 = vmor %vm24754_vm12, %vm24753_vm9  ;;  %vm24755_vm7 = vnez %v24672_v7  ;;  %v10633_v4 = vadd.s32 %v10632_v38, %v24756_v24 }
 0x4b3   :  { %vm10370_vm10 = vmor %vm24755_vm7, %vm20662_vm5  ;;  %v10497_v1 = vsel %vm10369_vm11, 1, %v24737_v53  ;;  %v10622_v22 = vadd.s32 %v10621_v63, %v10620_v2  ;;  %vm24760_vm11 = vnez %v24690_v12  ;;  %vm24780_vm5 = vnez %v24484_v9 }
 0x4b4   :  { %vm24757_vm15 = vmmov %vm24748_vm4  ;;  %v10498_v57 = vsel %vm10370_vm10, 1, %v24737_v53 }
 0x4b5   :  { %v10634_v49 = vsel %vm24757_vm15, %v10494_v8, 0  ;;  %vm10373_vm9 = vmor %vm24758_vm13, %vm20680_vm14  ;;  %v10623_v60 = vrot.slane %v10622_v22, 4  ;;  %vm24764_vm13 = vnez %v24710_v3 }
 0x4b6   :  { %vm24759_vm12 = vmmov %vm24748_vm4  ;;  %v10501_v7 = vsel %vm10373_vm9, 1, %v24737_v53  ;;  %v10635_v10 = vadd.s32 %v10634_v49, %v10633_v4  ;;  %vm24765_vm9 = vnez %v24706_v48 }
 0x4b7   :  { %v10645_v52 = vsel %vm24759_vm12, %v10497_v1, 0  ;;  %vm10374_vm7 = vmor %vm24760_vm11, %vm20702_vm1  ;;  %v10624_v31 = vadd.s32 %v10623_v60, %v10622_v22  ;;  %v24768_v1 = vld [vmem:[#allocation113_spill] sm:$0xff] }
 0x4b8   :  { %v10646_v2 = vadd.s32 %v10645_v52, %v24761_v43  ;;  %vm10377_vm14 = vmor %vm20712_vm0, %vm20719_vm2  ;;  %v10502_v63 = vsel %vm10374_vm7, 1, %v24737_v53  ;;  %v10636_v38 = vrot.slane %v10635_v10, 4  ;;  %vm24766_vm2 = vnez %v24719_v6 }
 0x4b9   :  { %vm24762_vm10 = vmmov %vm24748_vm4  ;;  %v10505_v12 = vsel %vm10377_vm14, 1, %v24737_v53  ;;  %vm24767_vm0 = vnez %v24715_v27  ;;  %vm24771_vm14 = vnez %v24723_v18  ;;  %v10625_v22 = vrot.slane %v10624_v31, 2 }
 0x4ba   :  { %v10647_v8 = vsel %vm24762_vm10, %v10498_v57, 0  ;;  %vm24763_vm15 = vmmov %vm24748_vm4  ;;  %v10637_v6 = vadd.s32 %v10636_v38, %v10635_v10  ;;  %v24774_v57 = vld [vmem:[#allocation114_spill] sm:$0xff]  ;;  %v24944_v43 = vmov 0 }
 0x4bb   :  { %v10658_v29 = vsel %vm24763_vm15, %v10501_v7, 0  ;;  %vm10378_vm12 = vmor %vm24765_vm9, %vm24764_vm13  ;;  %v10648_v34 = vadd.s32 %v10647_v8, %v10646_v2  ;;  %vm24772_vm13 = vnez %v24736_v58  ;;  %vm24773_vm9 = vnez %v24732_v46  ;;  %v24786_v58 = vld [vmem:[#allocation115_spill] sm:$0xff] }
 0x4bc   :  { %vm10381_vm11 = vmor %vm24767_vm0, %vm24766_vm2  ;;  %v10506_v52 = vsel %vm10378_vm12, 1, %v24737_v53  ;;  %v10659_v24 = vadd.s32 %v10658_v29, %v24768_v1  ;;  %vm24776_vm0 = vnez %v24741_v15  ;;  %v10626_v2 = vadd.s32 %v10625_v22, %v10624_v31  ;;  %v24778_v29 = vld [vmem:[#allocation99_spill] sm:$0xff] }
 0x4bd   :  { %vm24769_vm7 = vmmov %vm24748_vm4  ;;  %v10509_v48 = vsel %vm10381_vm11, 1, %v24737_v53  ;;  %v10649_v49 = vrot.slane %v10648_v34, 4  ;;  %v10638_v10 = vrot.slane %v10637_v6, 2  ;;  %v24788_v22 = vld [vmem:[#allocation127_spill] sm:$0xff] }
 0x4be   :  { %v10660_v4 = vsel %vm24769_vm7, %v10502_v63, 0  ;;  %vm24770_vm10 = vmmov %vm24748_vm4  ;;  %vm24777_vm7 = vnez %v24480_v19  ;;  %v10627_v1 = vrot.slane %v10626_v2, 1  ;;  %v24796_v19 = vld [vmem:[#allocation61_spill] sm:$0xff] }
 0x4bf   :  { %v10671_v3 = vsel %vm24770_vm10, %v10505_v12, 0  ;;  %vm10382_vm15 = vmor %vm24771_vm14, %vm20784_vm8  ;;  %v10661_v27 = vadd.s32 %v10660_v4, %v10659_v24  ;;  %v10650_v63 = vadd.s32 %v10649_v49, %v10648_v34  ;;  %vm24779_vm10 = vnez %v24778_v29  ;;  %v24781_v34 = vld [vmem:[#allocation126_spill] sm:$0xff] }
 0x4c0   :  { %vm10385_vm12 = vmor %vm24773_vm9, %vm24772_vm13  ;;  %v10672_v7 = vadd.s32 %v10671_v3, %v24774_v57  ;;  %v10510_v12 = vsel %vm10382_vm15, 1, %v24737_v53  ;;  %v10639_v30 = vadd.s32 %v10638_v10, %v10637_v6  ;;  %vm24783_vm8 = vnez %v24488_v23  ;;  %v24784_v4 = vld [vmem:[#allocation54_spill] sm:$0xff] }
 0x4c1   :  { %vm24775_vm2 = vmmov %vm24748_vm4  ;;  %v10662_v38 = vrot.slane %v10661_v27, 4  ;;  %vm24782_vm4 = vnez %v24781_v34  ;;  %v10513_v18 = vsel %vm10385_vm12, 1, %v24737_v53  ;;  %v10651_v24 = vrot.slane %v10650_v63, 2  ;;  %v24791_v49 = vld [vmem:[#allocation18_spill] sm:$0xff]  ;;  %v24804_v34 = vld [vmem:[#allocation20_spill] sm:$0xff] }
 0x4c2   :  { %v10673_v60 = vsel %vm24775_vm2, %v10506_v52, 0  ;;  %vm10386_vm11 = vmor %vm24776_vm0, %vm20836_vm3  ;;  %v10684_v31 = vsel %vm24775_vm2, %v10509_v48, 0  ;;  %vm24785_vm14 = vnez %v24784_v4  ;;  %v10640_v17 = vrot.slane %v10639_v30, 1 }
 0x4c3   :  { %vm10393_vm1 = vmor %vm24779_vm10, %vm24777_vm7  ;;  %v10674_v52 = vadd.s32 %v10673_v60, %v10672_v7  ;;  %v10514_v9 = vsel %vm10386_vm11, 1, %v24737_v53  ;;  %v10663_v46 = vadd.s32 %v10662_v38, %v10661_v27  ;;  %v10685_v48 = vadd.s32 %v10684_v31, %v24786_v58  ;;  %v24794_v60 = vld [vmem:[#allocation69_spill] sm:$0xff] }
 0x4c4   :  { %vm10394_vm6 = vmor %vm24782_vm4, %vm24780_vm5  ;;  %vm24787_vm4 = vnez %v24492_v50  ;;  %vm24789_vm5 = vnez %v24788_v22  ;;  %v10521_v23 = vsel %vm10393_vm1, 1, %v24737_v53  ;;  %v10652_v6 = vadd.s32 %v10651_v24, %v10650_v63  ;;  %v24800_v38 = vld [vmem:[#allocation13_spill] sm:$0xff]  ;;  %v24811_v22 = vld [vmem:[#allocation82_spill] sm:$0xff] }
 0x4c5   :  { %vm10397_vm15 = vmor %vm24785_vm14, %vm24783_vm8  ;;  %v10675_v3 = vrot.slane %v10674_v52, 4  ;;  %v10522_v15 = vsel %vm10394_vm6, 1, %v24737_v53  ;;  %vm24790_vm3 = vnez %v24495_v11  ;;  %vm24792_vm9 = vnez %v24791_v49  ;;  %v24807_v24 = vld [vmem:[#allocation9_spill] sm:$0xff] }
 0x4c6   :  { %vm10398_vm13 = vmor %vm24789_vm5, %vm24787_vm4  ;;  %v10525_v50 = vsel %vm10397_vm15, 1, %v24737_v53  ;;  %v10664_v27 = vrot.slane %v10663_v46, 2  ;;  %vm9282_vm11 = vcmp.ge.s32.totalorder %v24794_v60, 1  ;;  %vm24795_vm1 = vnez %v24498_v13 }
 0x4c7   :  { %vm10401_vm12 = vmor %vm24792_vm9, %vm24790_vm3  ;;  %v10676_v57 = vadd.s32 %v10675_v3, %v10674_v52  ;;  %vm24797_vm6 = vnez %v24796_v19  ;;  %v10526_v11 = vsel %vm10398_vm13, 1, %v24737_v53  ;;  %v20983_v10 = vadd.s32 %v10627_v1, %v10626_v2  ;;  %v24809_v3 = vld [vmem:[#allocation94_spill] sm:$0xff] }
 0x4c8   :  { %vm24793_vm0 = vmmov %vm24775_vm2  ;;  %v10653_v63 = vrot.slane %v10652_v6, 1  ;;  %vm24799_vm2 = vnez %v24501_v55  ;;  %vm24801_vm8 = vnez %v24800_v38  ;;  %v10665_v52 = vadd.s32 %v10664_v27, %v10663_v46  ;;  %v24822_v19 = vld [vmem:[#allocation90_spill] sm:$0xff] }
 0x4c9   :  { %v10686_v7 = vsel %vm24793_vm0, %v10510_v12, 0  ;;  %vm10402_vm10 = vmor %vm24797_vm6, %vm24795_vm1  ;;  %24798 = vst [vmem:[#allocation21_spill] sm:$0xff] %v20983_v10  ;;  %v10529_v12 = vsel %vm10401_vm12, 1, %v24737_v53  ;;  %v10677_v31 = vrot.slane %v10676_v57, 2  ;;  %vm24803_vm4 = vnez %v24504_v47 }
 0x4ca   :  { %v10687_v29 = vadd.s32 %v10686_v7, %v10685_v48  ;;  %vm10405_vm14 = vmor %vm24801_vm8, %vm24799_vm2  ;;  %vm24805_vm5 = vnez %v24804_v34  ;;  %v20996_v2 = vsel %vm10402_vm10, 1, %v24737_v53  ;;  %v20998_v1 = vadd.s32 %v10640_v17, %v10639_v30  ;;  %v24813_v30 = vld [vmem:[#allocation75_spill] sm:$0xff] }
 0x4cb   :  { %vm24802_vm15 = vmmov %vm24793_vm0  ;;  %vm24808_vm3 = vnez %v24507_v41  ;;  %vm24810_vm9 = vnez %v24809_v3  ;;  %v10666_v46 = vrot.slane %v10665_v52, 1  ;;  %v10678_v58 = vadd.s32 %v10677_v31, %v10676_v57  ;;  %v24825_v31 = vld [vmem:[#allocation70_spill] sm:$0xff]  ;;  %v24827_v41 = vld [vmem:[#allocation16_spill] sm:$0xff] }
 0x4cc   :  { %v10697_v13 = vsel %vm24802_vm15, %v10513_v18, 0  ;;  %vm10406_vm13 = vmor %vm24805_vm5, %vm24803_vm4  ;;  %24806 = vst [vmem:[#allocation28_spill] sm:$0xff] %v20998_v1  ;;  %v10688_v55 = vrot.slane %v10687_v29, 4  ;;  %v21006_v18 = vsel %vm10405_vm14, 1, %v24737_v53  ;;  %v10699_v48 = vsel %vm24793_vm0, %v10514_v9, 0  ;;  %v24818_v9 = vld [vmem:[#allocation14_spill] sm:$0xff] }
 0x4cd   :  { %v10698_v4 = vadd.s32 %v10697_v13, %v24807_v24  ;;  %vm10409_vm12 = vmor %vm24810_vm9, %vm24808_vm3  ;;  %vm24812_vm10 = vnez %v24510_v14  ;;  %vm24814_vm2 = vnez %v24813_v30  ;;  %v21015_v17 = vadd.s32 %v10653_v63, %v10652_v6  ;;  %v24820_v6 = vld [vmem:[#allocation66_spill] sm:$0xff]  ;;  %v25134_v1 = vld [vmem:[#allocation73_spill] sm:$0xff] }
 0x4ce   :  { %vm10410_vm8 = vmor %vm24814_vm2, %vm24812_vm10  ;;  %v10689_v49 = vadd.s32 %v10688_v55, %v10687_v29  ;;  %vm24817_vm1 = vnez %v24513_v56  ;;  %vm24819_vm6 = vnez %v24818_v9  ;;  %v21032_v14 = vsel %vm10406_vm13, 1, %v24737_v53 }
 0x4cf   :  { %24815 = vst [vmem:[#allocation12_spill] sm:$0xff] %v21015_v17  ;;  %v10700_v27 = vadd.s32 %v10699_v48, %v10698_v4  ;;  %vm24816_vm15 = vmmov %vm24793_vm0  ;;  %v10679_v56 = vrot.slane %v10678_v58, 1  ;;  %v21048_v47 = vsel %vm10410_vm8, 1, %v24737_v53  ;;  %vm24826_vm3 = vnez %v24519_v0  ;;  %v24831_v4 = vld [vmem:[#allocation106_spill] sm:$0xff] }
 0x4d0   :  { %v10723_v7 = vsel %vm24816_vm15, %v10521_v23, 0  ;;  %vm10413_vm7 = vmor %vm24819_vm6, %vm24817_vm1  ;;  %v21040_v23 = vsel %vm10409_vm12, 1, %v24737_v53  ;;  %vm24821_vm1 = vnez %v24516_v26  ;;  %vm24823_vm6 = vnez %v24822_v19  ;;  %v24855_v19 = vld [vmem:[#allocation121_spill] sm:$0xff] }
 0x4d1   :  { %v10724_v57 = vadd.s32 %v10723_v7, %v24820_v6  ;;  %vm10414_vm10 = vmor %vm24823_vm6, %vm24821_vm1  ;;  %v10690_v63 = vrot.slane %v10689_v49, 2  ;;  %v10701_v29 = vrot.slane %v10700_v27, 4  ;;  %vm24828_vm9 = vnez %v24827_v41 }
 0x4d2   :  { %vm24824_vm4 = vmmov %vm24793_vm0  ;;  %v21058_v13 = vsel %vm10413_vm7, 1, %v24737_v53  ;;  %v21060_v34 = vadd.s32 %v10666_v46, %v10665_v52  ;;  %v21075_v52 = vsel %vm10414_vm10, 1, %v24737_v53  ;;  %v24837_v30 = vmov 0 }
 0x4d3   :  { %v10725_v38 = vsel %vm24824_vm4, %v10522_v15, 0  ;;  %vm24830_vm2 = vmmov %vm24793_vm0  ;;  %vm24832_vm4 = vnez %v24522_v25  ;;  %v24833_v15 = vld [vmem:[#allocation71_spill] sm:$0xff]  ;;  %v10691_v3 = vadd.s32 %v10690_v63, %v10689_v49  ;;  %v10702_v46 = vadd.s32 %v10701_v29, %v10700_v27  ;;  %v24844_v49 = vld [vmem:[#allocation34_spill] sm:$0xff] }
 0x4d4   :  { %24829 = vst [vmem:[#allocation63_spill] sm:$0xff] %v21060_v34  ;;  %v10726_v55 = vadd.s32 %v10725_v38, %v10724_v57  ;;  %v10736_v24 = vsel %vm24830_vm2, %v10525_v50, 0  ;;  %vm24834_vm0 = vnez %v24833_v15  ;;  %v24835_v50 = vld [vmem:[#allocation91_spill] sm:$0xff]  ;;  %vm24836_vm2 = vcmp.lt.f32.partialorder %v19400_v39, %v19094_v40  ;;  %v24854_v57 = vld [vmem:[#allocation5_spill] sm:$0xff]  ;;  %v24860_v38 = vld [vmem:[#allocation38_spill] sm:$0xff] }
 0x4d5   :  { %v10737_v48 = vadd.s32 %v10736_v24, %v24835_v50  ;;  %vm21085_vm15 = vmand %vm24836_vm2, %vm9282_vm11  ;;  %vm24839_vm6 = vcmp.eq.s32.totalorder %v24794_v60, 2  ;;  %vm24840_vm10 = vcmp.eq.f32.partialorder %v19400_v39, %v19094_v40  ;;  %v24841_v26 = vmov 0  ;;  %v24849_v60 = vld [vmem:[#allocation118_spill] sm:$0xff]  ;;  %v24857_v63 = vld [vmem:[#allocation23_spill] sm:$0xff] }
 0x4d6   :  { %v24838_v30 = vsel %vm21085_vm15, 4294967295, %v24837_v30  ;;  %vm21096_vm8 = vmand %vm24840_vm10, %vm24839_vm6  ;;  %vm24843_vm7 = vnez %v24525_v20  ;;  %vm24845_vm14 = vnez %v24844_v49  ;;  %v21104_v27 = vadd.s32 %v10679_v56, %v10678_v58  ;;  %v24851_v40 = vld [vmem:[#allocation46_spill] sm:$0xff]  ;;  %v24983_v34 = vld [vmem:[#allocation83_spill] sm:$0xff] }
 0x4d7   :  { %v24842_v26 = vsel %vm21096_vm8, 4294967295, %v24841_v26  ;;  %v10727_v7 = vrot.slane %v10726_v55, 4  ;;  %vm24847_vm2 = vcmask 261120   ;;  %vm24850_vm6 = vnez %v24528_v59  ;;  %vm24853_vm11 = vmor %vm24828_vm9, %vm24826_vm3 }
 0x4d8   :  { %24846 = vst [vmem:[#allocation105_spill] sm:$0xff] %v21104_v27  ;;  %v10738_v9 = vsel %vm24847_vm2, %v10526_v11, 0  ;;  %vm24848_vm1 = vmmov %vm24847_vm2  ;;  %vm24852_vm10 = vnez %v24851_v40  ;;  %v21120_v58 = vsel %vm24853_vm11, 1, %v24737_v53  ;;  %v10692_v11 = vrot.slane %v10691_v3, 1  ;;  %v24883_v40 = vld [vmem:[#allocation48_spill] sm:$0xff]  ;;  %v24982_v27 = vld [vmem:[#allocation67_spill] sm:$0xff] }
 0x4d9   :  { %v10749_v6 = vsel %vm24848_vm1, %v10529_v12, 0  ;;  %v10703_v56 = vrot.slane %v10702_v46, 2  ;;  %v10739_v12 = vadd.s32 %v10738_v9, %v10737_v48  ;;  %vm24856_vm12 = vnez %v24530_v16  ;;  %vm24859_vm3 = vmor %vm24834_vm0, %vm24832_vm4  ;;  %v24863_v16 = vld [vmem:[#allocation45_spill] sm:$0xff] }
 0x4da   :  { %vm24858_vm15 = vnez %v24857_v63  ;;  %v21136_v0 = vsel %vm24859_vm3, 1, %v24737_v53  ;;  %v10728_v29 = vadd.s32 %v10727_v7, %v10726_v55  ;;  %v10750_v41 = vadd.s32 %v10749_v6, %v24860_v38  ;;  %vm24861_vm9 = vmmov %vm24848_vm1  ;;  %v24888_v38 = vld [vmem:[#allocation25_spill] sm:$0xff] }
 0x4db   :  { %vm10425_vm8 = vmor %vm24858_vm15, %vm24856_vm12  ;;  %v10751_v24 = vsel %vm24861_vm9, %v20996_v2, 0  ;;  %vm24862_vm11 = vnez %v24533_v45  ;;  %vm24864_vm5 = vnez %v24863_v16  ;;  %v10704_v55 = vadd.s32 %v10703_v56, %v10702_v46  ;;  %v24876_v46 = vld [vmem:[#allocation35_spill] sm:$0xff]  ;;  %v25038_v45 = vld [vmem:[#allocation134_spill] sm:$0xff] }
 0x4dc   :  { %vm10426_vm13 = vmor %vm24864_vm5, %vm24862_vm11  ;;  %v10740_v15 = vrot.slane %v10739_v12, 4  ;;  %vm24867_vm15 = vcmp.ge.s32.totalorder %v24811_v22, 1  ;;  %vm24868_vm4 = vcmp.lt.f32.partialorder %v19400_v39, %v19114_v33  ;;  %v24869_v20 = vmov 0 }
 0x4dd   :  { %vm24865_vm12 = vmor %vm24845_vm14, %vm24843_vm7  ;;  %vm24871_vm14 = vcmp.eq.s32.totalorder %v24811_v22, 2  ;;  %vm24872_vm7 = vcmp.eq.f32.partialorder %v19400_v39, %v19114_v33  ;;  %v21184_v50 = vsel %vm10425_vm8, 1, %v24737_v53  ;;  %v10729_v48 = vrot.slane %v10728_v29, 2  ;;  %v24880_v33 = vld [vmem:[#allocation84_spill] sm:$0xff] }
 0x4de   :  { %v21151_v25 = vsel %vm24865_vm12, 1, %v24737_v53  ;;  %vm24866_vm0 = vmor %vm24852_vm10, %vm24850_vm6  ;;  %vm24875_vm6 = vnez %v24536_v5  ;;  %vm24877_vm10 = vnez %v24876_v46  ;;  %v10752_v49 = vadd.s32 %v10751_v24, %v10750_v41  ;;  %v24911_v46 = vld [vmem:[#allocation93_spill] sm:$0xff] }
 0x4df   :  { %v21159_v2 = vsel %vm24866_vm0, 1, %v24737_v53  ;;  %vm21166_vm3 = vmand %vm24868_vm4, %vm24867_vm15  ;;  %vm24879_vm15 = vnez %v24540_v51  ;;  %vm24881_vm4 = vnez %v24880_v33  ;;  %v21192_v7 = vadd.s32 %v10692_v11, %v10691_v3 }
 0x4e0   :  { %v24870_v20 = vsel %vm21166_vm3, 4294967295, %v24869_v20  ;;  %vm21175_vm9 = vmand %vm24872_vm7, %vm24871_vm14  ;;  %v10705_v9 = vrot.slane %v10704_v55, 1  ;;  %v10741_v6 = vadd.s32 %v10740_v15, %v10739_v12  ;;  %vm24884_vm2 = vnez %v24542_v21  ;;  %v24902_v15 = vld [vmem:[#allocation108_spill] sm:$0xff]  ;;  %v24923_v21 = vld [vmem:[#allocation122_spill] sm:$0xff] }
 0x4e1   :  { %vm24878_vm0 = vmmov %vm24848_vm1  ;;  %24882 = vst [vmem:[#allocation43_spill] sm:$0xff] %v21192_v7  ;;  %v21209_v3 = vsel %vm10426_vm13, 1, %v24737_v53  ;;  %v10730_v11 = vadd.s32 %v10729_v48, %v10728_v29  ;;  %v10753_v12 = vrot.slane %v10752_v49, 4  ;;  %vm24889_vm12 = vcmp.ge.s32.totalorder %v24825_v31, 1  ;;  %v24913_v48 = vld [vmem:[#allocation65_spill] sm:$0xff] }
 0x4e2   :  { %v10762_v22 = vsel %vm24878_vm0, %v21006_v18, 0  ;;  %v24885_v18 = vld [vmem:[#allocation37_spill] sm:$0xff]  ;;  %vm24887_vm8 = vmmov %vm24848_vm1  ;;  %vm24890_vm1 = vcmp.lt.f32.partialorder %v19021_v32, %v19126_v44  ;;  %v24891_v41 = vmov 0  ;;  %vm24893_vm5 = vcmp.eq.s32.totalorder %v24825_v31, 2 }
 0x4e3   :  { %v10763_v56 = vadd.s32 %v10762_v22, %v24883_v40  ;;  %vm24886_vm0 = vnez %v24885_v18  ;;  %v10764_v63 = vsel %vm24887_vm8, %v21032_v14, 0  ;;  %vm21220_vm3 = vmand %vm24890_vm1, %vm24889_vm12  ;;  %vm24894_vm13 = vcmp.eq.f32.partialorder %v19021_v32, %v19126_v44  ;;  %v24898_v14 = vld [vmem:[#allocation51_spill] sm:$0xff]  ;;  %v24917_v40 = vld [vmem:[#allocation60_spill] sm:$0xff] }
 0x4e4   :  { %v24892_v41 = vsel %vm21220_vm3, 4294967295, %v24891_v41  ;;  %vm21229_vm11 = vmand %vm24894_vm13, %vm24893_vm5  ;;  %vm24897_vm8 = vnez %v24545_v37  ;;  %vm24899_vm14 = vnez %v24898_v14  ;;  %v10742_v24 = vrot.slane %v10741_v6, 2  ;;  %v24922_v18 = vld [vmem:[#allocation98_spill] sm:$0xff] }
 0x4e5   :  { %vm24900_vm1 = vmor %vm24877_vm10, %vm24875_vm6  ;;  %v10765_v16 = vadd.s32 %v10764_v63, %v10763_v56  ;;  %vm24903_vm7 = vcmp.ge.s32.totalorder %v24831_v4, 1  ;;  %vm24904_vm6 = vcmp.lt.f32.partialorder %v19400_v39, %v19126_v44  ;;  %v24905_v5 = vmov 0  ;;  %v24919_v56 = vld [vmem:[#allocation95_spill] sm:$0xff] }
 0x4e6   :  { %v21243_v29 = vsel %vm24900_vm1, 1, %v24737_v53  ;;  %vm24901_vm12 = vmor %vm24881_vm4, %vm24879_vm15  ;;  %vm24907_vm1 = vcmp.eq.s32.totalorder %v24831_v4, 2  ;;  %vm24908_vm15 = vcmp.eq.f32.partialorder %v19400_v39, %v19126_v44  ;;  %v24909_v51 = vmov 0 }
 0x4e7   :  { %v21251_v31 = vsel %vm24901_vm12, 1, %v24737_v53  ;;  %vm21260_vm10 = vmand %vm24904_vm6, %vm24903_vm7  ;;  %vm24912_vm12 = vnez %v24911_v46  ;;  %vm24914_vm13 = vnez %v24913_v48  ;;  %v10731_v4 = vrot.slane %v10730_v11, 1 }
 0x4e8   :  { %v24906_v5 = vsel %vm21260_vm10, 4294967295, %v24905_v5  ;;  %vm21269_vm4 = vmand %vm24908_vm15, %vm24907_vm1  ;;  %v10754_v33 = vadd.s32 %v10753_v12, %v10752_v49  ;;  %vm24916_vm6 = vcmask 261120   ;;  %vm24918_vm1 = vnez %v24917_v40  ;;  %v24924_v49 = vld [vmem:[#allocation62_spill] sm:$0xff]  ;;  %v24952_v40 = vld [vmem:[#allocation64_spill] sm:$0xff] }
 0x4e9   :  { %v24910_v51 = vsel %vm21269_vm4, 4294967295, %v24909_v51  ;;  %vm10431_vm5 = vmor %vm24914_vm13, %vm24912_vm12  ;;  %v10775_v44 = vsel %vm24916_vm6, %v21040_v23, 0  ;;  %vm24920_vm15 = vnez %v24919_v56  ;;  %v21291_v63 = vadd.s32 %v10705_v9, %v10704_v55  ;;  %v24926_v23 = vld [vmem:[#allocation87_spill] sm:$0xff] }
 0x4ea   :  { %vm24915_vm7 = vmor %vm24886_vm0, %vm24884_vm2  ;;  %v10743_v46 = vadd.s32 %v10742_v24, %v10741_v6  ;;  %v10766_v48 = vrot.slane %v10765_v16, 4  ;;  %v10776_v8 = vadd.s32 %v10775_v44, %v24922_v18  ;;  %vm24925_vm13 = vnez %v24924_v49  ;;  %v24941_v18 = vld [vmem:[#allocation89_spill] sm:$0xff] }
 0x4eb   :  { %v21283_v22 = vsel %vm24915_vm7, 1, %v24737_v53  ;;  %24921 = vst [vmem:[#allocation88_spill] sm:$0xff] %v21291_v63  ;;  %vm24927_vm12 = vnez %v24926_v23  ;;  %vm24928_vm6 = vmor %vm24899_vm14, %vm24897_vm8  ;;  %v21311_v9 = vsel %vm10431_vm5, 1, %v24737_v53  ;;  %v10755_v6 = vrot.slane %v10754_v33, 2 }
 0x4ec   :  { %v21308_v55 = vsel %vm24928_vm6, 1, %v24737_v53  ;;  %vm24929_vm2 = vcmask 261120   ;;  %vm24930_vm0 = vcmp.ge.s32.totalorder %v24854_v57, 1  ;;  %vm24931_vm7 = vcmp.lt.f32.partialorder %v19021_v32, %v19175_v62 }
 0x4ed   :  { %v10777_v12 = vsel %vm24929_vm2, %v21048_v47, 0  ;;  %vm21320_vm10 = vmand %vm24931_vm7, %vm24930_vm0  ;;  %v24932_v24 = vmov 0  ;;  %vm24934_vm14 = vcmp.eq.s32.totalorder %v24854_v57, 2  ;;  %vm24935_vm8 = vcmp.eq.f32.partialorder %v19021_v32, %v19175_v62 }
 0x4ee   :  { %v24933_v24 = vsel %vm21320_vm10, 4294967295, %v24932_v24  ;;  %vm21329_vm5 = vmand %vm24935_vm8, %vm24934_vm14  ;;  %v24936_v37 = vmov 0  ;;  %vm24938_vm2 = vnez %v24842_v26  ;;  %vm24939_vm6 = vnez %v24838_v30  ;;  %v24978_v26 = vld [vmem:[#allocation100_spill] sm:$0xff] }
 0x4ef   :  { %v24937_v37 = vsel %vm21329_vm5, 4294967295, %v24936_v37  ;;  %vm24940_vm0 = vmor %vm24920_vm15, %vm24918_vm1  ;;  %v10744_v57 = vrot.slane %v10743_v46, 1  ;;  %v10767_v14 = vadd.s32 %v10766_v48, %v10765_v16  ;;  %v10778_v44 = vadd.s32 %v10777_v12, %v10776_v8  ;;  %v24958_v12 = vld [vmem:[#allocation24_spill] sm:$0xff] }
 0x4f0   :  { %v21343_v47 = vsel %vm24940_vm0, 1, %v24737_v53  ;;  %vm24942_vm8 = vcmp.ge.s32.totalorder %v24849_v60, 1  ;;  %vm24943_vm4 = vcmp.lt.f32.partialorder %v19400_v39, %v19175_v62  ;;  %vm24946_vm1 = vcmp.eq.s32.totalorder %v24849_v60, 2 }
 0x4f1   :  { %vm21352_vm10 = vmand %vm24943_vm4, %vm24942_vm8  ;;  %vm24947_vm15 = vcmp.eq.f32.partialorder %v19400_v39, %v19175_v62  ;;  %v24948_v8 = vmov 0  ;;  %v24950_v16 = vmov %v24559_v54  ;;  %vm24953_vm7 = vnez %v24952_v40 }
 0x4f2   :  { %v24945_v43 = vsel %vm21352_vm10, 4294967295, %v24944_v43  ;;  %vm21361_vm0 = vmand %vm24947_vm15, %vm24946_vm1  ;;  %vm24951_vm14 = vnez %v24950_v16  ;;  %v21377_v60 = vadd.s32 %v10731_v4, %v10730_v11  ;;  %v10756_v62 = vadd.s32 %v10755_v6, %v10754_v33  ;;  %v24966_v4 = vld [vmem:[#allocation129_spill] sm:$0xff]  ;;  %v24972_v6 = vld [vmem:[#allocation123_spill] sm:$0xff] }
 0x4f3   :  { %v24949_v8 = vsel %vm21361_vm0, 4294967295, %v24948_v8  ;;  %vm24954_vm4 = vmor %vm24927_vm12, %vm24925_vm13  ;;  %vm24956_vm8 = vcmask 261120   ;;  %vm24957_vm1 = vcmp.ge.s32.totalorder %v24855_v19, 1  ;;  %vm24959_vm15 = vcmp.lt.f32.partialorder %v19400_v39, %v24958_v12 }
 0x4f4   :  { %v21375_v56 = vsel %vm24954_vm4, 1, %v24737_v53  ;;  %24955 = vst [vmem:[#allocation6_spill] sm:$0xff] %v21377_v60  ;;  %v10788_v48 = vsel %vm24956_vm8, %v21058_v13, 0  ;;  %vm21386_vm5 = vmand %vm24959_vm15, %vm24957_vm1  ;;  %vm24962_vm10 = vcmp.eq.s32.totalorder %v24855_v19, 2  ;;  %vm24963_vm13 = vcmp.eq.f32.partialorder %v19400_v39, %v24958_v12  ;;  %v24968_v13 = vld [vmem:[#allocation49_spill] sm:$0xff]  ;;  %v24973_v12 = vld [vmem:[#allocation130_spill] sm:$0xff] }
 0x4f5   :  { %v24961_v36 = vsel %vm21386_vm5, 4294967295, %v24960_v36  ;;  %vm21395_vm12 = vmand %vm24963_vm13, %vm24962_vm10  ;;  %v24964_v11 = vmov 0  ;;  %vm24967_vm4 = vnez %v24966_v4  ;;  %vm24969_vm8 = vnez %v24968_v13 }
 0x4f6   :  { %v24965_v11 = vsel %vm21395_vm12, 4294967295, %v24964_v11  ;;  %vm24970_vm1 = vmor %vm24939_vm6, %vm24938_vm2  ;;  %v10768_v19 = vrot.slane %v10767_v14, 2  ;;  %v10779_v49 = vrot.slane %v10778_v44, 4  ;;  %vm24971_vm10 = vcmask 261120  }
 0x4f7   :  { %v21409_v33 = vsel %vm24970_vm1, 1, %v24737_v53  ;;  %v10790_v23 = vsel %vm24971_vm10, %v21075_v52, 0  ;;  %vm24974_vm0 = vnez %v24973_v12  ;;  %vm24976_vm5 = vnez %v24975_v42  ;;  %vm24977_vm2 = vmor %vm24953_vm7, %vm24951_vm14  ;;  %v25017_v12 = vld [vmem:[#allocation2_spill] sm:$0xff] }
 0x4f8   :  { %v21427_v30 = vsel %vm24977_vm2, 1, %v24737_v53  ;;  %v10757_v52 = vrot.slane %v10756_v62, 1  ;;  %v10789_v54 = vadd.s32 %v10788_v48, %v24978_v26  ;;  %vm24979_vm6 = vmmov %vm24971_vm10  ;;  %vm24980_vm1 = vnez %v24870_v20  ;;  %v21527_v26 = vpop.permute.xlu1 %8694 }
 0x4f9   :  { %v10801_v60 = vsel %vm24979_vm6, %v21120_v58, 0  ;;  %v21436_v63 = vadd.s32 %v10744_v57, %v10743_v46  ;;  %v10769_v7 = vadd.s32 %v10768_v19, %v10767_v14  ;;  %v10780_v40 = vadd.s32 %v10779_v49, %v10778_v44  ;;  %v24992_v46 = vld [vmem:[#allocation131_spill] sm:$0xff]  ;;  %v24994_v57 = vld [vmem:[#allocation50_spill] sm:$0xff]  ;;  %v25012_v19 = vld [vmem:[#allocation124_spill] sm:$0xff] }
 0x4fa   :  { %v10802_v16 = vadd.s32 %v10801_v60, %v24982_v27  ;;  %vm24984_vm2 = vcmp.ge.s32.totalorder %v24888_v38, 1  ;;  %vm24985_vm6 = vcmp.lt.f32.partialorder %v19021_v32, %v19504_v35  ;;  %vm24988_vm15 = vcmp.eq.s32.totalorder %v24888_v38, 2  ;;  %v25119_v58 = vld [vmem:[#allocation40_spill] sm:$0xff] }
 0x4fb   :  { %24981 = vst [vmem:[#allocation26_spill] sm:$0xff] %v21436_v63  ;;  %vm21446_vm13 = vmand %vm24985_vm6, %vm24984_vm2  ;;  %vm24989_vm10 = vcmp.eq.f32.partialorder %v19021_v32, %v19504_v35  ;;  %vm24993_vm14 = vnez %v24992_v46  ;;  %vm24995_vm7 = vnez %v24994_v57  ;;  %v10791_v44 = vadd.s32 %v10790_v23, %v10789_v54  ;;  %v25007_v54 = vld [vmem:[#allocation132_spill] sm:$0xff]  ;;  %v25023_v57 = vld [vmem:[#allocation133_spill] sm:$0xff]  ;;  %v21705_v63 = vpop.permute.xlu0 %8698 }
 0x4fc   :  { %vm21455_vm12 = vmand %vm24989_vm10, %vm24988_vm15  ;;  %vm24998_vm10 = vcmask 261120   ;;  %vm24999_vm6 = vcmp.ge.s32.totalorder %v24902_v15, 1  ;;  %vm25000_vm3 = vcmp.lt.f32.partialorder %v19400_v39, %v19504_v35  ;;  %v25001_v48 = vmov 0  ;;  %v25025_v46 = vld [vmem:[#allocation102_spill] sm:$0xff] }
 0x4fd   :  { %vm24996_vm2 = vmor %vm24969_vm8, %vm24967_vm4  ;;  %v10803_v60 = vsel %vm24998_vm10, %v21136_v0, 0  ;;  %vm25003_vm8 = vcmp.eq.s32.totalorder %v24902_v15, 2  ;;  %v25005_v42 = vmov 0  ;;  %v25009_v0 = vld [vmem:[#allocation76_spill] sm:$0xff]  ;;  %v10770_v15 = vrot.slane %v10769_v7, 1 }
 0x4fe   :  { %v21469_v14 = vsel %vm24996_vm2, 1, %v24737_v53  ;;  %vm24997_vm15 = vmor %vm24976_vm5, %vm24974_vm0  ;;  %vm25004_vm5 = vcmp.eq.f32.partialorder %v19400_v39, %v19504_v35  ;;  %vm25008_vm2 = vnez %v25007_v54  ;;  %v10781_v13 = vrot.slane %v10780_v40, 2 }
 0x4ff   :  { %v21477_v38 = vsel %vm24997_vm15, 1, %v24737_v53  ;;  %vm21486_vm4 = vmand %vm25000_vm3, %vm24999_vm6  ;;  %vm25010_vm15 = vnez %v25009_v0  ;;  %v10804_v35 = vadd.s32 %v10803_v60, %v10802_v16  ;;  %v21519_v20 = vadd.s32 %v10757_v52, %v10756_v62  ;;  %v25022_v16 = vld [vmem:[#allocation116_spill] sm:$0xff] }
 0x500   :  { %v25002_v48 = vsel %vm21486_vm4, 4294967295, %v25001_v48  ;;  %vm21495_vm0 = vmand %vm25004_vm5, %vm25003_vm8  ;;  %vm25013_vm5 = vnez %v24892_v41  ;;  %v10792_v59 = vrot.slane %v10791_v44, 4  ;;  %vm25018_vm8 = vnez %v24910_v51 }
 0x501   :  { %v25006_v42 = vsel %vm21495_vm0, 4294967295, %v25005_v42  ;;  %vm25011_vm3 = vmor %vm24980_vm1, %vm21175_vm9  ;;  %25014 = vst [vmem:[#allocation22_spill] sm:$0xff] %v21519_v20  ;;  %vm25019_vm4 = vnez %v24906_v5  ;;  %v10782_v62 = vadd.s32 %v10781_v13, %v10780_v40  ;;  %v10805_v52 = vrot.slane %v10804_v35, 4  ;;  %v25029_v13 = vld [vmem:[#allocation4_spill] sm:$0xff]  ;;  %v21653_v20 = vpop.permute.xlu1 %8679 }
 0x502   :  { %v21509_v4 = vsel %vm25011_vm3, 1, %v24737_v53  ;;  %vm25015_vm9 = vmmov %vm24998_vm10  ;;  %vm25024_vm10 = vnez %v25023_v57  ;;  %v21563_v54 = vadd.s32 %v10770_v15, %v10769_v7  ;;  %v10793_v40 = vadd.s32 %v10792_v59, %v10791_v44  ;;  %v25040_v44 = vld [vmem:[#allocation15_spill] sm:$0xff] }
 0x503   :  { %v10824_v49 = vsel %vm25015_vm9, %v21151_v25, 0  ;;  %vm25016_vm1 = vmmov %vm25015_vm9  ;;  %vm25031_vm3 = vcmp.lt.f32.partialorder %v19400_v39, %v24923_v21  ;;  %v25032_v41 = vmov 0  ;;  %v25036_v7 = vmov 0 }
 0x504   :  { %v10825_v23 = vsel %vm25016_vm1, %v21159_v2, 0  ;;  %vm25020_vm9 = vmor %vm24995_vm7, %vm24993_vm14  ;;  %vm25026_vm7 = vnez %v25025_v46  ;;  %25028 = vst [vmem:[#allocation52_spill] sm:$0xff] %v21563_v54  ;;  %v10783_v15 = vrot.slane %v10782_v62, 1  ;;  %v10806_v59 = vadd.s32 %v10805_v52, %v10804_v35  ;;  %v25049_v54 = vld [vmem:[#allocation7_spill] sm:$0xff] }
 0x505   :  { %v21539_v25 = vsel %vm25020_vm9, 1, %v24737_v53  ;;  %vm25021_vm1 = vmor %vm25010_vm15, %vm25008_vm2  ;;  %v10826_v0 = vadd.s32 %v10825_v23, %v10824_v49  ;;  %vm25039_vm15 = vnez %v25038_v45  ;;  %vm25041_vm2 = vnez %v25040_v44  ;;  %v25044_v23 = vld [vmem:[#allocation103_spill] sm:$0xff]  ;;  %v25059_v44 = vld [vmem:[#allocation97_spill] sm:$0xff] }
 0x506   :  { %v21547_v2 = vsel %vm25021_vm1, 1, %v24737_v53  ;;  %vm25027_vm9 = vmor %vm25013_vm5, %vm21229_vm11  ;;  %vm25030_vm1 = vcmp.ge.s32.totalorder %v24941_v18, 1  ;;  %vm25034_vm11 = vcmp.eq.s32.totalorder %v24941_v18, 2  ;;  %vm25035_vm5 = vcmp.eq.f32.partialorder %v19400_v39, %v24923_v21  ;;  %v25045_v21 = vld [vmem:[#allocation78_spill] sm:$0xff] }
 0x507   :  { %v21561_v60 = vsel %vm25027_vm9, 1, %v24737_v53  ;;  %vm21572_vm6 = vmand %vm25031_vm3, %vm25030_vm1  ;;  %vm25042_vm3 = vcmask 261120   ;;  %vm25046_vm14 = vnez %v24937_v37  ;;  %vm25047_vm0 = vnez %v24933_v24 }
 0x508   :  { %v25033_v41 = vsel %vm21572_vm6, 4294967295, %v25032_v41  ;;  %vm21581_vm9 = vmand %vm25035_vm5, %vm25034_vm11  ;;  %v10827_v49 = vsel %vm25042_vm3, %v21184_v50, 0  ;;  %vm25050_vm11 = vnez %v24949_v8  ;;  %vm25051_vm6 = vnez %v24945_v43 }
 0x509   :  { %v25037_v7 = vsel %vm21581_vm9, 4294967295, %v25036_v7  ;;  %vm25043_vm1 = vmmov %vm25042_vm3  ;;  %v10828_v35 = vadd.s32 %v10827_v49, %v10826_v0  ;;  %v10807_v51 = vrot.slane %v10806_v59, 2  ;;  %v25055_v49 = vld [vmem:[#allocation119_spill] sm:$0xff]  ;;  %vm25061_vm5 = vcmp.lt.f32.partialorder %v19400_v39, %v24972_v6 }
 0x50a   :  { %v10829_v18 = vsel %vm25043_vm1, %v21209_v3, 0  ;;  %vm25048_vm3 = vmor %vm25019_vm4, %vm25018_vm8  ;;  %v10794_v3 = vrot.slane %v10793_v40, 2  ;;  %v10837_v52 = vsel %vm25043_vm1, %v21243_v29, 0  ;;  %v25062_v24 = vmov 0 }
 0x50b   :  { %v21609_v50 = vsel %vm25048_vm3, 1, %v24737_v53  ;;  %vm25052_vm4 = vmor %vm25026_vm7, %vm25024_vm10  ;;  %vm25056_vm10 = vnez %v24965_v11  ;;  %vm25057_vm7 = vnez %v24961_v36  ;;  %v10830_v45 = vadd.s32 %v10829_v18, %v10828_v35  ;;  %v25070_v18 = vld [vmem:[#allocation55_spill] sm:$0xff] }
 0x50c   :  { %v21625_v5 = vsel %vm25052_vm4, 1, %v24737_v53  ;;  %vm25053_vm8 = vmor %vm25041_vm2, %vm25039_vm15  ;;  %v10795_v46 = vadd.s32 %v10794_v3, %v10793_v40  ;;  %v25066_v37 = vmov 0  ;;  %v25068_v40 = vld [vmem:[#allocation135_spill] sm:$0xff]  ;;  %vm25071_vm15 = vnez %v25070_v18  ;;  %v25111_v18 = vld [vmem:[#allocation80_spill] sm:$0xff] }
 0x50d   :  { %v21633_v29 = vsel %vm25053_vm8, 1, %v24737_v53  ;;  %vm25054_vm3 = vmmov %vm25043_vm1  ;;  %v21677_v3 = vadd.s32 %v10783_v15, %v10782_v62  ;;  %v10808_v35 = vadd.s32 %v10807_v51, %v10806_v59  ;;  %v25077_v62 = vld [vmem:[#allocation136_spill] sm:$0xff]  ;;  %v10831_v59 = vrot.slane %v10830_v45, 4 }
 0x50e   :  { %v10838_v0 = vsel %vm25054_vm3, %v21251_v31, 0  ;;  %vm25058_vm2 = vmor %vm25047_vm0, %vm25046_vm14  ;;  %vm25060_vm3 = vcmp.ge.s32.totalorder %v24983_v34, 1  ;;  %vm25064_vm0 = vcmp.eq.s32.totalorder %v24983_v34, 2  ;;  %vm25065_vm14 = vcmp.eq.f32.partialorder %v19400_v39, %v24972_v6  ;;  %v25076_v6 = vld [vmem:[#allocation39_spill] sm:$0xff] }
 0x50f   :  { %v21649_v57 = vsel %vm25058_vm2, 1, %v24737_v53  ;;  %v10839_v31 = vadd.s32 %v10838_v0, %v10837_v52  ;;  %vm21660_vm1 = vmand %vm25061_vm5, %vm25060_vm3  ;;  %25072 = vst [vmem:[#allocation31_spill] sm:$0xff] %v21677_v3  ;;  %vm25073_vm5 = vcmask 261120   ;;  %v25075_v0 = vld [vmem:[#allocation29_spill] sm:$0xff]  ;;  %v10796_v15 = vrot.slane %v10795_v46, 1  ;;  %v25082_v3 = vld [vmem:[#allocation111_spill] sm:$0xff] }
 0x510   :  { %v25063_v24 = vsel %vm21660_vm1, 4294967295, %v25062_v24  ;;  %vm21669_vm2 = vmand %vm25065_vm14, %vm25064_vm0  ;;  %v10840_v52 = vsel %vm25073_vm5, %v21283_v22, 0  ;;  %v25079_v22 = vld [vmem:[#allocation86_spill] sm:$0xff]  ;;  %v10809_v8 = vrot.slane %v10808_v35, 1  ;;  %vm25087_vm1 = vcmp.ge.s32.totalorder %v25017_v12, 1 }
 0x511   :  { %v25067_v37 = vsel %vm21669_vm2, 4294967295, %v25066_v37  ;;  %vm25074_vm3 = vmmov %vm25073_vm5  ;;  %vm25078_vm2 = vnez %v25077_v62  ;;  %vm25080_vm5 = vnez %v25079_v22  ;;  %v10841_v51 = vadd.s32 %v10840_v52, %v10839_v31  ;;  %v25116_v22 = vld [vmem:[#allocation107_spill] sm:$0xff] }
 0x512   :  { %v10842_v34 = vsel %vm25074_vm3, %v21308_v55, 0  ;;  %vm10456_vm8 = vmor %vm25080_vm5, %vm25078_vm2  ;;  %v25089_v17 = vmov 0  ;;  %v10832_v11 = vadd.s32 %v10831_v59, %v10830_v45  ;;  %v25107_v45 = vmov 0  ;;  %v25117_v59 = vld [vmem:[#allocation30_spill] sm:$0xff] }
 0x513   :  { %vm25081_vm3 = vmor %vm25051_vm6, %vm25050_vm11  ;;  %vm25085_vm11 = vcmask 261120   ;;  %v25121_v27 = vmov 0  ;;  %v25136_v10 = vmov 0  ;;  %v21856_v28 = vadd.s32 %v10809_v8, %v10808_v35 }
 0x514   :  { %v21701_v55 = vsel %vm25081_vm3, 1, %v24737_v53  ;;  %vm25083_vm9 = vmmov %vm21446_vm13  ;;  %v10850_v31 = vsel %vm25085_vm11, %v21311_v9, 0  ;;  %vm25088_vm13 = vcmp.lt.f32.partialorder %v19021_v32, %v25012_v19  ;;  %v25155_v35 = vmov 0 }
 0x515   :  { %vm10457_vm14 = vmor %vm25083_vm9, %vm21455_vm12  ;;  %vm25120_vm12 = vcmp.lt.f32.partialorder %v25119_v58, %v25045_v21  ;;  %25146 = vst [vmem:[#allocation77_spill] sm:$0xff] %v21856_v28  ;;  %v25205_v28 = vmov 0 }
 0x516   :  { %vm25084_vm6 = vmor %vm25057_vm7, %vm25056_vm10  ;;  %vm25091_vm10 = vcmp.eq.s32.totalorder %v25017_v12, 2  ;;  %vm25092_vm7 = vcmp.eq.f32.partialorder %v19021_v32, %v25012_v19  ;;  %v25103_v12 = vmov 0 }
 0x517   :  { %v21717_v43 = vsel %vm25084_vm6, 1, %v24737_v53  ;;  %vm25086_vm3 = vmmov %vm25085_vm11  ;;  %vm25095_vm11 = vnez %v25006_v42  ;;  %v10843_v42 = vadd.s32 %v10842_v34, %v10841_v51  ;;  %v21791_v34 = vsel %vm10457_vm14, 1, %v24737_v53  ;;  %v25129_v51 = vld [vmem:[#allocation96_spill] sm:$0xff] }
 0x518   :  { %v10851_v52 = vsel %vm25086_vm3, %v21343_v47, 0  ;;  %vm21728_vm0 = vmand %vm25088_vm13, %vm25087_vm1  ;;  %vm25096_vm3 = vnez %v25002_v48  ;;  %vm25097_vm13 = vnez %v25068_v40  ;;  %v21759_v47 = vsel %vm10456_vm8, 1, %v24737_v53  ;;  %v25100_v48 = vld [vmem:[#allocation58_spill] sm:$0xff]  ;;  %v25109_v40 = vld [vmem:[#allocation137_spill] sm:$0xff]  ;;  %25113 = vst [vmem:[#allocation33_spill] sm:$0xff] %v21791_v34 }
 0x519   :  { %v25090_v17 = vsel %vm21728_vm0, 4294967295, %v25089_v17  ;;  %vm21737_vm6 = vmand %vm25092_vm7, %vm25091_vm10  ;;  %25099 = vst [vmem:[#allocation68_spill] sm:$0xff] %v21759_v47  ;;  %vm25106_vm8 = vcmp.eq.f32.partialorder %v19400_v39, %v25012_v19  ;;  %vm25110_vm5 = vnez %v25109_v40  ;;  %v10852_v62 = vadd.s32 %v10851_v52, %v10850_v31 }
 0x51a   :  { %vm10458_vm4 = vmor %vm25096_vm3, %vm25095_vm11  ;;  %vm25101_vm11 = vcmp.ge.s32.totalorder %v25022_v16, 1  ;;  %vm25118_vm10 = vcmp.ge.s32.totalorder %v25029_v13, 1  ;;  %v10833_v31 = vrot.slane %v10832_v11, 2  ;;  %v10844_v52 = vrot.slane %v10843_v42, 4 }
 0x51b   :  { %vm25098_vm1 = vmor %vm25071_vm15, %vm25097_vm13  ;;  %vm25102_vm15 = vcmp.lt.f32.partialorder %v19400_v39, %v25012_v19  ;;  %vm25105_vm13 = vcmp.eq.s32.totalorder %v25022_v16, 2  ;;  %v21794_v16 = vsel %vm10458_vm4, 1, %v24737_v53  ;;  %v21796_v19 = vadd.s32 %v10796_v15, %v10795_v46  ;;  %v25127_v15 = vld [vmem:[#allocation138_spill] sm:$0xff] }
 0x51c   :  { %v21751_v9 = vsel %vm25098_vm1, 1, %v24737_v53  ;;  %vm21768_vm3 = vmand %vm25102_vm15, %vm25101_vm11  ;;  %vm25112_vm1 = vnez %v25111_v18  ;;  %25114 = vst [vmem:[#allocation32_spill] sm:$0xff] %v21794_v16  ;;  %vm25123_vm15 = vcmp.eq.s32.totalorder %v25029_v13, 2  ;;  %v25125_v46 = vmov 0 }
 0x51d   :  { %v25104_v12 = vsel %vm21768_vm3, 4294967295, %v25103_v12  ;;  %vm21777_vm2 = vmand %vm25106_vm8, %vm25105_vm13  ;;  %25115 = vst [vmem:[#allocation74_spill] sm:$0xff] %v21796_v19  ;;  %vm25124_vm13 = vcmp.eq.f32.partialorder %v25119_v58, %v25045_v21  ;;  %vm25128_vm11 = vnez %v25127_v15  ;;  %vm25131_vm4 = vcmask 261120  }
 0x51e   :  { %v25108_v45 = vsel %vm21777_vm2, 4294967295, %v25107_v45  ;;  %vm21808_vm9 = vmand %vm25120_vm12, %vm25118_vm10  ;;  %vm25130_vm10 = vnez %v25129_v51  ;;  %v10853_v19 = vsel %vm25131_vm4, %v21375_v56, 0  ;;  %vm25138_vm12 = vcmp.eq.s32.totalorder %v25044_v23, 2 }
 0x51f   :  { %v25122_v27 = vsel %vm21808_vm9, 4294967295, %v25121_v27  ;;  %vm21820_vm8 = vmand %vm25124_vm13, %vm25123_vm15  ;;  %vm25133_vm13 = vcmp.ge.s32.totalorder %v25044_v23, 1  ;;  %vm25135_vm9 = vcmp.lt.f32.partialorder %v25134_v1, %v25045_v21  ;;  %v25140_v56 = vmov 0 }
 0x520   :  { %v25126_v46 = vsel %vm21820_vm8, 4294967295, %v25125_v46  ;;  %vm25132_vm14 = vmmov %vm25131_vm4  ;;  %vm25139_vm4 = vcmp.eq.f32.partialorder %v25134_v1, %v25045_v21  ;;  %vm25145_vm15 = vnez %v25144_v61  ;;  %v10854_v16 = vadd.s32 %v10853_v19, %v10852_v62 }
 0x521   :  { %v10855_v13 = vsel %vm25132_vm14, %v21409_v33, 0  ;;  %vm21839_vm8 = vmand %vm25135_vm9, %vm25133_vm13  ;;  %v25142_v33 = vld [vmem:[#allocation139_spill] sm:$0xff]  ;;  %vm25147_vm9 = vcmask 261120   ;;  %v25151_v47 = vmov 0  ;;  %vm25153_vm7 = vcmp.eq.s32.totalorder %v25049_v54, 2 }
 0x522   :  { %v25137_v10 = vsel %vm21839_vm8, 4294967295, %v25136_v10  ;;  %vm21848_vm3 = vmand %vm25139_vm4, %vm25138_vm12  ;;  %vm25143_vm14 = vnez %v25142_v33  ;;  %v10863_v34 = vsel %vm25147_vm9, %v21427_v30, 0  ;;  %vm25149_vm8 = vcmp.ge.s32.totalorder %v25049_v54, 1  ;;  %v25198_v33 = vld [vmem:[#allocation101_spill] sm:$0xff] }
 0x523   :  { %v25141_v56 = vsel %vm21848_vm3, 4294967295, %v25140_v56  ;;  %vm25148_vm13 = vmmov %vm25147_vm9  ;;  %vm25150_vm12 = vcmp.lt.f32.partialorder %v19021_v32, %v25045_v21  ;;  %vm25154_vm3 = vcmp.eq.f32.partialorder %v19021_v32, %v25045_v21  ;;  %vm25157_vm9 = vnez %v25037_v7 }
 0x524   :  { %v10864_v23 = vsel %vm25148_vm13, %v21469_v14, 0  ;;  %vm21867_vm4 = vmand %vm25150_vm12, %vm25149_vm8  ;;  %vm25158_vm13 = vnez %v25033_v41  ;;  %v10834_v14 = vadd.s32 %v10833_v31, %v10832_v11  ;;  %v10845_v54 = vadd.s32 %v10844_v52, %v10843_v42  ;;  %v25168_v11 = vld [vmem:[#allocation140_spill] sm:$0xff]  ;;  %v25170_v42 = vld [vmem:[#allocation10_spill] sm:$0xff] }
 0x525   :  { %v25152_v47 = vsel %vm21867_vm4, 4294967295, %v25151_v47  ;;  %vm21876_vm2 = vmand %vm25154_vm3, %vm25153_vm7  ;;  %v10865_v8 = vadd.s32 %v10864_v23, %v10863_v34  ;;  %vm25160_vm7 = vcmp.ge.s32.totalorder %v25055_v49, 1  ;;  %vm25161_vm3 = vcmp.lt.f32.partialorder %v19400_v39, %v25045_v21 }
 0x526   :  { %v25156_v35 = vsel %vm21876_vm2, 4294967295, %v25155_v35  ;;  %vm25159_vm8 = vmor %vm25112_vm1, %vm25110_vm5  ;;  %v25162_v19 = vmov 0  ;;  %vm25164_vm0 = vcmp.eq.s32.totalorder %v25055_v49, 2  ;;  %vm25165_vm4 = vcmp.eq.f32.partialorder %v19400_v39, %v25045_v21 }
 0x527   :  { %v21890_v30 = vsel %vm25159_vm8, 1, %v24737_v53  ;;  %vm21897_vm12 = vmand %vm25161_vm3, %vm25160_vm7  ;;  %v25166_v40 = vmov 0  ;;  %vm25169_vm1 = vnez %v25168_v11  ;;  %vm25171_vm8 = vnez %v25170_v42 }
 0x528   :  { %v25163_v19 = vsel %vm21897_vm12, 4294967295, %v25162_v19  ;;  %vm21906_vm5 = vmand %vm25165_vm4, %vm25164_vm0  ;;  %v10856_v49 = vadd.s32 %v10855_v13, %v10854_v16  ;;  %vm25173_vm3 = vcmask 261120   ;;  %vm25175_vm4 = vcmp.ge.s32.totalorder %v25059_v44, 1  ;;  %v25196_v13 = vld [vmem:[#allocation142_spill] sm:$0xff] }
 0x529   :  { %v25167_v40 = vsel %vm21906_vm5, 4294967295, %v25166_v40  ;;  %vm25172_vm7 = vmor %vm25130_vm10, %vm25128_vm11  ;;  %v10866_v21 = vsel %vm25173_vm3, %v21477_v38, 0  ;;  %vm25176_vm2 = vcmp.lt.f32.partialorder %v25119_v58, %v25076_v6  ;;  %v25177_v62 = vmov 0  ;;  %v25183_v38 = vld [vmem:[#allocation141_spill] sm:$0xff] }
 0x52a   :  { %v21920_v18 = vsel %vm25172_vm7, 1, %v24737_v53  ;;  %vm25174_vm0 = vmmov %vm25173_vm3  ;;  %vm25179_vm11 = vcmp.eq.s32.totalorder %v25059_v44, 2  ;;  %vm25180_vm10 = vcmp.eq.f32.partialorder %v25119_v58, %v25076_v6  ;;  %v25181_v16 = vmov 0 }
 0x52b   :  { %v10868_v34 = vsel %vm25174_vm0, %v21509_v4, 0  ;;  %vm21931_vm12 = vmand %vm25176_vm2, %vm25175_vm4  ;;  %vm25184_vm3 = vnez %v25183_v38  ;;  %v25185_v4 = vld [vmem:[#allocation81_spill] sm:$0xff]  ;;  %v10835_v44 = vrot.slane %v10834_v14, 1  ;;  %v10846_v51 = vrot.slane %v10845_v54, 2 }
 0x52c   :  { %v25178_v62 = vsel %vm21931_vm12, 4294967295, %v25177_v62  ;;  %vm21940_vm7 = vmand %vm25180_vm10, %vm25179_vm11  ;;  %vm25186_vm0 = vnez %v25185_v4  ;;  %v10867_v31 = vadd.s32 %v10866_v21, %v10865_v8  ;;  %vm25188_vm4 = vcmp.ge.s32.totalorder %v25075_v0, 1 }
 0x52d   :  { %v25182_v16 = vsel %vm21940_vm7, 4294967295, %v25181_v16  ;;  %vm25187_vm2 = vmor %vm25145_vm15, %vm25143_vm14  ;;  %vm25189_vm11 = vcmp.lt.f32.partialorder %v25134_v1, %v25076_v6  ;;  %v25190_v52 = vmov 0  ;;  %vm25192_vm5 = vcmp.eq.s32.totalorder %v25075_v0, 2 }
 0x52e   :  { %v21954_v15 = vsel %vm25187_vm2, 1, %v24737_v53  ;;  %vm21961_vm10 = vmand %vm25189_vm11, %vm25188_vm4  ;;  %vm25193_vm12 = vcmp.eq.f32.partialorder %v25134_v1, %v25076_v6  ;;  %v25194_v61 = vmov 0  ;;  %vm25197_vm14 = vnez %v25196_v13 }
 0x52f   :  { %v25191_v52 = vsel %vm21961_vm10, 4294967295, %v25190_v52  ;;  %vm21970_vm15 = vmand %vm25193_vm12, %vm25192_vm5  ;;  %vm25199_vm2 = vnez %v25198_v33  ;;  %v10857_v0 = vrot.slane %v10856_v49, 4  ;;  %vm25201_vm11 = vcmask 261120  }
 0x530   :  { %v25195_v61 = vsel %vm21970_vm15, 4294967295, %v25194_v61  ;;  %vm25200_vm4 = vmor %vm25158_vm13, %vm25157_vm9  ;;  %v10876_v8 = vsel %vm25201_vm11, %v21539_v25, 0  ;;  %vm25203_vm5 = vcmp.ge.s32.totalorder %v25082_v3, 1  ;;  %vm25204_vm7 = vcmp.lt.f32.partialorder %v19021_v32, %v25076_v6 }
 0x531   :  { %v21984_v23 = vsel %vm25200_vm4, 1, %v24737_v53  ;;  %vm25202_vm12 = vmmov %vm25201_vm11  ;;  %vm25207_vm9 = vcmp.eq.s32.totalorder %v25082_v3, 2  ;;  %vm25208_vm13 = vcmp.eq.f32.partialorder %v19021_v32, %v25076_v6  ;;  %vm25211_vm11 = vnez %v25067_v37 }
 0x532   :  { %v10877_v21 = vsel %vm25202_vm12, %v21547_v2, 0  ;;  %vm21995_vm10 = vmand %vm25204_vm7, %vm25203_vm5  ;;  %vm25212_vm12 = vnez %v25063_v24  ;;  %v10847_v7 = vadd.s32 %v10846_v51, %v10845_v54  ;;  %v10869_v3 = vadd.s32 %v10868_v34, %v10867_v31  ;;  %v25223_v54 = vld [vmem:[#allocation56_spill] sm:$0xff]  ;;  %v25225_v34 = vld [vmem:[#allocation3_spill] sm:$0xff] }
 0x533   :  { %v25206_v28 = vsel %vm21995_vm10, 4294967295, %v25205_v28  ;;  %vm22004_vm4 = vmand %vm25208_vm13, %vm25207_vm9  ;;  %vm25215_vm9 = vcmp.ge.s32.totalorder %v21653_v20, 1  ;;  %vm25216_vm13 = vcmp.lt.f32.partialorder %v19400_v39, %v25076_v6  ;;  %v25217_v11 = vmov 0 }
 0x534   :  { %vm25213_vm7 = vmor %vm25171_vm8, %vm25169_vm1  ;;  %vm25219_vm1 = vcmp.eq.s32.totalorder %v21653_v20, 2  ;;  %vm25220_vm8 = vcmp.eq.f32.partialorder %v19400_v39, %v25076_v6  ;;  %v25221_v42 = vmov 0  ;;  %v22058_v20 = vadd.s32 %v10835_v44, %v10834_v14  ;;  %v25236_v14 = vld [vmem:[#allocation143_spill] sm:$0xff] }
 0x535   :  { %v22018_v25 = vsel %vm25213_vm7, 1, %v24737_v53  ;;  %vm25214_vm5 = vmor %vm25186_vm0, %vm25184_vm3  ;;  %vm25224_vm3 = vnez %v25223_v54  ;;  %vm25226_vm0 = vnez %v25225_v34  ;;  %v10858_v6 = vadd.s32 %v10857_v0, %v10856_v49  ;;  %v25238_v49 = vld [vmem:[#allocation128_spill] sm:$0xff] }
 0x536   :  { %v22026_v2 = vsel %vm25214_vm5, 1, %v24737_v53  ;;  %vm22033_vm15 = vmand %vm25216_vm13, %vm25215_vm9  ;;  %v10878_v4 = vadd.s32 %v10877_v21, %v10876_v8  ;;  %vm25228_vm13 = vcmp.ge.s32.totalorder %v25100_v48, 1  ;;  %v25230_v51 = vmov 0 }
 0x537   :  { %v25218_v11 = vsel %vm22033_vm15, 4294967295, %v25217_v11  ;;  %vm22042_vm7 = vmand %vm25220_vm8, %vm25219_vm1  ;;  %vm25229_vm1 = vcmp.lt.f32.partialorder %v25119_v58, %v25117_v59  ;;  %vm25232_vm5 = vcmp.eq.s32.totalorder %v25100_v48, 2  ;;  %v25234_v31 = vmov 0 }
 0x538   :  { %v25222_v42 = vsel %vm22042_vm7, 4294967295, %v25221_v42  ;;  %vm25227_vm9 = vmor %vm25199_vm2, %vm25197_vm14  ;;  %vm25233_vm14 = vcmp.eq.f32.partialorder %v25119_v58, %v25117_v59  ;;  %vm25239_vm15 = vnez %v25238_v49  ;;  %v10848_v44 = vrot.slane %v10847_v7, 1 }
 0x539   :  { %v22056_v38 = vsel %vm25227_vm9, 1, %v24737_v53  ;;  %vm22065_vm8 = vmand %vm25229_vm1, %vm25228_vm13  ;;  %vm25237_vm9 = vnez %v25236_v14  ;;  %v10870_v13 = vrot.slane %v10869_v3, 4  ;;  %vm25240_vm13 = vcmask 261120  }
 0x53a   :  { %v25231_v51 = vsel %vm22065_vm8, 4294967295, %v25230_v51  ;;  %vm22074_vm2 = vmand %vm25233_vm14, %vm25232_vm5  ;;  %v10879_v33 = vsel %vm25240_vm13, %v21561_v60, 0  ;;  %vm25242_vm8 = vcmp.ge.s32.totalorder %v25116_v22, 1  ;;  %vm25243_vm5 = vcmp.lt.f32.partialorder %v25134_v1, %v25117_v59 }
 0x53b   :  { %v25235_v31 = vsel %vm22074_vm2, 4294967295, %v25234_v31  ;;  %vm25241_vm1 = vmmov %vm25240_vm13  ;;  %v25244_v0 = vmov 0  ;;  %vm25246_vm2 = vcmp.eq.s32.totalorder %v25116_v22, 2  ;;  %vm25247_vm7 = vcmp.eq.f32.partialorder %v25134_v1, %v25117_v59 }
 0x53c   :  { %v10881_v48 = vsel %vm25241_vm1, %v21609_v50, 0  ;;  %vm22091_vm14 = vmand %vm25243_vm5, %vm25242_vm8  ;;  %v25248_v8 = vmov 0  ;;  %vm25250_vm13 = vnez %v25090_v17  ;;  %v10859_v50 = vrot.slane %v10858_v6, 2 }
 0x53d   :  { %v25245_v0 = vsel %vm22091_vm14, 4294967295, %v25244_v0  ;;  %vm22100_vm10 = vmand %vm25247_vm7, %vm25246_vm2  ;;  %v10880_v22 = vadd.s32 %v10879_v33, %v10878_v4  ;;  %vm25253_vm2 = vcmp.ge.s32.totalorder %v21527_v26, 1  ;;  %vm25254_vm5 = vcmp.lt.f32.partialorder %v19021_v32, %v25117_v59 }
 0x53e   :  { %v25249_v8 = vsel %vm22100_vm10, 4294967295, %v25248_v8  ;;  %vm25251_vm8 = vmor %vm25212_vm12, %vm25211_vm11  ;;  %vm25258_vm11 = vcmp.eq.f32.partialorder %v19021_v32, %v25117_v59  ;;  %v10871_v37 = vadd.s32 %v10870_v13, %v10869_v3  ;;  %vm25267_vm10 = vcmp.lt.f32.partialorder %v19400_v39, %v25117_v59 }
 0x53f   :  { %v22114_v60 = vsel %vm25251_vm8, 1, %v24737_v53  ;;  %vm25252_vm7 = vmmov %vm25241_vm1  ;;  %vm25257_vm1 = vcmp.eq.s32.totalorder %v21527_v26, 2  ;;  %vm25261_vm8 = vnez %v25108_v45  ;;  %v25268_v54 = vmov 0 }
 0x540   :  { %v10889_v21 = vsel %vm25252_vm7, %v21625_v5, 0  ;;  %vm22123_vm14 = vmand %vm25254_vm5, %vm25253_vm2  ;;  %vm25262_vm7 = vnez %v25104_v12  ;;  %vm25265_vm5 = vcmask 261120   ;;  %v25272_v34 = vmov 0 }
 0x541   :  { %vm22132_vm12 = vmand %vm25258_vm11, %vm25257_vm1  ;;  %v10890_v4 = vsel %vm25265_vm5, %v21633_v29, 0  ;;  %vm25266_vm11 = vcmp.ge.s32.totalorder %v21705_v63, 1  ;;  %v10882_v3 = vadd.s32 %v10881_v48, %v10880_v22  ;;  %v22192_v14 = vadd.s32 %v10848_v44, %v10847_v7  ;;  %v25297_v48 = vld [vmem:[#allocation11_spill] sm:$0xff] }
 0x542   :  { %vm25263_vm2 = vmor %vm25226_vm0, %vm25224_vm3  ;;  %vm25270_vm0 = vcmp.eq.s32.totalorder %v21705_v63, 2  ;;  %v10860_v63 = vadd.s32 %v10859_v50, %v10858_v6  ;;  %v10872_v49 = vrot.slane %v10871_v37, 2  ;;  %v10892_v13 = vsel %vm25265_vm5, %v21649_v57, 0 }
 0x543   :  { %v22146_v5 = vsel %vm25263_vm2, 1, %v24737_v53  ;;  %vm25264_vm1 = vmor %vm25239_vm15, %vm25237_vm9  ;;  %vm25271_vm15 = vcmp.eq.f32.partialorder %v19400_v39, %v25117_v59  ;;  %vm25274_vm2 = vnez %v25126_v46  ;;  %v10891_v59 = vadd.s32 %v10890_v4, %v10889_v21  ;;  %v25299_v21 = vld [vmem:[#allocation79_spill] sm:$0xff]  ;;  %v25302_v4 = vld [vmem:[#allocation33_spill] sm:$0xff] }
 0x544   :  { %v22154_v26 = vsel %vm25264_vm1, 1, %v24737_v53  ;;  %vm22163_vm3 = vmand %vm25267_vm10, %vm25266_vm11  ;;  %vm25275_vm1 = vnez %v25122_v27  ;;  %vm25277_vm11 = vnez %v25141_v56  ;;  %v10861_v7 = vrot.slane %v10860_v63, 1  ;;  %v25294_v56 = vld [vmem:[#allocation120_spill] sm:$0xff] }
 0x545   :  { %v25269_v54 = vsel %vm22163_vm3, 4294967295, %v25268_v54  ;;  %vm22172_vm9 = vmand %vm25271_vm15, %vm25270_vm0  ;;  %vm25278_vm0 = vnez %v25137_v10  ;;  %v10883_v6 = vrot.slane %v10882_v3, 4  ;;  %v10893_v44 = vadd.s32 %v10892_v13, %v10891_v59 }
 0x546   :  { %v25273_v34 = vsel %vm22172_vm9, 4294967295, %v25272_v34  ;;  %vm25276_vm10 = vmor %vm25250_vm13, %vm21737_vm6  ;;  %vm25280_vm6 = vnez %v25156_v35  ;;  %vm25281_vm13 = vnez %v25152_v47  ;;  %v25291_v35 = vld [vmem:[#allocation59_spill] sm:$0xff] }
 0x547   :  { %v22186_v29 = vsel %vm25276_vm10, 1, %v24737_v53  ;;  %vm25279_vm3 = vmmov %vm25265_vm5  ;;  %vm25283_vm5 = vnez %v25167_v40  ;;  %v25295_v40 = vld [vmem:[#allocation68_spill] sm:$0xff] }
 0x548   :  { %v10894_v17 = vsel %vm25279_vm3, %v21701_v55, 0  ;;  %vm10473_vm10 = vmor %vm25281_vm13, %vm25280_vm6  ;;  %vm25284_vm3 = vnez %v25163_v19  ;;  %v10873_v55 = vadd.s32 %v10872_v49, %v10871_v37  ;;  %vm25289_vm13 = vnez %v25178_v62 }
 0x549   :  { %vm25282_vm15 = vmor %vm25262_vm7, %vm25261_vm8  ;;  %vm25286_vm8 = vcmask 261120   ;;  %v22239_v27 = vsel %vm10473_vm10, 1, %v24737_v53  ;;  %v10895_v46 = vadd.s32 %v10894_v17, %v10893_v44  ;;  %vm25298_vm10 = vnez %v25206_v28  ;;  %v25309_v17 = vld [vmem:[#allocation32_spill] sm:$0xff] }
 0x54a   :  { %v22208_v36 = vsel %vm25282_vm15, 1, %v24737_v53  ;;  %vm10474_vm9 = vmor %vm25284_vm3, %vm25283_vm5  ;;  %v10907_v47 = vsel %vm25286_vm8, %v21717_v43, 0  ;;  %vm25288_vm15 = vnez %v25182_v16  ;;  %v10884_v43 = vadd.s32 %v10883_v6, %v10882_v3  ;;  %v25304_v3 = vld [vmem:[#allocation44_spill] sm:$0xff] }
 0x54b   :  { %vm25285_vm6 = vmor %vm25275_vm1, %vm25274_vm2  ;;  %vm9237_vm1 = vcmp.ge.s32.totalorder %v25291_v35, 1  ;;  %vm25292_vm3 = vnez %v25195_v61  ;;  %v10874_v10 = vrot.slane %v10873_v55, 1  ;;  %v10908_v19 = vadd.s32 %v10907_v47, %v25294_v56  ;;  %v25311_v47 = vld [vmem:[#allocation92_spill] sm:$0xff] }
 0x54c   :  { %v22220_v57 = vsel %vm25285_vm6, 1, %v24737_v53  ;;  %vm25287_vm7 = vmmov %vm25286_vm8  ;;  %vm25293_vm6 = vnez %v25191_v52  ;;  %v22257_v61 = vadd.s32 %v10861_v7, %v10860_v63  ;;  %v10885_v52 = vrot.slane %v10884_v43, 2 }
 0x54d   :  { %v10928_v12 = vsel %vm25287_vm7, %v21751_v9, 0  ;;  %vm10475_vm5 = vmor %vm25289_vm13, %vm25288_vm15  ;;  %v22247_v9 = vsel %vm10474_vm9, 1, %v24737_v53  ;;  %v10896_v50 = vrot.slane %v10895_v46, 4  ;;  %vm9269_vm9 = vcmp.ge.s32.totalorder %v25299_v21, 1 }
 0x54e   :  { %vm25290_vm2 = vmor %vm25278_vm0, %vm25277_vm11  ;;  %vm9238_vm0 = vcmp.ge.s32.totalorder %v25297_v48, 1  ;;  %v22270_v28 = vsel %vm10475_vm5, 1, %v24737_v53  ;;  %v10909_v37 = vrot.slane %v10908_v19, 4  ;;  %v10886_v16 = vadd.s32 %v10885_v52, %v10884_v43 }
 0x54f   :  { %v22236_v45 = vsel %vm25290_vm2, 1, %v24737_v53  ;;  %vm10476_vm8 = vmor %vm25293_vm6, %vm25292_vm3  ;;  %vm25300_vm2 = vnez %v25222_v42  ;;  %vm25301_vm3 = vnez %v25218_v11  ;;  %v10897_v11 = vadd.s32 %v10896_v50, %v10895_v46 }
 0x550   :  { %vm25296_vm11 = vmmov %vm25287_vm7  ;;  %v22273_v41 = vsel %vm10476_vm8, 1, %v24737_v53  ;;  %vm25307_vm15 = vnez %v25249_v8  ;;  %vm25308_vm13 = vnez %v25245_v0  ;;  %v22292_v49 = vadd.s32 %v10874_v10, %v10873_v55 }
 0x551   :  { %v10929_v33 = vsel %vm25296_vm11, %v25295_v40, 0  ;;  %vm10477_vm7 = vmor %vm25298_vm10, %vm22004_vm4  ;;  %vm25305_vm10 = vnez %v25235_v31  ;;  %v10910_v13 = vadd.s32 %v10909_v37, %v10908_v19  ;;  %v10887_v6 = vrot.slane %v10886_v16, 1 }
 0x552   :  { %v10930_v22 = vadd.s32 %v10929_v33, %v10928_v12  ;;  %vm10478_vm6 = vmor %vm25301_vm3, %vm25300_vm2  ;;  %vm25306_vm2 = vnez %v25231_v51  ;;  %v22283_v62 = vsel %vm10477_vm7, 1, %v24737_v53  ;;  %v10898_v44 = vrot.slane %v10897_v11, 2 }
 0x553   :  { %vm25303_vm4 = vmmov %vm25296_vm11  ;;  %v22290_v59 = vsel %vm10478_vm6, 1, %v24737_v53  ;;  %vm9236_vm6 = vcmp.ge.s32.totalorder %v25311_v47, 1  ;;  %v10911_v55 = vrot.slane %v10910_v13, 2  ;;  %v22333_v10 = vadd.s32 %v10887_v6, %v10886_v16 }
 0x554   :  { %v10931_v63 = vsel %vm25303_vm4, %v25302_v4, 0  ;;  %vm10479_vm3 = vmor %vm25306_vm2, %vm25305_vm10  ;;  %v10941_v0 = vsel %vm25303_vm4, %v21890_v30, 0  ;;  %vm9877_vm10 = vcmp.eq.s32.totalorder %v25291_v35, 2  ;;  %v25330_v16 = vmov 0 }
 0x555   :  { %v10932_v42 = vadd.s32 %v10931_v63, %v10930_v22  ;;  %vm10480_vm5 = vmor %vm25308_vm13, %vm25307_vm15  ;;  %vm25312_vm15 = vnez %v25273_v34  ;;  %vm25313_vm13 = vnez %v25269_v54  ;;  %v22313_v58 = vsel %vm10479_vm3, 1, %v24737_v53 }
 0x556   :  { %vm25310_vm8 = vmmov %vm25303_vm4  ;;  %v22316_v24 = vsel %vm10480_vm5, 1, %v24737_v53  ;;  %v10899_v34 = vadd.s32 %v10898_v44, %v10897_v11  ;;  %v10912_v43 = vadd.s32 %v10911_v55, %v10910_v13  ;;  %vm9878_vm3 = vcmp.eq.s32.totalorder %v25297_v48, 2 }
 0x557   :  { %v10933_v7 = vsel %vm25310_vm8, %v25309_v17, 0  ;;  %vm10481_vm7 = vmor %vm22123_vm14, %vm22132_vm12  ;;  %vm9876_vm12 = vcmp.eq.s32.totalorder %v25311_v47, 2  ;;  %v25359_v48 = vmov 0 }
 0x558   :  { %v10934_v8 = vadd.s32 %v10933_v7, %v10932_v42  ;;  %vm10482_vm11 = vmor %vm25313_vm13, %vm25312_vm15  ;;  %v22322_v54 = vsel %vm10481_vm7, 1, %v24737_v53  ;;  %v10900_v56 = vrot.slane %v10899_v34, 1  ;;  %v10913_v37 = vrot.slane %v10912_v43, 1 }
 0x559   :  { %vm25314_vm14 = vmmov %vm25303_vm4  ;;  %v22328_v31 = vsel %vm10482_vm11, 1, %v24737_v53 }
 0x55a   :  { %v10942_v30 = vsel %vm25314_vm14, %v21920_v18, 0  ;;  %v10935_v12 = vrot.slane %v10934_v8, 4  ;;  %vm25315_vm8 = vmmov %vm25303_vm4 }
 0x55b   :  { %v10944_v51 = vsel %vm25315_vm8, %v21954_v15, 0  ;;  %v10943_v46 = vadd.s32 %v10942_v30, %v10941_v0  ;;  %vm25316_vm2 = vmmov %vm25303_vm4  ;;  %v25318_v15 = vld [vmem:[#allocation104_spill] sm:$0xff]  ;;  %vm9909_vm4 = vcmp.eq.s32.totalorder %v25299_v21, 2  ;;  %v22393_v30 = vadd.s32 %v10913_v37, %v10912_v43 }
 0x55c   :  { %v10954_v18 = vsel %vm25316_vm2, %v22018_v25, 0  ;;  %v10936_v19 = vadd.s32 %v10935_v12, %v10934_v8  ;;  %vm25317_vm5 = vmmov %vm25316_vm2  ;;  %vm25319_vm11 = vcmp.lt.f32.partialorder %v19021_v32, %v25318_v15  ;;  %vm25324_vm14 = vcmp.lt.f32.partialorder %v19400_v39, %v25318_v15 }
 0x55d   :  { %v10955_v40 = vsel %vm25317_vm5, %v22026_v2, 0  ;;  %vm22342_vm7 = vmand %vm25319_vm11, %vm9237_vm1  ;;  %v10945_v25 = vadd.s32 %v10944_v51, %v10943_v46  ;;  %v25325_v2 = vmov 0 }
 0x55e   :  { %vm25322_vm15 = vmmov %vm25316_vm2  ;;  %v10956_v50 = vadd.s32 %v10955_v40, %v10954_v18  ;;  %v10937_v4 = vrot.slane %v10936_v19, 2 }
 0x55f   :  { %v10946_v52 = vsel %vm25322_vm15, %v21984_v23, 0  ;;  %vm25323_vm13 = vmmov %vm25316_vm2  ;;  %v10967_v23 = vsel %vm25316_vm2, %v22146_v5, 0  ;;  %v25335_v5 = vmov 0 }
 0x560   :  { %v10957_v22 = vsel %vm25323_vm13, %v22056_v38, 0  ;;  %vm22356_vm8 = vmand %vm25324_vm14, %vm9238_vm0  ;;  %v25328_v38 = vld [vmem:[#allocation8_spill] sm:$0xff]  ;;  %v10947_v11 = vadd.s32 %v10946_v52, %v10945_v25  ;;  %vm25333_vm13 = vcmp.ge.s32.totalorder %v25304_v3, 1  ;;  %v10938_v7 = vadd.s32 %v10937_v4, %v10936_v19 }
 0x561   :  { %v25326_v2 = vsel %vm22356_vm8, 4294967295, %v25325_v2  ;;  %vm25327_vm5 = vmmov %vm25316_vm2  ;;  %vm25329_vm11 = vcmp.lt.f32.partialorder %v19021_v32, %v25328_v38  ;;  %v10958_v42 = vadd.s32 %v10957_v22, %v10956_v50  ;;  %vm25334_vm14 = vcmp.lt.f32.partialorder %v19400_v39, %v25328_v38 }
 0x562   :  { %v10968_v63 = vsel %vm25327_vm5, %v22154_v26, 0  ;;  %vm22370_vm15 = vmand %vm25329_vm11, %vm9269_vm9  ;;  %v22385_v26 = vadd.s32 %v10900_v56, %v10899_v34 }
 0x563   :  { %v25331_v16 = vsel %vm22370_vm15, 4294967295, %v25330_v16  ;;  %vm25332_vm0 = vmmov %vm25316_vm2  ;;  %v10969_v17 = vadd.s32 %v10968_v63, %v10967_v23 }
 0x564   :  { %v10959_v13 = vsel %vm25332_vm0, %v22114_v60, 0  ;;  %vm22381_vm2 = vmand %vm25334_vm14, %vm25333_vm13  ;;  %v10948_v60 = vrot.slane %v10947_v11, 4  ;;  %v10972_v12 = vsel %vm25332_vm0, %v22208_v36, 0  ;;  %vm25341_vm14 = vcmp.lt.f32.partialorder %v25134_v1, %v25318_v15 }
 0x565   :  { %v25336_v5 = vsel %vm22381_vm2, 4294967295, %v25335_v5  ;;  %vm25337_vm9 = vmmov %vm25332_vm0  ;;  %v10960_v8 = vadd.s32 %v10959_v13, %v10958_v42 }
 0x566   :  { %v10970_v6 = vsel %vm25337_vm9, %v22186_v29, 0  ;;  %vm25338_vm5 = vmmov %vm25332_vm0 }
 0x567   :  { %v10980_v44 = vsel %vm25338_vm5, %v22220_v57, 0  ;;  %v10971_v0 = vadd.s32 %v10970_v6, %v10969_v17  ;;  %vm25339_vm11 = vmmov %vm25332_vm0  ;;  %v10949_v57 = vadd.s32 %v10948_v60, %v10947_v11 }
 0x568   :  { %v10981_v55 = vsel %vm25339_vm11, %v22236_v45, 0  ;;  %vm25340_vm13 = vmmov %vm25332_vm0  ;;  %v10961_v45 = vrot.slane %v10960_v8, 4  ;;  %vm25345_vm11 = vcmp.eq.f32.partialorder %v25134_v1, %v25318_v15 }
 0x569   :  { %v10982_v34 = vadd.s32 %v10981_v55, %v10980_v44  ;;  %v10983_v51 = vsel %vm25340_vm13, %v22239_v27, 0  ;;  %vm22404_vm9 = vmand %vm25341_vm14, %vm9236_vm6  ;;  %v10973_v43 = vadd.s32 %v10972_v12, %v10971_v0  ;;  %v10939_v27 = vrot.slane %v10938_v7, 1  ;;  %v25367_v55 = vld [vmem:[#allocation21_spill] sm:$0xff]  ;;  %v25368_v12 = vld [vmem:[#allocation28_spill] sm:$0xff] }
 0x56a   :  { %vm25344_vm5 = vmmov %vm25332_vm0  ;;  %vm25350_vm14 = vcmp.eq.f32.partialorder %v19021_v32, %v25318_v15  ;;  %v10950_v47 = vrot.slane %v10949_v57, 2  ;;  %v10962_v40 = vadd.s32 %v10961_v45, %v10960_v8  ;;  %vm25384_vm2 = vcmp.eq.s32.totalorder %v25368_v12, 3 }
 0x56b   :  { %v10993_v46 = vsel %vm25344_vm5, %v22270_v28, 0  ;;  %vm22415_vm0 = vmand %vm25345_vm11, %vm9876_vm12  ;;  %v10984_v18 = vadd.s32 %v10983_v51, %v10982_v34  ;;  %v10974_v25 = vrot.slane %v10973_v43, 4  ;;  %vm25353_vm12 = vcmp.eq.f32.partialorder %v19400_v39, %v25318_v15  ;;  %v25369_v34 = vld [vmem:[#allocation12_spill] sm:$0xff]  ;;  %v25370_v51 = vld [vmem:[#allocation63_spill] sm:$0xff] }
 0x56c   :  { %vm25348_vm6 = vmmov %vm25344_vm5  ;;  %v10951_v37 = vadd.s32 %v10950_v47, %v10949_v57  ;;  %v10963_v4 = vrot.slane %v10962_v40, 2  ;;  %vm25386_vm15 = vcmp.eq.s32.totalorder %v25369_v34, 3 }
 0x56d   :  { %v10985_v56 = vsel %vm25348_vm6, %v22247_v9, 0  ;;  %vm25349_vm13 = vmmov %vm25344_vm5  ;;  %v25354_v9 = vmov 0  ;;  %v10975_v23 = vadd.s32 %v10974_v25, %v10973_v43  ;;  %v25374_v25 = vld [vmem:[#allocation6_spill] sm:$0xff] }
 0x56e   :  { %v10994_v19 = vsel %vm25349_vm13, %v22273_v41, 0  ;;  %vm22428_vm5 = vmand %vm25350_vm14, %vm9877_vm10  ;;  %v10986_v35 = vadd.s32 %v10985_v56, %v10984_v18  ;;  %v10996_v41 = vsel %vm25348_vm6, %v22283_v62, 0  ;;  %vm25358_vm14 = vcmp.eq.f32.partialorder %v19021_v32, %v25328_v38  ;;  %v25372_v56 = vld [vmem:[#allocation43_spill] sm:$0xff] }
 0x56f   :  { %v10995_v52 = vadd.s32 %v10994_v19, %v10993_v46  ;;  %vm22437_vm11 = vmand %vm25353_vm12, %vm9878_vm3  ;;  %vm25361_vm3 = vcmp.eq.s32.totalorder %v25304_v3, 2  ;;  %vm25362_vm12 = vcmp.eq.f32.partialorder %v19400_v39, %v25328_v38  ;;  %v25363_v62 = vmov 0  ;;  %v25371_v46 = vld [vmem:[#allocation105_spill] sm:$0xff]  ;;  %v25373_v19 = vld [vmem:[#allocation88_spill] sm:$0xff] }
 0x570   :  { %v25355_v9 = vsel %vm22437_vm11, 4294967295, %v25354_v9  ;;  %vm25356_vm10 = vmmov %vm25348_vm6  ;;  %v10987_v21 = vrot.slane %v10986_v35, 4  ;;  %v10952_v42 = vrot.slane %v10951_v37, 1  ;;  %v10964_v13 = vadd.s32 %v10963_v4, %v10962_v40  ;;  %v25378_v4 = vld [vmem:[#allocation31_spill] sm:$0xff] }
 0x571   :  { %v11006_v50 = vsel %vm25356_vm10, %v22313_v58, 0  ;;  %vm25357_vm13 = vmmov %vm25348_vm6  ;;  %v10997_v63 = vadd.s32 %v10996_v41, %v10995_v52  ;;  %v10998_v58 = vsel %vm25356_vm10, %v22290_v59, 0  ;;  %v10976_v17 = vrot.slane %v10975_v23, 2  ;;  %v25375_v52 = vld [vmem:[#allocation26_spill] sm:$0xff] }
 0x572   :  { %v11007_v22 = vsel %vm25357_vm13, %v22316_v24, 0  ;;  %vm22452_vm1 = vmand %vm25358_vm14, %vm9909_vm4  ;;  %v22473_v3 = vadd.s32 %v10939_v27, %v10938_v7  ;;  %v10988_v38 = vadd.s32 %v10987_v21, %v10986_v35  ;;  %v10965_v60 = vrot.slane %v10964_v13, 1 }
 0x573   :  { %v25360_v48 = vsel %vm22452_vm1, 4294967295, %v25359_v48  ;;  %vm22461_vm6 = vmand %vm25362_vm12, %vm25361_vm3  ;;  %v11008_v24 = vadd.s32 %v11007_v22, %v11006_v50  ;;  %v10999_v6 = vadd.s32 %v10998_v58, %v10997_v63  ;;  %v10977_v8 = vadd.s32 %v10976_v17, %v10975_v23  ;;  %v25376_v50 = vld [vmem:[#allocation22_spill] sm:$0xff]  ;;  %v25377_v22 = vld [vmem:[#allocation52_spill] sm:$0xff] }
 0x574   :  { %v25364_v62 = vsel %vm22461_vm6, 4294967295, %v25363_v62  ;;  %vm25365_vm4 = vmmov %vm25356_vm10  ;;  %v22495_v57 = vadd.s32 %v10965_v60, %v10964_v13  ;;  %v25379_v23 = vld [vmem:[#allocation74_spill] sm:$0xff]  ;;  %v25380_v63 = vld [vmem:[#allocation77_spill] sm:$0xff]  ;;  %vm11050_vm12 = vcmp.eq.s32.totalorder %v22257_v61, 3  ;;  %vm11054_vm3 = vcmp.eq.s32.totalorder %v22393_v30, 3  ;;  %v22524_v13 = vpop.permute.xlu1 %8565 }
 0x575   :  { %v11009_v11 = vsel %vm25365_vm4, %v22322_v54, 0  ;;  %vm25366_vm14 = vmmov %vm25365_vm4  ;;  %v22481_v54 = vadd.s32 %v10952_v42, %v10951_v37  ;;  %v11000_v0 = vrot.slane %v10999_v6, 4  ;;  %v10978_v45 = vrot.slane %v10977_v8, 1 }
 0x576   :  { %v11010_v44 = vadd.s32 %v11009_v11, %v11008_v24  ;;  %v11011_v59 = vsel %vm25366_vm14, %v22328_v31, 0  ;;  %v10989_v31 = vrot.slane %v10988_v38, 2  ;;  %vm11058_vm13 = vcmp.eq.s32.totalorder %v22495_v57, 3 }
 0x577   :  { %v11001_v43 = vadd.s32 %v11000_v0, %v10999_v6  ;;  %v22504_v47 = vadd.s32 %v10978_v45, %v10977_v8  ;;  %v25381_v6 = vld [vmem:[#allocation40_spill] sm:$0xff]  ;;  %vm25382_vm4 = vcmp.eq.s32.totalorder %v25367_v55, 3  ;;  %vm25388_vm10 = vcmp.eq.s32.totalorder %v25370_v51, 3 }
 0x578   :  { %v11012_v7 = vadd.s32 %v11011_v59, %v11010_v44  ;;  %v10990_v27 = vadd.s32 %v10989_v31, %v10988_v38  ;;  %v11124_v38 = vsel %vm25382_vm4, %v25381_v6, 0.0  ;;  %v25383_v44 = vrot.slane %v25381_v6, 1 }
 0x579   :  { %v11002_v40 = vrot.slane %v11001_v43, 2  ;;  %v25385_v60 = vrot.slane %v25381_v6, 2  ;;  %v25387_v0 = vrot.slane %v25381_v6, 3  ;;  %v25389_v55 = vrot.slane %v25381_v6, 4 }
 0x57a   :  { %v11013_v18 = vrot.slane %v11012_v7, 4  ;;  %v10991_v35 = vrot.slane %v10990_v27, 1  ;;  %v11125_v59 = vsel %vm25384_vm2, %v25383_v44, 0.0  ;;  %vm25390_vm4 = vcmp.eq.s32.totalorder %v25371_v46, 3 }
 0x57b   :  { %v11003_v37 = vadd.s32 %v11002_v40, %v11001_v43  ;;  %v11126_v8 = vsel %vm25386_vm15, %v25385_v60, 0.0  ;;  %v11127_v31 = vsel %vm25388_vm10, %v25387_v0, 0.0  ;;  %v25391_v45 = vrot.slane %v25381_v6, 5 }
 0x57c   :  { %v11014_v41 = vadd.s32 %v11013_v18, %v11012_v7  ;;  %v10992_v21 = vadd.s32 %v10991_v35, %v10990_v27  ;;  %v11128_v7 = vsel %vm25390_vm4, %v25389_v55, 0.0  ;;  %vm25392_vm2 = vcmp.eq.s32.totalorder %v25372_v56, 3 }
 0x57d   :  { %v11004_v24 = vrot.slane %v11003_v37, 1  ;;  %v11129_v43 = vsel %vm25392_vm2, %v25391_v45, 0.0  ;;  %v25393_v34 = vrot.slane %v25381_v6, 6  ;;  %vm25394_vm15 = vcmp.eq.s32.totalorder %v25373_v19, 3 }
 0x57e   :  { %v11015_v58 = vrot.slane %v11014_v41, 2  ;;  %vm25395_vm10 = vcmp.eq.s32.totalorder %v25374_v25, 3  ;;  %v25396_v46 = vrot.slane %v25134_v1, 1  ;;  %vm25397_vm14 = vcmp.eq.s32.totalorder %v25375_v52, 3  ;;  %v25404_v52 = vld [vmem:[#allocation17_spill] sm:$0xff] }
 0x57f   :  { %v11005_v42 = vadd.s32 %v11004_v24, %v11003_v37  ;;  %v22553_v27 = vsel %vm25394_vm15, %v25393_v34, 0.0  ;;  %v11132_v51 = vsel %vm25395_vm10, %v25134_v1, 0.0  ;;  %v25398_v56 = vrot.slane %v25134_v1, 2  ;;  %v22590_v24 = vpop.permute.xlu1 %8717 }
 0x580   :  { %v11016_v11 = vadd.s32 %v11015_v58, %v11014_v41  ;;  %v11133_v18 = vsel %vm25397_vm14, %v25396_v46, 0.0  ;;  %vm25399_vm2 = vcmp.eq.s32.totalorder %v25376_v50, 3  ;;  %v25400_v40 = vrot.slane %v25134_v1, 3 }
 0x581   :  { %v11134_v19 = vsel %vm25399_vm2, %v25398_v56, 0.0  ;;  %vm25401_vm15 = vcmp.eq.s32.totalorder %v25377_v22, 3  ;;  %v25402_v35 = vrot.slane %v25134_v1, 4  ;;  %vm25403_vm10 = vcmp.eq.s32.totalorder %v25378_v4, 3 }
 0x582   :  { %v11017_v17 = vrot.slane %v11016_v11, 1  ;;  %v11135_v25 = vsel %vm25401_vm15, %v25400_v40, 0.0  ;;  %v25405_v50 = vrot.slane %v25134_v1, 5  ;;  %vm25406_vm2 = vcmp.eq.s32.totalorder %v25379_v23, 3 }
 0x583   :  { %v11136_v41 = vsel %vm25403_vm10, %v25402_v35, 0.0  ;;  %v25407_v22 = vrot.slane %v25134_v1, 6  ;;  %vm25408_vm15 = vcmp.eq.s32.totalorder %v25380_v63, 3  ;;  %vm25409_vm10 = vcmp.eq.s32.totalorder %v22058_v20, 3 }
 0x584   :  { %v11018_v12 = vadd.s32 %v11017_v17, %v11016_v11  ;;  %v11137_v37 = vsel %vm25406_vm2, %v25405_v50, 0.0  ;;  %v11140_v4 = vsel %vm25409_vm10, %v19021_v32, 0.0  ;;  %vm9875_vm1 = vcmp.eq.s32.totalorder %v25404_v52, 2  ;;  %v25430_v50 = vld [vmem:[#allocation125_spill] sm:$0xff] }
 0x585   :  { %v11138_v58 = vsel %vm25408_vm15, %v25407_v22, 0.0  ;;  %vm9302_vm4 = vcmp.ge.s32.totalorder %v22524_v13, 1  ;;  %v25410_v11 = vrot.slane %v19021_v32, 1  ;;  %vm25411_vm14 = vcmp.eq.s32.totalorder %v22192_v14, 3 }
 0x586   :  { %vm11062_vm6 = vcmp.eq.s32.totalorder %v11018_v12, 3  ;;  %v25412_v17 = vrot.slane %v19021_v32, 2  ;;  %v25413_v44 = vrot.slane %v19021_v32, 3  ;;  %vm25414_vm2 = vcmp.eq.s32.totalorder %v22292_v49, 3 }
 0x587   :  { %v11141_v23 = vsel %vm25411_vm14, %v25410_v11, 0.0  ;;  %v25415_v60 = vrot.slane %v19021_v32, 4  ;;  %vm25416_vm15 = vcmp.eq.s32.totalorder %v22333_v10, 3  ;;  %v25417_v55 = vrot.slane %v19021_v32, 5 }
 0x588   :  { %v11142_v63 = vsel %vm11050_vm12, %v25412_v17, 0.0  ;;  %v11143_v20 = vsel %vm25414_vm2, %v25413_v44, 0.0  ;;  %vm25418_vm10 = vcmp.eq.s32.totalorder %v22385_v26, 3  ;;  %v25419_v45 = vrot.slane %v19021_v32, 6 }
 0x589   :  { %v11144_v0 = vsel %vm25416_vm15, %v25415_v60, 0.0  ;;  %v11145_v14 = vsel %vm25418_vm10, %v25417_v55, 0.0  ;;  %vm25420_vm12 = vcmp.eq.s32.totalorder %v22473_v3, 3  ;;  %v25421_v34 = vrot.slane %v19400_v39, 1 }
 0x58a   :  { %v11146_v61 = vsel %vm11054_vm3, %v25419_v45, 0.0  ;;  %v11148_v49 = vsel %vm25420_vm12, %v19400_v39, 0.0  ;;  %vm25422_vm14 = vcmp.eq.s32.totalorder %v22481_v54, 3  ;;  %v25423_v46 = vrot.slane %v19400_v39, 2 }
 0x58b   :  { %v11149_v10 = vsel %vm25422_vm14, %v25421_v34, 0.0  ;;  %v25424_v56 = vrot.slane %v19400_v39, 3  ;;  %vm25425_vm2 = vcmp.eq.s32.totalorder %v22504_v47, 3  ;;  %v25426_v40 = vrot.slane %v19400_v39, 4 }
 0x58c   :  { %v11150_v26 = vsel %vm11058_vm13, %v25423_v46, 0.0  ;;  %vm25427_vm3 = vcmp.eq.s32.totalorder %v10992_v21, 3  ;;  %v25428_v35 = vrot.slane %v19400_v39, 5  ;;  %vm25429_vm15 = vcmp.eq.s32.totalorder %v11005_v42, 3 }
 0x58d   :  { %v11151_v30 = vsel %vm25425_vm2, %v25424_v56, 0.0  ;;  %v22636_v3 = vsel %vm25427_vm3, %v25426_v40, 0.0  ;;  %v25431_v57 = vrot.slane %v19400_v39, 6  ;;  %v11188_v21 = vrot.slane %v11125_v59, 7 }
 0x58e   :  { %v22641_v54 = vsel %vm25429_vm15, %v25428_v35, 0.0  ;;  %v11191_v22 = vrot.slane %v11126_v8, 6  ;;  %v11194_v11 = vrot.slane %v11127_v31, 5  ;;  %v11197_v17 = vrot.slane %v11128_v7, 4 }
 0x58f   :  { %v22650_v47 = vsel %vm11062_vm6, %v25431_v57, 0.0  ;;  %v11200_v44 = vrot.slane %v11129_v43, 3  ;;  %v11203_v42 = vrot.slane %v22553_v27, 2  ;;  %v11209_v60 = vrot.slane %v11133_v18, 7 }
 0x590   :  { %vm25432_vm14 = vcmask 1041409   ;;  %v11211_v45 = vrot.slane %v11134_v19, 6  ;;  %v11213_v34 = vrot.slane %v11135_v25, 5  ;;  %v11215_v46 = vrot.slane %v11136_v41, 4 }
 0x591   :  { %v11190_v55 = vsel %vm25432_vm14, %v11188_v21, %v11124_v38  ;;  %vm25433_vm2 = vcmask 1042434   ;;  %vm25434_vm3 = vmmov %vm25432_vm14  ;;  %v11217_v12 = vrot.slane %v11137_v37, 3  ;;  %v11219_v35 = vrot.slane %v11138_v58, 2 }
 0x592   :  { %v11193_v56 = vsel %vm25433_vm2, %v11191_v22, %v11190_v55  ;;  %v11210_v40 = vsel %vm25434_vm3, %v11209_v60, %v11132_v51  ;;  %vm25435_vm6 = vcmask 1043459   ;;  %vm25436_vm15 = vmmov %vm25433_vm2  ;;  %v11223_v31 = vrot.slane %v11141_v23, 7 }
 0x593   :  { %v11196_v59 = vsel %vm25435_vm6, %v11194_v11, %v11193_v56  ;;  %v11212_v8 = vsel %vm25436_vm15, %v11211_v45, %v11210_v40  ;;  %v11225_v7 = vrot.slane %v11142_v63, 6  ;;  %vm25437_vm12 = vcmask 1044484   ;;  %vm25438_vm10 = vmmov %vm25435_vm6  ;;  %v25492_v40 = vld [vmem:[#allocation72_spill] sm:$0xff] }
 0x594   :  { %v11199_v43 = vsel %vm25437_vm12, %v11197_v17, %v11196_v59  ;;  %v11214_v27 = vsel %vm25438_vm10, %v11213_v34, %v11212_v8  ;;  %v11227_v38 = vrot.slane %v11143_v20, 5  ;;  %v11229_v18 = vrot.slane %v11144_v0, 4  ;;  %vm25444_vm15 = vmmov %vm25437_vm12 }
 0x595   :  { %vm25439_vm14 = vcmp.ge.s32.totalorder %v25404_v52, 1  ;;  %vm25440_vm2 = vcmp.lt.f32.partialorder %v25381_v6, %v25318_v15  ;;  %vm25443_vm6 = vcmask 1045509   ;;  %v11216_v25 = vsel %vm25444_vm15, %v11215_v46, %v11214_v27 }
 0x596   :  { %vm22665_vm3 = vmand %vm25440_vm2, %vm25439_vm14  ;;  %v11202_v19 = vsel %vm25443_vm6, %v11200_v44, %v11199_v43  ;;  %vm25445_vm13 = vcmask 1041409   ;;  %v11231_v37 = vrot.slane %v11145_v14, 3  ;;  %vm25446_vm10 = vcmp.eq.f32.partialorder %v25381_v6, %v25318_v15  ;;  %v25454_v15 = vld [vmem:[#allocation117_spill] sm:$0xff] }
 0x597   :  { %v11224_v41 = vsel %vm25445_vm13, %v11223_v31, %v11140_v4  ;;  %vm22677_vm12 = vmand %vm25446_vm10, %vm9875_vm1  ;;  %vm25449_vm14 = vcmask 1046534   ;;  %v11233_v0 = vrot.slane %v11146_v61, 2  ;;  %vm25453_vm13 = vcmask 1043459   ;;  %v25495_v31 = vld [vmem:[#allocation57_spill] sm:$0xff] }
 0x598   :  { %v22682_v23 = vsel %vm25449_vm14, %v11203_v42, %v11202_v19  ;;  %vm25450_vm2 = vmmov %vm25443_vm6  ;;  %vm25451_vm6 = vcmask 1042434   ;;  %v11237_v14 = vrot.slane %v11149_v10, 7  ;;  %v11239_v57 = vrot.slane %v11150_v26, 6 }
 0x599   :  { %v11218_v63 = vsel %vm25450_vm2, %v11217_v12, %v11216_v25  ;;  %v11226_v20 = vsel %vm25451_vm6, %v11225_v7, %v11224_v41  ;;  %vm25452_vm15 = vmmov %vm25449_vm14  ;;  %vm25455_vm1 = vcmp.lt.f32.partialorder %v19400_v39, %v25454_v15  ;;  %vm25458_vm14 = vcmask 1044484  }
 0x59a   :  { %v22687_v4 = vsel %vm25452_vm15, %v11219_v35, %v11218_v63  ;;  %v11228_v52 = vsel %vm25453_vm13, %v11227_v38, %v11226_v20  ;;  %vm22695_vm10 = vmand %vm25455_vm1, %vm9302_vm4  ;;  %v11241_v11 = vrot.slane %v11151_v30, 5  ;;  %v11243_v61 = vrot.slane %v22636_v3, 4  ;;  %v25493_v35 = vld [vmem:[#allocation19_spill] sm:$0xff] }
 0x59b   :  { %v11230_v22 = vsel %vm25458_vm14, %v11229_v18, %v11228_v52  ;;  %v11245_v17 = vrot.slane %v22641_v54, 3  ;;  %vm10387_vm2 = vmor %vm22665_vm3, %vm22677_vm12  ;;  %vm25459_vm6 = vcmask 1045509   ;;  %vm25460_vm15 = vcmask 1041409  }
 0x59c   :  { %v11232_v10 = vsel %vm25459_vm6, %v11231_v37, %v11230_v22  ;;  %v11238_v26 = vsel %vm25460_vm15, %v11237_v14, %v11148_v49  ;;  %v11247_v44 = vrot.slane %v22650_v47, 2  ;;  %vm25461_vm4 = vcmp.ge.s32.totalorder %v22590_v24, 1 }
 0x59d   :  { %vm25462_vm13 = vcmp.lt.f32.partialorder %v19400_v39, %v25430_v50  ;;  %vm9814_vm14 = vcmp.eq.f32.partialorder %v19400_v39, %v25454_v15  ;;  %vm25465_vm11 = vcmask 1046534   ;;  %vm25466_vm3 = vcmask 1042434  }
 0x59e   :  { %vm22714_vm1 = vmand %vm25462_vm13, %vm25461_vm4  ;;  %v22721_v3 = vsel %vm25465_vm11, %v11233_v0, %v11232_v10  ;;  %v11240_v54 = vsel %vm25466_vm3, %v11239_v57, %v11238_v26  ;;  %vm9846_vm12 = vcmp.eq.f32.partialorder %v19400_v39, %v25430_v50  ;;  %vm9974_vm6 = vcmp.eq.s32.totalorder %v22590_v24, 2 }
 0x59f   :  { %vm25467_vm15 = vcmp.eq.s32.totalorder %v22524_v13, 2  ;;  %vm25468_vm4 = vcmask 1043459   ;;  %vm22730_vm13 = vmand %vm9846_vm12, %vm9974_vm6  ;;  %v10515_v42 = vsel %vm10387_vm2, 1, %v24737_v53  ;;  %vm25473_vm3 = vcmask 1044484  }
 0x5a0   :  { %vm10326_vm8 = vmand %vm9814_vm14, %vm25467_vm15  ;;  %v11242_v49 = vsel %vm25468_vm4, %v11241_v11, %v11240_v54  ;;  %vm25474_vm2 = vnez %v25326_v2  ;;  %vm25475_vm6 = vnez %v25355_v9  ;;  %v11070_v26 = vrot.slane %v25381_v6, 7 }
 0x5a1   :  { %vm25471_vm11 = vmor %vm22404_vm9, %vm22415_vm0  ;;  %v11244_v24 = vsel %vm25473_vm3, %v11243_v61, %v11242_v49  ;;  %vm25477_vm9 = vnez %v25331_v16  ;;  %vm25478_vm0 = vnez %v25360_v48  ;;  %v11091_v49 = vrot.slane %v19400_v39, 7 }
 0x5a2   :  { %v10516_v50 = vsel %vm25471_vm11, 1, %v24737_v53  ;;  %vm25472_vm14 = vmor %vm22342_vm7, %vm22428_vm5  ;;  %vm25480_vm7 = vnez %v25336_v5  ;;  %vm25481_vm5 = vnez %v25364_v62  ;;  %v11077_v47 = vrot.slane %v25134_v1, 7 }
 0x5a3   :  { %v10517_v13 = vsel %vm25472_vm14, 1, %v24737_v53  ;;  %vm10454_vm12 = vmor %vm22695_vm10, %vm10326_vm8  ;;  %vm25483_vm10 = vcmask 1045509   ;;  %vm25484_vm14 = vcmask 261120  }
 0x5a4   :  { %vm25476_vm15 = vmor %vm25474_vm2, %vm25475_vm6  ;;  %v11246_v2 = vsel %vm25483_vm10, %v11245_v17, %v11244_v24  ;;  %v10582_v16 = vsel %vm10454_vm12, 1, %v24737_v53  ;;  %v10707_v28 = vsel %vm25484_vm14, %v10515_v42, 0  ;;  %vm25486_vm2 = vcmask 1046534  }
 0x5a5   :  { %v10518_v29 = vsel %vm25476_vm15, 1, %v24737_v53  ;;  %vm25479_vm4 = vmor %vm25477_vm9, %vm25478_vm0  ;;  %v11248_v48 = vsel %vm25486_vm2, %v11247_v44, %v11246_v2  ;;  %v11084_v44 = vrot.slane %v19021_v32, 7  ;;  %vm11294_vm2 = vcmask 257024  }
 0x5a6   :  { %v10549_v33 = vsel %vm25479_vm4, 1, %v24737_v53  ;;  %vm25482_vm8 = vmor %vm25480_vm7, %vm25481_vm5  ;;  %vm11207_vm4 = vcmask 1047559  }
 0x5a7   :  { %v10550_v36 = vsel %vm25482_vm8, 1, %v24737_v53  ;;  %vm10486_vm11 = vmor %vm22714_vm1, %vm22730_vm13 }
 0x5a8   :  { %vm25485_vm3 = vmmov %vm25484_vm14  ;;  %v10614_v5 = vsel %vm10486_vm11, 1, %v24737_v53 }
 0x5a9   :  { %v10708_v9 = vsel %vm25485_vm3, %v10516_v50, 0  ;;  %vm25487_vm6 = vmmov %vm25485_vm3 }
 0x5aa   :  { %v10709_v62 = vadd.s32 %v10708_v9, %v10707_v28  ;;  %v10710_v60 = vsel %vm25487_vm6, %v10517_v13, 0  ;;  %vm25488_vm15 = vmmov %vm25485_vm3  ;;  %vm25500_vm6 = vcmask 1041409  }
 0x5ab   :  { %v10712_v55 = vsel %vm25488_vm15, %v10518_v29, 0  ;;  %vm25489_vm9 = vmmov %vm25485_vm3  ;;  %vm25501_vm15 = vcmask 1042434  }
 0x5ac   :  { %v10814_v45 = vsel %vm25489_vm9, %v10549_v33, 0  ;;  %vm25490_vm0 = vmmov %vm25485_vm3  ;;  %v10711_v56 = vadd.s32 %v10710_v60, %v10709_v62  ;;  %vm25502_vm9 = vcmask 1043459  }
 0x5ad   :  { %v10816_v34 = vsel %vm25490_vm0, %v10550_v36, 0  ;;  %vm25491_vm1 = vmmov %vm25490_vm0  ;;  %v10815_v12 = vadd.s32 %v10814_v45, %v25492_v40 }
 0x5ae   :  { %v10920_v46 = vsel %vm25491_vm1, %v10582_v16, 0  ;;  %vm25494_vm13 = vmmov %vm25490_vm0  ;;  %v10713_v7 = vadd.s32 %v10712_v55, %v10711_v56 }
 0x5af   :  { %v10921_v59 = vadd.s32 %v10920_v46, %v25493_v35  ;;  %v11024_v8 = vsel %vm25494_vm13, %v10614_v5, 0  ;;  %v10817_v43 = vadd.s32 %v10816_v34, %v10815_v12  ;;  %vm25496_vm10 = vmmov %vm25490_vm0 }
 0x5b0   :  { %v11025_v53 = vadd.s32 %v11024_v8, %v25495_v31  ;;  %v10714_v18 = vrot.slane %v10713_v7, 4  ;;  %vm25497_vm11 = vmmov %vm25490_vm0 }
 0x5b1   :  { %v10922_v27 = vrot.slane %v10921_v59, 4  ;;  %v10818_v51 = vrot.slane %v10817_v43, 4  ;;  %vm25498_vm14 = vmmov %vm25490_vm0 }
 0x5b2   :  { %v11026_v38 = vrot.slane %v11025_v53, 4  ;;  %v10715_v41 = vadd.s32 %v10714_v18, %v10713_v7  ;;  %vm25499_vm3 = vmmov %vm25490_vm0 }
 0x5b3   :  { %v10923_v19 = vadd.s32 %v10922_v27, %v10921_v59  ;;  %v10819_v37 = vadd.s32 %v10818_v51, %v10817_v43 }
 0x5b4   :  { %v11027_v25 = vadd.s32 %v11026_v38, %v11025_v53  ;;  %v10716_v20 = vrot.slane %v10715_v41, 2 }
 0x5b5   :  { %v10924_v58 = vrot.slane %v10923_v19, 2  ;;  %v10820_v0 = vrot.slane %v10819_v37, 2 }
 0x5b6   :  { %v11028_v63 = vrot.slane %v11027_v25, 2  ;;  %v10717_v57 = vadd.s32 %v10716_v20, %v10715_v41 }
 0x5b7   :  { %v10925_v52 = vadd.s32 %v10924_v58, %v10923_v19  ;;  %v10821_v15 = vadd.s32 %v10820_v0, %v10819_v37 }
 0x5b8   :  { %v11029_v14 = vadd.s32 %v11028_v63, %v11027_v25  ;;  %v10718_v11 = vrot.slane %v10717_v57, 1 }
 0x5b9   :  { %v10926_v21 = vrot.slane %v10925_v52, 1  ;;  %v10822_v61 = vrot.slane %v10821_v15, 1 }
 0x5ba   :  { %v11030_v22 = vrot.slane %v11029_v14, 1  ;;  %v10719_v30 = vadd.s32 %v10718_v11, %v10717_v57 }
 0x5bb   :  { %v10927_v17 = vadd.s32 %v10926_v21, %v10925_v52  ;;  %v10823_v54 = vadd.s32 %v10822_v61, %v10821_v15 }
 0x5bc   :  { %v11031_v10 = vadd.s32 %v11030_v22, %v11029_v14  ;;  %vm11039_vm5 = vcmp.eq.s32.totalorder %v10719_v30, 3 }
 0x5bd   :  { %vm11055_vm12 = vcmp.eq.s32.totalorder %v10927_v17, 3  ;;  %vm11047_vm8 = vcmp.eq.s32.totalorder %v10823_v54, 3  ;;  %v11131_v24 = vsel %vm11039_vm5, %v11070_v26, 0.0 }
 0x5be   :  { %vm11063_vm7 = vcmp.eq.s32.totalorder %v11031_v10, 3  ;;  %v11147_v42 = vsel %vm11055_vm12, %v11084_v44, 0.0  ;;  %v11139_v29 = vsel %vm11047_vm8, %v11077_v47, 0.0  ;;  %v11206_v6 = vrot.slane %v11131_v24, 1 }
 0x5bf   :  { %v11155_v50 = vsel %vm11063_vm7, %v11091_v49, 0.0  ;;  %v11235_v13 = vrot.slane %v11147_v42, 1  ;;  %v11221_v36 = vrot.slane %v11139_v29, 1 }
 0x5c0   :  { %v11249_v33 = vrot.slane %v11155_v50, 1  ;;  %v11208_v1 = vsel %vm11207_vm4, %v11206_v6, %v22682_v23 }
 0x5c1   :  { %v11236_v32 = vsel %vm11207_vm4, %v11235_v13, %v22721_v3  ;;  %v11222_v16 = vsel %vm11207_vm4, %v11221_v36, %v22687_v4  ;;  %v11255_v5 = vsel %vm25498_vm14, %v11208_v1, 0.0 }
 0x5c2   :  { %v11250_v2 = vsel %vm11207_vm4, %v11249_v33, %v11248_v48  ;;  %v11269_v39 = vsel %vm25496_vm10, %v11236_v32, 0.0  ;;  %v11262_v62 = vsel %vm25499_vm3, %v11222_v16, 0.0  ;;  %v11256_v55 = vrot.slane %v11255_v5, 4 }
 0x5c3   :  { %v11270_v28 = vrot.slane %v11269_v39, 4  ;;  %v11276_v9 = vsel %vm25497_vm11, %v11250_v2, 0.0  ;;  %v11263_v3 = vrot.slane %v11262_v62, 4 }
 0x5c4   :  { %v11277_v60 = vrot.slane %v11276_v9, 4  ;;  %v11257_v34 = vadd.f32 %v11256_v55, %v11255_v5 }
 0x5c5   :  { %v11271_v45 = vadd.f32 %v11270_v28, %v11269_v39  ;;  %v11264_v46 = vadd.f32 %v11263_v3, %v11262_v62 }
 0x5c6   :  { %v11278_v48 = vadd.f32 %v11277_v60, %v11276_v9  ;;  %v11258_v23 = vrot.slane %v11257_v34, 2 }
 0x5c7   :  { %v11272_v56 = vrot.slane %v11271_v45, 2  ;;  %v11265_v12 = vrot.slane %v11264_v46, 2 }
 0x5c8   :  { %v11279_v40 = vrot.slane %v11278_v48, 2  ;;  %v11259_v59 = vadd.f32 %v11258_v23, %v11257_v34 }
 0x5c9   :  { %v11273_v35 = vadd.f32 %v11272_v56, %v11271_v45  ;;  %v11266_v8 = vadd.f32 %v11265_v12, %v11264_v46 }
 0x5ca   :  { %v11280_v4 = vadd.f32 %v11279_v40, %v11278_v48  ;;  %v11260_v7 = vrot.slane %v11259_v59, 1 }
 0x5cb   :  { %v11274_v31 = vrot.slane %v11273_v35, 1  ;;  %v11267_v43 = vrot.slane %v11266_v8, 1 }
 0x5cc   :  { %v11281_v53 = vrot.slane %v11280_v4, 1  ;;  %v11261_v19 = vadd.f32 %v11260_v7, %v11259_v59 }
 0x5cd   :  { %v11275_v27 = vadd.f32 %v11274_v31, %v11273_v35  ;;  %v11268_v18 = vadd.f32 %v11267_v43, %v11266_v8 }
 0x5ce   :  { %v11282_v38 = vadd.f32 %v11281_v53, %v11280_v4 }
 0x5cf   :  { %v11289_v51 = vrot.slane %v11275_v27, 6  ;;  %v11287_v25 = vrot.slane %v11268_v18, 7 }
 0x5d0   :  { %v11291_v41 = vrot.slane %v11282_v38, 5 }
 0x5d1   :  { %v11288_v37 = vsel %vm25500_vm6, %v11287_v25, %v11261_v19 }
 0x5d2   :  { %v11290_v58 = vsel %vm25501_vm15, %v11289_v51, %v11288_v37 }
 0x5d3   :  { %v11292_v63 = vsel %vm25502_vm9, %v11291_v41, %v11290_v58 }
 0x5d4   :  { %11295 = vst.msk [vmem:[%s22812_s4] sm:$0xf] %vm11294_vm2, %v11292_v63 }

</bundles_post_ra>
